<compile_context>
chip_gen: v5e
topology: v5e:2x2
jax: 0.10.0
libtpu: 0.0.40
codegen_flags: <defaults>
</compile_context>

<pallas_src>
import functools

import jax
import jax.numpy as jnp
import numpy as np
from jax import lax
from jax.experimental import pallas as pl
from jax.experimental.pallas import tpu as pltpu

HIGHEST = jax.lax.Precision.HIGHEST


def _dot(a, b):
    return jnp.dot(a, b, preferred_element_type=jnp.float32, precision=HIGHEST)


def _dot_t(a, b):
    # a @ b.T without materializing a transpose: contract last dims of both.
    return lax.dot_general(a, b, (((1,), (1,)), ((), ())),
                           preferred_element_type=jnp.float32,
                           precision=HIGHEST)


def seq2seq_attn_kernel(
    ids_ref,       # SMEM (T,) int32          -- input token ids
    emb_ref,       # VMEM (V, H)              -- embedding table
    enc_wih_ref,   # VMEM (H, 4H)             -- encoder W_ih^T (gate order i,f,g,o)
    enc_whh_ref,   # VMEM (H, 4H)             -- encoder W_hh^T
    enc_b_ref,     # VMEM (1, 4H)             -- encoder b_ih + b_hh
    dec_wp_ref,    # VMEM (H, 4H)             -- decoder W_ih^T rows for `prev` half
    dec_wc_ref,    # VMEM (H, 4H)             -- decoder W_ih^T rows for context half
    dec_whh_ref,   # VMEM (H, 4H)             -- decoder W_hh^T
    dec_b_ref,     # VMEM (1, 4H)             -- decoder b_ih + b_hh
    wa_ref,        # VMEM (H, H)              -- multiplicative attention matrix
    wout_ref,      # VMEM (H, V)              -- output projection W^T
    bout_ref,      # VMEM (1, V)              -- output projection bias
    pred_ref,      # OUT  (T, V) f32          -- per-step logits
    enc_out_ref,   # SCRATCH VMEM (T, H)      -- encoder hidden states
    enc_in_ref,    # SCRATCH VMEM (V, 4H)     -- precomputed emb @ enc_wih table
    *, T, V, H):

    f32 = jnp.float32
    vocab_iota = lax.broadcasted_iota(jnp.int32, (1, V), 1)

    def lstm_cell(gates, c):
        i = jax.nn.sigmoid(gates[:, 0 * H:1 * H])
        f = jax.nn.sigmoid(gates[:, 1 * H:2 * H])
        g = jnp.tanh(gates[:, 2 * H:3 * H])
        o = jax.nn.sigmoid(gates[:, 3 * H:4 * H])
        c_new = f * c + i * g
        h_new = o * jnp.tanh(c_new)
        return h_new, c_new

    # ---- one-time tables (well-shaped MXU matmuls, off the serial chain) ----
    emb = emb_ref[...]                                         # (V, H)
    enc_in_ref[...] = _dot(emb, enc_wih_ref[...])              # (V, 4H)
    pw = _dot(jnp.maximum(emb, 0.0), dec_wp_ref[...])          # (V, 4H) relu(emb) @ dec_wp

    # ---- hoisted loop invariants (encoder) ----
    enc_whh = enc_whh_ref[...]
    enc_b = enc_b_ref[...]

    # ---------------- encoder LSTM over the input sequence ----------------
    # Fully unrolled (T is static == 10): one MXU matmul per step on the chain.
    zeros_h = jnp.zeros((1, H), f32)
    h, c = zeros_h, zeros_h
    for t in range(T):
        tok = ids_ref[t]
        xg = enc_in_ref[pl.ds(tok, 1), :]                      # (1, 4H) gathered row
        gates = xg + _dot(h, enc_whh) + enc_b                  # (1, 4H)
        h, c = lstm_cell(gates, c)
        enc_out_ref[pl.ds(t, 1), :] = h
    h_enc, c_enc = h, c

    enc_out = enc_out_ref[...]                                 # (T, H)

    # ---- decoder-invariant precomputes (associativity hoists) ----
    # ew[j,a] = sum_b wa[a,b] * enc_out[j,b]  => scores = h @ ew^T == (h@wa)@enc_out^T
    ew = _dot_t(enc_out, wa_ref[...])                          # (T, H)
    # ec = enc_out @ dec_wc => attn @ ec == (attn @ enc_out) @ dec_wc
    ec = _dot(enc_out, dec_wc_ref[...])                        # (T, 4H)

    dec_whh = dec_whh_ref[...]
    dec_b = dec_b_ref[...]
    wout = wout_ref[...]
    bout = bout_ref[...]

    # --------- greedy decoder with multiplicative attention (unrolled) ------
    h, c = h_enc, c_enc
    prev_gate = jnp.zeros((1, 4 * H), f32)                     # relu(prev)=0 at step 0
    for i in range(T):
        # attention scores + softmax
        scores = _dot_t(h, ew)                                 # (1, T)
        m = jnp.max(scores, axis=1, keepdims=True)
        e = jnp.exp(scores - m)
        attn = e * pl.reciprocal(jnp.sum(e, axis=1, keepdims=True))
        ctx_gate = _dot(attn, ec)                              # (1, 4H) context gate term

        # decoder LSTM on cat([relu(prev), context])
        gates = prev_gate + ctx_gate + _dot(h, dec_whh) + dec_b
        h, c = lstm_cell(gates, c)

        # output projection + per-step logits
        pred = _dot(h, wout) + bout                            # (1, V)
        pred_ref[pl.ds(i, 1), :] = pred

        # greedy argmax (first max index, like torch.max) -> feedback through
        # the precomputed relu(emb) @ dec_wp table (exact row select).
        pmax = jnp.max(pred, axis=1, keepdims=True)
        idx = jnp.min(jnp.where(pred == pmax, vocab_iota, V),
                      axis=1, keepdims=True)                   # (1, 1) int32
        onehot = (vocab_iota == idx).astype(f32)
        prev_gate = _dot(onehot, pw)                           # (1, 4H)


def make_forward(V, H, T):
    kernel = functools.partial(seq2seq_attn_kernel, T=T, V=V, H=H)

    @jax.jit
    def forward(ids, p):
        preds = pl.pallas_call(
            kernel,
            out_shape=jax.ShapeDtypeStruct((T, V), jnp.float32),
            in_specs=[pl.BlockSpec(memory_space=pltpu.SMEM)]
                     + [pl.BlockSpec(memory_space=pltpu.VMEM)] * 11,
            out_specs=pl.BlockSpec(memory_space=pltpu.VMEM),
            scratch_shapes=[pltpu.VMEM((T, H), jnp.float32),
                            pltpu.VMEM((V, 4 * H), jnp.float32)],
        )(ids, p["emb"], p["enc_wih"], p["enc_whh"], p["enc_b"],
          p["dec_wp"], p["dec_wc"], p["dec_whh"], p["dec_b"],
          p["wa"], p["wout"], p["bout"])
        predicted_seq = jnp.argmax(preds, axis=1)
        return preds, predicted_seq

    return forward


def init_params(key, V, H):
    ks = jax.random.split(key, 12)
    s = 1.0 / np.sqrt(H)

    def u(k, shape):
        return jax.random.uniform(k, shape, jnp.float32, -s, s)

    dec_wih = u(ks[5], (2 * H, 4 * H))   # decoder input size 2H (useAttn=True)
    return dict(
        emb=jax.random.normal(ks[0], (V, H), jnp.float32),
        enc_wih=u(ks[1], (H, 4 * H)),
        enc_whh=u(ks[2], (H, 4 * H)),
        enc_b=u(ks[3], (1, 4 * H)) + u(ks[4], (1, 4 * H)),
        dec_wp=dec_wih[:H, :],
        dec_wc=dec_wih[H:, :],
        dec_whh=u(ks[6], (H, 4 * H)),
        dec_b=u(ks[7], (1, 4 * H)) + u(ks[8], (1, 4 * H)),
        wa=jnp.full((H, H), 1e-5, jnp.float32),
        wout=u(ks[9], (H, V)),
        bout=u(ks[10], (1, V)),
    )


def reference(ids, p, V, H, T):
    """Pure-JAX replica of the PyTorch forward (useAttn/mul path)."""
    def dot(a, b):
        return jnp.dot(a, b, precision=HIGHEST)

    def lstm_cell(gates, c):
        i = jax.nn.sigmoid(gates[:, 0 * H:1 * H])
        f = jax.nn.sigmoid(gates[:, 1 * H:2 * H])
        g = jnp.tanh(gates[:, 2 * H:3 * H])
        o = jax.nn.sigmoid(gates[:, 3 * H:4 * H])
        c = f * c + i * g
        return o * jnp.tanh(c), c

    h = c = jnp.zeros((1, H), jnp.float32)
    enc_rows = []
    for t in range(T):
        x = p["emb"][ids[t]][None, :]
        gates = dot(x, p["enc_wih"]) + dot(h, p["enc_whh"]) + p["enc_b"]
        h, c = lstm_cell(gates, c)
        enc_rows.append(h)
    enc_out = jnp.concatenate(enc_rows, axis=0)                   # (T, H)

    prev = jnp.zeros((1, H), jnp.float32)
    preds, seq = [], []
    for _ in range(T):
        prev_r = jnp.maximum(prev, 0.0)
        scores = dot(dot(h, p["wa"]), enc_out.T)                  # (1, T)
        e = jnp.exp(scores - jnp.max(scores, axis=1, keepdims=True))
        attn = e / jnp.sum(e, axis=1, keepdims=True)
        ctx = dot(attn, enc_out)
        gates = (dot(prev_r, p["dec_wp"]) + dot(ctx, p["dec_wc"])
                 + dot(h, p["dec_whh"]) + p["dec_b"])
        h, c = lstm_cell(gates, c)
        pred = dot(h, p["wout"]) + p["bout"]
        idx = int(jnp.argmax(pred[0]))
        preds.append(pred[0])
        seq.append(idx)
        prev = p["emb"][idx][None, :]
    return jnp.stack(preds), jnp.array(seq, jnp.int32)


if __name__ == "__main__":
    V, H, T = 32, 32, 10        # T must be 10 (hard-coded in the module's attn)
    key = jax.random.PRNGKey(0)
    kp, ki = jax.random.split(key)
    params = init_params(kp, V, H)
    input_seq = jax.random.randint(ki, (T,), 0, V, dtype=jnp.int32)

    forward = make_forward(V, H, T)
    preds, predicted_seq = forward(input_seq, params)
    jax.block_until_ready(preds)

    ref_preds, ref_seq = reference(np.asarray(input_seq), params, V, H, T)
    np.testing.assert_allclose(np.asarray(preds), np.asarray(ref_preds),
                               rtol=5e-3, atol=5e-3)
    np.testing.assert_array_equal(np.asarray(predicted_seq), np.asarray(ref_seq))

    print("KERNEL_OK")
</pallas_src>

<mosaic_0001>
module attributes {stable_mosaic.version = 11 : i64} {
  func.func @seq2seq_attn_kernel(%arg0: memref<10xi32, #tpu.memory_space<smem>>, %arg1: memref<32x32xf32, #tpu.memory_space<vmem>>, %arg2: memref<32x128xf32, #tpu.memory_space<vmem>>, %arg3: memref<32x128xf32, #tpu.memory_space<vmem>>, %arg4: memref<1x128xf32, #tpu.memory_space<vmem>>, %arg5: memref<32x128xf32, #tpu.memory_space<vmem>>, %arg6: memref<32x128xf32, #tpu.memory_space<vmem>>, %arg7: memref<32x128xf32, #tpu.memory_space<vmem>>, %arg8: memref<1x128xf32, #tpu.memory_space<vmem>>, %arg9: memref<32x32xf32, #tpu.memory_space<vmem>>, %arg10: memref<32x32xf32, #tpu.memory_space<vmem>>, %arg11: memref<1x32xf32, #tpu.memory_space<vmem>>, %arg12: memref<10x32xf32, #tpu.memory_space<vmem>>, %arg13: memref<10x32xf32, #tpu.memory_space<vmem>>, %arg14: memref<32x128xf32, #tpu.memory_space<vmem>>) attributes {dimension_semantics = [], scalar_prefetch = 0 : i64, scratch_operands = 2 : i64, tpu.core_type = #tpu.core_type<tc>} {
    %0 = tpu.iota {dimensions = array<i32: 1>} : vector<1x32xi32>
    %c0 = arith.constant 0 : index
    %c0_0 = arith.constant 0 : index
    %1 = vector.load %arg1[%c0, %c0_0] : memref<32x32xf32, #tpu.memory_space<vmem>>, vector<32x32xf32>
    %c0_1 = arith.constant 0 : index
    %c0_2 = arith.constant 0 : index
    %2 = vector.load %arg2[%c0_1, %c0_2] : memref<32x128xf32, #tpu.memory_space<vmem>>, vector<32x128xf32>
    %cst = arith.constant dense<0.000000e+00> : vector<32x128xf32>
    %3 = tpu.matmul %1, %2, %cst {dimension_numbers = #tpu.dot_dimension_numbers<[1], [0], [0], [1], [0, 0, 1, 1], [], []>, precision = #tpu.contract_precision<fp32>} : vector<32x32xf32>, vector<32x128xf32>, vector<32x128xf32> -> vector<32x128xf32>
    %c0_3 = arith.constant 0 : index
    %c0_4 = arith.constant 0 : index
    %4 = vector.load %arg14[%c0_3, %c0_4] : memref<32x128xf32, #tpu.memory_space<vmem>>, vector<32x128xf32>
    tpu.vector_store %arg14[%c0_3, %c0_4], %3 {strides = array<i32>} : memref<32x128xf32, #tpu.memory_space<vmem>>, vector<32x128xf32>,
    %cst_5 = arith.constant 0.000000e+00 : f32
    %5 = vector.broadcast %cst_5 : f32 to vector<32x32xf32>
    %6 = arith.maximumf %1, %5 : vector<32x32xf32>
    %c0_6 = arith.constant 0 : index
    %c0_7 = arith.constant 0 : index
    %7 = vector.load %arg5[%c0_6, %c0_7] : memref<32x128xf32, #tpu.memory_space<vmem>>, vector<32x128xf32>
    %cst_8 = arith.constant dense<0.000000e+00> : vector<32x128xf32>
    %8 = tpu.matmul %6, %7, %cst_8 {dimension_numbers = #tpu.dot_dimension_numbers<[1], [0], [0], [1], [0, 0, 1, 1], [], []>, precision = #tpu.contract_precision<fp32>} : vector<32x32xf32>, vector<32x128xf32>, vector<32x128xf32> -> vector<32x128xf32>
    %c0_9 = arith.constant 0 : index
    %c0_10 = arith.constant 0 : index
    %9 = vector.load %arg3[%c0_9, %c0_10] : memref<32x128xf32, #tpu.memory_space<vmem>>, vector<32x128xf32>
    %c0_11 = arith.constant 0 : index
    %c0_12 = arith.constant 0 : index
    %10 = vector.load %arg4[%c0_11, %c0_12] : memref<1x128xf32, #tpu.memory_space<vmem>>, vector<1x128xf32>
    %cst_13 = arith.constant 0.000000e+00 : f32
    %11 = vector.broadcast %cst_13 : f32 to vector<1x32xf32>
    %c0_14 = arith.constant 0 : index
    %12 = memref.load %arg0[%c0_14] : memref<10xi32, #tpu.memory_space<smem>>
    %13 = arith.index_cast %12 : i32 to index
    %c0_15 = arith.constant 0 : index
    %14 = vector.load %arg14[%13, %c0_15] : memref<32x128xf32, #tpu.memory_space<vmem>>, vector<1x128xf32>
    %cst_16 = arith.constant dense<0.000000e+00> : vector<1x128xf32>
    %15 = tpu.matmul %11, %9, %cst_16 {dimension_numbers = #tpu.dot_dimension_numbers<[1], [0], [0], [1], [0, 0, 1, 1], [], []>, precision = #tpu.contract_precision<fp32>} : vector<1x32xf32>, vector<32x128xf32>, vector<1x128xf32> -> vector<1x128xf32>
    %16 = arith.addf %14, %15 : vector<1x128xf32>
    %17 = arith.addf %16, %10 : vector<1x128xf32>
    %18 = vector.extract_strided_slice %17 {offsets = [0, 0], sizes = [1, 32], strides = [1, 1]} : vector<1x128xf32> to vector<1x32xf32>
    %19 = arith.negf %18 : vector<1x32xf32>
    %20 = math.exp %19 : vector<1x32xf32>
    %cst_17 = arith.constant 1.000000e+00 : f32
    %21 = vector.broadcast %cst_17 : f32 to vector<1x32xf32>
    %22 = arith.addf %21, %20 : vector<1x32xf32>
    %23 = arith.divf %21, %22 : vector<1x32xf32>
    %24 = vector.extract_strided_slice %17 {offsets = [0, 32], sizes = [1, 32], strides = [1, 1]} : vector<1x128xf32> to vector<1x32xf32>
    %25 = arith.negf %24 : vector<1x32xf32>
    %26 = math.exp %25 : vector<1x32xf32>
    %cst_18 = arith.constant 1.000000e+00 : f32
    %27 = vector.broadcast %cst_18 : f32 to vector<1x32xf32>
    %28 = arith.addf %27, %26 : vector<1x32xf32>
    %29 = arith.divf %27, %28 : vector<1x32xf32>
    %30 = vector.extract_strided_slice %17 {offsets = [0, 64], sizes = [1, 32], strides = [1, 1]} : vector<1x128xf32> to vector<1x32xf32>
    %31 = math.tanh %30 : vector<1x32xf32>
    %32 = vector.extract_strided_slice %17 {offsets = [0, 96], sizes = [1, 32], strides = [1, 1]} : vector<1x128xf32> to vector<1x32xf32>
    %33 = arith.negf %32 : vector<1x32xf32>
    %34 = math.exp %33 : vector<1x32xf32>
    %cst_19 = arith.constant 1.000000e+00 : f32
    %35 = vector.broadcast %cst_19 : f32 to vector<1x32xf32>
    %36 = arith.addf %35, %34 : vector<1x32xf32>
    %37 = arith.divf %35, %36 : vector<1x32xf32>
    %38 = arith.mulf %29, %11 : vector<1x32xf32>
    %39 = arith.mulf %23, %31 : vector<1x32xf32>
    %40 = arith.addf %38, %39 : vector<1x32xf32>
    %41 = math.tanh %40 : vector<1x32xf32>
    %42 = arith.mulf %37, %41 : vector<1x32xf32>
    %c0_20 = arith.constant 0 : index
    %c0_21 = arith.constant 0 : index
    %43 = vector.load %arg13[%c0_20, %c0_21] : memref<10x32xf32, #tpu.memory_space<vmem>>, vector<1x32xf32>
    tpu.vector_store %arg13[%c0_20, %c0_21], %42 {strides = array<i32>} : memref<10x32xf32, #tpu.memory_space<vmem>>, vector<1x32xf32>,
    %c1 = arith.constant 1 : index
    %44 = memref.load %arg0[%c1] : memref<10xi32, #tpu.memory_space<smem>>
    %45 = arith.index_cast %44 : i32 to index
    %c0_22 = arith.constant 0 : index
    %46 = vector.load %arg14[%45, %c0_22] : memref<32x128xf32, #tpu.memory_space<vmem>>, vector<1x128xf32>
    %cst_23 = arith.constant dense<0.000000e+00> : vector<1x128xf32>
    %47 = tpu.matmul %42, %9, %cst_23 {dimension_numbers = #tpu.dot_dimension_numbers<[1], [0], [0], [1], [0, 0, 1, 1], [], []>, precision = #tpu.contract_precision<fp32>} : vector<1x32xf32>, vector<32x128xf32>, vector<1x128xf32> -> vector<1x128xf32>
    %48 = arith.addf %46, %47 : vector<1x128xf32>
    %49 = arith.addf %48, %10 : vector<1x128xf32>
    %50 = vector.extract_strided_slice %49 {offsets = [0, 0], sizes = [1, 32], strides = [1, 1]} : vector<1x128xf32> to vector<1x32xf32>
    %51 = arith.negf %50 : vector<1x32xf32>
    %52 = math.exp %51 : vector<1x32xf32>
    %cst_24 = arith.constant 1.000000e+00 : f32
    %53 = vector.broadcast %cst_24 : f32 to vector<1x32xf32>
    %54 = arith.addf %53, %52 : vector<1x32xf32>
    %55 = arith.divf %53, %54 : vector<1x32xf32>
    %56 = vector.extract_strided_slice %49 {offsets = [0, 32], sizes = [1, 32], strides = [1, 1]} : vector<1x128xf32> to vector<1x32xf32>
    %57 = arith.negf %56 : vector<1x32xf32>
    %58 = math.exp %57 : vector<1x32xf32>
    %cst_25 = arith.constant 1.000000e+00 : f32
    %59 = vector.broadcast %cst_25 : f32 to vector<1x32xf32>
    %60 = arith.addf %59, %58 : vector<1x32xf32>
    %61 = arith.divf %59, %60 : vector<1x32xf32>
    %62 = vector.extract_strided_slice %49 {offsets = [0, 64], sizes = [1, 32], strides = [1, 1]} : vector<1x128xf32> to vector<1x32xf32>
    %63 = math.tanh %62 : vector<1x32xf32>
    %64 = vector.extract_strided_slice %49 {offsets = [0, 96], sizes = [1, 32], strides = [1, 1]} : vector<1x128xf32> to vector<1x32xf32>
    %65 = arith.negf %64 : vector<1x32xf32>
    %66 = math.exp %65 : vector<1x32xf32>
    %cst_26 = arith.constant 1.000000e+00 : f32
    %67 = vector.broadcast %cst_26 : f32 to vector<1x32xf32>
    %68 = arith.addf %67, %66 : vector<1x32xf32>
    %69 = arith.divf %67, %68 : vector<1x32xf32>
    %70 = arith.mulf %61, %40 : vector<1x32xf32>
    %71 = arith.mulf %55, %63 : vector<1x32xf32>
    %72 = arith.addf %70, %71 : vector<1x32xf32>
    %73 = math.tanh %72 : vector<1x32xf32>
    %74 = arith.mulf %69, %73 : vector<1x32xf32>
    %c1_27 = arith.constant 1 : index
    %c0_28 = arith.constant 0 : index
    %75 = vector.load %arg13[%c1_27, %c0_28] : memref<10x32xf32, #tpu.memory_space<vmem>>, vector<1x32xf32>
    tpu.vector_store %arg13[%c1_27, %c0_28], %74 {strides = array<i32>} : memref<10x32xf32, #tpu.memory_space<vmem>>, vector<1x32xf32>,
    %c2 = arith.constant 2 : index
    %76 = memref.load %arg0[%c2] : memref<10xi32, #tpu.memory_space<smem>>
    %77 = arith.index_cast %76 : i32 to index
    %c0_29 = arith.constant 0 : index
    %78 = vector.load %arg14[%77, %c0_29] : memref<32x128xf32, #tpu.memory_space<vmem>>, vector<1x128xf32>
    %cst_30 = arith.constant dense<0.000000e+00> : vector<1x128xf32>
    %79 = tpu.matmul %74, %9, %cst_30 {dimension_numbers = #tpu.dot_dimension_numbers<[1], [0], [0], [1], [0, 0, 1, 1], [], []>, precision = #tpu.contract_precision<fp32>} : vector<1x32xf32>, vector<32x128xf32>, vector<1x128xf32> -> vector<1x128xf32>
    %80 = arith.addf %78, %79 : vector<1x128xf32>
    %81 = arith.addf %80, %10 : vector<1x128xf32>
    %82 = vector.extract_strided_slice %81 {offsets = [0, 0], sizes = [1, 32], strides = [1, 1]} : vector<1x128xf32> to vector<1x32xf32>
    %83 = arith.negf %82 : vector<1x32xf32>
    %84 = math.exp %83 : vector<1x32xf32>
    %cst_31 = arith.constant 1.000000e+00 : f32
    %85 = vector.broadcast %cst_31 : f32 to vector<1x32xf32>
    %86 = arith.addf %85, %84 : vector<1x32xf32>
    %87 = arith.divf %85, %86 : vector<1x32xf32>
    %88 = vector.extract_strided_slice %81 {offsets = [0, 32], sizes = [1, 32], strides = [1, 1]} : vector<1x128xf32> to vector<1x32xf32>
    %89 = arith.negf %88 : vector<1x32xf32>
    %90 = math.exp %89 : vector<1x32xf32>
    %cst_32 = arith.constant 1.000000e+00 : f32
    %91 = vector.broadcast %cst_32 : f32 to vector<1x32xf32>
    %92 = arith.addf %91, %90 : vector<1x32xf32>
    %93 = arith.divf %91, %92 : vector<1x32xf32>
    %94 = vector.extract_strided_slice %81 {offsets = [0, 64], sizes = [1, 32], strides = [1, 1]} : vector<1x128xf32> to vector<1x32xf32>
    %95 = math.tanh %94 : vector<1x32xf32>
    %96 = vector.extract_strided_slice %81 {offsets = [0, 96], sizes = [1, 32], strides = [1, 1]} : vector<1x128xf32> to vector<1x32xf32>
    %97 = arith.negf %96 : vector<1x32xf32>
    %98 = math.exp %97 : vector<1x32xf32>
    %cst_33 = arith.constant 1.000000e+00 : f32
    %99 = vector.broadcast %cst_33 : f32 to vector<1x32xf32>
    %100 = arith.addf %99, %98 : vector<1x32xf32>
    %101 = arith.divf %99, %100 : vector<1x32xf32>
    %102 = arith.mulf %93, %72 : vector<1x32xf32>
    %103 = arith.mulf %87, %95 : vector<1x32xf32>
    %104 = arith.addf %102, %103 : vector<1x32xf32>
    %105 = math.tanh %104 : vector<1x32xf32>
    %106 = arith.mulf %101, %105 : vector<1x32xf32>
    %c2_34 = arith.constant 2 : index
    %c0_35 = arith.constant 0 : index
    %107 = vector.load %arg13[%c2_34, %c0_35] : memref<10x32xf32, #tpu.memory_space<vmem>>, vector<1x32xf32>
    tpu.vector_store %arg13[%c2_34, %c0_35], %106 {strides = array<i32>} : memref<10x32xf32, #tpu.memory_space<vmem>>, vector<1x32xf32>,
    %c3 = arith.constant 3 : index
    %108 = memref.load %arg0[%c3] : memref<10xi32, #tpu.memory_space<smem>>
    %109 = arith.index_cast %108 : i32 to index
    %c0_36 = arith.constant 0 : index
    %110 = vector.load %arg14[%109, %c0_36] : memref<32x128xf32, #tpu.memory_space<vmem>>, vector<1x128xf32>
    %cst_37 = arith.constant dense<0.000000e+00> : vector<1x128xf32>
    %111 = tpu.matmul %106, %9, %cst_37 {dimension_numbers = #tpu.dot_dimension_numbers<[1], [0], [0], [1], [0, 0, 1, 1], [], []>, precision = #tpu.contract_precision<fp32>} : vector<1x32xf32>, vector<32x128xf32>, vector<1x128xf32> -> vector<1x128xf32>
    %112 = arith.addf %110, %111 : vector<1x128xf32>
    %113 = arith.addf %112, %10 : vector<1x128xf32>
    %114 = vector.extract_strided_slice %113 {offsets = [0, 0], sizes = [1, 32], strides = [1, 1]} : vector<1x128xf32> to vector<1x32xf32>
    %115 = arith.negf %114 : vector<1x32xf32>
    %116 = math.exp %115 : vector<1x32xf32>
    %cst_38 = arith.constant 1.000000e+00 : f32
    %117 = vector.broadcast %cst_38 : f32 to vector<1x32xf32>
    %118 = arith.addf %117, %116 : vector<1x32xf32>
    %119 = arith.divf %117, %118 : vector<1x32xf32>
    %120 = vector.extract_strided_slice %113 {offsets = [0, 32], sizes = [1, 32], strides = [1, 1]} : vector<1x128xf32> to vector<1x32xf32>
    %121 = arith.negf %120 : vector<1x32xf32>
    %122 = math.exp %121 : vector<1x32xf32>
    %cst_39 = arith.constant 1.000000e+00 : f32
    %123 = vector.broadcast %cst_39 : f32 to vector<1x32xf32>
    %124 = arith.addf %123, %122 : vector<1x32xf32>
    %125 = arith.divf %123, %124 : vector<1x32xf32>
    %126 = vector.extract_strided_slice %113 {offsets = [0, 64], sizes = [1, 32], strides = [1, 1]} : vector<1x128xf32> to vector<1x32xf32>
    %127 = math.tanh %126 : vector<1x32xf32>
    %128 = vector.extract_strided_slice %113 {offsets = [0, 96], sizes = [1, 32], strides = [1, 1]} : vector<1x128xf32> to vector<1x32xf32>
    %129 = arith.negf %128 : vector<1x32xf32>
    %130 = math.exp %129 : vector<1x32xf32>
    %cst_40 = arith.constant 1.000000e+00 : f32
    %131 = vector.broadcast %cst_40 : f32 to vector<1x32xf32>
    %132 = arith.addf %131, %130 : vector<1x32xf32>
    %133 = arith.divf %131, %132 : vector<1x32xf32>
    %134 = arith.mulf %125, %104 : vector<1x32xf32>
    %135 = arith.mulf %119, %127 : vector<1x32xf32>
    %136 = arith.addf %134, %135 : vector<1x32xf32>
    %137 = math.tanh %136 : vector<1x32xf32>
    %138 = arith.mulf %133, %137 : vector<1x32xf32>
    %c3_41 = arith.constant 3 : index
    %c0_42 = arith.constant 0 : index
    %139 = vector.load %arg13[%c3_41, %c0_42] : memref<10x32xf32, #tpu.memory_space<vmem>>, vector<1x32xf32>
    tpu.vector_store %arg13[%c3_41, %c0_42], %138 {strides = array<i32>} : memref<10x32xf32, #tpu.memory_space<vmem>>, vector<1x32xf32>,
    %c4 = arith.constant 4 : index
    %140 = memref.load %arg0[%c4] : memref<10xi32, #tpu.memory_space<smem>>
    %141 = arith.index_cast %140 : i32 to index
    %c0_43 = arith.constant 0 : index
    %142 = vector.load %arg14[%141, %c0_43] : memref<32x128xf32, #tpu.memory_space<vmem>>, vector<1x128xf32>
    %cst_44 = arith.constant dense<0.000000e+00> : vector<1x128xf32>
    %143 = tpu.matmul %138, %9, %cst_44 {dimension_numbers = #tpu.dot_dimension_numbers<[1], [0], [0], [1], [0, 0, 1, 1], [], []>, precision = #tpu.contract_precision<fp32>} : vector<1x32xf32>, vector<32x128xf32>, vector<1x128xf32> -> vector<1x128xf32>
    %144 = arith.addf %142, %143 : vector<1x128xf32>
    %145 = arith.addf %144, %10 : vector<1x128xf32>
    %146 = vector.extract_strided_slice %145 {offsets = [0, 0], sizes = [1, 32], strides = [1, 1]} : vector<1x128xf32> to vector<1x32xf32>
    %147 = arith.negf %146 : vector<1x32xf32>
    %148 = math.exp %147 : vector<1x32xf32>
    %cst_45 = arith.constant 1.000000e+00 : f32
    %149 = vector.broadcast %cst_45 : f32 to vector<1x32xf32>
    %150 = arith.addf %149, %148 : vector<1x32xf32>
    %151 = arith.divf %149, %150 : vector<1x32xf32>
    %152 = vector.extract_strided_slice %145 {offsets = [0, 32], sizes = [1, 32], strides = [1, 1]} : vector<1x128xf32> to vector<1x32xf32>
    %153 = arith.negf %152 : vector<1x32xf32>
    %154 = math.exp %153 : vector<1x32xf32>
    %cst_46 = arith.constant 1.000000e+00 : f32
    %155 = vector.broadcast %cst_46 : f32 to vector<1x32xf32>
    %156 = arith.addf %155, %154 : vector<1x32xf32>
    %157 = arith.divf %155, %156 : vector<1x32xf32>
    %158 = vector.extract_strided_slice %145 {offsets = [0, 64], sizes = [1, 32], strides = [1, 1]} : vector<1x128xf32> to vector<1x32xf32>
    %159 = math.tanh %158 : vector<1x32xf32>
    %160 = vector.extract_strided_slice %145 {offsets = [0, 96], sizes = [1, 32], strides = [1, 1]} : vector<1x128xf32> to vector<1x32xf32>
    %161 = arith.negf %160 : vector<1x32xf32>
    %162 = math.exp %161 : vector<1x32xf32>
    %cst_47 = arith.constant 1.000000e+00 : f32
    %163 = vector.broadcast %cst_47 : f32 to vector<1x32xf32>
    %164 = arith.addf %163, %162 : vector<1x32xf32>
    %165 = arith.divf %163, %164 : vector<1x32xf32>
    %166 = arith.mulf %157, %136 : vector<1x32xf32>
    %167 = arith.mulf %151, %159 : vector<1x32xf32>
    %168 = arith.addf %166, %167 : vector<1x32xf32>
    %169 = math.tanh %168 : vector<1x32xf32>
    %170 = arith.mulf %165, %169 : vector<1x32xf32>
    %c4_48 = arith.constant 4 : index
    %c0_49 = arith.constant 0 : index
    %171 = vector.load %arg13[%c4_48, %c0_49] : memref<10x32xf32, #tpu.memory_space<vmem>>, vector<1x32xf32>
    tpu.vector_store %arg13[%c4_48, %c0_49], %170 {strides = array<i32>} : memref<10x32xf32, #tpu.memory_space<vmem>>, vector<1x32xf32>,
    %c5 = arith.constant 5 : index
    %172 = memref.load %arg0[%c5] : memref<10xi32, #tpu.memory_space<smem>>
    %173 = arith.index_cast %172 : i32 to index
    %c0_50 = arith.constant 0 : index
    %174 = vector.load %arg14[%173, %c0_50] : memref<32x128xf32, #tpu.memory_space<vmem>>, vector<1x128xf32>
    %cst_51 = arith.constant dense<0.000000e+00> : vector<1x128xf32>
    %175 = tpu.matmul %170, %9, %cst_51 {dimension_numbers = #tpu.dot_dimension_numbers<[1], [0], [0], [1], [0, 0, 1, 1], [], []>, precision = #tpu.contract_precision<fp32>} : vector<1x32xf32>, vector<32x128xf32>, vector<1x128xf32> -> vector<1x128xf32>
    %176 = arith.addf %174, %175 : vector<1x128xf32>
    %177 = arith.addf %176, %10 : vector<1x128xf32>
    %178 = vector.extract_strided_slice %177 {offsets = [0, 0], sizes = [1, 32], strides = [1, 1]} : vector<1x128xf32> to vector<1x32xf32>
    %179 = arith.negf %178 : vector<1x32xf32>
    %180 = math.exp %179 : vector<1x32xf32>
    %cst_52 = arith.constant 1.000000e+00 : f32
    %181 = vector.broadcast %cst_52 : f32 to vector<1x32xf32>
    %182 = arith.addf %181, %180 : vector<1x32xf32>
    %183 = arith.divf %181, %182 : vector<1x32xf32>
    %184 = vector.extract_strided_slice %177 {offsets = [0, 32], sizes = [1, 32], strides = [1, 1]} : vector<1x128xf32> to vector<1x32xf32>
    %185 = arith.negf %184 : vector<1x32xf32>
    %186 = math.exp %185 : vector<1x32xf32>
    %cst_53 = arith.constant 1.000000e+00 : f32
    %187 = vector.broadcast %cst_53 : f32 to vector<1x32xf32>
    %188 = arith.addf %187, %186 : vector<1x32xf32>
    %189 = arith.divf %187, %188 : vector<1x32xf32>
    %190 = vector.extract_strided_slice %177 {offsets = [0, 64], sizes = [1, 32], strides = [1, 1]} : vector<1x128xf32> to vector<1x32xf32>
    %191 = math.tanh %190 : vector<1x32xf32>
    %192 = vector.extract_strided_slice %177 {offsets = [0, 96], sizes = [1, 32], strides = [1, 1]} : vector<1x128xf32> to vector<1x32xf32>
    %193 = arith.negf %192 : vector<1x32xf32>
    %194 = math.exp %193 : vector<1x32xf32>
    %cst_54 = arith.constant 1.000000e+00 : f32
    %195 = vector.broadcast %cst_54 : f32 to vector<1x32xf32>
    %196 = arith.addf %195, %194 : vector<1x32xf32>
    %197 = arith.divf %195, %196 : vector<1x32xf32>
    %198 = arith.mulf %189, %168 : vector<1x32xf32>
    %199 = arith.mulf %183, %191 : vector<1x32xf32>
    %200 = arith.addf %198, %199 : vector<1x32xf32>
    %201 = math.tanh %200 : vector<1x32xf32>
    %202 = arith.mulf %197, %201 : vector<1x32xf32>
    %c5_55 = arith.constant 5 : index
    %c0_56 = arith.constant 0 : index
    %203 = vector.load %arg13[%c5_55, %c0_56] : memref<10x32xf32, #tpu.memory_space<vmem>>, vector<1x32xf32>
    tpu.vector_store %arg13[%c5_55, %c0_56], %202 {strides = array<i32>} : memref<10x32xf32, #tpu.memory_space<vmem>>, vector<1x32xf32>,
    %c6 = arith.constant 6 : index
    %204 = memref.load %arg0[%c6] : memref<10xi32, #tpu.memory_space<smem>>
    %205 = arith.index_cast %204 : i32 to index
    %c0_57 = arith.constant 0 : index
    %206 = vector.load %arg14[%205, %c0_57] : memref<32x128xf32, #tpu.memory_space<vmem>>, vector<1x128xf32>
    %cst_58 = arith.constant dense<0.000000e+00> : vector<1x128xf32>
    %207 = tpu.matmul %202, %9, %cst_58 {dimension_numbers = #tpu.dot_dimension_numbers<[1], [0], [0], [1], [0, 0, 1, 1], [], []>, precision = #tpu.contract_precision<fp32>} : vector<1x32xf32>, vector<32x128xf32>, vector<1x128xf32> -> vector<1x128xf32>
    %208 = arith.addf %206, %207 : vector<1x128xf32>
    %209 = arith.addf %208, %10 : vector<1x128xf32>
    %210 = vector.extract_strided_slice %209 {offsets = [0, 0], sizes = [1, 32], strides = [1, 1]} : vector<1x128xf32> to vector<1x32xf32>
    %211 = arith.negf %210 : vector<1x32xf32>
    %212 = math.exp %211 : vector<1x32xf32>
    %cst_59 = arith.constant 1.000000e+00 : f32
    %213 = vector.broadcast %cst_59 : f32 to vector<1x32xf32>
    %214 = arith.addf %213, %212 : vector<1x32xf32>
    %215 = arith.divf %213, %214 : vector<1x32xf32>
    %216 = vector.extract_strided_slice %209 {offsets = [0, 32], sizes = [1, 32], strides = [1, 1]} : vector<1x128xf32> to vector<1x32xf32>
    %217 = arith.negf %216 : vector<1x32xf32>
    %218 = math.exp %217 : vector<1x32xf32>
    %cst_60 = arith.constant 1.000000e+00 : f32
    %219 = vector.broadcast %cst_60 : f32 to vector<1x32xf32>
    %220 = arith.addf %219, %218 : vector<1x32xf32>
    %221 = arith.divf %219, %220 : vector<1x32xf32>
    %222 = vector.extract_strided_slice %209 {offsets = [0, 64], sizes = [1, 32], strides = [1, 1]} : vector<1x128xf32> to vector<1x32xf32>
    %223 = math.tanh %222 : vector<1x32xf32>
    %224 = vector.extract_strided_slice %209 {offsets = [0, 96], sizes = [1, 32], strides = [1, 1]} : vector<1x128xf32> to vector<1x32xf32>
    %225 = arith.negf %224 : vector<1x32xf32>
    %226 = math.exp %225 : vector<1x32xf32>
    %cst_61 = arith.constant 1.000000e+00 : f32
    %227 = vector.broadcast %cst_61 : f32 to vector<1x32xf32>
    %228 = arith.addf %227, %226 : vector<1x32xf32>
    %229 = arith.divf %227, %228 : vector<1x32xf32>
    %230 = arith.mulf %221, %200 : vector<1x32xf32>
    %231 = arith.mulf %215, %223 : vector<1x32xf32>
    %232 = arith.addf %230, %231 : vector<1x32xf32>
    %233 = math.tanh %232 : vector<1x32xf32>
    %234 = arith.mulf %229, %233 : vector<1x32xf32>
    %c6_62 = arith.constant 6 : index
    %c0_63 = arith.constant 0 : index
    %235 = vector.load %arg13[%c6_62, %c0_63] : memref<10x32xf32, #tpu.memory_space<vmem>>, vector<1x32xf32>
    tpu.vector_store %arg13[%c6_62, %c0_63], %234 {strides = array<i32>} : memref<10x32xf32, #tpu.memory_space<vmem>>, vector<1x32xf32>,
    %c7 = arith.constant 7 : index
    %236 = memref.load %arg0[%c7] : memref<10xi32, #tpu.memory_space<smem>>
    %237 = arith.index_cast %236 : i32 to index
    %c0_64 = arith.constant 0 : index
    %238 = vector.load %arg14[%237, %c0_64] : memref<32x128xf32, #tpu.memory_space<vmem>>, vector<1x128xf32>
    %cst_65 = arith.constant dense<0.000000e+00> : vector<1x128xf32>
    %239 = tpu.matmul %234, %9, %cst_65 {dimension_numbers = #tpu.dot_dimension_numbers<[1], [0], [0], [1], [0, 0, 1, 1], [], []>, precision = #tpu.contract_precision<fp32>} : vector<1x32xf32>, vector<32x128xf32>, vector<1x128xf32> -> vector<1x128xf32>
    %240 = arith.addf %238, %239 : vector<1x128xf32>
    %241 = arith.addf %240, %10 : vector<1x128xf32>
    %242 = vector.extract_strided_slice %241 {offsets = [0, 0], sizes = [1, 32], strides = [1, 1]} : vector<1x128xf32> to vector<1x32xf32>
    %243 = arith.negf %242 : vector<1x32xf32>
    %244 = math.exp %243 : vector<1x32xf32>
    %cst_66 = arith.constant 1.000000e+00 : f32
    %245 = vector.broadcast %cst_66 : f32 to vector<1x32xf32>
    %246 = arith.addf %245, %244 : vector<1x32xf32>
    %247 = arith.divf %245, %246 : vector<1x32xf32>
    %248 = vector.extract_strided_slice %241 {offsets = [0, 32], sizes = [1, 32], strides = [1, 1]} : vector<1x128xf32> to vector<1x32xf32>
    %249 = arith.negf %248 : vector<1x32xf32>
    %250 = math.exp %249 : vector<1x32xf32>
    %cst_67 = arith.constant 1.000000e+00 : f32
    %251 = vector.broadcast %cst_67 : f32 to vector<1x32xf32>
    %252 = arith.addf %251, %250 : vector<1x32xf32>
    %253 = arith.divf %251, %252 : vector<1x32xf32>
    %254 = vector.extract_strided_slice %241 {offsets = [0, 64], sizes = [1, 32], strides = [1, 1]} : vector<1x128xf32> to vector<1x32xf32>
    %255 = math.tanh %254 : vector<1x32xf32>
    %256 = vector.extract_strided_slice %241 {offsets = [0, 96], sizes = [1, 32], strides = [1, 1]} : vector<1x128xf32> to vector<1x32xf32>
    %257 = arith.negf %256 : vector<1x32xf32>
    %258 = math.exp %257 : vector<1x32xf32>
    %cst_68 = arith.constant 1.000000e+00 : f32
    %259 = vector.broadcast %cst_68 : f32 to vector<1x32xf32>
    %260 = arith.addf %259, %258 : vector<1x32xf32>
    %261 = arith.divf %259, %260 : vector<1x32xf32>
    %262 = arith.mulf %253, %232 : vector<1x32xf32>
    %263 = arith.mulf %247, %255 : vector<1x32xf32>
    %264 = arith.addf %262, %263 : vector<1x32xf32>
    %265 = math.tanh %264 : vector<1x32xf32>
    %266 = arith.mulf %261, %265 : vector<1x32xf32>
    %c7_69 = arith.constant 7 : index
    %c0_70 = arith.constant 0 : index
    %267 = vector.load %arg13[%c7_69, %c0_70] : memref<10x32xf32, #tpu.memory_space<vmem>>, vector<1x32xf32>
    tpu.vector_store %arg13[%c7_69, %c0_70], %266 {strides = array<i32>} : memref<10x32xf32, #tpu.memory_space<vmem>>, vector<1x32xf32>,
    %c8 = arith.constant 8 : index
    %268 = memref.load %arg0[%c8] : memref<10xi32, #tpu.memory_space<smem>>
    %269 = arith.index_cast %268 : i32 to index
    %c0_71 = arith.constant 0 : index
    %270 = vector.load %arg14[%269, %c0_71] : memref<32x128xf32, #tpu.memory_space<vmem>>, vector<1x128xf32>
    %cst_72 = arith.constant dense<0.000000e+00> : vector<1x128xf32>
    %271 = tpu.matmul %266, %9, %cst_72 {dimension_numbers = #tpu.dot_dimension_numbers<[1], [0], [0], [1], [0, 0, 1, 1], [], []>, precision = #tpu.contract_precision<fp32>} : vector<1x32xf32>, vector<32x128xf32>, vector<1x128xf32> -> vector<1x128xf32>
    %272 = arith.addf %270, %271 : vector<1x128xf32>
    %273 = arith.addf %272, %10 : vector<1x128xf32>
    %274 = vector.extract_strided_slice %273 {offsets = [0, 0], sizes = [1, 32], strides = [1, 1]} : vector<1x128xf32> to vector<1x32xf32>
    %275 = arith.negf %274 : vector<1x32xf32>
    %276 = math.exp %275 : vector<1x32xf32>
    %cst_73 = arith.constant 1.000000e+00 : f32
    %277 = vector.broadcast %cst_73 : f32 to vector<1x32xf32>
    %278 = arith.addf %277, %276 : vector<1x32xf32>
    %279 = arith.divf %277, %278 : vector<1x32xf32>
    %280 = vector.extract_strided_slice %273 {offsets = [0, 32], sizes = [1, 32], strides = [1, 1]} : vector<1x128xf32> to vector<1x32xf32>
    %281 = arith.negf %280 : vector<1x32xf32>
    %282 = math.exp %281 : vector<1x32xf32>
    %cst_74 = arith.constant 1.000000e+00 : f32
    %283 = vector.broadcast %cst_74 : f32 to vector<1x32xf32>
    %284 = arith.addf %283, %282 : vector<1x32xf32>
    %285 = arith.divf %283, %284 : vector<1x32xf32>
    %286 = vector.extract_strided_slice %273 {offsets = [0, 64], sizes = [1, 32], strides = [1, 1]} : vector<1x128xf32> to vector<1x32xf32>
    %287 = math.tanh %286 : vector<1x32xf32>
    %288 = vector.extract_strided_slice %273 {offsets = [0, 96], sizes = [1, 32], strides = [1, 1]} : vector<1x128xf32> to vector<1x32xf32>
    %289 = arith.negf %288 : vector<1x32xf32>
    %290 = math.exp %289 : vector<1x32xf32>
    %cst_75 = arith.constant 1.000000e+00 : f32
    %291 = vector.broadcast %cst_75 : f32 to vector<1x32xf32>
    %292 = arith.addf %291, %290 : vector<1x32xf32>
    %293 = arith.divf %291, %292 : vector<1x32xf32>
    %294 = arith.mulf %285, %264 : vector<1x32xf32>
    %295 = arith.mulf %279, %287 : vector<1x32xf32>
    %296 = arith.addf %294, %295 : vector<1x32xf32>
    %297 = math.tanh %296 : vector<1x32xf32>
    %298 = arith.mulf %293, %297 : vector<1x32xf32>
    %c8_76 = arith.constant 8 : index
    %c0_77 = arith.constant 0 : index
    %299 = vector.load %arg13[%c8_76, %c0_77] : memref<10x32xf32, #tpu.memory_space<vmem>>, vector<1x32xf32>
    tpu.vector_store %arg13[%c8_76, %c0_77], %298 {strides = array<i32>} : memref<10x32xf32, #tpu.memory_space<vmem>>, vector<1x32xf32>,
    %c9 = arith.constant 9 : index
    %300 = memref.load %arg0[%c9] : memref<10xi32, #tpu.memory_space<smem>>
    %301 = arith.index_cast %300 : i32 to index
    %c0_78 = arith.constant 0 : index
    %302 = vector.load %arg14[%301, %c0_78] : memref<32x128xf32, #tpu.memory_space<vmem>>, vector<1x128xf32>
    %cst_79 = arith.constant dense<0.000000e+00> : vector<1x128xf32>
    %303 = tpu.matmul %298, %9, %cst_79 {dimension_numbers = #tpu.dot_dimension_numbers<[1], [0], [0], [1], [0, 0, 1, 1], [], []>, precision = #tpu.contract_precision<fp32>} : vector<1x32xf32>, vector<32x128xf32>, vector<1x128xf32> -> vector<1x128xf32>
    %304 = arith.addf %302, %303 : vector<1x128xf32>
    %305 = arith.addf %304, %10 : vector<1x128xf32>
    %306 = vector.extract_strided_slice %305 {offsets = [0, 0], sizes = [1, 32], strides = [1, 1]} : vector<1x128xf32> to vector<1x32xf32>
    %307 = arith.negf %306 : vector<1x32xf32>
    %308 = math.exp %307 : vector<1x32xf32>
    %cst_80 = arith.constant 1.000000e+00 : f32
    %309 = vector.broadcast %cst_80 : f32 to vector<1x32xf32>
    %310 = arith.addf %309, %308 : vector<1x32xf32>
    %311 = arith.divf %309, %310 : vector<1x32xf32>
    %312 = vector.extract_strided_slice %305 {offsets = [0, 32], sizes = [1, 32], strides = [1, 1]} : vector<1x128xf32> to vector<1x32xf32>
    %313 = arith.negf %312 : vector<1x32xf32>
    %314 = math.exp %313 : vector<1x32xf32>
    %cst_81 = arith.constant 1.000000e+00 : f32
    %315 = vector.broadcast %cst_81 : f32 to vector<1x32xf32>
    %316 = arith.addf %315, %314 : vector<1x32xf32>
    %317 = arith.divf %315, %316 : vector<1x32xf32>
    %318 = vector.extract_strided_slice %305 {offsets = [0, 64], sizes = [1, 32], strides = [1, 1]} : vector<1x128xf32> to vector<1x32xf32>
    %319 = math.tanh %318 : vector<1x32xf32>
    %320 = vector.extract_strided_slice %305 {offsets = [0, 96], sizes = [1, 32], strides = [1, 1]} : vector<1x128xf32> to vector<1x32xf32>
    %321 = arith.negf %320 : vector<1x32xf32>
    %322 = math.exp %321 : vector<1x32xf32>
    %cst_82 = arith.constant 1.000000e+00 : f32
    %323 = vector.broadcast %cst_82 : f32 to vector<1x32xf32>
    %324 = arith.addf %323, %322 : vector<1x32xf32>
    %325 = arith.divf %323, %324 : vector<1x32xf32>
    %326 = arith.mulf %317, %296 : vector<1x32xf32>
    %327 = arith.mulf %311, %319 : vector<1x32xf32>
    %328 = arith.addf %326, %327 : vector<1x32xf32>
    %329 = math.tanh %328 : vector<1x32xf32>
    %330 = arith.mulf %325, %329 : vector<1x32xf32>
    %c9_83 = arith.constant 9 : index
    %c0_84 = arith.constant 0 : index
    %331 = vector.load %arg13[%c9_83, %c0_84] : memref<10x32xf32, #tpu.memory_space<vmem>>, vector<1x32xf32>
    tpu.vector_store %arg13[%c9_83, %c0_84], %330 {strides = array<i32>} : memref<10x32xf32, #tpu.memory_space<vmem>>, vector<1x32xf32>,
    %c0_85 = arith.constant 0 : index
    %c0_86 = arith.constant 0 : index
    %332 = vector.load %arg13[%c0_85, %c0_86] : memref<10x32xf32, #tpu.memory_space<vmem>>, vector<10x32xf32>
    %c0_87 = arith.constant 0 : index
    %c0_88 = arith.constant 0 : index
    %333 = vector.load %arg9[%c0_87, %c0_88] : memref<32x32xf32, #tpu.memory_space<vmem>>, vector<32x32xf32>
    %cst_89 = arith.constant dense<0.000000e+00> : vector<10x32xf32>
    %334 = tpu.matmul %332, %333, %cst_89 {dimension_numbers = #tpu.dot_dimension_numbers<[1], [1], [0], [0], [0, 0, 1, 0], [], []>, precision = #tpu.contract_precision<fp32>} : vector<10x32xf32>, vector<32x32xf32>, vector<10x32xf32> -> vector<10x32xf32>
    %c0_90 = arith.constant 0 : index
    %c0_91 = arith.constant 0 : index
    %335 = vector.load %arg6[%c0_90, %c0_91] : memref<32x128xf32, #tpu.memory_space<vmem>>, vector<32x128xf32>
    %cst_92 = arith.constant dense<0.000000e+00> : vector<10x128xf32>
    %336 = tpu.matmul %332, %335, %cst_92 {dimension_numbers = #tpu.dot_dimension_numbers<[1], [0], [0], [1], [0, 0, 1, 1], [], []>, precision = #tpu.contract_precision<fp32>} : vector<10x32xf32>, vector<32x128xf32>, vector<10x128xf32> -> vector<10x128xf32>
    %c0_93 = arith.constant 0 : index
    %c0_94 = arith.constant 0 : index
    %337 = vector.load %arg7[%c0_93, %c0_94] : memref<32x128xf32, #tpu.memory_space<vmem>>, vector<32x128xf32>
    %c0_95 = arith.constant 0 : index
    %c0_96 = arith.constant 0 : index
    %338 = vector.load %arg8[%c0_95, %c0_96] : memref<1x128xf32, #tpu.memory_space<vmem>>, vector<1x128xf32>
    %c0_97 = arith.constant 0 : index
    %c0_98 = arith.constant 0 : index
    %339 = vector.load %arg10[%c0_97, %c0_98] : memref<32x32xf32, #tpu.memory_space<vmem>>, vector<32x32xf32>
    %c0_99 = arith.constant 0 : index
    %c0_100 = arith.constant 0 : index
    %340 = vector.load %arg11[%c0_99, %c0_100] : memref<1x32xf32, #tpu.memory_space<vmem>>, vector<1x32xf32>
    %cst_101 = arith.constant 0.000000e+00 : f32
    %341 = vector.broadcast %cst_101 : f32 to vector<1x128xf32>
    %cst_102 = arith.constant dense<0.000000e+00> : vector<1x10xf32>
    %342 = tpu.matmul %330, %334, %cst_102 {dimension_numbers = #tpu.dot_dimension_numbers<[1], [1], [0], [0], [0, 0, 1, 0], [], []>, precision = #tpu.contract_precision<fp32>} : vector<1x32xf32>, vector<10x32xf32>, vector<1x10xf32> -> vector<1x10xf32>
    %cst_103 = arith.constant dense<0xFF800000> : vector<1xf32>
    %343 = vector.multi_reduction <maximumf>, %342, %cst_103 [1] : vector<1x10xf32> to vector<1xf32>
    %344 = vector.shape_cast %343 : vector<1xf32> to vector<1x1xf32>
    %345 = vector.broadcast %344 : vector<1x1xf32> to vector<1x10xf32>
    %346 = arith.subf %342, %345 : vector<1x10xf32>
    %347 = math.exp %346 : vector<1x10xf32>
    %cst_104 = arith.constant dense<0.000000e+00> : vector<1xf32>
    %348 = vector.multi_reduction <add>, %347, %cst_104 [1] : vector<1x10xf32> to vector<1xf32>
    %349 = vector.shape_cast %348 : vector<1xf32> to vector<1x1xf32>
    %350 = tpu.reciprocal %349 : vector<1x1xf32> -> vector<1x1xf32>
    %351 = vector.broadcast %350 : vector<1x1xf32> to vector<1x10xf32>
    %352 = arith.mulf %347, %351 : vector<1x10xf32>
    %cst_105 = arith.constant dense<0.000000e+00> : vector<1x128xf32>
    %353 = tpu.matmul %352, %336, %cst_105 {dimension_numbers = #tpu.dot_dimension_numbers<[1], [0], [0], [1], [0, 0, 1, 1], [], []>, precision = #tpu.contract_precision<fp32>} : vector<1x10xf32>, vector<10x128xf32>, vector<1x128xf32> -> vector<1x128xf32>
    %354 = arith.addf %341, %353 : vector<1x128xf32>
    %cst_106 = arith.constant dense<0.000000e+00> : vector<1x128xf32>
    %355 = tpu.matmul %330, %337, %cst_106 {dimension_numbers = #tpu.dot_dimension_numbers<[1], [0], [0], [1], [0, 0, 1, 1], [], []>, precision = #tpu.contract_precision<fp32>} : vector<1x32xf32>, vector<32x128xf32>, vector<1x128xf32> -> vector<1x128xf32>
    %356 = arith.addf %354, %355 : vector<1x128xf32>
    %357 = arith.addf %356, %338 : vector<1x128xf32>
    %358 = vector.extract_strided_slice %357 {offsets = [0, 0], sizes = [1, 32], strides = [1, 1]} : vector<1x128xf32> to vector<1x32xf32>
    %359 = arith.negf %358 : vector<1x32xf32>
    %360 = math.exp %359 : vector<1x32xf32>
    %cst_107 = arith.constant 1.000000e+00 : f32
    %361 = vector.broadcast %cst_107 : f32 to vector<1x32xf32>
    %362 = arith.addf %361, %360 : vector<1x32xf32>
    %363 = arith.divf %361, %362 : vector<1x32xf32>
    %364 = vector.extract_strided_slice %357 {offsets = [0, 32], sizes = [1, 32], strides = [1, 1]} : vector<1x128xf32> to vector<1x32xf32>
    %365 = arith.negf %364 : vector<1x32xf32>
    %366 = math.exp %365 : vector<1x32xf32>
    %cst_108 = arith.constant 1.000000e+00 : f32
    %367 = vector.broadcast %cst_108 : f32 to vector<1x32xf32>
    %368 = arith.addf %367, %366 : vector<1x32xf32>
    %369 = arith.divf %367, %368 : vector<1x32xf32>
    %370 = vector.extract_strided_slice %357 {offsets = [0, 64], sizes = [1, 32], strides = [1, 1]} : vector<1x128xf32> to vector<1x32xf32>
    %371 = math.tanh %370 : vector<1x32xf32>
    %372 = vector.extract_strided_slice %357 {offsets = [0, 96], sizes = [1, 32], strides = [1, 1]} : vector<1x128xf32> to vector<1x32xf32>
    %373 = arith.negf %372 : vector<1x32xf32>
    %374 = math.exp %373 : vector<1x32xf32>
    %cst_109 = arith.constant 1.000000e+00 : f32
    %375 = vector.broadcast %cst_109 : f32 to vector<1x32xf32>
    %376 = arith.addf %375, %374 : vector<1x32xf32>
    %377 = arith.divf %375, %376 : vector<1x32xf32>
    %378 = arith.mulf %369, %328 : vector<1x32xf32>
    %379 = arith.mulf %363, %371 : vector<1x32xf32>
    %380 = arith.addf %378, %379 : vector<1x32xf32>
    %381 = math.tanh %380 : vector<1x32xf32>
    %382 = arith.mulf %377, %381 : vector<1x32xf32>
    %cst_110 = arith.constant dense<0.000000e+00> : vector<1x32xf32>
    %383 = tpu.matmul %382, %339, %cst_110 {dimension_numbers = #tpu.dot_dimension_numbers<[1], [0], [0], [1], [0, 0, 1, 1], [], []>, precision = #tpu.contract_precision<fp32>} : vector<1x32xf32>, vector<32x32xf32>, vector<1x32xf32> -> vector<1x32xf32>
    %384 = arith.addf %383, %340 : vector<1x32xf32>
    %c0_111 = arith.constant 0 : index
    %c0_112 = arith.constant 0 : index
    %385 = vector.load %arg12[%c0_111, %c0_112] : memref<10x32xf32, #tpu.memory_space<vmem>>, vector<1x32xf32>
    tpu.vector_store %arg12[%c0_111, %c0_112], %384 {strides = array<i32>} : memref<10x32xf32, #tpu.memory_space<vmem>>, vector<1x32xf32>,
    %cst_113 = arith.constant dense<0xFF800000> : vector<1xf32>
    %386 = vector.multi_reduction <maximumf>, %384, %cst_113 [1] : vector<1x32xf32> to vector<1xf32>
    %387 = vector.shape_cast %386 : vector<1xf32> to vector<1x1xf32>
    %388 = vector.broadcast %387 : vector<1x1xf32> to vector<1x32xf32>
    %389 = arith.cmpf oeq, %384, %388 : vector<1x32xf32>
    %c32_i32 = arith.constant 32 : i32
    %390 = vector.broadcast %c32_i32 : i32 to vector<1x32xi32>
    %391 = arith.select %389, %0, %390 : vector<1x32xi1>, vector<1x32xi32>
    %cst_114 = arith.constant dense<2147483647> : vector<1xi32>
    %392 = vector.multi_reduction <minsi>, %391, %cst_114 [1] : vector<1x32xi32> to vector<1xi32>
    %393 = vector.shape_cast %392 : vector<1xi32> to vector<1x1xi32>
    %394 = vector.broadcast %393 : vector<1x1xi32> to vector<1x32xi32>
    %395 = arith.cmpi eq, %0, %394 : vector<1x32xi32>
    %396 = arith.extui %395 : vector<1x32xi1> to vector<1x32xi32>
    %397 = arith.sitofp %396 : vector<1x32xi32> to vector<1x32xf32>
    %cst_115 = arith.constant dense<0.000000e+00> : vector<1x128xf32>
    %398 = tpu.matmul %397, %8, %cst_115 {dimension_numbers = #tpu.dot_dimension_numbers<[1], [0], [0], [1], [0, 0, 1, 1], [], []>, precision = #tpu.contract_precision<fp32>} : vector<1x32xf32>, vector<32x128xf32>, vector<1x128xf32> -> vector<1x128xf32>
    %cst_116 = arith.constant dense<0.000000e+00> : vector<1x10xf32>
    %399 = tpu.matmul %382, %334, %cst_116 {dimension_numbers = #tpu.dot_dimension_numbers<[1], [1], [0], [0], [0, 0, 1, 0], [], []>, precision = #tpu.contract_precision<fp32>} : vector<1x32xf32>, vector<10x32xf32>, vector<1x10xf32> -> vector<1x10xf32>
    %cst_117 = arith.constant dense<0xFF800000> : vector<1xf32>
    %400 = vector.multi_reduction <maximumf>, %399, %cst_117 [1] : vector<1x10xf32> to vector<1xf32>
    %401 = vector.shape_cast %400 : vector<1xf32> to vector<1x1xf32>
    %402 = vector.broadcast %401 : vector<1x1xf32> to vector<1x10xf32>
    %403 = arith.subf %399, %402 : vector<1x10xf32>
    %404 = math.exp %403 : vector<1x10xf32>
    %cst_118 = arith.constant dense<0.000000e+00> : vector<1xf32>
    %405 = vector.multi_reduction <add>, %404, %cst_118 [1] : vector<1x10xf32> to vector<1xf32>
    %406 = vector.shape_cast %405 : vector<1xf32> to vector<1x1xf32>
    %407 = tpu.reciprocal %406 : vector<1x1xf32> -> vector<1x1xf32>
    %408 = vector.broadcast %407 : vector<1x1xf32> to vector<1x10xf32>
    %409 = arith.mulf %404, %408 : vector<1x10xf32>
    %cst_119 = arith.constant dense<0.000000e+00> : vector<1x128xf32>
    %410 = tpu.matmul %409, %336, %cst_119 {dimension_numbers = #tpu.dot_dimension_numbers<[1], [0], [0], [1], [0, 0, 1, 1], [], []>, precision = #tpu.contract_precision<fp32>} : vector<1x10xf32>, vector<10x128xf32>, vector<1x128xf32> -> vector<1x128xf32>
    %411 = arith.addf %398, %410 : vector<1x128xf32>
    %cst_120 = arith.constant dense<0.000000e+00> : vector<1x128xf32>
    %412 = tpu.matmul %382, %337, %cst_120 {dimension_numbers = #tpu.dot_dimension_numbers<[1], [0], [0], [1], [0, 0, 1, 1], [], []>, precision = #tpu.contract_precision<fp32>} : vector<1x32xf32>, vector<32x128xf32>, vector<1x128xf32> -> vector<1x128xf32>
    %413 = arith.addf %411, %412 : vector<1x128xf32>
    %414 = arith.addf %413, %338 : vector<1x128xf32>
    %415 = vector.extract_strided_slice %414 {offsets = [0, 0], sizes = [1, 32], strides = [1, 1]} : vector<1x128xf32> to vector<1x32xf32>
    %416 = arith.negf %415 : vector<1x32xf32>
    %417 = math.exp %416 : vector<1x32xf32>
    %cst_121 = arith.constant 1.000000e+00 : f32
    %418 = vector.broadcast %cst_121 : f32 to vector<1x32xf32>
    %419 = arith.addf %418, %417 : vector<1x32xf32>
    %420 = arith.divf %418, %419 : vector<1x32xf32>
    %421 = vector.extract_strided_slice %414 {offsets = [0, 32], sizes = [1, 32], strides = [1, 1]} : vector<1x128xf32> to vector<1x32xf32>
    %422 = arith.negf %421 : vector<1x32xf32>
    %423 = math.exp %422 : vector<1x32xf32>
    %cst_122 = arith.constant 1.000000e+00 : f32
    %424 = vector.broadcast %cst_122 : f32 to vector<1x32xf32>
    %425 = arith.addf %424, %423 : vector<1x32xf32>
    %426 = arith.divf %424, %425 : vector<1x32xf32>
    %427 = vector.extract_strided_slice %414 {offsets = [0, 64], sizes = [1, 32], strides = [1, 1]} : vector<1x128xf32> to vector<1x32xf32>
    %428 = math.tanh %427 : vector<1x32xf32>
    %429 = vector.extract_strided_slice %414 {offsets = [0, 96], sizes = [1, 32], strides = [1, 1]} : vector<1x128xf32> to vector<1x32xf32>
    %430 = arith.negf %429 : vector<1x32xf32>
    %431 = math.exp %430 : vector<1x32xf32>
    %cst_123 = arith.constant 1.000000e+00 : f32
    %432 = vector.broadcast %cst_123 : f32 to vector<1x32xf32>
    %433 = arith.addf %432, %431 : vector<1x32xf32>
    %434 = arith.divf %432, %433 : vector<1x32xf32>
    %435 = arith.mulf %426, %380 : vector<1x32xf32>
    %436 = arith.mulf %420, %428 : vector<1x32xf32>
    %437 = arith.addf %435, %436 : vector<1x32xf32>
    %438 = math.tanh %437 : vector<1x32xf32>
    %439 = arith.mulf %434, %438 : vector<1x32xf32>
    %cst_124 = arith.constant dense<0.000000e+00> : vector<1x32xf32>
    %440 = tpu.matmul %439, %339, %cst_124 {dimension_numbers = #tpu.dot_dimension_numbers<[1], [0], [0], [1], [0, 0, 1, 1], [], []>, precision = #tpu.contract_precision<fp32>} : vector<1x32xf32>, vector<32x32xf32>, vector<1x32xf32> -> vector<1x32xf32>
    %441 = arith.addf %440, %340 : vector<1x32xf32>
    %c1_125 = arith.constant 1 : index
    %c0_126 = arith.constant 0 : index
    %442 = vector.load %arg12[%c1_125, %c0_126] : memref<10x32xf32, #tpu.memory_space<vmem>>, vector<1x32xf32>
    tpu.vector_store %arg12[%c1_125, %c0_126], %441 {strides = array<i32>} : memref<10x32xf32, #tpu.memory_space<vmem>>, vector<1x32xf32>,
    %cst_127 = arith.constant dense<0xFF800000> : vector<1xf32>
    %443 = vector.multi_reduction <maximumf>, %441, %cst_127 [1] : vector<1x32xf32> to vector<1xf32>
    %444 = vector.shape_cast %443 : vector<1xf32> to vector<1x1xf32>
    %445 = vector.broadcast %444 : vector<1x1xf32> to vector<1x32xf32>
    %446 = arith.cmpf oeq, %441, %445 : vector<1x32xf32>
    %c32_i32_128 = arith.constant 32 : i32
    %447 = vector.broadcast %c32_i32_128 : i32 to vector<1x32xi32>
    %448 = arith.select %446, %0, %447 : vector<1x32xi1>, vector<1x32xi32>
    %cst_129 = arith.constant dense<2147483647> : vector<1xi32>
    %449 = vector.multi_reduction <minsi>, %448, %cst_129 [1] : vector<1x32xi32> to vector<1xi32>
    %450 = vector.shape_cast %449 : vector<1xi32> to vector<1x1xi32>
    %451 = vector.broadcast %450 : vector<1x1xi32> to vector<1x32xi32>
    %452 = arith.cmpi eq, %0, %451 : vector<1x32xi32>
    %453 = arith.extui %452 : vector<1x32xi1> to vector<1x32xi32>
    %454 = arith.sitofp %453 : vector<1x32xi32> to vector<1x32xf32>
    %cst_130 = arith.constant dense<0.000000e+00> : vector<1x128xf32>
    %455 = tpu.matmul %454, %8, %cst_130 {dimension_numbers = #tpu.dot_dimension_numbers<[1], [0], [0], [1], [0, 0, 1, 1], [], []>, precision = #tpu.contract_precision<fp32>} : vector<1x32xf32>, vector<32x128xf32>, vector<1x128xf32> -> vector<1x128xf32>
    %cst_131 = arith.constant dense<0.000000e+00> : vector<1x10xf32>
    %456 = tpu.matmul %439, %334, %cst_131 {dimension_numbers = #tpu.dot_dimension_numbers<[1], [1], [0], [0], [0, 0, 1, 0], [], []>, precision = #tpu.contract_precision<fp32>} : vector<1x32xf32>, vector<10x32xf32>, vector<1x10xf32> -> vector<1x10xf32>
    %cst_132 = arith.constant dense<0xFF800000> : vector<1xf32>
    %457 = vector.multi_reduction <maximumf>, %456, %cst_132 [1] : vector<1x10xf32> to vector<1xf32>
    %458 = vector.shape_cast %457 : vector<1xf32> to vector<1x1xf32>
    %459 = vector.broadcast %458 : vector<1x1xf32> to vector<1x10xf32>
    %460 = arith.subf %456, %459 : vector<1x10xf32>
    %461 = math.exp %460 : vector<1x10xf32>
    %cst_133 = arith.constant dense<0.000000e+00> : vector<1xf32>
    %462 = vector.multi_reduction <add>, %461, %cst_133 [1] : vector<1x10xf32> to vector<1xf32>
    %463 = vector.shape_cast %462 : vector<1xf32> to vector<1x1xf32>
    %464 = tpu.reciprocal %463 : vector<1x1xf32> -> vector<1x1xf32>
    %465 = vector.broadcast %464 : vector<1x1xf32> to vector<1x10xf32>
    %466 = arith.mulf %461, %465 : vector<1x10xf32>
    %cst_134 = arith.constant dense<0.000000e+00> : vector<1x128xf32>
    %467 = tpu.matmul %466, %336, %cst_134 {dimension_numbers = #tpu.dot_dimension_numbers<[1], [0], [0], [1], [0, 0, 1, 1], [], []>, precision = #tpu.contract_precision<fp32>} : vector<1x10xf32>, vector<10x128xf32>, vector<1x128xf32> -> vector<1x128xf32>
    %468 = arith.addf %455, %467 : vector<1x128xf32>
    %cst_135 = arith.constant dense<0.000000e+00> : vector<1x128xf32>
    %469 = tpu.matmul %439, %337, %cst_135 {dimension_numbers = #tpu.dot_dimension_numbers<[1], [0], [0], [1], [0, 0, 1, 1], [], []>, precision = #tpu.contract_precision<fp32>} : vector<1x32xf32>, vector<32x128xf32>, vector<1x128xf32> -> vector<1x128xf32>
    %470 = arith.addf %468, %469 : vector<1x128xf32>
    %471 = arith.addf %470, %338 : vector<1x128xf32>
    %472 = vector.extract_strided_slice %471 {offsets = [0, 0], sizes = [1, 32], strides = [1, 1]} : vector<1x128xf32> to vector<1x32xf32>
    %473 = arith.negf %472 : vector<1x32xf32>
    %474 = math.exp %473 : vector<1x32xf32>
    %cst_136 = arith.constant 1.000000e+00 : f32
    %475 = vector.broadcast %cst_136 : f32 to vector<1x32xf32>
    %476 = arith.addf %475, %474 : vector<1x32xf32>
    %477 = arith.divf %475, %476 : vector<1x32xf32>
    %478 = vector.extract_strided_slice %471 {offsets = [0, 32], sizes = [1, 32], strides = [1, 1]} : vector<1x128xf32> to vector<1x32xf32>
    %479 = arith.negf %478 : vector<1x32xf32>
    %480 = math.exp %479 : vector<1x32xf32>
    %cst_137 = arith.constant 1.000000e+00 : f32
    %481 = vector.broadcast %cst_137 : f32 to vector<1x32xf32>
    %482 = arith.addf %481, %480 : vector<1x32xf32>
    %483 = arith.divf %481, %482 : vector<1x32xf32>
    %484 = vector.extract_strided_slice %471 {offsets = [0, 64], sizes = [1, 32], strides = [1, 1]} : vector<1x128xf32> to vector<1x32xf32>
    %485 = math.tanh %484 : vector<1x32xf32>
    %486 = vector.extract_strided_slice %471 {offsets = [0, 96], sizes = [1, 32], strides = [1, 1]} : vector<1x128xf32> to vector<1x32xf32>
    %487 = arith.negf %486 : vector<1x32xf32>
    %488 = math.exp %487 : vector<1x32xf32>
    %cst_138 = arith.constant 1.000000e+00 : f32
    %489 = vector.broadcast %cst_138 : f32 to vector<1x32xf32>
    %490 = arith.addf %489, %488 : vector<1x32xf32>
    %491 = arith.divf %489, %490 : vector<1x32xf32>
    %492 = arith.mulf %483, %437 : vector<1x32xf32>
    %493 = arith.mulf %477, %485 : vector<1x32xf32>
    %494 = arith.addf %492, %493 : vector<1x32xf32>
    %495 = math.tanh %494 : vector<1x32xf32>
    %496 = arith.mulf %491, %495 : vector<1x32xf32>
    %cst_139 = arith.constant dense<0.000000e+00> : vector<1x32xf32>
    %497 = tpu.matmul %496, %339, %cst_139 {dimension_numbers = #tpu.dot_dimension_numbers<[1], [0], [0], [1], [0, 0, 1, 1], [], []>, precision = #tpu.contract_precision<fp32>} : vector<1x32xf32>, vector<32x32xf32>, vector<1x32xf32> -> vector<1x32xf32>
    %498 = arith.addf %497, %340 : vector<1x32xf32>
    %c2_140 = arith.constant 2 : index
    %c0_141 = arith.constant 0 : index
    %499 = vector.load %arg12[%c2_140, %c0_141] : memref<10x32xf32, #tpu.memory_space<vmem>>, vector<1x32xf32>
    tpu.vector_store %arg12[%c2_140, %c0_141], %498 {strides = array<i32>} : memref<10x32xf32, #tpu.memory_space<vmem>>, vector<1x32xf32>,
    %cst_142 = arith.constant dense<0xFF800000> : vector<1xf32>
    %500 = vector.multi_reduction <maximumf>, %498, %cst_142 [1] : vector<1x32xf32> to vector<1xf32>
    %501 = vector.shape_cast %500 : vector<1xf32> to vector<1x1xf32>
    %502 = vector.broadcast %501 : vector<1x1xf32> to vector<1x32xf32>
    %503 = arith.cmpf oeq, %498, %502 : vector<1x32xf32>
    %c32_i32_143 = arith.constant 32 : i32
    %504 = vector.broadcast %c32_i32_143 : i32 to vector<1x32xi32>
    %505 = arith.select %503, %0, %504 : vector<1x32xi1>, vector<1x32xi32>
    %cst_144 = arith.constant dense<2147483647> : vector<1xi32>
    %506 = vector.multi_reduction <minsi>, %505, %cst_144 [1] : vector<1x32xi32> to vector<1xi32>
    %507 = vector.shape_cast %506 : vector<1xi32> to vector<1x1xi32>
    %508 = vector.broadcast %507 : vector<1x1xi32> to vector<1x32xi32>
    %509 = arith.cmpi eq, %0, %508 : vector<1x32xi32>
    %510 = arith.extui %509 : vector<1x32xi1> to vector<1x32xi32>
    %511 = arith.sitofp %510 : vector<1x32xi32> to vector<1x32xf32>
    %cst_145 = arith.constant dense<0.000000e+00> : vector<1x128xf32>
    %512 = tpu.matmul %511, %8, %cst_145 {dimension_numbers = #tpu.dot_dimension_numbers<[1], [0], [0], [1], [0, 0, 1, 1], [], []>, precision = #tpu.contract_precision<fp32>} : vector<1x32xf32>, vector<32x128xf32>, vector<1x128xf32> -> vector<1x128xf32>
    %cst_146 = arith.constant dense<0.000000e+00> : vector<1x10xf32>
    %513 = tpu.matmul %496, %334, %cst_146 {dimension_numbers = #tpu.dot_dimension_numbers<[1], [1], [0], [0], [0, 0, 1, 0], [], []>, precision = #tpu.contract_precision<fp32>} : vector<1x32xf32>, vector<10x32xf32>, vector<1x10xf32> -> vector<1x10xf32>
    %cst_147 = arith.constant dense<0xFF800000> : vector<1xf32>
    %514 = vector.multi_reduction <maximumf>, %513, %cst_147 [1] : vector<1x10xf32> to vector<1xf32>
    %515 = vector.shape_cast %514 : vector<1xf32> to vector<1x1xf32>
    %516 = vector.broadcast %515 : vector<1x1xf32> to vector<1x10xf32>
    %517 = arith.subf %513, %516 : vector<1x10xf32>
    %518 = math.exp %517 : vector<1x10xf32>
    %cst_148 = arith.constant dense<0.000000e+00> : vector<1xf32>
    %519 = vector.multi_reduction <add>, %518, %cst_148 [1] : vector<1x10xf32> to vector<1xf32>
    %520 = vector.shape_cast %519 : vector<1xf32> to vector<1x1xf32>
    %521 = tpu.reciprocal %520 : vector<1x1xf32> -> vector<1x1xf32>
    %522 = vector.broadcast %521 : vector<1x1xf32> to vector<1x10xf32>
    %523 = arith.mulf %518, %522 : vector<1x10xf32>
    %cst_149 = arith.constant dense<0.000000e+00> : vector<1x128xf32>
    %524 = tpu.matmul %523, %336, %cst_149 {dimension_numbers = #tpu.dot_dimension_numbers<[1], [0], [0], [1], [0, 0, 1, 1], [], []>, precision = #tpu.contract_precision<fp32>} : vector<1x10xf32>, vector<10x128xf32>, vector<1x128xf32> -> vector<1x128xf32>
    %525 = arith.addf %512, %524 : vector<1x128xf32>
    %cst_150 = arith.constant dense<0.000000e+00> : vector<1x128xf32>
    %526 = tpu.matmul %496, %337, %cst_150 {dimension_numbers = #tpu.dot_dimension_numbers<[1], [0], [0], [1], [0, 0, 1, 1], [], []>, precision = #tpu.contract_precision<fp32>} : vector<1x32xf32>, vector<32x128xf32>, vector<1x128xf32> -> vector<1x128xf32>
    %527 = arith.addf %525, %526 : vector<1x128xf32>
    %528 = arith.addf %527, %338 : vector<1x128xf32>
    %529 = vector.extract_strided_slice %528 {offsets = [0, 0], sizes = [1, 32], strides = [1, 1]} : vector<1x128xf32> to vector<1x32xf32>
    %530 = arith.negf %529 : vector<1x32xf32>
    %531 = math.exp %530 : vector<1x32xf32>
    %cst_151 = arith.constant 1.000000e+00 : f32
    %532 = vector.broadcast %cst_151 : f32 to vector<1x32xf32>
    %533 = arith.addf %532, %531 : vector<1x32xf32>
    %534 = arith.divf %532, %533 : vector<1x32xf32>
    %535 = vector.extract_strided_slice %528 {offsets = [0, 32], sizes = [1, 32], strides = [1, 1]} : vector<1x128xf32> to vector<1x32xf32>
    %536 = arith.negf %535 : vector<1x32xf32>
    %537 = math.exp %536 : vector<1x32xf32>
    %cst_152 = arith.constant 1.000000e+00 : f32
    %538 = vector.broadcast %cst_152 : f32 to vector<1x32xf32>
    %539 = arith.addf %538, %537 : vector<1x32xf32>
    %540 = arith.divf %538, %539 : vector<1x32xf32>
    %541 = vector.extract_strided_slice %528 {offsets = [0, 64], sizes = [1, 32], strides = [1, 1]} : vector<1x128xf32> to vector<1x32xf32>
    %542 = math.tanh %541 : vector<1x32xf32>
    %543 = vector.extract_strided_slice %528 {offsets = [0, 96], sizes = [1, 32], strides = [1, 1]} : vector<1x128xf32> to vector<1x32xf32>
    %544 = arith.negf %543 : vector<1x32xf32>
    %545 = math.exp %544 : vector<1x32xf32>
    %cst_153 = arith.constant 1.000000e+00 : f32
    %546 = vector.broadcast %cst_153 : f32 to vector<1x32xf32>
    %547 = arith.addf %546, %545 : vector<1x32xf32>
    %548 = arith.divf %546, %547 : vector<1x32xf32>
    %549 = arith.mulf %540, %494 : vector<1x32xf32>
    %550 = arith.mulf %534, %542 : vector<1x32xf32>
    %551 = arith.addf %549, %550 : vector<1x32xf32>
    %552 = math.tanh %551 : vector<1x32xf32>
    %553 = arith.mulf %548, %552 : vector<1x32xf32>
    %cst_154 = arith.constant dense<0.000000e+00> : vector<1x32xf32>
    %554 = tpu.matmul %553, %339, %cst_154 {dimension_numbers = #tpu.dot_dimension_numbers<[1], [0], [0], [1], [0, 0, 1, 1], [], []>, precision = #tpu.contract_precision<fp32>} : vector<1x32xf32>, vector<32x32xf32>, vector<1x32xf32> -> vector<1x32xf32>
    %555 = arith.addf %554, %340 : vector<1x32xf32>
    %c3_155 = arith.constant 3 : index
    %c0_156 = arith.constant 0 : index
    %556 = vector.load %arg12[%c3_155, %c0_156] : memref<10x32xf32, #tpu.memory_space<vmem>>, vector<1x32xf32>
    tpu.vector_store %arg12[%c3_155, %c0_156], %555 {strides = array<i32>} : memref<10x32xf32, #tpu.memory_space<vmem>>, vector<1x32xf32>,
    %cst_157 = arith.constant dense<0xFF800000> : vector<1xf32>
    %557 = vector.multi_reduction <maximumf>, %555, %cst_157 [1] : vector<1x32xf32> to vector<1xf32>
    %558 = vector.shape_cast %557 : vector<1xf32> to vector<1x1xf32>
    %559 = vector.broadcast %558 : vector<1x1xf32> to vector<1x32xf32>
    %560 = arith.cmpf oeq, %555, %559 : vector<1x32xf32>
    %c32_i32_158 = arith.constant 32 : i32
    %561 = vector.broadcast %c32_i32_158 : i32 to vector<1x32xi32>
    %562 = arith.select %560, %0, %561 : vector<1x32xi1>, vector<1x32xi32>
    %cst_159 = arith.constant dense<2147483647> : vector<1xi32>
    %563 = vector.multi_reduction <minsi>, %562, %cst_159 [1] : vector<1x32xi32> to vector<1xi32>
    %564 = vector.shape_cast %563 : vector<1xi32> to vector<1x1xi32>
    %565 = vector.broadcast %564 : vector<1x1xi32> to vector<1x32xi32>
    %566 = arith.cmpi eq, %0, %565 : vector<1x32xi32>
    %567 = arith.extui %566 : vector<1x32xi1> to vector<1x32xi32>
    %568 = arith.sitofp %567 : vector<1x32xi32> to vector<1x32xf32>
    %cst_160 = arith.constant dense<0.000000e+00> : vector<1x128xf32>
    %569 = tpu.matmul %568, %8, %cst_160 {dimension_numbers = #tpu.dot_dimension_numbers<[1], [0], [0], [1], [0, 0, 1, 1], [], []>, precision = #tpu.contract_precision<fp32>} : vector<1x32xf32>, vector<32x128xf32>, vector<1x128xf32> -> vector<1x128xf32>
    %cst_161 = arith.constant dense<0.000000e+00> : vector<1x10xf32>
    %570 = tpu.matmul %553, %334, %cst_161 {dimension_numbers = #tpu.dot_dimension_numbers<[1], [1], [0], [0], [0, 0, 1, 0], [], []>, precision = #tpu.contract_precision<fp32>} : vector<1x32xf32>, vector<10x32xf32>, vector<1x10xf32> -> vector<1x10xf32>
    %cst_162 = arith.constant dense<0xFF800000> : vector<1xf32>
    %571 = vector.multi_reduction <maximumf>, %570, %cst_162 [1] : vector<1x10xf32> to vector<1xf32>
    %572 = vector.shape_cast %571 : vector<1xf32> to vector<1x1xf32>
    %573 = vector.broadcast %572 : vector<1x1xf32> to vector<1x10xf32>
    %574 = arith.subf %570, %573 : vector<1x10xf32>
    %575 = math.exp %574 : vector<1x10xf32>
    %cst_163 = arith.constant dense<0.000000e+00> : vector<1xf32>
    %576 = vector.multi_reduction <add>, %575, %cst_163 [1] : vector<1x10xf32> to vector<1xf32>
    %577 = vector.shape_cast %576 : vector<1xf32> to vector<1x1xf32>
    %578 = tpu.reciprocal %577 : vector<1x1xf32> -> vector<1x1xf32>
    %579 = vector.broadcast %578 : vector<1x1xf32> to vector<1x10xf32>
    %580 = arith.mulf %575, %579 : vector<1x10xf32>
    %cst_164 = arith.constant dense<0.000000e+00> : vector<1x128xf32>
    %581 = tpu.matmul %580, %336, %cst_164 {dimension_numbers = #tpu.dot_dimension_numbers<[1], [0], [0], [1], [0, 0, 1, 1], [], []>, precision = #tpu.contract_precision<fp32>} : vector<1x10xf32>, vector<10x128xf32>, vector<1x128xf32> -> vector<1x128xf32>
    %582 = arith.addf %569, %581 : vector<1x128xf32>
    %cst_165 = arith.constant dense<0.000000e+00> : vector<1x128xf32>
    %583 = tpu.matmul %553, %337, %cst_165 {dimension_numbers = #tpu.dot_dimension_numbers<[1], [0], [0], [1], [0, 0, 1, 1], [], []>, precision = #tpu.contract_precision<fp32>} : vector<1x32xf32>, vector<32x128xf32>, vector<1x128xf32> -> vector<1x128xf32>
    %584 = arith.addf %582, %583 : vector<1x128xf32>
    %585 = arith.addf %584, %338 : vector<1x128xf32>
    %586 = vector.extract_strided_slice %585 {offsets = [0, 0], sizes = [1, 32], strides = [1, 1]} : vector<1x128xf32> to vector<1x32xf32>
    %587 = arith.negf %586 : vector<1x32xf32>
    %588 = math.exp %587 : vector<1x32xf32>
    %cst_166 = arith.constant 1.000000e+00 : f32
    %589 = vector.broadcast %cst_166 : f32 to vector<1x32xf32>
    %590 = arith.addf %589, %588 : vector<1x32xf32>
    %591 = arith.divf %589, %590 : vector<1x32xf32>
    %592 = vector.extract_strided_slice %585 {offsets = [0, 32], sizes = [1, 32], strides = [1, 1]} : vector<1x128xf32> to vector<1x32xf32>
    %593 = arith.negf %592 : vector<1x32xf32>
    %594 = math.exp %593 : vector<1x32xf32>
    %cst_167 = arith.constant 1.000000e+00 : f32
    %595 = vector.broadcast %cst_167 : f32 to vector<1x32xf32>
    %596 = arith.addf %595, %594 : vector<1x32xf32>
    %597 = arith.divf %595, %596 : vector<1x32xf32>
    %598 = vector.extract_strided_slice %585 {offsets = [0, 64], sizes = [1, 32], strides = [1, 1]} : vector<1x128xf32> to vector<1x32xf32>
    %599 = math.tanh %598 : vector<1x32xf32>
    %600 = vector.extract_strided_slice %585 {offsets = [0, 96], sizes = [1, 32], strides = [1, 1]} : vector<1x128xf32> to vector<1x32xf32>
    %601 = arith.negf %600 : vector<1x32xf32>
    %602 = math.exp %601 : vector<1x32xf32>
    %cst_168 = arith.constant 1.000000e+00 : f32
    %603 = vector.broadcast %cst_168 : f32 to vector<1x32xf32>
    %604 = arith.addf %603, %602 : vector<1x32xf32>
    %605 = arith.divf %603, %604 : vector<1x32xf32>
    %606 = arith.mulf %597, %551 : vector<1x32xf32>
    %607 = arith.mulf %591, %599 : vector<1x32xf32>
    %608 = arith.addf %606, %607 : vector<1x32xf32>
    %609 = math.tanh %608 : vector<1x32xf32>
    %610 = arith.mulf %605, %609 : vector<1x32xf32>
    %cst_169 = arith.constant dense<0.000000e+00> : vector<1x32xf32>
    %611 = tpu.matmul %610, %339, %cst_169 {dimension_numbers = #tpu.dot_dimension_numbers<[1], [0], [0], [1], [0, 0, 1, 1], [], []>, precision = #tpu.contract_precision<fp32>} : vector<1x32xf32>, vector<32x32xf32>, vector<1x32xf32> -> vector<1x32xf32>
    %612 = arith.addf %611, %340 : vector<1x32xf32>
    %c4_170 = arith.constant 4 : index
    %c0_171 = arith.constant 0 : index
    %613 = vector.load %arg12[%c4_170, %c0_171] : memref<10x32xf32, #tpu.memory_space<vmem>>, vector<1x32xf32>
    tpu.vector_store %arg12[%c4_170, %c0_171], %612 {strides = array<i32>} : memref<10x32xf32, #tpu.memory_space<vmem>>, vector<1x32xf32>,
    %cst_172 = arith.constant dense<0xFF800000> : vector<1xf32>
    %614 = vector.multi_reduction <maximumf>, %612, %cst_172 [1] : vector<1x32xf32> to vector<1xf32>
    %615 = vector.shape_cast %614 : vector<1xf32> to vector<1x1xf32>
    %616 = vector.broadcast %615 : vector<1x1xf32> to vector<1x32xf32>
    %617 = arith.cmpf oeq, %612, %616 : vector<1x32xf32>
    %c32_i32_173 = arith.constant 32 : i32
    %618 = vector.broadcast %c32_i32_173 : i32 to vector<1x32xi32>
    %619 = arith.select %617, %0, %618 : vector<1x32xi1>, vector<1x32xi32>
    %cst_174 = arith.constant dense<2147483647> : vector<1xi32>
    %620 = vector.multi_reduction <minsi>, %619, %cst_174 [1] : vector<1x32xi32> to vector<1xi32>
    %621 = vector.shape_cast %620 : vector<1xi32> to vector<1x1xi32>
    %622 = vector.broadcast %621 : vector<1x1xi32> to vector<1x32xi32>
    %623 = arith.cmpi eq, %0, %622 : vector<1x32xi32>
    %624 = arith.extui %623 : vector<1x32xi1> to vector<1x32xi32>
    %625 = arith.sitofp %624 : vector<1x32xi32> to vector<1x32xf32>
    %cst_175 = arith.constant dense<0.000000e+00> : vector<1x128xf32>
    %626 = tpu.matmul %625, %8, %cst_175 {dimension_numbers = #tpu.dot_dimension_numbers<[1], [0], [0], [1], [0, 0, 1, 1], [], []>, precision = #tpu.contract_precision<fp32>} : vector<1x32xf32>, vector<32x128xf32>, vector<1x128xf32> -> vector<1x128xf32>
    %cst_176 = arith.constant dense<0.000000e+00> : vector<1x10xf32>
    %627 = tpu.matmul %610, %334, %cst_176 {dimension_numbers = #tpu.dot_dimension_numbers<[1], [1], [0], [0], [0, 0, 1, 0], [], []>, precision = #tpu.contract_precision<fp32>} : vector<1x32xf32>, vector<10x32xf32>, vector<1x10xf32> -> vector<1x10xf32>
    %cst_177 = arith.constant dense<0xFF800000> : vector<1xf32>
    %628 = vector.multi_reduction <maximumf>, %627, %cst_177 [1] : vector<1x10xf32> to vector<1xf32>
    %629 = vector.shape_cast %628 : vector<1xf32> to vector<1x1xf32>
    %630 = vector.broadcast %629 : vector<1x1xf32> to vector<1x10xf32>
    %631 = arith.subf %627, %630 : vector<1x10xf32>
    %632 = math.exp %631 : vector<1x10xf32>
    %cst_178 = arith.constant dense<0.000000e+00> : vector<1xf32>
    %633 = vector.multi_reduction <add>, %632, %cst_178 [1] : vector<1x10xf32> to vector<1xf32>
    %634 = vector.shape_cast %633 : vector<1xf32> to vector<1x1xf32>
    %635 = tpu.reciprocal %634 : vector<1x1xf32> -> vector<1x1xf32>
    %636 = vector.broadcast %635 : vector<1x1xf32> to vector<1x10xf32>
    %637 = arith.mulf %632, %636 : vector<1x10xf32>
    %cst_179 = arith.constant dense<0.000000e+00> : vector<1x128xf32>
    %638 = tpu.matmul %637, %336, %cst_179 {dimension_numbers = #tpu.dot_dimension_numbers<[1], [0], [0], [1], [0, 0, 1, 1], [], []>, precision = #tpu.contract_precision<fp32>} : vector<1x10xf32>, vector<10x128xf32>, vector<1x128xf32> -> vector<1x128xf32>
    %639 = arith.addf %626, %638 : vector<1x128xf32>
    %cst_180 = arith.constant dense<0.000000e+00> : vector<1x128xf32>
    %640 = tpu.matmul %610, %337, %cst_180 {dimension_numbers = #tpu.dot_dimension_numbers<[1], [0], [0], [1], [0, 0, 1, 1], [], []>, precision = #tpu.contract_precision<fp32>} : vector<1x32xf32>, vector<32x128xf32>, vector<1x128xf32> -> vector<1x128xf32>
    %641 = arith.addf %639, %640 : vector<1x128xf32>
    %642 = arith.addf %641, %338 : vector<1x128xf32>
    %643 = vector.extract_strided_slice %642 {offsets = [0, 0], sizes = [1, 32], strides = [1, 1]} : vector<1x128xf32> to vector<1x32xf32>
    %644 = arith.negf %643 : vector<1x32xf32>
    %645 = math.exp %644 : vector<1x32xf32>
    %cst_181 = arith.constant 1.000000e+00 : f32
    %646 = vector.broadcast %cst_181 : f32 to vector<1x32xf32>
    %647 = arith.addf %646, %645 : vector<1x32xf32>
    %648 = arith.divf %646, %647 : vector<1x32xf32>
    %649 = vector.extract_strided_slice %642 {offsets = [0, 32], sizes = [1, 32], strides = [1, 1]} : vector<1x128xf32> to vector<1x32xf32>
    %650 = arith.negf %649 : vector<1x32xf32>
    %651 = math.exp %650 : vector<1x32xf32>
    %cst_182 = arith.constant 1.000000e+00 : f32
    %652 = vector.broadcast %cst_182 : f32 to vector<1x32xf32>
    %653 = arith.addf %652, %651 : vector<1x32xf32>
    %654 = arith.divf %652, %653 : vector<1x32xf32>
    %655 = vector.extract_strided_slice %642 {offsets = [0, 64], sizes = [1, 32], strides = [1, 1]} : vector<1x128xf32> to vector<1x32xf32>
    %656 = math.tanh %655 : vector<1x32xf32>
    %657 = vector.extract_strided_slice %642 {offsets = [0, 96], sizes = [1, 32], strides = [1, 1]} : vector<1x128xf32> to vector<1x32xf32>
    %658 = arith.negf %657 : vector<1x32xf32>
    %659 = math.exp %658 : vector<1x32xf32>
    %cst_183 = arith.constant 1.000000e+00 : f32
    %660 = vector.broadcast %cst_183 : f32 to vector<1x32xf32>
    %661 = arith.addf %660, %659 : vector<1x32xf32>
    %662 = arith.divf %660, %661 : vector<1x32xf32>
    %663 = arith.mulf %654, %608 : vector<1x32xf32>
    %664 = arith.mulf %648, %656 : vector<1x32xf32>
    %665 = arith.addf %663, %664 : vector<1x32xf32>
    %666 = math.tanh %665 : vector<1x32xf32>
    %667 = arith.mulf %662, %666 : vector<1x32xf32>
    %cst_184 = arith.constant dense<0.000000e+00> : vector<1x32xf32>
    %668 = tpu.matmul %667, %339, %cst_184 {dimension_numbers = #tpu.dot_dimension_numbers<[1], [0], [0], [1], [0, 0, 1, 1], [], []>, precision = #tpu.contract_precision<fp32>} : vector<1x32xf32>, vector<32x32xf32>, vector<1x32xf32> -> vector<1x32xf32>
    %669 = arith.addf %668, %340 : vector<1x32xf32>
    %c5_185 = arith.constant 5 : index
    %c0_186 = arith.constant 0 : index
    %670 = vector.load %arg12[%c5_185, %c0_186] : memref<10x32xf32, #tpu.memory_space<vmem>>, vector<1x32xf32>
    tpu.vector_store %arg12[%c5_185, %c0_186], %669 {strides = array<i32>} : memref<10x32xf32, #tpu.memory_space<vmem>>, vector<1x32xf32>,
    %cst_187 = arith.constant dense<0xFF800000> : vector<1xf32>
    %671 = vector.multi_reduction <maximumf>, %669, %cst_187 [1] : vector<1x32xf32> to vector<1xf32>
    %672 = vector.shape_cast %671 : vector<1xf32> to vector<1x1xf32>
    %673 = vector.broadcast %672 : vector<1x1xf32> to vector<1x32xf32>
    %674 = arith.cmpf oeq, %669, %673 : vector<1x32xf32>
    %c32_i32_188 = arith.constant 32 : i32
    %675 = vector.broadcast %c32_i32_188 : i32 to vector<1x32xi32>
    %676 = arith.select %674, %0, %675 : vector<1x32xi1>, vector<1x32xi32>
    %cst_189 = arith.constant dense<2147483647> : vector<1xi32>
    %677 = vector.multi_reduction <minsi>, %676, %cst_189 [1] : vector<1x32xi32> to vector<1xi32>
    %678 = vector.shape_cast %677 : vector<1xi32> to vector<1x1xi32>
    %679 = vector.broadcast %678 : vector<1x1xi32> to vector<1x32xi32>
    %680 = arith.cmpi eq, %0, %679 : vector<1x32xi32>
    %681 = arith.extui %680 : vector<1x32xi1> to vector<1x32xi32>
    %682 = arith.sitofp %681 : vector<1x32xi32> to vector<1x32xf32>
    %cst_190 = arith.constant dense<0.000000e+00> : vector<1x128xf32>
    %683 = tpu.matmul %682, %8, %cst_190 {dimension_numbers = #tpu.dot_dimension_numbers<[1], [0], [0], [1], [0, 0, 1, 1], [], []>, precision = #tpu.contract_precision<fp32>} : vector<1x32xf32>, vector<32x128xf32>, vector<1x128xf32> -> vector<1x128xf32>
    %cst_191 = arith.constant dense<0.000000e+00> : vector<1x10xf32>
    %684 = tpu.matmul %667, %334, %cst_191 {dimension_numbers = #tpu.dot_dimension_numbers<[1], [1], [0], [0], [0, 0, 1, 0], [], []>, precision = #tpu.contract_precision<fp32>} : vector<1x32xf32>, vector<10x32xf32>, vector<1x10xf32> -> vector<1x10xf32>
    %cst_192 = arith.constant dense<0xFF800000> : vector<1xf32>
    %685 = vector.multi_reduction <maximumf>, %684, %cst_192 [1] : vector<1x10xf32> to vector<1xf32>
    %686 = vector.shape_cast %685 : vector<1xf32> to vector<1x1xf32>
    %687 = vector.broadcast %686 : vector<1x1xf32> to vector<1x10xf32>
    %688 = arith.subf %684, %687 : vector<1x10xf32>
    %689 = math.exp %688 : vector<1x10xf32>
    %cst_193 = arith.constant dense<0.000000e+00> : vector<1xf32>
    %690 = vector.multi_reduction <add>, %689, %cst_193 [1] : vector<1x10xf32> to vector<1xf32>
    %691 = vector.shape_cast %690 : vector<1xf32> to vector<1x1xf32>
    %692 = tpu.reciprocal %691 : vector<1x1xf32> -> vector<1x1xf32>
    %693 = vector.broadcast %692 : vector<1x1xf32> to vector<1x10xf32>
    %694 = arith.mulf %689, %693 : vector<1x10xf32>
    %cst_194 = arith.constant dense<0.000000e+00> : vector<1x128xf32>
    %695 = tpu.matmul %694, %336, %cst_194 {dimension_numbers = #tpu.dot_dimension_numbers<[1], [0], [0], [1], [0, 0, 1, 1], [], []>, precision = #tpu.contract_precision<fp32>} : vector<1x10xf32>, vector<10x128xf32>, vector<1x128xf32> -> vector<1x128xf32>
    %696 = arith.addf %683, %695 : vector<1x128xf32>
    %cst_195 = arith.constant dense<0.000000e+00> : vector<1x128xf32>
    %697 = tpu.matmul %667, %337, %cst_195 {dimension_numbers = #tpu.dot_dimension_numbers<[1], [0], [0], [1], [0, 0, 1, 1], [], []>, precision = #tpu.contract_precision<fp32>} : vector<1x32xf32>, vector<32x128xf32>, vector<1x128xf32> -> vector<1x128xf32>
    %698 = arith.addf %696, %697 : vector<1x128xf32>
    %699 = arith.addf %698, %338 : vector<1x128xf32>
    %700 = vector.extract_strided_slice %699 {offsets = [0, 0], sizes = [1, 32], strides = [1, 1]} : vector<1x128xf32> to vector<1x32xf32>
    %701 = arith.negf %700 : vector<1x32xf32>
    %702 = math.exp %701 : vector<1x32xf32>
    %cst_196 = arith.constant 1.000000e+00 : f32
    %703 = vector.broadcast %cst_196 : f32 to vector<1x32xf32>
    %704 = arith.addf %703, %702 : vector<1x32xf32>
    %705 = arith.divf %703, %704 : vector<1x32xf32>
    %706 = vector.extract_strided_slice %699 {offsets = [0, 32], sizes = [1, 32], strides = [1, 1]} : vector<1x128xf32> to vector<1x32xf32>
    %707 = arith.negf %706 : vector<1x32xf32>
    %708 = math.exp %707 : vector<1x32xf32>
    %cst_197 = arith.constant 1.000000e+00 : f32
    %709 = vector.broadcast %cst_197 : f32 to vector<1x32xf32>
    %710 = arith.addf %709, %708 : vector<1x32xf32>
    %711 = arith.divf %709, %710 : vector<1x32xf32>
    %712 = vector.extract_strided_slice %699 {offsets = [0, 64], sizes = [1, 32], strides = [1, 1]} : vector<1x128xf32> to vector<1x32xf32>
    %713 = math.tanh %712 : vector<1x32xf32>
    %714 = vector.extract_strided_slice %699 {offsets = [0, 96], sizes = [1, 32], strides = [1, 1]} : vector<1x128xf32> to vector<1x32xf32>
    %715 = arith.negf %714 : vector<1x32xf32>
    %716 = math.exp %715 : vector<1x32xf32>
    %cst_198 = arith.constant 1.000000e+00 : f32
    %717 = vector.broadcast %cst_198 : f32 to vector<1x32xf32>
    %718 = arith.addf %717, %716 : vector<1x32xf32>
    %719 = arith.divf %717, %718 : vector<1x32xf32>
    %720 = arith.mulf %711, %665 : vector<1x32xf32>
    %721 = arith.mulf %705, %713 : vector<1x32xf32>
    %722 = arith.addf %720, %721 : vector<1x32xf32>
    %723 = math.tanh %722 : vector<1x32xf32>
    %724 = arith.mulf %719, %723 : vector<1x32xf32>
    %cst_199 = arith.constant dense<0.000000e+00> : vector<1x32xf32>
    %725 = tpu.matmul %724, %339, %cst_199 {dimension_numbers = #tpu.dot_dimension_numbers<[1], [0], [0], [1], [0, 0, 1, 1], [], []>, precision = #tpu.contract_precision<fp32>} : vector<1x32xf32>, vector<32x32xf32>, vector<1x32xf32> -> vector<1x32xf32>
    %726 = arith.addf %725, %340 : vector<1x32xf32>
    %c6_200 = arith.constant 6 : index
    %c0_201 = arith.constant 0 : index
    %727 = vector.load %arg12[%c6_200, %c0_201] : memref<10x32xf32, #tpu.memory_space<vmem>>, vector<1x32xf32>
    tpu.vector_store %arg12[%c6_200, %c0_201], %726 {strides = array<i32>} : memref<10x32xf32, #tpu.memory_space<vmem>>, vector<1x32xf32>,
    %cst_202 = arith.constant dense<0xFF800000> : vector<1xf32>
    %728 = vector.multi_reduction <maximumf>, %726, %cst_202 [1] : vector<1x32xf32> to vector<1xf32>
    %729 = vector.shape_cast %728 : vector<1xf32> to vector<1x1xf32>
    %730 = vector.broadcast %729 : vector<1x1xf32> to vector<1x32xf32>
    %731 = arith.cmpf oeq, %726, %730 : vector<1x32xf32>
    %c32_i32_203 = arith.constant 32 : i32
    %732 = vector.broadcast %c32_i32_203 : i32 to vector<1x32xi32>
    %733 = arith.select %731, %0, %732 : vector<1x32xi1>, vector<1x32xi32>
    %cst_204 = arith.constant dense<2147483647> : vector<1xi32>
    %734 = vector.multi_reduction <minsi>, %733, %cst_204 [1] : vector<1x32xi32> to vector<1xi32>
    %735 = vector.shape_cast %734 : vector<1xi32> to vector<1x1xi32>
    %736 = vector.broadcast %735 : vector<1x1xi32> to vector<1x32xi32>
    %737 = arith.cmpi eq, %0, %736 : vector<1x32xi32>
    %738 = arith.extui %737 : vector<1x32xi1> to vector<1x32xi32>
    %739 = arith.sitofp %738 : vector<1x32xi32> to vector<1x32xf32>
    %cst_205 = arith.constant dense<0.000000e+00> : vector<1x128xf32>
    %740 = tpu.matmul %739, %8, %cst_205 {dimension_numbers = #tpu.dot_dimension_numbers<[1], [0], [0], [1], [0, 0, 1, 1], [], []>, precision = #tpu.contract_precision<fp32>} : vector<1x32xf32>, vector<32x128xf32>, vector<1x128xf32> -> vector<1x128xf32>
    %cst_206 = arith.constant dense<0.000000e+00> : vector<1x10xf32>
    %741 = tpu.matmul %724, %334, %cst_206 {dimension_numbers = #tpu.dot_dimension_numbers<[1], [1], [0], [0], [0, 0, 1, 0], [], []>, precision = #tpu.contract_precision<fp32>} : vector<1x32xf32>, vector<10x32xf32>, vector<1x10xf32> -> vector<1x10xf32>
    %cst_207 = arith.constant dense<0xFF800000> : vector<1xf32>
    %742 = vector.multi_reduction <maximumf>, %741, %cst_207 [1] : vector<1x10xf32> to vector<1xf32>
    %743 = vector.shape_cast %742 : vector<1xf32> to vector<1x1xf32>
    %744 = vector.broadcast %743 : vector<1x1xf32> to vector<1x10xf32>
    %745 = arith.subf %741, %744 : vector<1x10xf32>
    %746 = math.exp %745 : vector<1x10xf32>
    %cst_208 = arith.constant dense<0.000000e+00> : vector<1xf32>
    %747 = vector.multi_reduction <add>, %746, %cst_208 [1] : vector<1x10xf32> to vector<1xf32>
    %748 = vector.shape_cast %747 : vector<1xf32> to vector<1x1xf32>
    %749 = tpu.reciprocal %748 : vector<1x1xf32> -> vector<1x1xf32>
    %750 = vector.broadcast %749 : vector<1x1xf32> to vector<1x10xf32>
    %751 = arith.mulf %746, %750 : vector<1x10xf32>
    %cst_209 = arith.constant dense<0.000000e+00> : vector<1x128xf32>
    %752 = tpu.matmul %751, %336, %cst_209 {dimension_numbers = #tpu.dot_dimension_numbers<[1], [0], [0], [1], [0, 0, 1, 1], [], []>, precision = #tpu.contract_precision<fp32>} : vector<1x10xf32>, vector<10x128xf32>, vector<1x128xf32> -> vector<1x128xf32>
    %753 = arith.addf %740, %752 : vector<1x128xf32>
    %cst_210 = arith.constant dense<0.000000e+00> : vector<1x128xf32>
    %754 = tpu.matmul %724, %337, %cst_210 {dimension_numbers = #tpu.dot_dimension_numbers<[1], [0], [0], [1], [0, 0, 1, 1], [], []>, precision = #tpu.contract_precision<fp32>} : vector<1x32xf32>, vector<32x128xf32>, vector<1x128xf32> -> vector<1x128xf32>
    %755 = arith.addf %753, %754 : vector<1x128xf32>
    %756 = arith.addf %755, %338 : vector<1x128xf32>
    %757 = vector.extract_strided_slice %756 {offsets = [0, 0], sizes = [1, 32], strides = [1, 1]} : vector<1x128xf32> to vector<1x32xf32>
    %758 = arith.negf %757 : vector<1x32xf32>
    %759 = math.exp %758 : vector<1x32xf32>
    %cst_211 = arith.constant 1.000000e+00 : f32
    %760 = vector.broadcast %cst_211 : f32 to vector<1x32xf32>
    %761 = arith.addf %760, %759 : vector<1x32xf32>
    %762 = arith.divf %760, %761 : vector<1x32xf32>
    %763 = vector.extract_strided_slice %756 {offsets = [0, 32], sizes = [1, 32], strides = [1, 1]} : vector<1x128xf32> to vector<1x32xf32>
    %764 = arith.negf %763 : vector<1x32xf32>
    %765 = math.exp %764 : vector<1x32xf32>
    %cst_212 = arith.constant 1.000000e+00 : f32
    %766 = vector.broadcast %cst_212 : f32 to vector<1x32xf32>
    %767 = arith.addf %766, %765 : vector<1x32xf32>
    %768 = arith.divf %766, %767 : vector<1x32xf32>
    %769 = vector.extract_strided_slice %756 {offsets = [0, 64], sizes = [1, 32], strides = [1, 1]} : vector<1x128xf32> to vector<1x32xf32>
    %770 = math.tanh %769 : vector<1x32xf32>
    %771 = vector.extract_strided_slice %756 {offsets = [0, 96], sizes = [1, 32], strides = [1, 1]} : vector<1x128xf32> to vector<1x32xf32>
    %772 = arith.negf %771 : vector<1x32xf32>
    %773 = math.exp %772 : vector<1x32xf32>
    %cst_213 = arith.constant 1.000000e+00 : f32
    %774 = vector.broadcast %cst_213 : f32 to vector<1x32xf32>
    %775 = arith.addf %774, %773 : vector<1x32xf32>
    %776 = arith.divf %774, %775 : vector<1x32xf32>
    %777 = arith.mulf %768, %722 : vector<1x32xf32>
    %778 = arith.mulf %762, %770 : vector<1x32xf32>
    %779 = arith.addf %777, %778 : vector<1x32xf32>
    %780 = math.tanh %779 : vector<1x32xf32>
    %781 = arith.mulf %776, %780 : vector<1x32xf32>
    %cst_214 = arith.constant dense<0.000000e+00> : vector<1x32xf32>
    %782 = tpu.matmul %781, %339, %cst_214 {dimension_numbers = #tpu.dot_dimension_numbers<[1], [0], [0], [1], [0, 0, 1, 1], [], []>, precision = #tpu.contract_precision<fp32>} : vector<1x32xf32>, vector<32x32xf32>, vector<1x32xf32> -> vector<1x32xf32>
    %783 = arith.addf %782, %340 : vector<1x32xf32>
    %c7_215 = arith.constant 7 : index
    %c0_216 = arith.constant 0 : index
    %784 = vector.load %arg12[%c7_215, %c0_216] : memref<10x32xf32, #tpu.memory_space<vmem>>, vector<1x32xf32>
    tpu.vector_store %arg12[%c7_215, %c0_216], %783 {strides = array<i32>} : memref<10x32xf32, #tpu.memory_space<vmem>>, vector<1x32xf32>,
    %cst_217 = arith.constant dense<0xFF800000> : vector<1xf32>
    %785 = vector.multi_reduction <maximumf>, %783, %cst_217 [1] : vector<1x32xf32> to vector<1xf32>
    %786 = vector.shape_cast %785 : vector<1xf32> to vector<1x1xf32>
    %787 = vector.broadcast %786 : vector<1x1xf32> to vector<1x32xf32>
    %788 = arith.cmpf oeq, %783, %787 : vector<1x32xf32>
    %c32_i32_218 = arith.constant 32 : i32
    %789 = vector.broadcast %c32_i32_218 : i32 to vector<1x32xi32>
    %790 = arith.select %788, %0, %789 : vector<1x32xi1>, vector<1x32xi32>
    %cst_219 = arith.constant dense<2147483647> : vector<1xi32>
    %791 = vector.multi_reduction <minsi>, %790, %cst_219 [1] : vector<1x32xi32> to vector<1xi32>
    %792 = vector.shape_cast %791 : vector<1xi32> to vector<1x1xi32>
    %793 = vector.broadcast %792 : vector<1x1xi32> to vector<1x32xi32>
    %794 = arith.cmpi eq, %0, %793 : vector<1x32xi32>
    %795 = arith.extui %794 : vector<1x32xi1> to vector<1x32xi32>
    %796 = arith.sitofp %795 : vector<1x32xi32> to vector<1x32xf32>
    %cst_220 = arith.constant dense<0.000000e+00> : vector<1x128xf32>
    %797 = tpu.matmul %796, %8, %cst_220 {dimension_numbers = #tpu.dot_dimension_numbers<[1], [0], [0], [1], [0, 0, 1, 1], [], []>, precision = #tpu.contract_precision<fp32>} : vector<1x32xf32>, vector<32x128xf32>, vector<1x128xf32> -> vector<1x128xf32>
    %cst_221 = arith.constant dense<0.000000e+00> : vector<1x10xf32>
    %798 = tpu.matmul %781, %334, %cst_221 {dimension_numbers = #tpu.dot_dimension_numbers<[1], [1], [0], [0], [0, 0, 1, 0], [], []>, precision = #tpu.contract_precision<fp32>} : vector<1x32xf32>, vector<10x32xf32>, vector<1x10xf32> -> vector<1x10xf32>
    %cst_222 = arith.constant dense<0xFF800000> : vector<1xf32>
    %799 = vector.multi_reduction <maximumf>, %798, %cst_222 [1] : vector<1x10xf32> to vector<1xf32>
    %800 = vector.shape_cast %799 : vector<1xf32> to vector<1x1xf32>
    %801 = vector.broadcast %800 : vector<1x1xf32> to vector<1x10xf32>
    %802 = arith.subf %798, %801 : vector<1x10xf32>
    %803 = math.exp %802 : vector<1x10xf32>
    %cst_223 = arith.constant dense<0.000000e+00> : vector<1xf32>
    %804 = vector.multi_reduction <add>, %803, %cst_223 [1] : vector<1x10xf32> to vector<1xf32>
    %805 = vector.shape_cast %804 : vector<1xf32> to vector<1x1xf32>
    %806 = tpu.reciprocal %805 : vector<1x1xf32> -> vector<1x1xf32>
    %807 = vector.broadcast %806 : vector<1x1xf32> to vector<1x10xf32>
    %808 = arith.mulf %803, %807 : vector<1x10xf32>
    %cst_224 = arith.constant dense<0.000000e+00> : vector<1x128xf32>
    %809 = tpu.matmul %808, %336, %cst_224 {dimension_numbers = #tpu.dot_dimension_numbers<[1], [0], [0], [1], [0, 0, 1, 1], [], []>, precision = #tpu.contract_precision<fp32>} : vector<1x10xf32>, vector<10x128xf32>, vector<1x128xf32> -> vector<1x128xf32>
    %810 = arith.addf %797, %809 : vector<1x128xf32>
    %cst_225 = arith.constant dense<0.000000e+00> : vector<1x128xf32>
    %811 = tpu.matmul %781, %337, %cst_225 {dimension_numbers = #tpu.dot_dimension_numbers<[1], [0], [0], [1], [0, 0, 1, 1], [], []>, precision = #tpu.contract_precision<fp32>} : vector<1x32xf32>, vector<32x128xf32>, vector<1x128xf32> -> vector<1x128xf32>
    %812 = arith.addf %810, %811 : vector<1x128xf32>
    %813 = arith.addf %812, %338 : vector<1x128xf32>
    %814 = vector.extract_strided_slice %813 {offsets = [0, 0], sizes = [1, 32], strides = [1, 1]} : vector<1x128xf32> to vector<1x32xf32>
    %815 = arith.negf %814 : vector<1x32xf32>
    %816 = math.exp %815 : vector<1x32xf32>
    %cst_226 = arith.constant 1.000000e+00 : f32
    %817 = vector.broadcast %cst_226 : f32 to vector<1x32xf32>
    %818 = arith.addf %817, %816 : vector<1x32xf32>
    %819 = arith.divf %817, %818 : vector<1x32xf32>
    %820 = vector.extract_strided_slice %813 {offsets = [0, 32], sizes = [1, 32], strides = [1, 1]} : vector<1x128xf32> to vector<1x32xf32>
    %821 = arith.negf %820 : vector<1x32xf32>
    %822 = math.exp %821 : vector<1x32xf32>
    %cst_227 = arith.constant 1.000000e+00 : f32
    %823 = vector.broadcast %cst_227 : f32 to vector<1x32xf32>
    %824 = arith.addf %823, %822 : vector<1x32xf32>
    %825 = arith.divf %823, %824 : vector<1x32xf32>
    %826 = vector.extract_strided_slice %813 {offsets = [0, 64], sizes = [1, 32], strides = [1, 1]} : vector<1x128xf32> to vector<1x32xf32>
    %827 = math.tanh %826 : vector<1x32xf32>
    %828 = vector.extract_strided_slice %813 {offsets = [0, 96], sizes = [1, 32], strides = [1, 1]} : vector<1x128xf32> to vector<1x32xf32>
    %829 = arith.negf %828 : vector<1x32xf32>
    %830 = math.exp %829 : vector<1x32xf32>
    %cst_228 = arith.constant 1.000000e+00 : f32
    %831 = vector.broadcast %cst_228 : f32 to vector<1x32xf32>
    %832 = arith.addf %831, %830 : vector<1x32xf32>
    %833 = arith.divf %831, %832 : vector<1x32xf32>
    %834 = arith.mulf %825, %779 : vector<1x32xf32>
    %835 = arith.mulf %819, %827 : vector<1x32xf32>
    %836 = arith.addf %834, %835 : vector<1x32xf32>
    %837 = math.tanh %836 : vector<1x32xf32>
    %838 = arith.mulf %833, %837 : vector<1x32xf32>
    %cst_229 = arith.constant dense<0.000000e+00> : vector<1x32xf32>
    %839 = tpu.matmul %838, %339, %cst_229 {dimension_numbers = #tpu.dot_dimension_numbers<[1], [0], [0], [1], [0, 0, 1, 1], [], []>, precision = #tpu.contract_precision<fp32>} : vector<1x32xf32>, vector<32x32xf32>, vector<1x32xf32> -> vector<1x32xf32>
    %840 = arith.addf %839, %340 : vector<1x32xf32>
    %c8_230 = arith.constant 8 : index
    %c0_231 = arith.constant 0 : index
    %841 = vector.load %arg12[%c8_230, %c0_231] : memref<10x32xf32, #tpu.memory_space<vmem>>, vector<1x32xf32>
    tpu.vector_store %arg12[%c8_230, %c0_231], %840 {strides = array<i32>} : memref<10x32xf32, #tpu.memory_space<vmem>>, vector<1x32xf32>,
    %cst_232 = arith.constant dense<0xFF800000> : vector<1xf32>
    %842 = vector.multi_reduction <maximumf>, %840, %cst_232 [1] : vector<1x32xf32> to vector<1xf32>
    %843 = vector.shape_cast %842 : vector<1xf32> to vector<1x1xf32>
    %844 = vector.broadcast %843 : vector<1x1xf32> to vector<1x32xf32>
    %845 = arith.cmpf oeq, %840, %844 : vector<1x32xf32>
    %c32_i32_233 = arith.constant 32 : i32
    %846 = vector.broadcast %c32_i32_233 : i32 to vector<1x32xi32>
    %847 = arith.select %845, %0, %846 : vector<1x32xi1>, vector<1x32xi32>
    %cst_234 = arith.constant dense<2147483647> : vector<1xi32>
    %848 = vector.multi_reduction <minsi>, %847, %cst_234 [1] : vector<1x32xi32> to vector<1xi32>
    %849 = vector.shape_cast %848 : vector<1xi32> to vector<1x1xi32>
    %850 = vector.broadcast %849 : vector<1x1xi32> to vector<1x32xi32>
    %851 = arith.cmpi eq, %0, %850 : vector<1x32xi32>
    %852 = arith.extui %851 : vector<1x32xi1> to vector<1x32xi32>
    %853 = arith.sitofp %852 : vector<1x32xi32> to vector<1x32xf32>
    %cst_235 = arith.constant dense<0.000000e+00> : vector<1x128xf32>
    %854 = tpu.matmul %853, %8, %cst_235 {dimension_numbers = #tpu.dot_dimension_numbers<[1], [0], [0], [1], [0, 0, 1, 1], [], []>, precision = #tpu.contract_precision<fp32>} : vector<1x32xf32>, vector<32x128xf32>, vector<1x128xf32> -> vector<1x128xf32>
    %cst_236 = arith.constant dense<0.000000e+00> : vector<1x10xf32>
    %855 = tpu.matmul %838, %334, %cst_236 {dimension_numbers = #tpu.dot_dimension_numbers<[1], [1], [0], [0], [0, 0, 1, 0], [], []>, precision = #tpu.contract_precision<fp32>} : vector<1x32xf32>, vector<10x32xf32>, vector<1x10xf32> -> vector<1x10xf32>
    %cst_237 = arith.constant dense<0xFF800000> : vector<1xf32>
    %856 = vector.multi_reduction <maximumf>, %855, %cst_237 [1] : vector<1x10xf32> to vector<1xf32>
    %857 = vector.shape_cast %856 : vector<1xf32> to vector<1x1xf32>
    %858 = vector.broadcast %857 : vector<1x1xf32> to vector<1x10xf32>
    %859 = arith.subf %855, %858 : vector<1x10xf32>
    %860 = math.exp %859 : vector<1x10xf32>
    %cst_238 = arith.constant dense<0.000000e+00> : vector<1xf32>
    %861 = vector.multi_reduction <add>, %860, %cst_238 [1] : vector<1x10xf32> to vector<1xf32>
    %862 = vector.shape_cast %861 : vector<1xf32> to vector<1x1xf32>
    %863 = tpu.reciprocal %862 : vector<1x1xf32> -> vector<1x1xf32>
    %864 = vector.broadcast %863 : vector<1x1xf32> to vector<1x10xf32>
    %865 = arith.mulf %860, %864 : vector<1x10xf32>
    %cst_239 = arith.constant dense<0.000000e+00> : vector<1x128xf32>
    %866 = tpu.matmul %865, %336, %cst_239 {dimension_numbers = #tpu.dot_dimension_numbers<[1], [0], [0], [1], [0, 0, 1, 1], [], []>, precision = #tpu.contract_precision<fp32>} : vector<1x10xf32>, vector<10x128xf32>, vector<1x128xf32> -> vector<1x128xf32>
    %867 = arith.addf %854, %866 : vector<1x128xf32>
    %cst_240 = arith.constant dense<0.000000e+00> : vector<1x128xf32>
    %868 = tpu.matmul %838, %337, %cst_240 {dimension_numbers = #tpu.dot_dimension_numbers<[1], [0], [0], [1], [0, 0, 1, 1], [], []>, precision = #tpu.contract_precision<fp32>} : vector<1x32xf32>, vector<32x128xf32>, vector<1x128xf32> -> vector<1x128xf32>
    %869 = arith.addf %867, %868 : vector<1x128xf32>
    %870 = arith.addf %869, %338 : vector<1x128xf32>
    %871 = vector.extract_strided_slice %870 {offsets = [0, 0], sizes = [1, 32], strides = [1, 1]} : vector<1x128xf32> to vector<1x32xf32>
    %872 = arith.negf %871 : vector<1x32xf32>
    %873 = math.exp %872 : vector<1x32xf32>
    %cst_241 = arith.constant 1.000000e+00 : f32
    %874 = vector.broadcast %cst_241 : f32 to vector<1x32xf32>
    %875 = arith.addf %874, %873 : vector<1x32xf32>
    %876 = arith.divf %874, %875 : vector<1x32xf32>
    %877 = vector.extract_strided_slice %870 {offsets = [0, 32], sizes = [1, 32], strides = [1, 1]} : vector<1x128xf32> to vector<1x32xf32>
    %878 = arith.negf %877 : vector<1x32xf32>
    %879 = math.exp %878 : vector<1x32xf32>
    %cst_242 = arith.constant 1.000000e+00 : f32
    %880 = vector.broadcast %cst_242 : f32 to vector<1x32xf32>
    %881 = arith.addf %880, %879 : vector<1x32xf32>
    %882 = arith.divf %880, %881 : vector<1x32xf32>
    %883 = vector.extract_strided_slice %870 {offsets = [0, 64], sizes = [1, 32], strides = [1, 1]} : vector<1x128xf32> to vector<1x32xf32>
    %884 = math.tanh %883 : vector<1x32xf32>
    %885 = vector.extract_strided_slice %870 {offsets = [0, 96], sizes = [1, 32], strides = [1, 1]} : vector<1x128xf32> to vector<1x32xf32>
    %886 = arith.negf %885 : vector<1x32xf32>
    %887 = math.exp %886 : vector<1x32xf32>
    %cst_243 = arith.constant 1.000000e+00 : f32
    %888 = vector.broadcast %cst_243 : f32 to vector<1x32xf32>
    %889 = arith.addf %888, %887 : vector<1x32xf32>
    %890 = arith.divf %888, %889 : vector<1x32xf32>
    %891 = arith.mulf %882, %836 : vector<1x32xf32>
    %892 = arith.mulf %876, %884 : vector<1x32xf32>
    %893 = arith.addf %891, %892 : vector<1x32xf32>
    %894 = math.tanh %893 : vector<1x32xf32>
    %895 = arith.mulf %890, %894 : vector<1x32xf32>
    %cst_244 = arith.constant dense<0.000000e+00> : vector<1x32xf32>
    %896 = tpu.matmul %895, %339, %cst_244 {dimension_numbers = #tpu.dot_dimension_numbers<[1], [0], [0], [1], [0, 0, 1, 1], [], []>, precision = #tpu.contract_precision<fp32>} : vector<1x32xf32>, vector<32x32xf32>, vector<1x32xf32> -> vector<1x32xf32>
    %897 = arith.addf %896, %340 : vector<1x32xf32>
    %c9_245 = arith.constant 9 : index
    %c0_246 = arith.constant 0 : index
    %898 = vector.load %arg12[%c9_245, %c0_246] : memref<10x32xf32, #tpu.memory_space<vmem>>, vector<1x32xf32>
    tpu.vector_store %arg12[%c9_245, %c0_246], %897 {strides = array<i32>} : memref<10x32xf32, #tpu.memory_space<vmem>>, vector<1x32xf32>,
    return
  }
}

</mosaic_0001>

<bundles_post_ra>
// kernel: forward.1
= control target key start
LH: loop header
LB: loop body
LE: loop exit
PB: predicated region body
PF: predicated region fallthrough
CT: control target
= control target key end

     0   :  { %17 = vsyncpa [#allocation6], 0  ;;  %s16252_s0 = inlined_call_operand.hbm [shape: s32[10], index: 0, kind: input, shape index: {}]   ;;  %s16253_s1 = inlined_call_operand.hbm [shape: f32[32,32], index: 1, kind: input, shape index: {}]   ;;  %s16254_s2 = inlined_call_operand.hbm [shape: f32[32,128], index: 2, kind: input, shape index: {}]   ;;  %s16255_s3 = inlined_call_operand.hbm [shape: f32[32,128], index: 3, kind: input, shape index: {}]   ;;  %s16256_s4 = inlined_call_operand.vmem [shape: f32[1,128], index: 4, kind: input, shape index: {}]   ;;  %s16257_s5 = inlined_call_operand.hbm [shape: f32[32,128], index: 5, kind: input, shape index: {}]   ;;  %s16258_s6 = inlined_call_operand.hbm [shape: f32[32,128], index: 6, kind: input, shape index: {}]   ;;  %s16259_s7 = inlined_call_operand.hbm [shape: f32[32,128], index: 7, kind: input, shape index: {}]   ;;  %s16260_s8 = inlined_call_operand.hbm [shape: f32[1,128], index: 8, kind: input, shape index: {}]   ;;  %s16261_s9 = inlined_call_operand.hbm [shape: f32[32,32], index: 9, kind: input, shape index: {}]   ;;  %s16262_s10 = inlined_call_operand.hbm [shape: f32[32,32], index: 10, kind: input, shape index: {}]   ;;  %s16263_s11 = inlined_call_operand.hbm [shape: f32[1,32], index: 11, kind: input, shape index: {}]   ;;  %s16264_s12 = inlined_call_operand.vmem [shape: f32[10,32], index: 12, kind: output, shape index: {}]  }
   0x1   :  { %18 = vsyncpa [#allocation5], 0 }
   0x2   :  { %19 = vsyncpa [#allocation9], 0 }
   0x3   :  { %20 = vsyncpa [#allocation12], 0 }
   0x4   :  { %21 = vsyncpa [#allocation15], 0 }
   0x5   :  { %22 = vsyncpa [#allocation18], 0 }
   0x6   :  { %23 = vsyncpa [#allocation21], 0  ;;  %s50_s23 = sshll.u32 %s16254_s2, 4  ;;  %s13715_s24 = smov [#allocation8]   ;;  %s51_s23 = int_to_ptr.hbm [resolvable:$true] %s50_s23 }
   0x7   :  { %s52_s25 = sshll.u32 %s13715_s24, 4  ;;  %s78_s28 = sshll.u32 %s16257_s5, 4  ;;  %s53_s25 = int_to_ptr.vmem [resolvable:$true] %s52_s25  ;;  %s79_s28 = int_to_ptr.hbm [resolvable:$true] %s78_s28 }
   0x8   :  { %s13716_s29 = smov 128   ;;  %s13717_s30 = smov 8  }
   0x9   :  { %58 = dma.hbm_to_vmem [thread:$0]  %s51_s23, 512, %s53_s25, [#allocation9], %s13716_s29, %s13716_s29, %s13717_s30  }
   0xa   :  { %s13718_s13 = smov [#allocation11]   ;;  %s104_s2 = sshll.u32 %s16259_s7, 4  ;;  %s105_s2 = int_to_ptr.hbm [resolvable:$true] %s104_s2 }
   0xb   :  { %s80_s14 = sshll.u32 %s13718_s13, 4  ;;  %s128_s18 = sshll.u32 %s16261_s9, 4  ;;  %s81_s14 = int_to_ptr.vmem [resolvable:$true] %s80_s14  ;;  %s129_s18 = int_to_ptr.hbm [resolvable:$true] %s128_s18 }
   0xc   :  { %86 = dma.hbm_to_vmem [thread:$0]  %s79_s28, 512, %s81_s14, [#allocation12], %s13716_s29, %s13716_s29, %s13717_s30  }
   0xd   :  { %s13719_s19 = smov [#allocation14]   ;;  %s13720_s21 = smov [#allocation17]  }
   0xe   :  { %s106_s20 = sshll.u32 %s13719_s19, 4  ;;  %s130_s7 = sshll.u32 %s13720_s21, 4  ;;  %s107_s20 = int_to_ptr.vmem [resolvable:$true] %s106_s20  ;;  %s131_s7 = int_to_ptr.vmem [resolvable:$true] %s130_s7 }
   0xf   :  { %112 = dma.hbm_to_vmem [thread:$0]  %s105_s2, 512, %s107_s20, [#allocation15], %s13716_s29, %s13716_s29, %s13717_s30  }
  0x10   :  { %s29_s24 = sshll.u32 %s16252_s0, 4  ;;  %s37_s26 = sshll.u32 %s16253_s1, 4  ;;  %s30_s24 = int_to_ptr.hbm [resolvable:$true] %s29_s24  ;;  %s38_s26 = int_to_ptr.hbm [resolvable:$true] %s37_s26 }
  0x11   :  { %136 = dma.hbm_to_vmem [thread:$0]  %s129_s18, 512, %s131_s7, [#allocation18], %s13716_s29, %s13716_s29, %s13717_s30  }
  0x12   :  { %s13721_s27 = smov [#allocation4]   ;;  %s13722_s28 = smov [#allocation7]  }
  0x13   :  { %32 = dma.hbm_to_smem %s30_s24, 16, %s13721_s27, [#allocation6]  }
  0x14   :  { %s39_s13 = sshll.u32 %s13722_s28, 4  ;;  %s63_s16 = sshll.u32 %s16255_s3, 4  ;;  %s40_s13 = int_to_ptr.vmem [resolvable:$true] %s39_s13  ;;  %s64_s16 = int_to_ptr.hbm [resolvable:$true] %s63_s16 }
  0x15   :  { %45 = dma.hbm_to_vmem [thread:$0]  %s38_s26, 512, %s40_s13, [#allocation5], %s13716_s29, %s13716_s29, %s13717_s30  }
  0x16   :  { %s91_s5 = sshll.u32 %s16258_s6, 4  ;;  %s13723_s1 = smov [#allocation10]   ;;  %s92_s5 = int_to_ptr.hbm [resolvable:$true] %s91_s5 }
  0x17   :  { %s65_s17 = sshll.u32 %s13723_s1, 4  ;;  %s13724_s18 = smov [#allocation13]   ;;  %s66_s17 = int_to_ptr.vmem [resolvable:$true] %s65_s17 }
  0x18   :  { %71 = dma.hbm_to_vmem [thread:$0]  %s64_s16, 512, %s66_s17, [#allocation9], %s13716_s29, %s13716_s29, %s13717_s30  }
  0x19   :  { %s93_s3 = sshll.u32 %s13724_s18, 4  ;;  %s118_s21 = sshll.u32 %s16260_s8, 4  ;;  %s94_s3 = int_to_ptr.vmem [resolvable:$true] %s93_s3  ;;  %s119_s21 = int_to_ptr.hbm [resolvable:$true] %s118_s21 }
  0x1a   :  { %99 = dma.hbm_to_vmem [thread:$0]  %s92_s5, 512, %s94_s3, [#allocation12], %s13716_s29, %s13716_s29, %s13717_s30  }
  0x1b   :  { %s141_s22 = sshll.u32 %s16262_s10, 4  ;;  %s13725_s23 = smov [#allocation16]   ;;  %s142_s22 = int_to_ptr.hbm [resolvable:$true] %s141_s22 }
  0x1c   :  { %s120_s24 = sshll.u32 %s13725_s23, 4  ;;  %s13726_s9 = smov [#allocation19]   ;;  %s121_s24 = int_to_ptr.vmem [resolvable:$true] %s120_s24 }
  0x1d   :  { %123 = dma.hbm_to_vmem [thread:$0]  %s119_s21, 16, %s121_s24, [#allocation15]  }
  0x1e   :  { %s143_s25 = sshll.u32 %s13726_s9, 4  ;;  %s155_s8 = sshll.u32 %s16263_s11, 4  ;;  %s144_s25 = int_to_ptr.vmem [resolvable:$true] %s143_s25  ;;  %s156_s8 = int_to_ptr.hbm [resolvable:$true] %s155_s8 }
  0x1f   :  { %149 = dma.hbm_to_vmem [thread:$0]  %s142_s22, 512, %s144_s25, [#allocation18], %s13716_s29, %s13716_s29, %s13717_s30  }
  0x20   :  { %s13727_s28 = smov [#allocation20]  }
  0x21   :  { %s157_s13 = sshll.u32 %s13727_s28, 4  ;;  %s158_s13 = int_to_ptr.vmem [resolvable:$true] %s157_s13 }
  0x22   :  { %160 = dma.hbm_to_vmem [thread:$0]  %s156_s8, 16, %s158_s13, [#allocation21]  }
  0x23   :  { %13701 = dma.done.wait [#allocation6], 16  }
  0x24   :  { %13702 = vsyncadd [#allocation6], 4294967280 }
  0x25   :  { %13703 = dma.done.wait [#allocation5], 512  }
  0x26   :  { %13704 = vsyncadd [#allocation5], 4294966784 }
  0x27   :  { %13705 = dma.done.wait [#allocation9], 1024  }
  0x28   :  { %13706 = vsyncadd [#allocation9], 4294966272 }
  0x29   :  { %13707 = dma.done.wait [#allocation12], 1024  }
  0x2a   :  { %13708 = vsyncadd [#allocation12], 4294966272 }
  0x2b   :  { %13709 = dma.done.wait [#allocation15], 528  }
  0x2c   :  { %13710 = vsyncadd [#allocation15], 4294966768 }
  0x2d   :  { %13711 = dma.done.wait [#allocation18], 1024  }
  0x2e   :  { %13712 = vsyncadd [#allocation18], 4294966272 }
  0x2f   :  { %13713 = dma.done.wait [#allocation21], 16  }
  0x30   :  { %13714 = vsyncadd [#allocation21], 4294967280 }
  0x31   :  { %205 = sfence }
  0x32   :  { %v215_v0 = vld [vmem:[#allocation8 + $0x18] sm:$0xff]  ;;  %v214_v1 = vld [vmem:[#allocation8 + $0x10] sm:$0xff]  ;;  %v213_v2 = vld [vmem:[#allocation8 + $0x8] sm:$0xff]  ;;  %vm216_vm0 = vcmask 261120   ;;  %s814_s10 = sld [smem:[#allocation4]]  ;;  %s13729_s14 = smov 64  }
  0x33   :  { %v13853_v3 = vand.u32 4294901760, %v215_v0  ;;  %v13855_v4 = vand.u32 4294901760, %v214_v1  ;;  %v13857_v5 = vand.u32 4294901760, %v213_v2  ;;  %v212_v6 = vld [vmem:[#allocation8] sm:$0xff]  ;;  %v13861_v8 = vld [vmem:[#allocation7 + $0x8] sm:$0xff]  ;;  %v518_v12 = vld [vmem:[#allocation11 + $0x18] sm:$0xff] }
  0x34   :  { %v13859_v7 = vld [vmem:[#allocation7] sm:$0xff]  ;;  %v13863_v9 = vand.u32 4294901760, %v212_v6  ;;  %v221_v11 = vsel %vm216_vm0, %v13861_v8, 0  ;;  %v13869_v13 = vld [vmem:[#allocation7 + $0x10] sm:$0xff]  ;;  %v13885_v20 = vand.u32 4294901760, %v518_v12  ;;  %v516_v37 = vld [vmem:[#allocation11 + $0x8] sm:$0xff] }
  0x35   :  { %v218_v10 = vsel %vm216_vm0, %v13859_v7, 0  ;;  %242 = vmatpush.msra.mxu0 %v13853_v3  ;;  %v295_v14 = vsub.f32 %v215_v0, %v13853_v3  ;;  %393 = vmatpush.msra.mxu3 %v13853_v3  ;;  %v301_v15 = vsub.f32 %v214_v1, %v13855_v4  ;;  %v13876_v16 = vsub.f32 %v213_v2, %v13857_v5  ;;  %v517_v36 = vld [vmem:[#allocation11 + $0x10] sm:$0xff]  ;;  %v515_v43 = vld [vmem:[#allocation11] sm:$0xff]  ;;  %v13919_v47 = vld [vmem:[#allocation7 + $0x18] sm:$0xff]  ;;  %s13730_s15 = smov 32   ;;  %s13160_s16 = sld [smem:[#allocation4 + $0x1]] }
  0x36   :  { %v13878_v17 = vand.u32 4294901760, %v218_v10  ;;  %v13881_v18 = vsub.f32 %v212_v6, %v13863_v9  ;;  %v13883_v19 = vand.u32 4294901760, %v221_v11  ;;  %v224_v21 = vsel %vm216_vm0, %v13869_v13, 0  ;;  %s13162_s2 = sld [smem:[#allocation4 + $0x2]] }
  0x37   :  { %244 = vmatpush.msra.mxu0 %v13855_v4  ;;  %349 = vmatpush.msra.mxu2 %v295_v14  ;;  %v296_v22 = vand.u32 4294901760, %v295_v14  ;;  %v302_v24 = vand.u32 4294901760, %v301_v15  ;;  %v308_v25 = vand.u32 4294901760, %v13876_v16  ;;  %v13898_v28 = vsub.f32 %v518_v12, %v13885_v20  ;;  %s13164_s1 = sld [smem:[#allocation4 + $0x3]] }
  0x38   :  { %v250_v23 = vsub.f32 %v218_v10, %v13878_v17  ;;  %395 = vmatpush.msra.mxu3 %v13855_v4  ;;  %v314_v26 = vand.u32 4294901760, %v13881_v18  ;;  %v13895_v27 = vsub.f32 %v221_v11, %v13883_v19  ;;  %v13905_v35 = vand.u32 4294901760, %v224_v21  ;;  %s815_s30 = scalar_lea.vmem [#allocation3], %s814_s10  ;;  %s13166_s18 = sld [smem:[#allocation4 + $0x4]] }
  0x39   :  { %246 = vmatpush.msra.mxu0 %v13857_v5  ;;  %352 = vmatpush.msra.mxu2 %v301_v15  ;;  %v297_v29 = vsub.f32 %v295_v14, %v296_v22  ;;  %v303_v31 = vsub.f32 %v301_v15, %v302_v24  ;;  %v309_v32 = vsub.f32 %v13876_v16, %v308_v25  ;;  %v598_v34 = vand.u32 4294901760, %v13898_v28  ;;  %s13168_s19 = sld [smem:[#allocation4 + $0x5]] }
  0x3a   :  { %v251_v30 = vand.u32 4294901760, %v250_v23  ;;  %397 = vmatpush.msra.mxu3 %v13857_v5  ;;  %v259_v33 = vand.u32 4294901760, %v13895_v27  ;;  %v315_v41 = vsub.f32 %v13881_v18, %v314_v26  ;;  %v13917_v46 = vand.u32 4294901760, %v517_v36  ;;  %s13170_s21 = sld [smem:[#allocation4 + $0x6]] }
  0x3b   :  { %248 = vmatpush.msra.mxu0 %v13863_v9  ;;  %v298_v38 = vand.u32 4294901760, %v297_v29  ;;  %355 = vmatpush.msra.mxu2 %v13876_v16  ;;  %v304_v40 = vand.u32 4294901760, %v303_v31  ;;  %v599_v42 = vsub.f32 %v13898_v28, %v598_v34  ;;  %v310_v45 = vand.u32 4294901760, %v309_v32  ;;  %s1051_s0 = scalar_lea.vmem [#allocation3], %s13160_s16  ;;  %s13174_s24 = sld [smem:[#allocation4 + $0x8]] }
  0x3c   :  { %v252_v39 = vsub.f32 %v250_v23, %v251_v30  ;;  %399 = vmatpush.msra.mxu3 %v13863_v9  ;;  %v13921_v48 = vand.u32 4294901760, %v516_v37  ;;  %v260_v49 = vsub.f32 %v13895_v27, %v259_v33  ;;  %v266_v51 = vsub.f32 %v224_v21, %v13905_v35  ;;  %s1285_s5 = scalar_lea.vmem [#allocation3], %s13162_s2  ;;  %s13176_s25 = sld [smem:[#allocation4 + $0x9]] }
  0x3d   :  { %440 = vmatpush.msrb.mxu0 %v296_v22  ;;  %299 = vmatpush.msra.mxu1 %v298_v38  ;;  %v600_v50 = vand.u32 4294901760, %v599_v42  ;;  %v316_v52 = vand.u32 4294901760, %v315_v41  ;;  %v603_v53 = vsub.f32 %v517_v36, %v13917_v46  ;;  %v13927_v55 = vand.u32 4294901760, %v515_v43  ;;  %s1519_s17 = scalar_lea.vmem [#allocation3], %s13164_s1 }
  0x3e   :  { %v253_v44 = vand.u32 4294901760, %v252_v39  ;;  %358 = vmatpush.msra.mxu2 %v13881_v18  ;;  %403 = vmatmul.f32.vlgmr.msra.gmra.mxu3 %v251_v30  ;;  %v609_v54 = vsub.f32 %v516_v37, %v13921_v48  ;;  %v227_v56 = vsel %vm216_vm0, %v13919_v47, 0  ;;  %v511_v60 = vmax.f32 %v13859_v7, 0.0  ;;  %v812_v39 = vld [vmem:[#allocation10 + $0x18] sm:$0xff]  ;;  %s1753_s3 = scalar_lea.vmem [#allocation3], %s13166_s18 }
  0x3f   :  { %361 = vmatmul.f32.vlgmr.msra.gmra.mxu2 %v250_v23  ;;  %305 = vmatpush.msra.mxu1 %v304_v40  ;;  %v604_v57 = vand.u32 4294901760, %v603_v53  ;;  %v615_v59 = vsub.f32 %v515_v43, %v13927_v55  ;;  %v261_v61 = vand.u32 4294901760, %v260_v49  ;;  %v267_v62 = vand.u32 4294901760, %v266_v51  ;;  %s1987_s20 = scalar_lea.vmem [#allocation3], %s13168_s19 }
  0x40   :  { %254 = vmatmul.f32.vlgmr.msra.gmra.mxu0 %v253_v44  ;;  %544 = vmatpush.msrb.mxu2 %v13885_v20  ;;  %v610_v58 = vand.u32 4294901760, %v609_v54  ;;  %v13935_v0 = vand.u32 4294901760, %v227_v56  ;;  %v520_v15 = vsel %vm216_vm0, %v511_v60, 0  ;;  %v512_v21 = vmax.f32 %v13861_v8, 0.0  ;;  %s2221_s6 = scalar_lea.vmem [#allocation3], %s13170_s21 }
  0x41   :  { %601 = vmatpush.msrb.mxu3 %v600_v50  ;;  %311 = vmatpush.msra.mxu1 %v310_v45  ;;  %v605_v63 = vsub.f32 %v603_v53, %v604_v57  ;;  %v616_v2 = vand.u32 4294901760, %v615_v59  ;;  %v268_v11 = vsub.f32 %v266_v51, %v267_v62  ;;  %v514_v29 = vmax.f32 %v13919_v47, 0.0  ;;  %s2689_s9 = scalar_lea.vmem [#allocation3], %s13174_s24 }
  0x42   :  { %444 = vmatpush.msrb.mxu0 %v302_v24  ;;  %546 = vmatpush.msrb.mxu2 %v13917_v46  ;;  %v611_v1 = vsub.f32 %v609_v54, %v610_v58  ;;  %v274_v12 = vsub.f32 %v227_v56, %v13935_v0  ;;  %v523_v22 = vsel %vm216_vm0, %v512_v21, 0  ;;  %v513_v24 = vmax.f32 %v13869_v13, 0.0  ;;  %s2923_s26 = scalar_lea.vmem [#allocation3], %s13176_s25 }
  0x43   :  { %317 = vmatpush.msra.mxu1 %v316_v52  ;;  %v606_v6 = vand.u32 4294901760, %v605_v63  ;;  %v617_v7 = vsub.f32 %v615_v59, %v616_v2  ;;  %v269_v16 = vand.u32 4294901760, %v268_v11  ;;  %v529_v32 = vsel %vm216_vm0, %v514_v29, 0  ;;  %v810_v52 = vld [vmem:[#allocation10 + $0x8] sm:$0xff] }
  0x44   :  { %448 = vmatpush.msrb.mxu0 %v308_v25  ;;  %319 = vmatmul.f32.vlgmr.msra.gmra.mxu1 %v13878_v17  ;;  %v612_v10 = vand.u32 4294901760, %v611_v1  ;;  %v275_v18 = vand.u32 4294901760, %v274_v12  ;;  %v526_v13 = vsel %vm216_vm0, %v513_v24, 0  ;;  %v13995_v36 = vand.u32 4294901760, %v529_v32 }
  0x45   :  { %548 = vmatpush.msrb.mxu2 %v13921_v48  ;;  %483 = vmatpush.msrb.mxu1 %v13853_v3  ;;  %v618_v14 = vand.u32 4294901760, %v617_v7  ;;  %v13950_v3 = vand.u32 4294901760, %v520_v15  ;;  %v14006_v40 = vand.u32 4294901760, %v812_v39  ;;  %vm1048_vm5 = vcmask 253952  }
  0x46   :  { %452 = vmatpush.msrb.mxu0 %v314_v26  ;;  %409 = vmatmul.f32.gmra.mxu3 %v259_v33  ;;  %v14003_v38 = vsub.f32 %v529_v32, %v13995_v36 }
  0x47   :  { %366 = vmatmul.f32.gmra.mxu2 %v13895_v27  ;;  %607 = vmatpush.msrb.mxu3 %v606_v6 }
  0x48   :  { %262 = vmatmul.f32.gmra.mxu0 %v261_v61  ;;  %485 = vmatpush.msrb.mxu1 %v13855_v4  ;;  %v13958_v4 = vsub.f32 %v520_v15, %v13950_v3  ;;  %v577_v42 = vand.u32 4294901760, %v14003_v38 }
  0x49   :  { %550 = vmatpush.msrb.mxu2 %v13927_v55  ;;  %613 = vmatpush.msrb.mxu3 %v612_v10 }
  0x4a   :  { %487 = vmatpush.msrb.mxu1 %v13857_v5  ;;  %651 = vmatpush.msra.mxu0 %v13898_v28  ;;  %v276_v5 = vsub.f32 %v274_v12, %v275_v18  ;;  %v553_v8 = vand.u32 4294901760, %v13958_v4  ;;  %v13981_v28 = vand.u32 4294901760, %v526_v13  ;;  %v578_v44 = vsub.f32 %v14003_v38, %v577_v42 }
  0x4b   :  { %742 = vmatpush.msra.mxu2 %v598_v34  ;;  %619 = vmatpush.msrb.mxu3 %v618_v14 }
  0x4c   :  { %323 = vmatmul.f32.gmra.mxu1 %v13883_v19  ;;  %654 = vmatpush.msra.mxu0 %v603_v53  ;;  %v277_v23 = vand.u32 4294901760, %v276_v5  ;;  %v13990_v31 = vsub.f32 %v526_v13, %v13981_v28 }
  0x4d   :  { %746 = vmatpush.msra.mxu2 %v604_v57  ;;  %785 = vmatpush.msra.mxu3 %v13885_v20 }
  0x4e   :  { %489 = vmatpush.msrb.mxu1 %v13863_v9  ;;  %415 = vmatmul.f32.gmra.mxu3 %v267_v62  ;;  %v13965_v9 = vand.u32 4294901760, %v523_v22  ;;  %v569_v34 = vand.u32 4294901760, %v13990_v31 }
  0x4f   :  { %371 = vmatmul.f32.gmra.mxu2 %v266_v51  ;;  %787 = vmatpush.msra.mxu3 %v13917_v46 }
  0x50   :  { %270 = vmatmul.f32.gmra.mxu0 %v269_v16  ;;  %695 = vmatpush.msra.mxu1 %v13885_v20  ;;  %v554_v20 = vsub.f32 %v13958_v4, %v553_v8  ;;  %v13977_v25 = vsub.f32 %v523_v22, %v13965_v9  ;;  %v570_v37 = vsub.f32 %v13990_v31, %v569_v34 }
  0x51   :  { %750 = vmatpush.msra.mxu2 %v610_v58  ;;  %657 = vmatpush.msra.mxu0 %v609_v54  ;;  %v14047_v54 = vand.u32 4294901760, %v810_v52 }
  0x52   :  { %697 = vmatpush.msra.mxu1 %v13917_v46  ;;  %789 = vmatpush.msra.mxu3 %v13921_v48  ;;  %v555_v26 = vand.u32 4294901760, %v554_v20  ;;  %v561_v27 = vand.u32 4294901760, %v13977_v25  ;;  %v571_v41 = vand.u32 4294901760, %v570_v37  ;;  %v811_v46 = vld [vmem:[#allocation10 + $0x10] sm:$0xff] }
  0x53   :  { %754 = vmatpush.msra.mxu2 %v616_v2  ;;  %660 = vmatpush.msra.mxu0 %v615_v59 }
  0x54   :  { %699 = vmatpush.msra.mxu1 %v13921_v48  ;;  %791 = vmatpush.msra.mxu3 %v13927_v55  ;;  %v562_v30 = vsub.f32 %v13977_v25, %v561_v27  ;;  %v579_v48 = vand.u32 4294901760, %v578_v44 }
  0x55   :  { %327 = vmatmul.f32.gmra.mxu1 %v13905_v35 }
  0x56   :  { %701 = vmatpush.msra.mxu1 %v13927_v55  ;;  %421 = vmatmul.f32.gmra.mxu3 %v275_v18  ;;  %v563_v33 = vand.u32 4294901760, %v562_v30  ;;  %v809_v55 = vld [vmem:[#allocation10] sm:$0xff] }
  0x57   :  { %376 = vmatmul.f32.gmra.mxu2 %v274_v12  ;;  %v14054_v56 = vand.u32 4294901760, %v809_v55 }
  0x58   :  { %278 = vmatmul.f32.gmra.mxu0 %v277_v23 }
  0x59   :  { %v14063_v58 = vsub.f32 %v809_v55, %v14054_v56 }
  0x5b   :  { %v14072_v60 = vand.u32 4294901760, %v14063_v58 }
  0x5d   :  { %331 = vmatmul.f32.gmra.mxu1 %v13935_v0  ;;  %v882_v62 = vsub.f32 %v14063_v58, %v14072_v60 }
  0x5e   :  { %621 = vmatmul.f32.vlgmr.msrb.gmra.mxu3 %v13950_v3 }
  0x5f   :  { %556 = vmatmul.f32.vlgmr.msrb.gmra.mxu2 %v555_v26  ;;  %933 = vmatpush.msrb.mxu3 %v14006_v40  ;;  %v14084_v63 = vand.u32 4294901760, %v882_v62 }
  0x60   :  { %454 = vmatmul.f32.vlgmr.msrb.gmra.mxu0 %v13878_v17 }
  0x61   :  { %833 = vmatpush.msrb.mxu0 %v14006_v40 }
  0x65   :  { %491 = vmatmul.f32.vlgmr.msrb.gmra.mxu1 %v13878_v17  ;;  %v14010_v17 = vsub.f32 %v812_v39, %v14006_v40 }
  0x66   :  { %625 = vmatmul.f32.gmra.mxu3 %v13965_v9 }
  0x67   :  { %564 = vmatmul.f32.gmra.mxu2 %v563_v33  ;;  %v14017_v43 = vand.u32 4294901760, %v14010_v17 }
  0x68   :  { %458 = vmatmul.f32.gmra.mxu0 %v13883_v19  ;;  %904 = vmatpush.msrb.mxu2 %v14010_v17 }
  0x69   :  { %v864_v45 = vsub.f32 %v14010_v17, %v14017_v43 }
  0x6b   :  { %v14026_v47 = vand.u32 4294901760, %v864_v45 }
  0x6d   :  { %495 = vmatmul.f32.gmra.mxu1 %v13883_v19  ;;  %v14028_v19 = vand.u32 4294901760, %v811_v46 }
  0x6e   :  { %629 = vmatmul.f32.gmra.mxu3 %v13981_v28  ;;  %866 = vmatpush.msrb.mxu1 %v14026_v47 }
  0x6f   :  { %572 = vmatmul.f32.gmra.mxu2 %v571_v41  ;;  %v14032_v49 = vsub.f32 %v811_v46, %v14028_v19  ;;  %835 = vmatpush.msrb.mxu0 %v14028_v19 }
  0x70   :  { %462 = vmatmul.f32.gmra.mxu0 %v13905_v35  ;;  %935 = vmatpush.msrb.mxu3 %v14028_v19 }
  0x71   :  { %907 = vmatpush.msrb.mxu2 %v14032_v49  ;;  %v14039_v50 = vand.u32 4294901760, %v14032_v49  ;;  %837 = vmatpush.msrb.mxu0 %v14047_v54 }
  0x72   :  { %937 = vmatpush.msrb.mxu3 %v14047_v54 }
  0x73   :  { %v870_v51 = vsub.f32 %v14032_v49, %v14039_v50  ;;  %839 = vmatpush.msrb.mxu0 %v14054_v56 }
  0x74   :  { %939 = vmatpush.msrb.mxu3 %v14054_v56 }
  0x75   :  { %499 = vmatmul.f32.gmra.mxu1 %v13905_v35  ;;  %v14045_v53 = vand.u32 4294901760, %v870_v51  ;;  %v14051_v35 = vsub.f32 %v810_v52, %v14047_v54 }
  0x76   :  { %633 = vmatmul.f32.gmra.mxu3 %v13995_v36 }
  0x77   :  { %580 = vmatmul.f32.gmra.mxu2 %v579_v48  ;;  %872 = vmatpush.msrb.mxu1 %v14045_v53  ;;  %v14060_v57 = vand.u32 4294901760, %v14051_v35 }
  0x78   :  { %466 = vmatmul.f32.gmra.mxu0 %v13935_v0  ;;  %910 = vmatpush.msrb.mxu2 %v14051_v35 }
  0x79   :  { %v876_v59 = vsub.f32 %v14051_v35, %v14060_v57 }
  0x7a   :  { %913 = vmatpush.msrb.mxu2 %v14063_v58 }
  0x7b   :  { %v14076_v61 = vand.u32 4294901760, %v876_v59 }
  0x7d   :  { %503 = vmatmul.f32.gmra.mxu1 %v13935_v0  ;;  %v16265_v0 = vmov 0.0  }
  0x7e   :  { %793 = vmatmul.f32.vlgmr.msra.gmra.mxu3 %v13950_v3  ;;  %878 = vmatpush.msrb.mxu1 %v14076_v61 }
  0x7f   :  { %756 = vmatmul.f32.vlgmr.msra.gmra.mxu2 %v13950_v3  ;;  %1101 = vmatpush.msra.mxu3 %v14026_v47 }
  0x80   :  { %663 = vmatmul.f32.vlgmr.msra.gmra.mxu0 %v13958_v4  ;;  %1068 = vmatpush.msra.mxu2 %v14006_v40 }
  0x81   :  { %962 = vmatpush.msra.mxu0 %v14017_v43  ;;  %1107 = vmatpush.msra.mxu3 %v14045_v53 }
  0x82   :  { %1070 = vmatpush.msra.mxu2 %v14028_v19  ;;  %884 = vmatpush.msrb.mxu1 %v14084_v63 }
  0x83   :  { %966 = vmatpush.msra.mxu0 %v14039_v50  ;;  %1113 = vmatpush.msra.mxu3 %v14076_v61 }
  0x84   :  { %1072 = vmatpush.msra.mxu2 %v14047_v54 }
  0x85   :  { %705 = vmatmul.f32.vlgmr.msra.gmra.mxu1 %v553_v8  ;;  %970 = vmatpush.msra.mxu0 %v14060_v57 }
  0x86   :  { %797 = vmatmul.f32.gmra.mxu3 %v13965_v9  ;;  %993 = vmatpush.msra.mxu1 %v14006_v40 }
  0x87   :  { %760 = vmatmul.f32.gmra.mxu2 %v13965_v9  ;;  %974 = vmatpush.msra.mxu0 %v14072_v60 }
  0x88   :  { %668 = vmatmul.f32.gmra.mxu0 %v13977_v25  ;;  %1119 = vmatpush.msra.mxu3 %v14084_v63 }
  0x89   :  { %995 = vmatpush.msra.mxu1 %v14028_v19  ;;  %1074 = vmatpush.msra.mxu2 %v14054_v56 }
  0x8b   :  { %997 = vmatpush.msra.mxu1 %v14047_v54 }
  0x8d   :  { %711 = vmatmul.f32.gmra.mxu1 %v561_v27 }
  0x8e   :  { %999 = vmatpush.msra.mxu1 %v14054_v56  ;;  %801 = vmatmul.f32.gmra.mxu3 %v13981_v28 }
  0x8f   :  { %764 = vmatmul.f32.gmra.mxu2 %v13981_v28 }
  0x90   :  { %673 = vmatmul.f32.gmra.mxu0 %v13990_v31 }
  0x95   :  { %717 = vmatmul.f32.gmra.mxu1 %v569_v34 }
  0x96   :  { %805 = vmatmul.f32.gmra.mxu3 %v13995_v36 }
  0x97   :  { %768 = vmatmul.f32.gmra.mxu2 %v13995_v36 }
  0x98   :  { %678 = vmatmul.f32.gmra.mxu0 %v14003_v38 }
  0x9d   :  { %723 = vmatmul.f32.gmra.mxu1 %v577_v42 }
  0x9e   :  { %943 = vmatmul.f32.vlgmr.msrb.gmra.mxu3 %v16265_v0 }
  0x9f   :  { %916 = vmatmul.f32.vlgmr.msrb.gmra.mxu2 %v16265_v0  ;;  %1228 = vmatpush.msrb.mxu3 %v14006_v40 }
  0xa0   :  { %845 = vmatmul.f32.vlgmr.msrb.gmra.mxu0 %v16265_v0  ;;  %1197 = vmatpush.msrb.mxu2 %v14017_v43 }
  0xa1   :  { %1139 = vmatpush.msrb.mxu0 %v14010_v17  ;;  %1230 = vmatpush.msrb.mxu3 %v14028_v19 }
  0xa2   :  { %1201 = vmatpush.msrb.mxu2 %v14039_v50 }
  0xa3   :  { %1142 = vmatpush.msrb.mxu0 %v14032_v49  ;;  %1232 = vmatpush.msrb.mxu3 %v14047_v54 }
  0xa4   :  { %1205 = vmatpush.msrb.mxu2 %v14060_v57 }
  0xa5   :  { %886 = vmatmul.f32.vlgmr.msrb.gmra.mxu1 %v16265_v0  ;;  %1145 = vmatpush.msrb.mxu0 %v14051_v35 }
  0xa6   :  { %1168 = vmatpush.msrb.mxu1 %v14006_v40  ;;  %1234 = vmatpush.msrb.mxu3 %v14054_v56 }
  0xa7   :  { %1148 = vmatpush.msrb.mxu0 %v14063_v58  ;;  %1209 = vmatpush.msrb.mxu2 %v14072_v60 }
  0xa8   :  { %976 = vmatmul.f32.vlgmr.msra.gmra.mxu0 %v16265_v0  ;;  %1170 = vmatpush.msrb.mxu1 %v14028_v19 }
  0xa9   :  { %1302 = vmatpush.msra.mxu0 %v14006_v40 }
  0xaa   :  { %1172 = vmatpush.msrb.mxu1 %v14047_v54 }
  0xab   :  { %1304 = vmatpush.msra.mxu0 %v14028_v19 }
  0xac   :  { %1174 = vmatpush.msrb.mxu1 %v14054_v56 }
  0xad   :  { %1001 = vmatmul.f32.vlgmr.msra.gmra.mxu1 %v16265_v0  ;;  %1306 = vmatpush.msra.mxu0 %v14047_v54 }
  0xae   :  { %1335 = vmatpush.msra.mxu1 %v14026_v47 }
  0xaf   :  { %1308 = vmatpush.msra.mxu0 %v14054_v56 }
  0xb0   :  { %1341 = vmatpush.msra.mxu1 %v14045_v53 }
  0xb2   :  { %1347 = vmatpush.msra.mxu1 %v14076_v61 }
  0xb4   :  { %1353 = vmatpush.msra.mxu1 %v14084_v63 }
  0xbd   :  { %v255_v1 = vpop.f32.mrf.mxu0 }
  0xc1   :  { %v320_v2 = vpop.f32.mrf.mxu1  ;;  %v404_v10 = vpop.f32.mrf.mxu3 }
  0xc2   :  { %v362_v6 = vpop.f32.mrf.mxu2  ;;  %v321_v4 = vadd.f32 %v320_v2, %v255_v1 }
  0xc4   :  { %v363_v8 = vadd.f32 %v362_v6, %v321_v4 }
  0xc5   :  { %v263_v7 = vpop.f32.mrf.mxu0 }
  0xc6   :  { %v405_v24 = vadd.f32 %v404_v10, %v363_v8 }
  0xc9   :  { %v324_v11 = vpop.f32.mrf.mxu1  ;;  %v410_v14 = vpop.f32.mrf.mxu3 }
  0xca   :  { %v367_v12 = vpop.f32.mrf.mxu2  ;;  %v325_v20 = vadd.f32 %v324_v11, %v263_v7 }
  0xcc   :  { %v368_v27 = vadd.f32 %v367_v12, %v325_v20 }
  0xcd   :  { %v271_v15 = vpop.f32.mrf.mxu0 }
  0xce   :  { %v411_v31 = vadd.f32 %v410_v14, %v368_v27 }
  0xd1   :  { %v416_v18 = vpop.f32.mrf.mxu3 }
  0xd2   :  { %v328_v3 = vpop.f32.mrf.mxu1  ;;  %v372_v16 = vpop.f32.mrf.mxu2 }
  0xd3   :  { %v329_v32 = vadd.f32 %v328_v3, %v271_v15 }
  0xd5   :  { %v279_v21 = vpop.f32.mrf.mxu0  ;;  %v373_v37 = vadd.f32 %v372_v16, %v329_v32 }
  0xd7   :  { %v417_v42 = vadd.f32 %v416_v18, %v373_v37 }
  0xd9   :  { %v422_v9 = vpop.f32.mrf.mxu3 }
  0xda   :  { %v332_v5 = vpop.f32.mrf.mxu1  ;;  %v377_v22 = vpop.f32.mrf.mxu2 }
  0xdb   :  { %v333_v44 = vadd.f32 %v332_v5, %v279_v21 }
  0xdd   :  { %v455_v23 = vpop.f32.mrf.mxu0  ;;  %v378_v51 = vadd.f32 %v377_v22, %v333_v44 }
  0xde   :  { %v456_v25 = vadd.f32 %v455_v23, %v405_v24 }
  0xdf   :  { %v423_v62 = vadd.f32 %v422_v9, %v378_v51 }
  0xe1   :  { %v14149_v29 = vpop.f32.mrf.mxu3 }
  0xe2   :  { %v492_v13 = vpop.f32.mrf.mxu1  ;;  %v14147_v26 = vpop.f32.mrf.mxu2 }
  0xe3   :  { %v493_v28 = vadd.f32 %v492_v13, %v456_v25 }
  0xe5   :  { %507 = vst [vmem:[#allocation3] sm:$0xff] %v493_v28  ;;  %v459_v30 = vpop.f32.mrf.mxu0 }
  0xe6   :  { %v460_v33 = vadd.f32 %v459_v30, %v411_v31 }
  0xe9   :  { %v14153_v39 = vpop.f32.mrf.mxu3 }
  0xea   :  { %v496_v34 = vpop.f32.mrf.mxu1  ;;  %v14151_v36 = vpop.f32.mrf.mxu2 }
  0xeb   :  { %v497_v38 = vadd.f32 %v496_v34, %v460_v33 }
  0xed   :  { %508 = vst [vmem:[#allocation3 + $0x8] sm:$0xff] %v497_v38  ;;  %v463_v41 = vpop.f32.mrf.mxu0 }
  0xee   :  { %v464_v45 = vadd.f32 %v463_v41, %v417_v42  ;;  %v14198_v41 = vld [vmem:[%s16256_s4] sm:$0x1] }
  0xf1   :  { %v14157_v55 = vpop.f32.mrf.mxu3 }
  0xf2   :  { %v500_v46 = vpop.f32.mrf.mxu1  ;;  %v14155_v48 = vpop.f32.mrf.mxu2 }
  0xf3   :  { %v501_v52 = vadd.f32 %v500_v46, %v464_v45 }
  0xf5   :  { %509 = vst [vmem:[#allocation3 + $0x10] sm:$0xff] %v501_v52  ;;  %v467_v59 = vpop.f32.mrf.mxu0 }
  0xf6   :  { %v468_v1 = vadd.f32 %v467_v59, %v423_v62 }
  0xf9   :  { %v14161_v7 = vpop.f32.mrf.mxu3 }
  0xfa   :  { %v504_v2 = vpop.f32.mrf.mxu1  ;;  %v14159_v6 = vpop.f32.mrf.mxu2 }
  0xfb   :  { %v505_v10 = vadd.f32 %v504_v2, %v468_v1 }
  0xfd   :  { %510 = vst [vmem:[#allocation3 + $0x18] sm:$0xff] %v505_v10  ;;  %v14163_v11 = vpop.f32.mrf.mxu0 }
 0x101   :  { %v14169_v15 = vpop.f32.mrf.mxu3 }
 0x102   :  { %v14165_v12 = vpop.f32.mrf.mxu1  ;;  %v14167_v14 = vpop.f32.mrf.mxu2 }
 0x104   :  { %v816_v42 = vld [vmem:[%s815_s30] sm:$0x1] }
 0x105   :  { %v14171_v3 = vpop.f32.mrf.mxu0 }
 0x109   :  { %v14177_v21 = vpop.f32.mrf.mxu3 }
 0x10a   :  { %v14173_v16 = vpop.f32.mrf.mxu1  ;;  %v14175_v18 = vpop.f32.mrf.mxu2 }
 0x10d   :  { %v14179_v4 = vpop.f32.mrf.mxu0 }
 0x111   :  { %v14185_v8 = vpop.f32.mrf.mxu3 }
 0x112   :  { %v14181_v5 = vpop.f32.mrf.mxu1  ;;  %v14183_v22 = vpop.f32.mrf.mxu2 }
 0x115   :  { %v14187_v9 = vpop.f32.mrf.mxu0 }
 0x119   :  { %v14193_v20 = vpop.f32.mrf.mxu3 }
 0x11a   :  { %v14189_v23 = vpop.f32.mrf.mxu1  ;;  %v14191_v24 = vpop.f32.mrf.mxu2 }
 0x11d   :  { %v846_v25 = vpop.f32.mrf.mxu0 }
 0x121   :  { %v944_v30 = vpop.f32.mrf.mxu3 }
 0x122   :  { %v887_v13 = vpop.f32.mrf.mxu1  ;;  %v917_v27 = vpop.f32.mrf.mxu2 }
 0x123   :  { %v888_v28 = vadd.f32 %v887_v13, %v846_v25 }
 0x125   :  { %v918_v31 = vadd.f32 %v917_v27, %v888_v28  ;;  %v977_v32 = vpop.f32.mrf.mxu0 }
 0x127   :  { %v945_v33 = vadd.f32 %v944_v30, %v918_v31 }
 0x129   :  { %v978_v34 = vadd.f32 %v977_v32, %v945_v33 }
 0x12a   :  { %v1002_v37 = vpop.f32.mrf.mxu1 }
 0x12b   :  { %v1003_v38 = vadd.f32 %v1002_v37, %v978_v34 }
 0x12d   :  { %v1005_v44 = vadd.f32 %v1003_v38, %v816_v42 }
 0x12f   :  { %v1006_v45 = vadd.f32 %v1005_v44, %v14198_v41 }
 0x131   :  { %13240 = vtanh.f32 %v1006_v45  ;;  %v13159_v51 = vmul.f32 -1.442695, %v1006_v45 }
 0x133   :  { %13242 = vpow2.f32 %v13159_v51 }
 0x137   :  { %v13241_v46 = vpop.eup %13240 }
 0x138   :  { %1029 = vrot.lane.b32.xlu0 %v13241_v46, %s13729_s14 }
 0x139   :  { %v13243_v52 = vpop.eup %13242 }
 0x13a   :  { %v1010_v59 = vadd.f32 1.0, %v13243_v52 }
 0x13c   :  { %13244 = vrcp.f32 %v1010_v59  ;;  %v1022_v13 = vand.u32 2147483648, %v1010_v59  ;;  %vm1016_vm2 = vweird.f32 %v1010_v59  ;;  %v1020_v27 = vand.u32 2147483647, %v1010_v59 }
 0x13e   :  { %v1023_v30 = vor.u32 1.1754944e-38, %v1022_v13  ;;  %vm1021_vm4 = vcmp.eq.f32.partialorder %v1020_v27, 8.507059e+37 }
 0x142   :  { %v13245_v62 = vpop.eup %13244 }
 0x143   :  { %v1012_v1 = vmul.f32 %v13245_v62, %v1010_v59  ;;  %vm1017_vm1 = vweird.f32 %v13245_v62 }
 0x144   :  { %vm1018_vm3 = vmor %vm1016_vm2, %vm1017_vm1 }
 0x145   :  { %v1013_v2 = vsub.f32 1.0, %v1012_v1 }
 0x147   :  { %v1014_v10 = vmul.f32 %v13245_v62, %v1013_v2 }
 0x149   :  { %v1015_v25 = vadd.f32 %v13245_v62, %v1014_v10 }
 0x14b   :  { %v1019_v28 = vsel %vm1018_vm3, %v13245_v62, %v1015_v25 }
 0x14c   :  { %v1024_v32 = vsel %vm1021_vm4, %v1023_v30, %v1019_v28 }
 0x14d   :  { %v1027_v34 = vmul.f32 0.0, %v1024_v32 }
 0x1aa   :  { %v1030_v31 = vpop.permute.xlu0 %1029 }
 0x1ab   :  { %v1032_v33 = vmul.f32 %v1030_v31, %v1024_v32 }
 0x1ad   :  { %1034 = vrot.lane.b32.xlu0 %v1032_v33, %s13730_s15 }
 0x21f   :  { %v1035_v37 = vpop.permute.xlu0 %1034 }
 0x220   :  { %v14203_v38 = vadd.f32 %v1035_v37, %v1027_v34 }
 0x222   :  { %13246 = vtanh.f32 %v14203_v38 }
 0x228   :  { %v13247_v42 = vpop.eup %13246 }
 0x229   :  { %1040 = vrot.lane.b32.xlu1 %v13247_v42, %s13729_s14  ;;  %v1052_v42 = vld [vmem:[%s1051_s0] sm:$0x1] }
 0x29b   :  { %v1041_v44 = vpop.permute.xlu1 %1040 }
 0x29c   :  { %v1043_v45 = vmul.f32 %v1041_v44, %v1024_v32 }
 0x29e   :  { %1045 = vrot.lane.b32.xlu1 %v1043_v45, %s13730_s15 }
 0x310   :  { %v1046_v46 = vpop.permute.xlu1 %1045 }
 0x311   :  { %1049 = vst.msk [vmem:[#allocation2] sm:$0x1] %vm1048_vm5, %v1046_v46  ;;  %v1053_v51 = vsel %vm216_vm0, %v1046_v46, 0 }
 0x312   :  { %v1075_v52 = vand.u32 4294901760, %v1053_v51 }
 0x314   :  { %v1076_v59 = vsub.f32 %v1053_v51, %v1075_v52  ;;  %1121 = vmatmul.f32.vlgmr.msra.gmra.mxu3 %v1075_v52 }
 0x315   :  { %1402 = vmatpush.msra.mxu3 %v14006_v40 }
 0x316   :  { %v1077_v62 = vand.u32 4294901760, %v1076_v59  ;;  %1151 = vmatmul.f32.vlgmr.msrb.gmra.mxu0 %v1076_v59 }
 0x317   :  { %1404 = vmatpush.msra.mxu3 %v14028_v19  ;;  %1431 = vmatpush.msrb.mxu0 %v14017_v43 }
 0x318   :  { %v1078_v1 = vsub.f32 %v1076_v59, %v1077_v62  ;;  %1178 = vmatmul.f32.vlgmr.msrb.gmra.mxu1 %v1077_v62 }
 0x319   :  { %1406 = vmatpush.msra.mxu3 %v14047_v54  ;;  %1462 = vmatpush.msrb.mxu1 %v14006_v40 }
 0x31a   :  { %v1079_v2 = vand.u32 4294901760, %v1078_v1  ;;  %1435 = vmatpush.msrb.mxu0 %v14039_v50 }
 0x31b   :  { %1408 = vmatpush.msra.mxu3 %v14054_v56  ;;  %1464 = vmatpush.msrb.mxu1 %v14028_v19 }
 0x31c   :  { %1080 = vmatmul.f32.vlgmr.msra.gmra.mxu2 %v1079_v2  ;;  %1236 = vmatmul.f32.vlgmr.msrb.gmra.mxu3 %v1075_v52 }
 0x31d   :  { %1373 = vmatpush.msra.mxu2 %v14010_v17  ;;  %1466 = vmatpush.msrb.mxu1 %v14047_v54 }
 0x31e   :  { %1439 = vmatpush.msrb.mxu0 %v14060_v57  ;;  %1569 = vmatpush.msrb.mxu3 %v14026_v47 }
 0x31f   :  { %1376 = vmatpush.msra.mxu2 %v14032_v49  ;;  %1468 = vmatpush.msrb.mxu1 %v14054_v56 }
 0x320   :  { %1443 = vmatpush.msrb.mxu0 %v14072_v60  ;;  %1575 = vmatpush.msrb.mxu3 %v14045_v53 }
 0x321   :  { %1379 = vmatpush.msra.mxu2 %v14051_v35 }
 0x322   :  { %1581 = vmatpush.msrb.mxu3 %v14076_v61 }
 0x323   :  { %1382 = vmatpush.msra.mxu2 %v14063_v58 }
 0x324   :  { %1211 = vmatmul.f32.vlgmr.msrb.gmra.mxu2 %v1075_v52  ;;  %1587 = vmatpush.msrb.mxu3 %v14084_v63 }
 0x325   :  { %1536 = vmatpush.msrb.mxu2 %v14006_v40 }
 0x327   :  { %1538 = vmatpush.msrb.mxu2 %v14028_v19 }
 0x329   :  { %1540 = vmatpush.msrb.mxu2 %v14047_v54 }
 0x32b   :  { %1542 = vmatpush.msrb.mxu2 %v14054_v56 }
 0x393   :  { %v1152_v27 = vpop.f32.mrf.mxu0 }
 0x395   :  { %v1179_v30 = vpop.f32.mrf.mxu1 }
 0x397   :  { %v1122_v10 = vpop.f32.mrf.mxu3 }
 0x39f   :  { %v1081_v25 = vpop.f32.mrf.mxu2  ;;  %v1237_v34 = vpop.f32.mrf.mxu3 }
 0x3a0   :  { %v1123_v13 = vadd.f32 %v1122_v10, %v1081_v25 }
 0x3a2   :  { %v1153_v28 = vadd.f32 %v1152_v27, %v1123_v13 }
 0x3a4   :  { %v1180_v31 = vadd.f32 %v1179_v30, %v1153_v28 }
 0x3a7   :  { %v1212_v32 = vpop.f32.mrf.mxu2 }
 0x3a8   :  { %v1213_v33 = vadd.f32 %v1212_v32, %v1180_v31 }
 0x3aa   :  { %v1238_v37 = vadd.f32 %v1237_v34, %v1213_v33 }
 0x3ac   :  { %v1240_v44 = vadd.f32 %v1238_v37, %v1052_v42 }
 0x3ae   :  { %v1241_v45 = vadd.f32 %v1240_v44, %v14198_v41 }
 0x3b0   :  { %13248 = vtanh.f32 %v1241_v45  ;;  %v13161_v51 = vmul.f32 -1.442695, %v1241_v45 }
 0x3b2   :  { %13250 = vpow2.f32 %v13161_v51 }
 0x3b6   :  { %v13249_v46 = vpop.eup %13248 }
 0x3b7   :  { %1264 = vrot.lane.b32.xlu2 %v13249_v46, %s13729_s14 }
 0x3b8   :  { %v13251_v52 = vpop.eup %13250 }
 0x3b9   :  { %v1245_v59 = vadd.f32 1.0, %v13251_v52 }
 0x3bb   :  { %13252 = vrcp.f32 %v1245_v59  ;;  %v1257_v13 = vand.u32 2147483648, %v1245_v59  ;;  %vm1251_vm7 = vweird.f32 %v1245_v59  ;;  %v1255_v27 = vand.u32 2147483647, %v1245_v59 }
 0x3bd   :  { %v1258_v30 = vor.u32 1.1754944e-38, %v1257_v13  ;;  %vm1256_vm9 = vcmp.eq.f32.partialorder %v1255_v27, 8.507059e+37 }
 0x3c1   :  { %v13253_v62 = vpop.eup %13252 }
 0x3c2   :  { %v1247_v1 = vmul.f32 %v13253_v62, %v1245_v59  ;;  %vm1252_vm6 = vweird.f32 %v13253_v62 }
 0x3c3   :  { %vm1253_vm8 = vmor %vm1251_vm7, %vm1252_vm6 }
 0x3c4   :  { %v1248_v2 = vsub.f32 1.0, %v1247_v1 }
 0x3c6   :  { %v1249_v10 = vmul.f32 %v13253_v62, %v1248_v2 }
 0x3c8   :  { %v1250_v25 = vadd.f32 %v13253_v62, %v1249_v10 }
 0x3ca   :  { %v1254_v28 = vsel %vm1253_vm8, %v13253_v62, %v1250_v25 }
 0x3cb   :  { %v1259_v32 = vsel %vm1256_vm9, %v1258_v30, %v1254_v28 }
 0x3cc   :  { %v1262_v34 = vmul.f32 %v1259_v32, %v14203_v38 }
 0x411   :  { %v1265_v31 = vpop.permute.xlu2 %1264 }
 0x412   :  { %v1267_v33 = vmul.f32 %v1265_v31, %v1259_v32 }
 0x414   :  { %1269 = vrot.lane.b32.xlu2 %v1267_v33, %s13730_s15 }
 0x46e   :  { %v1270_v37 = vpop.permute.xlu2 %1269 }
 0x46f   :  { %v14238_v42 = vadd.f32 %v1270_v37, %v1262_v34 }
 0x471   :  { %13254 = vtanh.f32 %v14238_v42 }
 0x477   :  { %v13255_v44 = vpop.eup %13254 }
 0x478   :  { %1275 = vrot.lane.b32.xlu0 %v13255_v44, %s13729_s14  ;;  %v1286_v44 = vld [vmem:[%s1285_s5] sm:$0x1] }
 0x4ea   :  { %v1276_v45 = vpop.permute.xlu0 %1275 }
 0x4eb   :  { %v1278_v46 = vmul.f32 %v1276_v45, %v1259_v32 }
 0x4ed   :  { %1280 = vrot.lane.b32.xlu1 %v1278_v46, %s13730_s15 }
 0x55f   :  { %v1281_v51 = vpop.permute.xlu1 %1280 }
 0x560   :  { %1283 = vst.msk [vmem:[#allocation2 + $0x1] sm:$0x1] %vm1048_vm5, %v1281_v51  ;;  %v1287_v52 = vsel %vm216_vm0, %v1281_v51, 0 }
 0x561   :  { %v1309_v59 = vand.u32 4294901760, %v1287_v52 }
 0x563   :  { %v1310_v62 = vsub.f32 %v1287_v52, %v1309_v59  ;;  %1355 = vmatmul.f32.vlgmr.msra.gmra.mxu1 %v1309_v59 }
 0x564   :  { %1636 = vmatpush.msra.mxu1 %v14006_v40 }
 0x565   :  { %v1311_v38 = vand.u32 4294901760, %v1310_v62  ;;  %1385 = vmatmul.f32.vlgmr.msra.gmra.mxu2 %v1310_v62 }
 0x566   :  { %1638 = vmatpush.msra.mxu1 %v14028_v19  ;;  %1665 = vmatpush.msra.mxu2 %v14017_v43 }
 0x567   :  { %v1312_v1 = vsub.f32 %v1310_v62, %v1311_v38  ;;  %1412 = vmatmul.f32.vlgmr.msra.gmra.mxu3 %v1311_v38 }
 0x568   :  { %1640 = vmatpush.msra.mxu1 %v14047_v54  ;;  %1696 = vmatpush.msra.mxu3 %v14006_v40 }
 0x569   :  { %v1313_v2 = vand.u32 4294901760, %v1312_v1  ;;  %1669 = vmatpush.msra.mxu2 %v14039_v50 }
 0x56a   :  { %1642 = vmatpush.msra.mxu1 %v14054_v56  ;;  %1698 = vmatpush.msra.mxu3 %v14028_v19 }
 0x56b   :  { %1314 = vmatmul.f32.vlgmr.msra.gmra.mxu0 %v1313_v2  ;;  %1470 = vmatmul.f32.vlgmr.msrb.gmra.mxu1 %v1309_v59 }
 0x56c   :  { %1607 = vmatpush.msra.mxu0 %v14010_v17  ;;  %1700 = vmatpush.msra.mxu3 %v14047_v54 }
 0x56d   :  { %1673 = vmatpush.msra.mxu2 %v14060_v57  ;;  %1803 = vmatpush.msrb.mxu1 %v14026_v47 }
 0x56e   :  { %1610 = vmatpush.msra.mxu0 %v14032_v49  ;;  %1702 = vmatpush.msra.mxu3 %v14054_v56 }
 0x56f   :  { %1677 = vmatpush.msra.mxu2 %v14072_v60  ;;  %1809 = vmatpush.msrb.mxu1 %v14045_v53 }
 0x570   :  { %1613 = vmatpush.msra.mxu0 %v14051_v35 }
 0x571   :  { %1815 = vmatpush.msrb.mxu1 %v14076_v61 }
 0x572   :  { %1616 = vmatpush.msra.mxu0 %v14063_v58 }
 0x573   :  { %1445 = vmatmul.f32.vlgmr.msrb.gmra.mxu0 %v1309_v59  ;;  %1821 = vmatpush.msrb.mxu1 %v14084_v63 }
 0x574   :  { %1770 = vmatpush.msrb.mxu0 %v14006_v40 }
 0x576   :  { %1772 = vmatpush.msrb.mxu0 %v14028_v19 }
 0x578   :  { %1774 = vmatpush.msrb.mxu0 %v14047_v54 }
 0x57a   :  { %1776 = vmatpush.msrb.mxu0 %v14054_v56 }
 0x5e0   :  { %v1356_v10 = vpop.f32.mrf.mxu1 }
 0x5e8   :  { %v1315_v25 = vpop.f32.mrf.mxu0  ;;  %v1386_v27 = vpop.f32.mrf.mxu2 }
 0x5e9   :  { %v1357_v13 = vadd.f32 %v1356_v10, %v1315_v25  ;;  %v1471_v34 = vpop.f32.mrf.mxu1 }
 0x5ea   :  { %v1413_v30 = vpop.f32.mrf.mxu3 }
 0x5eb   :  { %v1387_v28 = vadd.f32 %v1386_v27, %v1357_v13 }
 0x5ed   :  { %v1414_v31 = vadd.f32 %v1413_v30, %v1387_v28 }
 0x5f0   :  { %v1446_v32 = vpop.f32.mrf.mxu0 }
 0x5f1   :  { %v1447_v33 = vadd.f32 %v1446_v32, %v1414_v31 }
 0x5f3   :  { %v1472_v37 = vadd.f32 %v1471_v34, %v1447_v33 }
 0x5f5   :  { %v1474_v45 = vadd.f32 %v1472_v37, %v1286_v44 }
 0x5f7   :  { %v1475_v46 = vadd.f32 %v1474_v45, %v14198_v41 }
 0x5f9   :  { %13256 = vtanh.f32 %v1475_v46  ;;  %v13163_v52 = vmul.f32 -1.442695, %v1475_v46 }
 0x5fb   :  { %13258 = vpow2.f32 %v13163_v52 }
 0x5ff   :  { %v13257_v51 = vpop.eup %13256 }
 0x600   :  { %1498 = vrot.lane.b32.xlu2 %v13257_v51, %s13729_s14 }
 0x601   :  { %v13259_v59 = vpop.eup %13258 }
 0x602   :  { %v1479_v62 = vadd.f32 1.0, %v13259_v59 }
 0x604   :  { %13260 = vrcp.f32 %v1479_v62  ;;  %v1491_v13 = vand.u32 2147483648, %v1479_v62  ;;  %vm1485_vm11 = vweird.f32 %v1479_v62  ;;  %v1489_v27 = vand.u32 2147483647, %v1479_v62 }
 0x606   :  { %v1492_v30 = vor.u32 1.1754944e-38, %v1491_v13  ;;  %vm1490_vm13 = vcmp.eq.f32.partialorder %v1489_v27, 8.507059e+37 }
 0x60a   :  { %v13261_v38 = vpop.eup %13260 }
 0x60b   :  { %v1481_v1 = vmul.f32 %v13261_v38, %v1479_v62  ;;  %vm1486_vm10 = vweird.f32 %v13261_v38 }
 0x60c   :  { %vm1487_vm12 = vmor %vm1485_vm11, %vm1486_vm10 }
 0x60d   :  { %v1482_v2 = vsub.f32 1.0, %v1481_v1 }
 0x60f   :  { %v1483_v10 = vmul.f32 %v13261_v38, %v1482_v2 }
 0x611   :  { %v1484_v25 = vadd.f32 %v13261_v38, %v1483_v10 }
 0x613   :  { %v1488_v28 = vsel %vm1487_vm12, %v13261_v38, %v1484_v25 }
 0x614   :  { %v1493_v32 = vsel %vm1490_vm13, %v1492_v30, %v1488_v28 }
 0x615   :  { %v1496_v34 = vmul.f32 %v1493_v32, %v14238_v42 }
 0x65a   :  { %v1499_v31 = vpop.permute.xlu2 %1498 }
 0x65b   :  { %v1501_v33 = vmul.f32 %v1499_v31, %v1493_v32 }
 0x65d   :  { %1503 = vrot.lane.b32.xlu0 %v1501_v33, %s13730_s15 }
 0x6cf   :  { %v1504_v37 = vpop.permute.xlu0 %1503 }
 0x6d0   :  { %v14273_v44 = vadd.f32 %v1504_v37, %v1496_v34 }
 0x6d2   :  { %13262 = vtanh.f32 %v14273_v44 }
 0x6d8   :  { %v13263_v45 = vpop.eup %13262 }
 0x6d9   :  { %1509 = vrot.lane.b32.xlu1 %v13263_v45, %s13729_s14  ;;  %v1520_v45 = vld [vmem:[%s1519_s17] sm:$0x1] }
 0x74b   :  { %v1510_v46 = vpop.permute.xlu1 %1509 }
 0x74c   :  { %v1512_v51 = vmul.f32 %v1510_v46, %v1493_v32 }
 0x74e   :  { %1514 = vrot.lane.b32.xlu2 %v1512_v51, %s13730_s15 }
 0x7a8   :  { %v1515_v52 = vpop.permute.xlu2 %1514 }
 0x7a9   :  { %1517 = vst.msk [vmem:[#allocation2 + $0x2] sm:$0x1] %vm1048_vm5, %v1515_v52  ;;  %v1521_v59 = vsel %vm216_vm0, %v1515_v52, 0 }
 0x7aa   :  { %v1543_v62 = vand.u32 4294901760, %v1521_v59 }
 0x7ac   :  { %v1544_v38 = vsub.f32 %v1521_v59, %v1543_v62  ;;  %1589 = vmatmul.f32.vlgmr.msrb.gmra.mxu3 %v1543_v62 }
 0x7ad   :  { %1870 = vmatpush.msrb.mxu3 %v14006_v40 }
 0x7ae   :  { %v1545_v42 = vand.u32 4294901760, %v1544_v38  ;;  %1619 = vmatmul.f32.vlgmr.msra.gmra.mxu0 %v1544_v38 }
 0x7af   :  { %1872 = vmatpush.msrb.mxu3 %v14028_v19  ;;  %1899 = vmatpush.msra.mxu0 %v14017_v43 }
 0x7b0   :  { %v1546_v1 = vsub.f32 %v1544_v38, %v1545_v42  ;;  %1646 = vmatmul.f32.vlgmr.msra.gmra.mxu1 %v1545_v42 }
 0x7b1   :  { %1874 = vmatpush.msrb.mxu3 %v14047_v54  ;;  %1930 = vmatpush.msra.mxu1 %v14006_v40 }
 0x7b2   :  { %v1547_v2 = vand.u32 4294901760, %v1546_v1  ;;  %1903 = vmatpush.msra.mxu0 %v14039_v50 }
 0x7b3   :  { %1876 = vmatpush.msrb.mxu3 %v14054_v56  ;;  %1932 = vmatpush.msra.mxu1 %v14028_v19 }
 0x7b4   :  { %1548 = vmatmul.f32.vlgmr.msrb.gmra.mxu2 %v1547_v2  ;;  %1704 = vmatmul.f32.vlgmr.msra.gmra.mxu3 %v1543_v62 }
 0x7b5   :  { %1841 = vmatpush.msrb.mxu2 %v14010_v17  ;;  %1934 = vmatpush.msra.mxu1 %v14047_v54 }
 0x7b6   :  { %1907 = vmatpush.msra.mxu0 %v14060_v57  ;;  %2037 = vmatpush.msra.mxu3 %v14026_v47 }
 0x7b7   :  { %1844 = vmatpush.msrb.mxu2 %v14032_v49  ;;  %1936 = vmatpush.msra.mxu1 %v14054_v56 }
 0x7b8   :  { %1911 = vmatpush.msra.mxu0 %v14072_v60  ;;  %2043 = vmatpush.msra.mxu3 %v14045_v53 }
 0x7b9   :  { %1847 = vmatpush.msrb.mxu2 %v14051_v35 }
 0x7ba   :  { %2049 = vmatpush.msra.mxu3 %v14076_v61 }
 0x7bb   :  { %1850 = vmatpush.msrb.mxu2 %v14063_v58 }
 0x7bc   :  { %1679 = vmatmul.f32.vlgmr.msra.gmra.mxu2 %v1543_v62  ;;  %2055 = vmatpush.msra.mxu3 %v14084_v63 }
 0x7bd   :  { %2004 = vmatpush.msra.mxu2 %v14006_v40 }
 0x7bf   :  { %2006 = vmatpush.msra.mxu2 %v14028_v19 }
 0x7c1   :  { %2008 = vmatpush.msra.mxu2 %v14047_v54 }
 0x7c3   :  { %2010 = vmatpush.msra.mxu2 %v14054_v56 }
 0x82b   :  { %v1620_v27 = vpop.f32.mrf.mxu0 }
 0x82d   :  { %v1647_v30 = vpop.f32.mrf.mxu1 }
 0x82f   :  { %v1590_v10 = vpop.f32.mrf.mxu3 }
 0x837   :  { %v1549_v25 = vpop.f32.mrf.mxu2  ;;  %v1705_v34 = vpop.f32.mrf.mxu3 }
 0x838   :  { %v1591_v13 = vadd.f32 %v1590_v10, %v1549_v25 }
 0x83a   :  { %v1621_v28 = vadd.f32 %v1620_v27, %v1591_v13 }
 0x83c   :  { %v1648_v31 = vadd.f32 %v1647_v30, %v1621_v28 }
 0x83f   :  { %v1680_v32 = vpop.f32.mrf.mxu2 }
 0x840   :  { %v1681_v33 = vadd.f32 %v1680_v32, %v1648_v31 }
 0x842   :  { %v1706_v37 = vadd.f32 %v1705_v34, %v1681_v33 }
 0x844   :  { %v1708_v46 = vadd.f32 %v1706_v37, %v1520_v45 }
 0x846   :  { %v1709_v51 = vadd.f32 %v1708_v46, %v14198_v41 }
 0x848   :  { %13264 = vtanh.f32 %v1709_v51  ;;  %v13165_v59 = vmul.f32 -1.442695, %v1709_v51 }
 0x84a   :  { %13266 = vpow2.f32 %v13165_v59 }
 0x84e   :  { %v13265_v52 = vpop.eup %13264 }
 0x84f   :  { %1732 = vrot.lane.b32.xlu0 %v13265_v52, %s13729_s14 }
 0x850   :  { %v13267_v62 = vpop.eup %13266 }
 0x851   :  { %v1713_v38 = vadd.f32 1.0, %v13267_v62 }
 0x853   :  { %13268 = vrcp.f32 %v1713_v38  ;;  %v1725_v13 = vand.u32 2147483648, %v1713_v38  ;;  %vm1719_vm15 = vweird.f32 %v1713_v38  ;;  %v1723_v27 = vand.u32 2147483647, %v1713_v38 }
 0x855   :  { %v1726_v30 = vor.u32 1.1754944e-38, %v1725_v13  ;;  %vm1724_vm2 = vcmp.eq.f32.partialorder %v1723_v27, 8.507059e+37 }
 0x859   :  { %v13269_v42 = vpop.eup %13268 }
 0x85a   :  { %v1715_v1 = vmul.f32 %v13269_v42, %v1713_v38  ;;  %vm1720_vm14 = vweird.f32 %v13269_v42 }
 0x85b   :  { %vm1721_vm1 = vmor %vm1719_vm15, %vm1720_vm14 }
 0x85c   :  { %v1716_v2 = vsub.f32 1.0, %v1715_v1 }
 0x85e   :  { %v1717_v10 = vmul.f32 %v13269_v42, %v1716_v2 }
 0x860   :  { %v1718_v25 = vadd.f32 %v13269_v42, %v1717_v10 }
 0x862   :  { %v1722_v28 = vsel %vm1721_vm1, %v13269_v42, %v1718_v25 }
 0x863   :  { %v1727_v32 = vsel %vm1724_vm2, %v1726_v30, %v1722_v28 }
 0x864   :  { %v1730_v34 = vmul.f32 %v1727_v32, %v14273_v44 }
 0x8c1   :  { %v1733_v31 = vpop.permute.xlu0 %1732 }
 0x8c2   :  { %v1735_v33 = vmul.f32 %v1733_v31, %v1727_v32 }
 0x8c4   :  { %1737 = vrot.lane.b32.xlu1 %v1735_v33, %s13730_s15 }
 0x936   :  { %v1738_v37 = vpop.permute.xlu1 %1737 }
 0x937   :  { %v14308_v45 = vadd.f32 %v1738_v37, %v1730_v34 }
 0x939   :  { %13270 = vtanh.f32 %v14308_v45 }
 0x93f   :  { %v13271_v46 = vpop.eup %13270 }
 0x940   :  { %1743 = vrot.lane.b32.xlu2 %v13271_v46, %s13729_s14  ;;  %v1754_v46 = vld [vmem:[%s1753_s3] sm:$0x1] }
 0x99a   :  { %v1744_v51 = vpop.permute.xlu2 %1743 }
 0x99b   :  { %v1746_v52 = vmul.f32 %v1744_v51, %v1727_v32 }
 0x99d   :  { %1748 = vrot.lane.b32.xlu0 %v1746_v52, %s13730_s15 }
 0xa0f   :  { %v1749_v59 = vpop.permute.xlu0 %1748 }
 0xa10   :  { %1751 = vst.msk [vmem:[#allocation2 + $0x3] sm:$0x1] %vm1048_vm5, %v1749_v59  ;;  %v1755_v62 = vsel %vm216_vm0, %v1749_v59, 0 }
 0xa11   :  { %v1777_v38 = vand.u32 4294901760, %v1755_v62 }
 0xa13   :  { %v1778_v42 = vsub.f32 %v1755_v62, %v1777_v38  ;;  %1823 = vmatmul.f32.vlgmr.msrb.gmra.mxu1 %v1777_v38 }
 0xa14   :  { %2104 = vmatpush.msrb.mxu1 %v14006_v40 }
 0xa15   :  { %v1779_v44 = vand.u32 4294901760, %v1778_v42  ;;  %1853 = vmatmul.f32.vlgmr.msrb.gmra.mxu2 %v1778_v42 }
 0xa16   :  { %2106 = vmatpush.msrb.mxu1 %v14028_v19  ;;  %2133 = vmatpush.msrb.mxu2 %v14017_v43 }
 0xa17   :  { %v1780_v1 = vsub.f32 %v1778_v42, %v1779_v44  ;;  %1880 = vmatmul.f32.vlgmr.msrb.gmra.mxu3 %v1779_v44 }
 0xa18   :  { %2108 = vmatpush.msrb.mxu1 %v14047_v54  ;;  %2164 = vmatpush.msrb.mxu3 %v14006_v40 }
 0xa19   :  { %v1781_v2 = vand.u32 4294901760, %v1780_v1  ;;  %2137 = vmatpush.msrb.mxu2 %v14039_v50 }
 0xa1a   :  { %2110 = vmatpush.msrb.mxu1 %v14054_v56  ;;  %2166 = vmatpush.msrb.mxu3 %v14028_v19 }
 0xa1b   :  { %1782 = vmatmul.f32.vlgmr.msrb.gmra.mxu0 %v1781_v2  ;;  %1938 = vmatmul.f32.vlgmr.msra.gmra.mxu1 %v1777_v38 }
 0xa1c   :  { %2075 = vmatpush.msrb.mxu0 %v14010_v17  ;;  %2168 = vmatpush.msrb.mxu3 %v14047_v54 }
 0xa1d   :  { %2141 = vmatpush.msrb.mxu2 %v14060_v57  ;;  %2271 = vmatpush.msra.mxu1 %v14026_v47 }
 0xa1e   :  { %2078 = vmatpush.msrb.mxu0 %v14032_v49  ;;  %2170 = vmatpush.msrb.mxu3 %v14054_v56 }
 0xa1f   :  { %2145 = vmatpush.msrb.mxu2 %v14072_v60  ;;  %2277 = vmatpush.msra.mxu1 %v14045_v53 }
 0xa20   :  { %2081 = vmatpush.msrb.mxu0 %v14051_v35 }
 0xa21   :  { %2283 = vmatpush.msra.mxu1 %v14076_v61 }
 0xa22   :  { %2084 = vmatpush.msrb.mxu0 %v14063_v58 }
 0xa23   :  { %1913 = vmatmul.f32.vlgmr.msra.gmra.mxu0 %v1777_v38  ;;  %2289 = vmatpush.msra.mxu1 %v14084_v63 }
 0xa24   :  { %2238 = vmatpush.msra.mxu0 %v14006_v40 }
 0xa26   :  { %2240 = vmatpush.msra.mxu0 %v14028_v19 }
 0xa28   :  { %2242 = vmatpush.msra.mxu0 %v14047_v54 }
 0xa2a   :  { %2244 = vmatpush.msra.mxu0 %v14054_v56 }
 0xa90   :  { %v1824_v10 = vpop.f32.mrf.mxu1 }
 0xa98   :  { %v1783_v25 = vpop.f32.mrf.mxu0  ;;  %v1854_v27 = vpop.f32.mrf.mxu2 }
 0xa99   :  { %v1825_v13 = vadd.f32 %v1824_v10, %v1783_v25  ;;  %v1939_v34 = vpop.f32.mrf.mxu1 }
 0xa9a   :  { %v1881_v30 = vpop.f32.mrf.mxu3 }
 0xa9b   :  { %v1855_v28 = vadd.f32 %v1854_v27, %v1825_v13 }
 0xa9d   :  { %v1882_v31 = vadd.f32 %v1881_v30, %v1855_v28 }
 0xaa0   :  { %v1914_v32 = vpop.f32.mrf.mxu0 }
 0xaa1   :  { %v1915_v33 = vadd.f32 %v1914_v32, %v1882_v31 }
 0xaa3   :  { %v1940_v37 = vadd.f32 %v1939_v34, %v1915_v33 }
 0xaa5   :  { %v1942_v51 = vadd.f32 %v1940_v37, %v1754_v46 }
 0xaa7   :  { %v1943_v52 = vadd.f32 %v1942_v51, %v14198_v41 }
 0xaa9   :  { %13272 = vtanh.f32 %v1943_v52  ;;  %v13167_v62 = vmul.f32 -1.442695, %v1943_v52 }
 0xaab   :  { %13274 = vpow2.f32 %v13167_v62 }
 0xaaf   :  { %v13273_v59 = vpop.eup %13272 }
 0xab0   :  { %1966 = vrot.lane.b32.xlu1 %v13273_v59, %s13729_s14 }
 0xab1   :  { %v13275_v38 = vpop.eup %13274 }
 0xab2   :  { %v1947_v42 = vadd.f32 1.0, %v13275_v38 }
 0xab4   :  { %13276 = vrcp.f32 %v1947_v42  ;;  %v1959_v13 = vand.u32 2147483648, %v1947_v42  ;;  %vm1953_vm4 = vweird.f32 %v1947_v42  ;;  %v1957_v27 = vand.u32 2147483647, %v1947_v42 }
 0xab6   :  { %v1960_v30 = vor.u32 1.1754944e-38, %v1959_v13  ;;  %vm1958_vm7 = vcmp.eq.f32.partialorder %v1957_v27, 8.507059e+37 }
 0xaba   :  { %v13277_v44 = vpop.eup %13276 }
 0xabb   :  { %v1949_v1 = vmul.f32 %v13277_v44, %v1947_v42  ;;  %vm1954_vm3 = vweird.f32 %v13277_v44 }
 0xabc   :  { %vm1955_vm6 = vmor %vm1953_vm4, %vm1954_vm3 }
 0xabd   :  { %v1950_v2 = vsub.f32 1.0, %v1949_v1 }
 0xabf   :  { %v1951_v10 = vmul.f32 %v13277_v44, %v1950_v2 }
 0xac1   :  { %v1952_v25 = vadd.f32 %v13277_v44, %v1951_v10 }
 0xac3   :  { %v1956_v28 = vsel %vm1955_vm6, %v13277_v44, %v1952_v25 }
 0xac4   :  { %v1961_v32 = vsel %vm1958_vm7, %v1960_v30, %v1956_v28 }
 0xac5   :  { %v1964_v34 = vmul.f32 %v1961_v32, %v14308_v45 }
 0xb22   :  { %v1967_v31 = vpop.permute.xlu1 %1966 }
 0xb23   :  { %v1969_v33 = vmul.f32 %v1967_v31, %v1961_v32 }
 0xb25   :  { %1971 = vrot.lane.b32.xlu2 %v1969_v33, %s13730_s15 }
 0xb7f   :  { %v1972_v37 = vpop.permute.xlu2 %1971 }
 0xb80   :  { %v14343_v46 = vadd.f32 %v1972_v37, %v1964_v34 }
 0xb82   :  { %13278 = vtanh.f32 %v14343_v46 }
 0xb88   :  { %v13279_v51 = vpop.eup %13278 }
 0xb89   :  { %1977 = vrot.lane.b32.xlu0 %v13279_v51, %s13729_s14  ;;  %v1988_v51 = vld [vmem:[%s1987_s20] sm:$0x1] }
 0xbfb   :  { %v1978_v52 = vpop.permute.xlu0 %1977 }
 0xbfc   :  { %v1980_v59 = vmul.f32 %v1978_v52, %v1961_v32 }
 0xbfe   :  { %1982 = vrot.lane.b32.xlu1 %v1980_v59, %s13730_s15 }
 0xc70   :  { %v1983_v62 = vpop.permute.xlu1 %1982 }
 0xc71   :  { %1985 = vst.msk [vmem:[#allocation2 + $0x4] sm:$0x1] %vm1048_vm5, %v1983_v62  ;;  %v1989_v38 = vsel %vm216_vm0, %v1983_v62, 0 }
 0xc72   :  { %v2011_v42 = vand.u32 4294901760, %v1989_v38 }
 0xc74   :  { %v2012_v44 = vsub.f32 %v1989_v38, %v2011_v42  ;;  %2057 = vmatmul.f32.vlgmr.msra.gmra.mxu3 %v2011_v42 }
 0xc75   :  { %2338 = vmatpush.msra.mxu3 %v14006_v40 }
 0xc76   :  { %v2013_v45 = vand.u32 4294901760, %v2012_v44  ;;  %2087 = vmatmul.f32.vlgmr.msrb.gmra.mxu0 %v2012_v44 }
 0xc77   :  { %2340 = vmatpush.msra.mxu3 %v14028_v19  ;;  %2367 = vmatpush.msrb.mxu0 %v14017_v43 }
 0xc78   :  { %v2014_v1 = vsub.f32 %v2012_v44, %v2013_v45  ;;  %2114 = vmatmul.f32.vlgmr.msrb.gmra.mxu1 %v2013_v45 }
 0xc79   :  { %2342 = vmatpush.msra.mxu3 %v14047_v54  ;;  %2398 = vmatpush.msrb.mxu1 %v14006_v40 }
 0xc7a   :  { %v2015_v2 = vand.u32 4294901760, %v2014_v1  ;;  %2371 = vmatpush.msrb.mxu0 %v14039_v50 }
 0xc7b   :  { %2344 = vmatpush.msra.mxu3 %v14054_v56  ;;  %2400 = vmatpush.msrb.mxu1 %v14028_v19 }
 0xc7c   :  { %2016 = vmatmul.f32.vlgmr.msra.gmra.mxu2 %v2015_v2  ;;  %2172 = vmatmul.f32.vlgmr.msrb.gmra.mxu3 %v2011_v42 }
 0xc7d   :  { %2309 = vmatpush.msra.mxu2 %v14010_v17  ;;  %2402 = vmatpush.msrb.mxu1 %v14047_v54 }
 0xc7e   :  { %2375 = vmatpush.msrb.mxu0 %v14060_v57  ;;  %2505 = vmatpush.msrb.mxu3 %v14026_v47 }
 0xc7f   :  { %2312 = vmatpush.msra.mxu2 %v14032_v49  ;;  %2404 = vmatpush.msrb.mxu1 %v14054_v56 }
 0xc80   :  { %2379 = vmatpush.msrb.mxu0 %v14072_v60  ;;  %2511 = vmatpush.msrb.mxu3 %v14045_v53 }
 0xc81   :  { %2315 = vmatpush.msra.mxu2 %v14051_v35 }
 0xc82   :  { %2517 = vmatpush.msrb.mxu3 %v14076_v61 }
 0xc83   :  { %2318 = vmatpush.msra.mxu2 %v14063_v58 }
 0xc84   :  { %2147 = vmatmul.f32.vlgmr.msrb.gmra.mxu2 %v2011_v42  ;;  %2523 = vmatpush.msrb.mxu3 %v14084_v63 }
 0xc85   :  { %2472 = vmatpush.msrb.mxu2 %v14006_v40 }
 0xc87   :  { %2474 = vmatpush.msrb.mxu2 %v14028_v19 }
 0xc89   :  { %2476 = vmatpush.msrb.mxu2 %v14047_v54 }
 0xc8b   :  { %2478 = vmatpush.msrb.mxu2 %v14054_v56 }
 0xcf3   :  { %v2088_v27 = vpop.f32.mrf.mxu0 }
 0xcf5   :  { %v2115_v30 = vpop.f32.mrf.mxu1 }
 0xcf7   :  { %v2058_v10 = vpop.f32.mrf.mxu3 }
 0xcff   :  { %v2017_v25 = vpop.f32.mrf.mxu2  ;;  %v2173_v34 = vpop.f32.mrf.mxu3 }
 0xd00   :  { %v2059_v13 = vadd.f32 %v2058_v10, %v2017_v25 }
 0xd02   :  { %v2089_v28 = vadd.f32 %v2088_v27, %v2059_v13 }
 0xd04   :  { %v2116_v31 = vadd.f32 %v2115_v30, %v2089_v28 }
 0xd07   :  { %v2148_v32 = vpop.f32.mrf.mxu2 }
 0xd08   :  { %v2149_v33 = vadd.f32 %v2148_v32, %v2116_v31 }
 0xd0a   :  { %v2174_v37 = vadd.f32 %v2173_v34, %v2149_v33 }
 0xd0c   :  { %v2176_v52 = vadd.f32 %v2174_v37, %v1988_v51 }
 0xd0e   :  { %v2177_v59 = vadd.f32 %v2176_v52, %v14198_v41 }
 0xd10   :  { %13280 = vtanh.f32 %v2177_v59  ;;  %v13169_v38 = vmul.f32 -1.442695, %v2177_v59 }
 0xd12   :  { %13282 = vpow2.f32 %v13169_v38 }
 0xd16   :  { %v13281_v62 = vpop.eup %13280 }
 0xd17   :  { %2200 = vrot.lane.b32.xlu2 %v13281_v62, %s13729_s14 }
 0xd18   :  { %v13283_v42 = vpop.eup %13282 }
 0xd19   :  { %v2181_v44 = vadd.f32 1.0, %v13283_v42 }
 0xd1b   :  { %13284 = vrcp.f32 %v2181_v44  ;;  %v2193_v13 = vand.u32 2147483648, %v2181_v44  ;;  %vm2187_vm9 = vweird.f32 %v2181_v44  ;;  %v2191_v27 = vand.u32 2147483647, %v2181_v44 }
 0xd1d   :  { %v2194_v28 = vor.u32 1.1754944e-38, %v2193_v13  ;;  %vm2192_vm11 = vcmp.eq.f32.partialorder %v2191_v27, 8.507059e+37 }
 0xd21   :  { %v13285_v45 = vpop.eup %13284 }
 0xd22   :  { %v2183_v1 = vmul.f32 %v13285_v45, %v2181_v44  ;;  %vm2188_vm8 = vweird.f32 %v13285_v45 }
 0xd23   :  { %vm2189_vm10 = vmor %vm2187_vm9, %vm2188_vm8 }
 0xd24   :  { %v2184_v2 = vsub.f32 1.0, %v2183_v1 }
 0xd26   :  { %v2185_v10 = vmul.f32 %v13285_v45, %v2184_v2 }
 0xd28   :  { %v2186_v25 = vadd.f32 %v13285_v45, %v2185_v10 }
 0xd2a   :  { %v2190_v41 = vsel %vm2189_vm10, %v13285_v45, %v2186_v25 }
 0xd2b   :  { %v2195_v31 = vsel %vm2192_vm11, %v2194_v28, %v2190_v41 }
 0xd2c   :  { %v2198_v33 = vmul.f32 %v2195_v31, %v14343_v46 }
 0xd71   :  { %v2201_v30 = vpop.permute.xlu2 %2200 }
 0xd72   :  { %v2203_v32 = vmul.f32 %v2201_v30, %v2195_v31 }
 0xd74   :  { %2205 = vrot.lane.b32.xlu0 %v2203_v32, %s13730_s15 }
 0xde6   :  { %v2206_v34 = vpop.permute.xlu0 %2205 }
 0xde7   :  { %v14378_v37 = vadd.f32 %v2206_v34, %v2198_v33  ;;  %v2222_v34 = vld [vmem:[%s2221_s6] sm:$0x1] }
 0xde9   :  { %13286 = vtanh.f32 %v14378_v37 }
 0xdef   :  { %v13287_v51 = vpop.eup %13286 }
 0xdf0   :  { %2211 = vrot.lane.b32.xlu1 %v13287_v51, %s13729_s14 }
 0xe62   :  { %v2212_v52 = vpop.permute.xlu1 %2211 }
 0xe63   :  { %v2214_v59 = vmul.f32 %v2212_v52, %v2195_v31  ;;  %v14412_v52 = vld [vmem:[%s16256_s4] sm:$0x1]  ;;  %s13172_s4 = sld [smem:[#allocation4 + $0x7]] }
 0xe65   :  { %2216 = vrot.lane.b32.xlu2 %v2214_v59, %s13730_s15 }
 0xe69   :  { %s2455_s23 = scalar_lea.vmem [#allocation3], %s13172_s4 }
 0xebf   :  { %v2217_v62 = vpop.permute.xlu2 %2216 }
 0xec0   :  { %2219 = vst.msk [vmem:[#allocation2 + $0x5] sm:$0x1] %vm1048_vm5, %v2217_v62  ;;  %v2223_v38 = vsel %vm216_vm0, %v2217_v62, 0 }
 0xec1   :  { %v2245_v42 = vand.u32 4294901760, %v2223_v38 }
 0xec3   :  { %v2246_v44 = vsub.f32 %v2223_v38, %v2245_v42  ;;  %2291 = vmatmul.f32.vlgmr.msra.gmra.mxu1 %v2245_v42 }
 0xec4   :  { %2572 = vmatpush.msra.mxu1 %v14006_v40 }
 0xec5   :  { %v2247_v46 = vand.u32 4294901760, %v2246_v44  ;;  %2321 = vmatmul.f32.vlgmr.msra.gmra.mxu2 %v2246_v44 }
 0xec6   :  { %2574 = vmatpush.msra.mxu1 %v14028_v19  ;;  %2601 = vmatpush.msra.mxu2 %v14017_v43 }
 0xec7   :  { %v2248_v45 = vsub.f32 %v2246_v44, %v2247_v46  ;;  %2348 = vmatmul.f32.vlgmr.msra.gmra.mxu3 %v2247_v46 }
 0xec8   :  { %2576 = vmatpush.msra.mxu1 %v14047_v54  ;;  %2632 = vmatpush.msra.mxu3 %v14006_v40 }
 0xec9   :  { %v2249_v1 = vand.u32 4294901760, %v2248_v45  ;;  %2605 = vmatpush.msra.mxu2 %v14039_v50 }
 0xeca   :  { %2578 = vmatpush.msra.mxu1 %v14054_v56  ;;  %2634 = vmatpush.msra.mxu3 %v14028_v19 }
 0xecb   :  { %2250 = vmatmul.f32.vlgmr.msra.gmra.mxu0 %v2249_v1  ;;  %2406 = vmatmul.f32.vlgmr.msrb.gmra.mxu1 %v2245_v42 }
 0xecc   :  { %2543 = vmatpush.msra.mxu0 %v14010_v17  ;;  %2636 = vmatpush.msra.mxu3 %v14047_v54 }
 0xecd   :  { %2609 = vmatpush.msra.mxu2 %v14060_v57  ;;  %2739 = vmatpush.msrb.mxu1 %v14026_v47 }
 0xece   :  { %2546 = vmatpush.msra.mxu0 %v14032_v49  ;;  %2638 = vmatpush.msra.mxu3 %v14054_v56 }
 0xecf   :  { %2613 = vmatpush.msra.mxu2 %v14072_v60  ;;  %2745 = vmatpush.msrb.mxu1 %v14045_v53 }
 0xed0   :  { %2549 = vmatpush.msra.mxu0 %v14051_v35 }
 0xed1   :  { %2751 = vmatpush.msrb.mxu1 %v14076_v61 }
 0xed2   :  { %2552 = vmatpush.msra.mxu0 %v14063_v58 }
 0xed3   :  { %2381 = vmatmul.f32.vlgmr.msrb.gmra.mxu0 %v2245_v42  ;;  %2757 = vmatpush.msrb.mxu1 %v14084_v63 }
 0xed4   :  { %2706 = vmatpush.msrb.mxu0 %v14006_v40 }
 0xed6   :  { %2708 = vmatpush.msrb.mxu0 %v14028_v19 }
 0xed8   :  { %2710 = vmatpush.msrb.mxu0 %v14047_v54 }
 0xeda   :  { %2712 = vmatpush.msrb.mxu0 %v14054_v56 }
 0xf40   :  { %v2292_v2 = vpop.f32.mrf.mxu1 }
 0xf48   :  { %v2251_v10 = vpop.f32.mrf.mxu0  ;;  %v2322_v13 = vpop.f32.mrf.mxu2 }
 0xf49   :  { %v2293_v25 = vadd.f32 %v2292_v2, %v2251_v10  ;;  %v2407_v32 = vpop.f32.mrf.mxu1 }
 0xf4a   :  { %v2349_v41 = vpop.f32.mrf.mxu3 }
 0xf4b   :  { %v2323_v27 = vadd.f32 %v2322_v13, %v2293_v25 }
 0xf4d   :  { %v2350_v28 = vadd.f32 %v2349_v41, %v2323_v27 }
 0xf50   :  { %v2382_v30 = vpop.f32.mrf.mxu0 }
 0xf51   :  { %v2383_v31 = vadd.f32 %v2382_v30, %v2350_v28 }
 0xf53   :  { %v2408_v33 = vadd.f32 %v2407_v32, %v2383_v31 }
 0xf55   :  { %v2410_v51 = vadd.f32 %v2408_v33, %v2222_v34 }
 0xf57   :  { %v2411_v59 = vadd.f32 %v14412_v52, %v2410_v51 }
 0xf59   :  { %13288 = vtanh.f32 %v2411_v59  ;;  %v13171_v38 = vmul.f32 -1.442695, %v2411_v59 }
 0xf5b   :  { %13290 = vpow2.f32 %v13171_v38 }
 0xf5f   :  { %v13289_v62 = vpop.eup %13288 }
 0xf60   :  { %2434 = vrot.lane.b32.xlu0 %v13289_v62, %s13729_s14 }
 0xf61   :  { %v13291_v42 = vpop.eup %13290 }
 0xf62   :  { %v2415_v44 = vadd.f32 1.0, %v13291_v42 }
 0xf64   :  { %13292 = vrcp.f32 %v2415_v44  ;;  %v2427_v25 = vand.u32 2147483648, %v2415_v44  ;;  %vm2421_vm13 = vweird.f32 %v2415_v44  ;;  %v2425_v13 = vand.u32 2147483647, %v2415_v44 }
 0xf66   :  { %v2428_v41 = vor.u32 1.1754944e-38, %v2427_v25  ;;  %vm2426_vm15 = vcmp.eq.f32.partialorder %v2425_v13, 8.507059e+37 }
 0xf6a   :  { %v13293_v46 = vpop.eup %13292 }
 0xf6b   :  { %v2417_v45 = vmul.f32 %v13293_v46, %v2415_v44  ;;  %vm2422_vm12 = vweird.f32 %v13293_v46 }
 0xf6c   :  { %vm2423_vm14 = vmor %vm2421_vm13, %vm2422_vm12 }
 0xf6d   :  { %v2418_v1 = vsub.f32 1.0, %v2417_v45 }
 0xf6f   :  { %v2419_v2 = vmul.f32 %v13293_v46, %v2418_v1 }
 0xf71   :  { %v2420_v10 = vadd.f32 %v13293_v46, %v2419_v2 }
 0xf73   :  { %v2424_v27 = vsel %vm2423_vm14, %v13293_v46, %v2420_v10  ;;  %vm4007_vm14 = vcmask 1041408  }
 0xf74   :  { %v2429_v30 = vsel %vm2426_vm15, %v2428_v41, %v2424_v27  ;;  %vm3793_vm15 = vcmask 73728  }
 0xf75   :  { %v2432_v32 = vmul.f32 %v2429_v30, %v14378_v37 }
 0xfd2   :  { %v2435_v28 = vpop.permute.xlu0 %2434 }
 0xfd3   :  { %v2437_v31 = vmul.f32 %v2435_v28, %v2429_v30 }
 0xfd5   :  { %2439 = vrot.lane.b32.xlu1 %v2437_v31, %s13730_s15 }
0x1047   :  { %v2440_v33 = vpop.permute.xlu1 %2439 }
0x1048   :  { %v14418_v34 = vadd.f32 %v2440_v33, %v2432_v32 }
0x104a   :  { %13294 = vtanh.f32 %v14418_v34 }
0x1050   :  { %v13295_v51 = vpop.eup %13294 }
0x1051   :  { %2445 = vrot.lane.b32.xlu2 %v13295_v51, %s13729_s14 }
0x10ab   :  { %v2446_v59 = vpop.permute.xlu2 %2445 }
0x10ac   :  { %v2448_v62 = vmul.f32 %v2446_v59, %v2429_v30  ;;  %v2456_v30 = vld [vmem:[%s2455_s23] sm:$0x1] }
0x10ae   :  { %2450 = vrot.lane.b32.xlu0 %v2448_v62, %s13730_s15 }
0x1120   :  { %v2451_v38 = vpop.permute.xlu0 %2450 }
0x1121   :  { %2453 = vst.msk [vmem:[#allocation2 + $0x6] sm:$0x1] %vm1048_vm5, %v2451_v38  ;;  %v2457_v42 = vsel %vm216_vm0, %v2451_v38, 0 }
0x1122   :  { %v2479_v44 = vand.u32 4294901760, %v2457_v42 }
0x1124   :  { %v2480_v46 = vsub.f32 %v2457_v42, %v2479_v44  ;;  %2525 = vmatmul.f32.vlgmr.msrb.gmra.mxu3 %v2479_v44 }
0x1125   :  { %2806 = vmatpush.msrb.mxu3 %v14006_v40 }
0x1126   :  { %v2481_v37 = vand.u32 4294901760, %v2480_v46  ;;  %2555 = vmatmul.f32.vlgmr.msra.gmra.mxu0 %v2480_v46 }
0x1127   :  { %2808 = vmatpush.msrb.mxu3 %v14028_v19  ;;  %2835 = vmatpush.msra.mxu0 %v14017_v43 }
0x1128   :  { %v2482_v45 = vsub.f32 %v2480_v46, %v2481_v37  ;;  %2582 = vmatmul.f32.vlgmr.msra.gmra.mxu1 %v2481_v37 }
0x1129   :  { %2810 = vmatpush.msrb.mxu3 %v14047_v54  ;;  %2866 = vmatpush.msra.mxu1 %v14006_v40 }
0x112a   :  { %v2483_v1 = vand.u32 4294901760, %v2482_v45  ;;  %2839 = vmatpush.msra.mxu0 %v14039_v50 }
0x112b   :  { %2812 = vmatpush.msrb.mxu3 %v14054_v56  ;;  %2868 = vmatpush.msra.mxu1 %v14028_v19 }
0x112c   :  { %2484 = vmatmul.f32.vlgmr.msrb.gmra.mxu2 %v2483_v1  ;;  %2640 = vmatmul.f32.vlgmr.msra.gmra.mxu3 %v2479_v44 }
0x112d   :  { %2777 = vmatpush.msrb.mxu2 %v14010_v17  ;;  %2870 = vmatpush.msra.mxu1 %v14047_v54 }
0x112e   :  { %2843 = vmatpush.msra.mxu0 %v14060_v57  ;;  %2973 = vmatpush.msra.mxu3 %v14026_v47 }
0x112f   :  { %2780 = vmatpush.msrb.mxu2 %v14032_v49  ;;  %2872 = vmatpush.msra.mxu1 %v14054_v56 }
0x1130   :  { %2847 = vmatpush.msra.mxu0 %v14072_v60  ;;  %2979 = vmatpush.msra.mxu3 %v14045_v53 }
0x1131   :  { %2783 = vmatpush.msrb.mxu2 %v14051_v35 }
0x1132   :  { %2985 = vmatpush.msra.mxu3 %v14076_v61 }
0x1133   :  { %2786 = vmatpush.msrb.mxu2 %v14063_v58 }
0x1134   :  { %2615 = vmatmul.f32.vlgmr.msra.gmra.mxu2 %v2479_v44  ;;  %2991 = vmatpush.msra.mxu3 %v14084_v63 }
0x1135   :  { %2940 = vmatpush.msra.mxu2 %v14006_v40 }
0x1137   :  { %2942 = vmatpush.msra.mxu2 %v14028_v19 }
0x1139   :  { %2944 = vmatpush.msra.mxu2 %v14047_v54 }
0x113b   :  { %2946 = vmatpush.msra.mxu2 %v14054_v56 }
0x11a3   :  { %v2556_v10 = vpop.f32.mrf.mxu0 }
0x11a5   :  { %v2583_v61 = vpop.f32.mrf.mxu1 }
0x11a7   :  { %v2526_v47 = vpop.f32.mrf.mxu3 }
0x11af   :  { %v2485_v2 = vpop.f32.mrf.mxu2  ;;  %v2641_v28 = vpop.f32.mrf.mxu3 }
0x11b0   :  { %v2527_v53 = vadd.f32 %v2526_v47, %v2485_v2 }
0x11b2   :  { %v2557_v25 = vadd.f32 %v2556_v10, %v2527_v53 }
0x11b4   :  { %v2584_v13 = vadd.f32 %v2583_v61, %v2557_v25 }
0x11b7   :  { %v2616_v27 = vpop.f32.mrf.mxu2 }
0x11b8   :  { %v2617_v41 = vadd.f32 %v2616_v27, %v2584_v13 }
0x11ba   :  { %v2642_v63 = vadd.f32 %v2641_v28, %v2617_v41 }
0x11bc   :  { %v2644_v31 = vadd.f32 %v2642_v63, %v2456_v30 }
0x11be   :  { %v2645_v32 = vadd.f32 %v14412_v52, %v2644_v31 }
0x11c0   :  { %13296 = vtanh.f32 %v2645_v32  ;;  %v13173_v51 = vmul.f32 -1.442695, %v2645_v32 }
0x11c2   :  { %13298 = vpow2.f32 %v13173_v51 }
0x11c6   :  { %v13297_v33 = vpop.eup %13296 }
0x11c7   :  { %2668 = vrot.lane.b32.xlu1 %v13297_v33, %s13729_s14 }
0x11c8   :  { %v13299_v59 = vpop.eup %13298 }
0x11c9   :  { %v2649_v62 = vadd.f32 1.0, %v13299_v59 }
0x11cb   :  { %13300 = vrcp.f32 %v2649_v62  ;;  %v2661_v45 = vand.u32 2147483648, %v2649_v62  ;;  %vm2655_vm2 = vweird.f32 %v2649_v62  ;;  %v2659_v1 = vand.u32 2147483647, %v2649_v62 }
0x11cd   :  { %v2662_v2 = vor.u32 1.1754944e-38, %v2661_v45  ;;  %vm2660_vm4 = vcmp.eq.f32.partialorder %v2659_v1, 8.507059e+37 }
0x11d1   :  { %v13301_v38 = vpop.eup %13300 }
0x11d2   :  { %v2651_v42 = vmul.f32 %v13301_v38, %v2649_v62  ;;  %vm2656_vm1 = vweird.f32 %v13301_v38 }
0x11d3   :  { %vm2657_vm3 = vmor %vm2655_vm2, %vm2656_vm1 }
0x11d4   :  { %v2652_v44 = vsub.f32 1.0, %v2651_v42 }
0x11d6   :  { %v2653_v46 = vmul.f32 %v13301_v38, %v2652_v44 }
0x11d8   :  { %v2654_v37 = vadd.f32 %v13301_v38, %v2653_v46 }
0x11da   :  { %v2658_v47 = vsel %vm2657_vm3, %v13301_v38, %v2654_v37 }
0x11db   :  { %v2663_v10 = vsel %vm2660_vm4, %v2662_v2, %v2658_v47 }
0x11dc   :  { %v2666_v61 = vmul.f32 %v2663_v10, %v14418_v34 }
0x1239   :  { %v2669_v53 = vpop.permute.xlu1 %2668 }
0x123a   :  { %v2671_v25 = vmul.f32 %v2669_v53, %v2663_v10 }
0x123c   :  { %2673 = vrot.lane.b32.xlu2 %v2671_v25, %s13730_s15 }
0x1296   :  { %v2674_v13 = vpop.permute.xlu2 %2673 }
0x1297   :  { %v14453_v27 = vadd.f32 %v2674_v13, %v2666_v61 }
0x1299   :  { %13302 = vtanh.f32 %v14453_v27 }
0x129f   :  { %v13303_v41 = vpop.eup %13302 }
0x12a0   :  { %2679 = vrot.lane.b32.xlu0 %v13303_v41, %s13729_s14 }
0x1312   :  { %v2680_v28 = vpop.permute.xlu0 %2679 }
0x1313   :  { %v2682_v63 = vmul.f32 %v2680_v28, %v2663_v10 }
0x1315   :  { %2684 = vrot.lane.b32.xlu1 %v2682_v63, %s13730_s15 }
0x1387   :  { %v2685_v30 = vpop.permute.xlu1 %2684 }
0x1388   :  { %2687 = vst.msk [vmem:[#allocation2 + $0x7] sm:$0x1] %vm1048_vm5, %v2685_v30  ;;  %v2691_v31 = vsel %vm216_vm0, %v2685_v30, 0 }
0x1389   :  { %v2713_v32 = vand.u32 4294901760, %v2691_v31 }
0x138b   :  { %v2714_v33 = vsub.f32 %v2691_v31, %v2713_v32  ;;  %2759 = vmatmul.f32.vlgmr.msrb.gmra.mxu1 %v2713_v32 }
0x138c   :  { %3040 = vmatpush.msrb.mxu1 %v14006_v40 }
0x138d   :  { %v2715_v34 = vand.u32 4294901760, %v2714_v33  ;;  %2789 = vmatmul.f32.vlgmr.msrb.gmra.mxu2 %v2714_v33 }
0x138e   :  { %3042 = vmatpush.msrb.mxu1 %v14028_v19  ;;  %3069 = vmatpush.msrb.mxu2 %v14017_v43 }
0x138f   :  { %v2716_v51 = vsub.f32 %v2714_v33, %v2715_v34  ;;  %2816 = vmatmul.f32.vlgmr.msrb.gmra.mxu3 %v2715_v34  ;;  %v3161_v34 = vld [vmem:[#allocation17 + $0x18] sm:$0xff] }
0x1390   :  { %3044 = vmatpush.msrb.mxu1 %v14047_v54  ;;  %3100 = vmatpush.msrb.mxu3 %v14006_v40 }
0x1391   :  { %v2717_v59 = vand.u32 4294901760, %v2716_v51  ;;  %3073 = vmatpush.msrb.mxu2 %v14039_v50  ;;  %v3178_v51 = vsel %vm216_vm0, %v3161_v34, 0 }
0x1392   :  { %3046 = vmatpush.msrb.mxu1 %v14054_v56  ;;  %3102 = vmatpush.msrb.mxu3 %v14028_v19 }
0x1393   :  { %2718 = vmatmul.f32.vlgmr.msrb.gmra.mxu0 %v2717_v59  ;;  %2874 = vmatmul.f32.vlgmr.msra.gmra.mxu1 %v2713_v32  ;;  %v3192_v59 = vand.u32 4294901760, %v3178_v51 }
0x1394   :  { %3011 = vmatpush.msrb.mxu0 %v14010_v17  ;;  %3104 = vmatpush.msrb.mxu3 %v14047_v54 }
0x1395   :  { %3077 = vmatpush.msrb.mxu2 %v14060_v57 }
0x1396   :  { %3014 = vmatpush.msrb.mxu0 %v14032_v49  ;;  %3106 = vmatpush.msrb.mxu3 %v14054_v56  ;;  %v2690_v56 = vld [vmem:[%s2689_s9] sm:$0x1] }
0x1397   :  { %3081 = vmatpush.msrb.mxu2 %v14072_v60 }
0x1398   :  { %3017 = vmatpush.msrb.mxu0 %v14051_v35 }
0x139a   :  { %3020 = vmatpush.msrb.mxu0 %v14063_v58 }
0x139b   :  { %2849 = vmatmul.f32.vlgmr.msra.gmra.mxu0 %v2713_v32 }
0x139c   :  { %3193 = vmatpush.xpose.msra.mxu0 %v3192_v59 }
0x1408   :  { %v2760_v40 = vpop.f32.mrf.mxu1 }
0x1410   :  { %v2719_v43 = vpop.f32.mrf.mxu0  ;;  %v2790_v17 = vpop.f32.mrf.mxu2 }
0x1411   :  { %v2761_v19 = vadd.f32 %v2760_v40, %v2719_v43  ;;  %v2875_v49 = vpop.f32.mrf.mxu1 }
0x1412   :  { %v2817_v54 = vpop.f32.mrf.mxu3 }
0x1413   :  { %v2791_v50 = vadd.f32 %v2790_v17, %v2761_v19  ;;  %v3230_v19 = vsub.f32 %v3178_v51, %v3192_v59  ;;  %v3160_v17 = vld [vmem:[#allocation17 + $0x10] sm:$0xff] }
0x1415   :  { %v2818_v62 = vadd.f32 %v2817_v54, %v2791_v50  ;;  %v3231_v50 = vand.u32 4294901760, %v3230_v19 }
0x1418   :  { %v2850_v57 = vpop.f32.mrf.mxu0 }
0x1419   :  { %v2851_v38 = vadd.f32 %v2850_v57, %v2818_v62  ;;  %v3232_v62 = vsub.f32 %v3230_v19, %v3231_v50 }
0x141b   :  { %v2876_v42 = vadd.f32 %v2875_v49, %v2851_v38  ;;  %v3159_v38 = vld [vmem:[#allocation17 + $0x8] sm:$0xff] }
0x141c   :  { %v3172_v49 = vsel %vm216_vm0, %v3159_v38, 0 }
0x141d   :  { %v2878_v60 = vadd.f32 %v2876_v42, %v2690_v56  ;;  %v3233_v42 = vand.u32 4294901760, %v3232_v62 }
0x141f   :  { %v2879_v35 = vadd.f32 %v14412_v52, %v2878_v60  ;;  %v3196_v60 = vand.u32 4294901760, %v3172_v49  ;;  %3234 = vmatpush.xpose.msra.mxu1 %v3233_v42 }
0x1421   :  { %13304 = vtanh.f32 %v2879_v35  ;;  %v13175_v44 = vmul.f32 -1.442695, %v2879_v35 }
0x1423   :  { %13306 = vpow2.f32 %v13175_v44  ;;  %v3158_v44 = vld [vmem:[#allocation17] sm:$0xff] }
0x1427   :  { %v13305_v58 = vpop.eup %13304 }
0x1428   :  { %2902 = vrot.lane.b32.xlu2 %v13305_v58, %s13729_s14  ;;  %v3242_v58 = vsub.f32 %v3172_v49, %v3196_v60 }
0x1429   :  { %v13307_v46 = vpop.eup %13306 }
0x142a   :  { %v2883_v37 = vadd.f32 1.0, %v13307_v46  ;;  %v3169_v46 = vsel %vm216_vm0, %v3158_v44, 0  ;;  %v2924_v44 = vld [vmem:[%s2923_s26] sm:$0x1] }
0x142c   :  { %13308 = vrcp.f32 %v2883_v37  ;;  %v2895_v10 = vand.u32 2147483648, %v2883_v37  ;;  %vm2889_vm7 = vweird.f32 %v2883_v37  ;;  %v2893_v25 = vand.u32 2147483647, %v2883_v37 }
0x142e   :  { %v2896_v13 = vor.u32 1.1754944e-38, %v2895_v10  ;;  %vm2894_vm9 = vcmp.eq.f32.partialorder %v2893_v25, 8.507059e+37 }
0x1432   :  { %v13309_v45 = vpop.eup %13308 }
0x1433   :  { %v2885_v1 = vmul.f32 %v13309_v45, %v2883_v37  ;;  %vm2890_vm6 = vweird.f32 %v13309_v45 }
0x1434   :  { %vm2891_vm8 = vmor %vm2889_vm7, %vm2890_vm6  ;;  %vm4003_vm6 = vcmask 80896  }
0x1435   :  { %v2886_v47 = vsub.f32 1.0, %v2885_v1  ;;  %v3198_v1 = vand.u32 4294901760, %v3169_v46 }
0x1437   :  { %v2887_v2 = vmul.f32 %v13309_v45, %v2886_v47 }
0x1439   :  { %v2888_v53 = vadd.f32 %v13309_v45, %v2887_v2  ;;  %v3248_v2 = vsub.f32 %v3169_v46, %v3198_v1 }
0x143b   :  { %v2892_v61 = vsel %vm2891_vm8, %v13309_v45, %v2888_v53  ;;  %v3243_v45 = vand.u32 4294901760, %v3242_v58  ;;  %v3249_v10 = vand.u32 4294901760, %v3248_v2 }
0x143c   :  { %v2897_v28 = vsel %vm2894_vm9, %v2896_v13, %v2892_v61  ;;  %v3156_v13 = vld [vmem:[#allocation2] sm:$0xff] }
0x143d   :  { %v2900_v30 = vmul.f32 %v2897_v28, %v14453_v27  ;;  %v3175_v27 = vsel %vm216_vm0, %v3160_v17, 0  ;;  %v3244_v47 = vsub.f32 %v3242_v58, %v3243_v45  ;;  %v3250_v25 = vsub.f32 %v3248_v2, %v3249_v10 }
0x143e   :  { %v3194_v54 = vand.u32 4294901760, %v3175_v27 }
0x143f   :  { %v3245_v53 = vand.u32 4294901760, %v3244_v47  ;;  %v3251_v61 = vand.u32 4294901760, %v3250_v25 }
0x1440   :  { %3195 = vmatpush.xpose.msra.mxu0 %v3194_v54  ;;  %v3236_v57 = vsub.f32 %v3175_v27, %v3194_v54 }
0x1442   :  { %v3237_v56 = vand.u32 4294901760, %v3236_v57 }
0x1444   :  { %v3238_v35 = vsub.f32 %v3236_v57, %v3237_v56  ;;  %3197 = vmatpush.xpose.msra.mxu0 %v3196_v60 }
0x1446   :  { %v3239_v37 = vand.u32 4294901760, %v3238_v35 }
0x1448   :  { %3240 = vmatpush.xpose.msra.mxu1 %v3239_v37  ;;  %3199 = vmatpush.xpose.msra.mxu0 %v3198_v1 }
0x144c   :  { %3246 = vmatpush.xpose.msra.mxu1 %v3245_v53 }
0x1450   :  { %3252 = vmatpush.xpose.msra.mxu1 %v3251_v61 }
0x1482   :  { %v2903_v41 = vpop.permute.xlu2 %2902 }
0x1483   :  { %v2905_v63 = vmul.f32 %v2903_v41, %v2897_v28  ;;  %v3163_v41 = vsel %vm216_vm0, %v3156_v13, 0 }
0x1485   :  { %2907 = vrot.lane.b32.xlu0 %v2905_v63, %s13730_s15 }
0x14f7   :  { %v2908_v31 = vpop.permute.xlu0 %2907 }
0x14f8   :  { %v14480_v32 = vadd.f32 %v2908_v31, %v2900_v30 }
0x14fa   :  { %13310 = vtanh.f32 %v14480_v32 }
0x1500   :  { %v13311_v33 = vpop.eup %13310 }
0x1501   :  { %2913 = vrot.lane.b32.xlu1 %v13311_v33, %s13729_s14 }
0x1573   :  { %v2914_v40 = vpop.permute.xlu1 %2913 }
0x1574   :  { %v2916_v43 = vmul.f32 %v2914_v40, %v2897_v28  ;;  %v14490_v28 = vand.u32 4294901760, %v3163_v41 }
0x1576   :  { %2918 = vrot.lane.b32.xlu2 %v2916_v43, %s13730_s15  ;;  %v14493_v30 = vsub.f32 %v3163_v41, %v14490_v28 }
0x1578   :  { %v14498_v51 = vand.u32 4294901760, %v14493_v30 }
0x157a   :  { %v3203_v17 = vsub.f32 %v14493_v30, %v14498_v51 }
0x157c   :  { %v14502_v62 = vand.u32 4294901760, %v3203_v17 }
0x15d0   :  { %v2919_v63 = vpop.permute.xlu2 %2918 }
0x15d1   :  { %2921 = vst.msk [vmem:[#allocation2 + $0x8] sm:$0x1] %vm1048_vm5, %v2919_v63  ;;  %v2925_v31 = vsel %vm216_vm0, %v2919_v63, 0 }
0x15d2   :  { %v2947_v33 = vand.u32 4294901760, %v2925_v31 }
0x15d4   :  { %v2948_v34 = vsub.f32 %v2925_v31, %v2947_v33  ;;  %2993 = vmatmul.f32.vlgmr.msra.gmra.mxu3 %v2947_v33 }
0x15d5   :  { %3310 = vmatpush.xpose.msra.mxu3 %v3192_v59 }
0x15d6   :  { %v2949_v40 = vand.u32 4294901760, %v2948_v34  ;;  %3023 = vmatmul.f32.vlgmr.msrb.gmra.mxu0 %v2948_v34 }
0x15d7   :  { %3345 = vmatpush.xpose.msrb.mxu0 %v3231_v50 }
0x15d8   :  { %v2950_v43 = vsub.f32 %v2948_v34, %v2949_v40  ;;  %3050 = vmatmul.f32.vlgmr.msrb.gmra.mxu1 %v2949_v40 }
0x15d9   :  { %3312 = vmatpush.xpose.msra.mxu3 %v3194_v54  ;;  %3380 = vmatpush.xpose.msrb.mxu1 %v3192_v59 }
0x15da   :  { %v2951_v27 = vand.u32 4294901760, %v2950_v43 }
0x15db   :  { %3349 = vmatpush.xpose.msrb.mxu0 %v3237_v56 }
0x15dc   :  { %2952 = vmatmul.f32.vlgmr.msra.gmra.mxu2 %v2951_v27  ;;  %3108 = vmatmul.f32.vlgmr.msrb.gmra.mxu3 %v2947_v33 }
0x15dd   :  { %3276 = vmatpush.xpose.msra.mxu2 %v3230_v19  ;;  %3314 = vmatpush.xpose.msra.mxu3 %v3196_v60 }
0x15de   :  { %3205 = vmatmul.f32.vlgmr.msra.gmra.mxu0 %v14502_v62  ;;  %3382 = vmatpush.xpose.msrb.mxu1 %v3194_v54 }
0x15df   :  { %3353 = vmatpush.xpose.msrb.mxu0 %v3243_v45 }
0x15e0   :  { %3254 = vmatmul.f32.vlgmr.msra.gmra.mxu1 %v14490_v28 }
0x15e1   :  { %3279 = vmatpush.xpose.msra.mxu2 %v3236_v57  ;;  %3316 = vmatpush.xpose.msra.mxu3 %v3198_v1 }
0x15e2   :  { %3384 = vmatpush.xpose.msrb.mxu1 %v3196_v60 }
0x15e3   :  { %3357 = vmatpush.xpose.msrb.mxu0 %v3249_v10 }
0x15e4   :  { %3083 = vmatmul.f32.vlgmr.msrb.gmra.mxu2 %v2947_v33  ;;  %3320 = vmatmul.f32.vlgmr.msra.gmra.mxu3 %v14498_v51 }
0x15e5   :  { %3282 = vmatpush.xpose.msra.mxu2 %v3242_v58 }
0x15e6   :  { %3386 = vmatpush.xpose.msrb.mxu1 %v3198_v1 }
0x15e9   :  { %3285 = vmatpush.xpose.msra.mxu2 %v3248_v2 }
0x15ec   :  { %3288 = vmatmul.f32.vlgmr.msra.gmra.mxu2 %v14493_v30 }
0x1653   :  { %v3024_v54 = vpop.f32.mrf.mxu0 }
0x1655   :  { %v3051_v49 = vpop.f32.mrf.mxu1 }
0x1657   :  { %v2994_v59 = vpop.f32.mrf.mxu3 }
0x165f   :  { %v2953_v19 = vpop.f32.mrf.mxu2  ;;  %v3109_v60 = vpop.f32.mrf.mxu3 }
0x1660   :  { %v2995_v50 = vadd.f32 %v2994_v59, %v2953_v19 }
0x1662   :  { %v3025_v38 = vadd.f32 %v3024_v54, %v2995_v50  ;;  %v3399_v50 = vld [vmem:[#allocation13 + $0x18] sm:$0xff] }
0x1663   :  { %v3412_v54 = vand.u32 4294901760, %v3399_v50 }
0x1664   :  { %v3052_v42 = vadd.f32 %v3051_v49, %v3025_v38  ;;  %v3398_v38 = vld [vmem:[#allocation13 + $0x10] sm:$0xff] }
0x1665   :  { %3413 = vmatpush.msrb.mxu2 %v3412_v54  ;;  %v3450_v49 = vsub.f32 %v3399_v50, %v3412_v54  ;;  %3530 = vmatpush.msra.mxu1 %v3412_v54 }
0x1667   :  { %v3084_v57 = vpop.f32.mrf.mxu2  ;;  %3496 = vmatpush.msra.mxu0 %v3450_v49  ;;  %v3321_v50 = vpop.f32.mrf.mxu3 }
0x1668   :  { %v3085_v56 = vadd.f32 %v3084_v57, %v3052_v42  ;;  %v3414_v42 = vand.u32 4294901760, %v3398_v38  ;;  %v3451_v57 = vand.u32 4294901760, %v3450_v49 }
0x166a   :  { %v3110_v35 = vadd.f32 %v3109_v60, %v3085_v56  ;;  %3415 = vmatpush.msrb.mxu2 %v3414_v42  ;;  %v3456_v60 = vsub.f32 %v3398_v38, %v3414_v42  ;;  %3532 = vmatpush.msra.mxu1 %v3414_v42 }
0x166c   :  { %v3112_v46 = vadd.f32 %v3110_v35, %v2924_v44  ;;  %v3396_v35 = vld [vmem:[#allocation13] sm:$0xff]  ;;  %v3452_v44 = vsub.f32 %v3450_v49, %v3451_v57  ;;  %3499 = vmatpush.msra.mxu0 %v3456_v60 }
0x166e   :  { %v3113_v58 = vadd.f32 %v14412_v52, %v3112_v46  ;;  %v3457_v46 = vand.u32 4294901760, %v3456_v60 }
0x1670   :  { %13312 = vtanh.f32 %v3113_v58  ;;  %v13177_v45 = vmul.f32 -1.442695, %v3113_v58  ;;  %v3418_v58 = vand.u32 4294901760, %v3396_v35 }
0x1672   :  { %13314 = vpow2.f32 %v13177_v45  ;;  %v3453_v45 = vand.u32 4294901760, %v3452_v44 }
0x1674   :  { %3454 = vmatpush.msrb.mxu3 %v3453_v45  ;;  %v3618_v45 = vld [vmem:[#allocation14 + $0x10] sm:$0xff] }
0x1676   :  { %v13313_v37 = vpop.eup %13312 }
0x1677   :  { %3136 = vrot.lane.b32.xlu0 %v13313_v37, %s13729_s14 }
0x1678   :  { %v13315_v1 = vpop.eup %13314 }
0x1679   :  { %v3117_v47 = vadd.f32 1.0, %v13315_v1  ;;  %v3458_v1 = vsub.f32 %v3456_v60, %v3457_v46 }
0x167b   :  { %13316 = vrcp.f32 %v3117_v47  ;;  %v3129_v13 = vand.u32 2147483648, %v3117_v47  ;;  %vm3123_vm11 = vweird.f32 %v3117_v47  ;;  %v3127_v41 = vand.u32 2147483647, %v3117_v47 }
0x167d   :  { %v3130_v63 = vor.u32 1.1754944e-38, %v3129_v13  ;;  %vm3128_vm13 = vcmp.eq.f32.partialorder %v3127_v41, 8.507059e+37 }
0x1681   :  { %v13317_v2 = vpop.eup %13316 }
0x1682   :  { %v3119_v53 = vmul.f32 %v13317_v2, %v3117_v47  ;;  %vm3124_vm10 = vweird.f32 %v13317_v2 }
0x1683   :  { %vm3125_vm12 = vmor %vm3123_vm11, %vm3124_vm10 }
0x1684   :  { %v3120_v10 = vsub.f32 1.0, %v3119_v53  ;;  %v3459_v53 = vand.u32 4294901760, %v3458_v1 }
0x1686   :  { %v3121_v25 = vmul.f32 %v13317_v2, %v3120_v10  ;;  %3460 = vmatpush.msrb.mxu3 %v3459_v53  ;;  %v3617_v53 = vld [vmem:[#allocation14 + $0x8] sm:$0xff] }
0x1688   :  { %v3122_v61 = vadd.f32 %v13317_v2, %v3121_v25 }
0x168a   :  { %v3126_v52 = vsel %vm3125_vm12, %v13317_v2, %v3122_v61  ;;  %v3468_v2 = vsub.f32 %v3396_v35, %v3418_v58 }
0x168b   :  { %v3131_v33 = vsel %vm3128_vm13, %v3130_v63, %v3126_v52 }
0x168c   :  { %v3134_v40 = vmul.f32 %v3131_v33, %v14480_v32  ;;  %v3397_v32 = vld [vmem:[#allocation13 + $0x8] sm:$0xff]  ;;  %v3469_v25 = vand.u32 4294901760, %v3468_v2 }
0x168d   :  { %v3416_v56 = vand.u32 4294901760, %v3397_v32 }
0x168e   :  { %v3470_v13 = vsub.f32 %v3468_v2, %v3469_v25 }
0x168f   :  { %3417 = vmatpush.msrb.mxu2 %v3416_v56  ;;  %v3462_v37 = vsub.f32 %v3397_v32, %v3416_v56  ;;  %3534 = vmatpush.msra.mxu1 %v3416_v56 }
0x1690   :  { %v3471_v41 = vand.u32 4294901760, %v3470_v13  ;;  %v3616_v13 = vld [vmem:[#allocation14] sm:$0xff] }
0x1691   :  { %3419 = vmatpush.msrb.mxu2 %v3418_v58  ;;  %v3463_v47 = vand.u32 4294901760, %v3462_v37  ;;  %3536 = vmatpush.msra.mxu1 %v3418_v58 }
0x1692   :  { %3502 = vmatpush.msra.mxu0 %v3462_v37 }
0x1693   :  { %3565 = vmatpush.msra.mxu2 %v3451_v57  ;;  %v3464_v10 = vsub.f32 %v3462_v37, %v3463_v47 }
0x1694   :  { %3505 = vmatpush.msra.mxu0 %v3468_v2 }
0x1695   :  { %3569 = vmatpush.msra.mxu2 %v3457_v46  ;;  %v3465_v61 = vand.u32 4294901760, %v3464_v10 }
0x1697   :  { %3573 = vmatpush.msra.mxu2 %v3463_v47  ;;  %3466 = vmatpush.msrb.mxu3 %v3465_v61 }
0x1699   :  { %3577 = vmatpush.msra.mxu2 %v3469_v25  ;;  %3472 = vmatpush.msrb.mxu3 %v3471_v41  ;;  %v14535_v25 = vand.u32 4294901760, %v3618_v45 }
0x169b   :  { %3600 = vmatpush.msra.mxu3 %v3412_v54  ;;  %16402 = vst [vmem:[#allocation31_spill] sm:$0xff] %v14535_v25 }
0x169d   :  { %3602 = vmatpush.msra.mxu3 %v3414_v42 }
0x169f   :  { %3604 = vmatpush.msra.mxu3 %v3416_v56  ;;  %v3619_v56 = vld [vmem:[#allocation14 + $0x18] sm:$0xff] }
0x16a1   :  { %3606 = vmatpush.msra.mxu3 %v3418_v58  ;;  %v14528_v58 = vand.u32 4294901760, %v3619_v56 }
0x16a3   :  { %16400 = vst [vmem:[#allocation29_spill] sm:$0xff] %v14528_v58  ;;  %v14533_v10 = vsub.f32 %v3619_v56, %v14528_v58 }
0x16a5   :  { %16401 = vst [vmem:[#allocation30_spill] sm:$0xff] %v14533_v10 }
0x16e9   :  { %v3137_v31 = vpop.permute.xlu0 %3136 }
0x16ea   :  { %v3139_v34 = vmul.f32 %v3137_v31, %v3131_v33 }
0x16ec   :  { %3141 = vrot.lane.b32.xlu1 %v3139_v34, %s13730_s15 }
0x175e   :  { %v3142_v43 = vpop.permute.xlu1 %3141 }
0x175f   :  { %v14512_v17 = vadd.f32 %v3142_v43, %v3134_v40 }
0x1761   :  { %13318 = vtanh.f32 %v14512_v17 }
0x1767   :  { %v13319_v27 = vpop.eup %13318 }
0x1768   :  { %3147 = vrot.lane.b32.xlu2 %v13319_v27, %s13729_s14 }
0x17c2   :  { %v3148_v59 = vpop.permute.xlu2 %3147 }
0x17c3   :  { %v3150_v19 = vmul.f32 %v3148_v59, %v3131_v33  ;;  %v3206_v59 = vpop.f32.mrf.mxu0 }
0x17c5   :  { %3152 = vrot.lane.b32.xlu0 %v3150_v19, %s13730_s15  ;;  %v3289_v19 = vpop.f32.mrf.mxu2 }
0x1837   :  { %v3153_v52 = vpop.permute.xlu0 %3152 }
0x1838   :  { %3155 = vst.msk [vmem:[#allocation2 + $0x9] sm:$0x1] %vm1048_vm5, %v3153_v52  ;;  %v3626_v44 = vsel %vm216_vm0, %v3153_v52, 0 }
0x1839   :  { %v14530_v2 = vand.u32 4294901760, %v3626_v44 }
0x183f   :  { %v3157_v63 = vld [vmem:[#allocation2 + $0x8] sm:$0x3] }
0x1840   :  { %v3166_v31 = vsel %vm216_vm0, %v3157_v63, 0  ;;  %v14538_v63 = vand.u32 4294901760, %v3617_v53 }
0x1841   :  { %v3208_v33 = vand.u32 4294901760, %v3166_v31 }
0x1842   :  { %16403 = vst [vmem:[#allocation32_spill] sm:$0xff] %v14538_v63 }
0x1843   :  { %3258 = vmatmul.f32.gmra.mxu1 %v3208_v33  ;;  %v3209_v34 = vsub.f32 %v3166_v31, %v3208_v33  ;;  %v14541_v31 = vsub.f32 %v3626_v44, %v14530_v2 }
0x1845   :  { %3293 = vmatmul.f32.gmra.mxu2 %v3209_v34  ;;  %v3210_v40 = vand.u32 4294901760, %v3209_v34 }
0x1847   :  { %3326 = vmatmul.f32.gmra.mxu3 %v3210_v40  ;;  %v3211_v43 = vsub.f32 %v3209_v34, %v3210_v40 }
0x1849   :  { %v3212_v27 = vand.u32 4294901760, %v3211_v43  ;;  %v14544_v43 = vand.u32 4294901760, %v14533_v10 }
0x184b   :  { %3213 = vmatmul.f32.gmra.mxu0 %v3212_v27  ;;  %3388 = vmatmul.f32.vlgmr.msrb.gmra.mxu1 %v14490_v28  ;;  %16404 = vst [vmem:[#allocation33_spill] sm:$0xff] %v14544_v43 }
0x184d   :  { %3425 = vmatmul.f32.vlgmr.msrb.gmra.mxu2 %v14502_v62  ;;  %v3255_v62 = vpop.f32.mrf.mxu1 }
0x184e   :  { %v3256_v42 = vadd.f32 %v3255_v62, %v3206_v59  ;;  %v14549_v62 = vand.u32 4294901760, %v3616_v13 }
0x184f   :  { %3474 = vmatmul.f32.vlgmr.msrb.gmra.mxu3 %v14490_v28 }
0x1850   :  { %16406 = vst [vmem:[#allocation35_spill] sm:$0xff] %v14549_v62 }
0x1853   :  { %3359 = vmatmul.f32.vlgmr.msrb.gmra.mxu0 %v14490_v28  ;;  %3392 = vmatmul.f32.gmra.mxu1 %v3208_v33 }
0x1855   :  { %3433 = vmatmul.f32.gmra.mxu2 %v3212_v27  ;;  %v14547_v27 = vsub.f32 %v3618_v45, %v14535_v25 }
0x1857   :  { %3478 = vmatmul.f32.gmra.mxu3 %v3208_v33  ;;  %16405 = vst [vmem:[#allocation34_spill] sm:$0xff] %v14547_v27 }
0x185b   :  { %3363 = vmatmul.f32.gmra.mxu0 %v3208_v33  ;;  %3540 = vmatmul.f32.vlgmr.msra.gmra.mxu1 %v14498_v51  ;;  %v3290_v51 = vadd.f32 %v3289_v19, %v3256_v42  ;;  %v3862_v42 = vsub.f32 %v14533_v10, %v14544_v43 }
0x185d   :  { %3579 = vmatmul.f32.vlgmr.msra.gmra.mxu2 %v14490_v28 }
0x185f   :  { %3608 = vmatmul.f32.vlgmr.msra.gmra.mxu3 %v14490_v28  ;;  %v3322_v28 = vadd.f32 %v3321_v50, %v3290_v51  ;;  %v14566_v51 = vsub.f32 %v3616_v13, %v14549_v62 }
0x1861   :  { %16409 = vst [vmem:[#allocation38_spill] sm:$0xff] %v14566_v51 }
0x1863   :  { %3508 = vmatmul.f32.vlgmr.msra.gmra.mxu0 %v14493_v30  ;;  %3546 = vmatmul.f32.gmra.mxu1 %v3210_v40 }
0x1865   :  { %3583 = vmatmul.f32.gmra.mxu2 %v3208_v33 }
0x1867   :  { %3612 = vmatmul.f32.gmra.mxu3 %v3208_v33 }
0x186b   :  { %3513 = vmatmul.f32.gmra.mxu0 %v3209_v34 }
0x18c0   :  { %v3259_v54 = vpop.f32.mrf.mxu1 }
0x18c8   :  { %v3214_v38 = vpop.f32.mrf.mxu0  ;;  %v3294_v49 = vpop.f32.mrf.mxu2 }
0x18c9   :  { %v3389_v57 = vpop.f32.mrf.mxu1  ;;  %v3260_v60 = vadd.f32 %v3259_v54, %v3214_v38  ;;  %v14554_v54 = vsub.f32 %v3617_v53, %v14538_v63  ;;  %v14557_v38 = vand.u32 4294901760, %v14541_v31 }
0x18ca   :  { %v3327_v32 = vpop.f32.mrf.mxu3 }
0x18cb   :  { %v3295_v1 = vadd.f32 %v3294_v49, %v3260_v60  ;;  %16407 = vst [vmem:[#allocation36_spill] sm:$0xff] %v14554_v54 }
0x18cd   :  { %v3328_v41 = vadd.f32 %v3327_v32, %v3295_v1  ;;  %v14563_v32 = vand.u32 4294901760, %v14547_v27 }
0x18cf   :  { %16408 = vst [vmem:[#allocation37_spill] sm:$0xff] %v14563_v32 }
0x18d0   :  { %v3360_v35 = vpop.f32.mrf.mxu0  ;;  %v3426_v30 = vpop.f32.mrf.mxu2 }
0x18d1   :  { %v3361_v46 = vadd.f32 %v3360_v35, %v3322_v28  ;;  %v3393_v61 = vpop.f32.mrf.mxu1  ;;  %v14574_v28 = vand.u32 4294901760, %v14554_v54  ;;  %v3655_v35 = vsub.f32 %v14541_v31, %v14557_v38 }
0x18d2   :  { %v3475_v37 = vpop.f32.mrf.mxu3 }
0x18d3   :  { %v3390_v47 = vadd.f32 %v3389_v57, %v3361_v46  ;;  %v3476_v60 = vadd.f32 %v3475_v37, %v3426_v30  ;;  %16410 = vst [vmem:[#allocation39_spill] sm:$0xff] %v14574_v28  ;;  %v3868_v30 = vsub.f32 %v14547_v27, %v14563_v32  ;;  %v14588_v37 = vand.u32 4294901760, %v14566_v51 }
0x18d5   :  { %v3629_v52 = vsel %vm216_vm0, %v3390_v47, 0  ;;  %v14583_v47 = vand.u32 4294901760, %v3862_v42  ;;  %16412 = vst [vmem:[#allocation41_spill] sm:$0xff] %v14588_v37  ;;  %v3880_v42 = vsub.f32 %v14566_v51, %v14588_v37 }
0x18d6   :  { %v14551_v59 = vand.u32 4294901760, %v3629_v52 }
0x18d7   :  { %16411 = vst [vmem:[#allocation40_spill] sm:$0xff] %v14583_v47 }
0x18d8   :  { %v3364_v33 = vpop.f32.mrf.mxu0  ;;  %v3434_v34 = vpop.f32.mrf.mxu2  ;;  %v14569_v57 = vsub.f32 %v3629_v52, %v14551_v59  ;;  %v3874_v52 = vsub.f32 %v14554_v54, %v14574_v28 }
0x18d9   :  { %v3365_v40 = vadd.f32 %v3364_v33, %v3328_v41  ;;  %v3541_v46 = vpop.f32.mrf.mxu1 }
0x18da   :  { %v3479_v19 = vpop.f32.mrf.mxu3  ;;  %v14595_v13 = vand.u32 4294901760, %v14569_v57 }
0x18db   :  { %v3394_v50 = vadd.f32 %v3393_v61, %v3365_v40 }
0x18dd   :  { %v3632_v49 = vsel %vm216_vm0, %v3394_v50, 0  ;;  %v3656_v50 = vand.u32 4294901760, %v3655_v35  ;;  %v14615_v35 = vand.u32 4294901760, %v3874_v52 }
0x18de   :  { %v14571_v56 = vand.u32 4294901760, %v3632_v49 }
0x18df   :  { %16415 = vst [vmem:[#allocation44_spill] sm:$0xff] %v14615_v35 }
0x18e0   :  { %v14579_v44 = vsub.f32 %v3632_v49, %v14571_v56  ;;  %v3509_v45 = vpop.f32.mrf.mxu0  ;;  %3649 = vmatpush.xpose.msrb.mxu0 %v14571_v56  ;;  %3733 = vmatpush.xpose.msrb.mxu3 %v14571_v56  ;;  %v3580_v53 = vpop.f32.mrf.mxu2  ;;  %v14605_v49 = vand.u32 4294901760, %v3868_v30 }
0x18e1   :  { %v3510_v1 = vadd.f32 %v3509_v45, %v3476_v60  ;;  %v3480_v45 = vadd.f32 %v3479_v19, %v3434_v34 }
0x18e2   :  { %3708 = vmatpush.xpose.msrb.mxu2 %v14579_v44  ;;  %v14592_v61 = vand.u32 4294901760, %v14579_v44  ;;  %v3609_v33 = vpop.f32.mrf.mxu3  ;;  %16413 = vst [vmem:[#allocation42_spill] sm:$0xff] %v14605_v49 }
0x18e3   :  { %v3542_v41 = vadd.f32 %v3541_v46, %v3510_v1  ;;  %v3684_v46 = vsub.f32 %v14569_v57, %v14595_v13 }
0x18e4   :  { %3651 = vmatpush.xpose.msrb.mxu0 %v14551_v59  ;;  %3735 = vmatpush.xpose.msrb.mxu3 %v14551_v59  ;;  %v3678_v40 = vsub.f32 %v14579_v44, %v14592_v61 }
0x18e5   :  { %v3581_v1 = vadd.f32 %v3580_v53, %v3542_v41  ;;  %v14625_v34 = vand.u32 4294901760, %v3684_v46 }
0x18e6   :  { %3711 = vmatpush.xpose.msrb.mxu2 %v14569_v57  ;;  %v14610_v60 = vand.u32 4294901760, %v3678_v40  ;;  %v14621_v40 = vand.u32 4294901760, %v3880_v42 }
0x18e7   :  { %3657 = vmatmul.f32.vlgmr.msrb.gmra.mxu0 %v3656_v50  ;;  %3739 = vmatmul.f32.vlgmr.msrb.gmra.mxu3 %v14557_v38  ;;  %16417 = vst [vmem:[#allocation46_spill] sm:$0xff] %v14625_v34  ;;  %v3610_v19 = vadd.f32 %v3609_v33, %v3581_v1 }
0x18e8   :  { %3760 = vmatpush.xpose.msra.mxu0 %v14592_v61  ;;  %3864 = vmatpush.msra.mxu3 %v14583_v47  ;;  %16414 = vst [vmem:[#allocation43_spill] sm:$0xff] %v14610_v60  ;;  %v3514_v0 = vpop.f32.mrf.mxu0  ;;  %v3547_v47 = vpop.f32.mrf.mxu1 }
0x18e9   :  { %3680 = vmatpush.xpose.msrb.mxu1 %v14610_v60  ;;  %v3515_v30 = vadd.f32 %v3514_v0, %v3480_v45  ;;  %3714 = vmatmul.f32.vlgmr.msrb.gmra.mxu2 %v14541_v31  ;;  %16416 = vst [vmem:[#allocation45_spill] sm:$0xff] %v14621_v40  ;;  %v3584_v0 = vpop.f32.mrf.mxu2 }
0x18ea   :  { %3831 = vmatpush.msra.mxu2 %v14528_v58  ;;  %3870 = vmatpush.msra.mxu3 %v14605_v49  ;;  %v3613_v52 = vpop.f32.mrf.mxu3 }
0x18eb   :  { %v3548_v53 = vadd.f32 %v3547_v47, %v3515_v30  ;;  %v14635_v47 = vand.u32 4294901760, %v3610_v19 }
0x18ec   :  { %3764 = vmatpush.xpose.msra.mxu0 %v14595_v13  ;;  %3833 = vmatpush.msra.mxu2 %v14535_v25 }
0x18ed   :  { %3876 = vmatpush.msra.mxu3 %v14615_v35  ;;  %3686 = vmatpush.xpose.msrb.mxu1 %v14625_v34  ;;  %v3585_v41 = vadd.f32 %v3584_v0, %v3548_v53  ;;  %16418 = vst [vmem:[#allocation47_spill] sm:$0xff] %v14635_v47  ;;  %v14647_v45 = vsub.f32 %v3610_v19, %v14635_v47 }
0x18ee   :  { %3835 = vmatpush.msra.mxu2 %v14538_v63 }
0x18ef   :  { %3882 = vmatpush.msra.mxu3 %v14621_v40  ;;  %v3614_v33 = vadd.f32 %v3613_v52, %v3585_v41  ;;  %3766 = vmatmul.f32.vlgmr.msra.gmra.mxu0 %v14530_v2  ;;  %16420 = vst [vmem:[#allocation49_spill] sm:$0xff] %v14647_v45  ;;  %v14666_v30 = vand.u32 4294901760, %v14647_v45 }
0x18f0   :  { %3902 = vmatpush.msrb.mxu0 %v14533_v10  ;;  %3837 = vmatpush.msra.mxu2 %v14549_v62 }
0x18f1   :  { %3785 = vmatpush.xpose.msra.mxu1 %v14571_v56  ;;  %3991 = vmatpush.msrb.mxu3 %v14528_v58  ;;  %v4009_v42 = vsel %vm4007_vm14, %v3614_v33, 0  ;;  %16422 = vst [vmem:[#allocation51_spill] sm:$0xff] %v14666_v30  ;;  %v4061_v0 = vsub.f32 %v14647_v45, %v14666_v30 }
0x18f2   :  { %3688 = vmatmul.f32.vlgmr.msrb.gmra.mxu1 %v14530_v2  ;;  %3884 = vmatmul.f32.vlgmr.msra.gmra.mxu3 %v14530_v2  ;;  %v14643_v46 = vand.u32 4294901760, %v4009_v42 }
0x18f3   :  { %3905 = vmatpush.msrb.mxu0 %v14547_v27  ;;  %3960 = vmatpush.msrb.mxu2 %v14544_v43 }
0x18f4   :  { %3993 = vmatpush.msrb.mxu3 %v14535_v25  ;;  %16419 = vst [vmem:[#allocation48_spill] sm:$0xff] %v14643_v46  ;;  %3843 = vmatmul.f32.vlgmr.msra.gmra.mxu2 %v3656_v50  ;;  %v14652_v1 = vsub.f32 %v4009_v42, %v14643_v46 }
0x18f5   :  { %3787 = vmatpush.xpose.msra.mxu1 %v14551_v59  ;;  %3908 = vmatpush.msrb.mxu0 %v14554_v54 }
0x18f6   :  { %3964 = vmatpush.msrb.mxu2 %v14563_v32  ;;  %3995 = vmatpush.msrb.mxu3 %v14538_v63  ;;  %v14661_v50 = vand.u32 4294901760, %v14652_v1 }
0x18f7   :  { %3911 = vmatpush.msrb.mxu0 %v14566_v51 }
0x18f8   :  { %3968 = vmatpush.msrb.mxu2 %v14574_v28  ;;  %3997 = vmatpush.msrb.mxu3 %v14549_v62  ;;  %16421 = vst [vmem:[#allocation50_spill] sm:$0xff] %v14661_v50  ;;  %v4055_v19 = vsub.f32 %v14652_v1, %v14661_v50 }
0x18f9   :  { %3931 = vmatpush.msrb.mxu1 %v14528_v58  ;;  %4026 = vmatpush.msra.mxu0 %v14643_v46 }
0x18fa   :  { %4110 = vmatpush.msra.mxu3 %v14643_v46  ;;  %3972 = vmatpush.msrb.mxu2 %v14588_v37  ;;  %v14678_v53 = vand.u32 4294901760, %v4055_v19 }
0x18fb   :  { %4028 = vmatpush.msra.mxu0 %v14635_v47  ;;  %3789 = vmatmul.f32.vlgmr.msra.gmra.mxu1 %v14530_v2 }
0x18fc   :  { %4085 = vmatpush.msra.mxu2 %v14652_v1  ;;  %4112 = vmatpush.msra.mxu3 %v14635_v47 }
0x18fd   :  { %3914 = vmatmul.f32.vlgmr.msrb.gmra.mxu0 %v14541_v31  ;;  %3933 = vmatpush.msrb.mxu1 %v14535_v25  ;;  %v14688_v31 = vand.u32 4294901760, %v4061_v0 }
0x18fe   :  { %3999 = vmatmul.f32.vlgmr.msrb.gmra.mxu3 %v14530_v2  ;;  %4088 = vmatpush.msra.mxu2 %v14647_v45 }
0x18ff   :  { %4137 = vmatpush.msrb.mxu0 %v14661_v50  ;;  %3935 = vmatpush.msrb.mxu1 %v14538_v63 }
0x1900   :  { %3974 = vmatmul.f32.vlgmr.msrb.gmra.mxu2 %v14530_v2 }
0x1901   :  { %4141 = vmatpush.msrb.mxu0 %v14666_v30  ;;  %3937 = vmatpush.msrb.mxu1 %v14549_v62 }
0x1903   :  { %4057 = vmatpush.msra.mxu1 %v14678_v53 }
0x1904   :  { %3941 = vmatmul.f32.vlgmr.msrb.gmra.mxu1 %v14557_v38 }
0x1905   :  { %4063 = vmatpush.msra.mxu1 %v14688_v31 }
0x1907   :  { %4162 = vmatpush.msrb.mxu1 %v14643_v46 }
0x1909   :  { %4164 = vmatpush.msrb.mxu1 %v14635_v47 }
0x1964   :  { %v3658_v41 = vpop.f32.mrf.mxu0 }
0x196a   :  { %v3740_v19 = vpop.f32.mrf.mxu3 }
0x196c   :  { %v3715_v2 = vpop.f32.mrf.mxu2  ;;  %v3767_v54 = vpop.f32.mrf.mxu0 }
0x196f   :  { %v3689_v52 = vpop.f32.mrf.mxu1 }
0x1970   :  { %v3690_v33 = vadd.f32 %v3689_v52, %v3658_v41  ;;  %v3624_v41 = vld [vmem:[#allocation19 + $0x18] sm:$0xff] }
0x1971   :  { %v14696_v52 = vand.u32 4294901760, %v3624_v41 }
0x1972   :  { %v3716_v42 = vadd.f32 %v3715_v2, %v3690_v33  ;;  %v3623_v33 = vld [vmem:[#allocation19 + $0x10] sm:$0xff] }
0x1973   :  { %16423 = vst [vmem:[#allocation52_spill] sm:$0xff] %v14696_v52  ;;  %v14698_v2 = vand.u32 4294901760, %v3623_v33  ;;  %4226 = vmatpush.msrb.mxu2 %v14696_v52 }
0x1974   :  { %v3741_v51 = vadd.f32 %v3740_v19, %v3716_v42 }
0x1975   :  { %16424 = vst [vmem:[#allocation53_spill] sm:$0xff] %v14698_v2  ;;  %4228 = vmatpush.msrb.mxu2 %v14698_v2 }
0x1976   :  { %v3768_v27 = vadd.f32 %v3767_v54, %v3741_v51  ;;  %v3621_v54 = vld [vmem:[#allocation19] sm:$0xff] }
0x1977   :  { %v14704_v51 = vand.u32 4294901760, %v3621_v54 }
0x1978   :  { %v3790_v10 = vpop.f32.mrf.mxu1 }
0x1979   :  { %v3791_v0 = vadd.f32 %v3790_v10, %v3768_v27  ;;  %v3622_v10 = vld [vmem:[#allocation19 + $0x8] sm:$0xff]  ;;  %16426 = vst [vmem:[#allocation55_spill] sm:$0xff] %v14704_v51 }
0x197a   :  { %v14701_v27 = vand.u32 4294901760, %v3622_v10 }
0x197b   :  { %v3794_v37 = vsel %vm3793_vm15, %v3791_v0, -inf }
0x197c   :  { %3795 = vmax.xlane.f32.xlu1 %v3794_v37  ;;  %16425 = vst [vmem:[#allocation54_spill] sm:$0xff] %v14701_v27  ;;  %4230 = vmatpush.msrb.mxu2 %v14701_v27 }
0x197e   :  { %4232 = vmatpush.msrb.mxu2 %v14704_v51 }
0x19ef   :  { %v3796_v38 = vpop.xlane.xlu1 %3795 }
0x19f0   :  { %v3797_v28 = vsub.f32 %v3791_v0, %v3796_v38 }
0x19f2   :  { %v3798_v32 = vmul.f32 1.442695, %v3797_v28 }
0x19f4   :  { %13320 = vpow2.f32 %v3798_v32 }
0x19fa   :  { %v13321_v43 = vpop.eup %13320 }
0x19fb   :  { %v3800_v62 = vsel %vm3793_vm15, %v13321_v43, 0.0 }
0x19fc   :  { %3801 = vadd.xlane.f32.xlu2 %v3800_v62 }
0x1a6f   :  { %v3802_v32 = vpop.xlane.xlu2 %3801 }
0x1a70   :  { %13322 = vrcp.f32 %v3802_v32  ;;  %v3814_v42 = vand.u32 2147483648, %v3802_v32  ;;  %v3812_v0 = vand.u32 2147483647, %v3802_v32  ;;  %vm3808_vm2 = vweird.f32 %v3802_v32 }
0x1a72   :  { %v3815_v63 = vor.u32 1.1754944e-38, %v3814_v42  ;;  %vm3813_vm4 = vcmp.eq.f32.partialorder %v3812_v0, 8.507059e+37 }
0x1a76   :  { %v13323_v62 = vpop.eup %13322 }
0x1a77   :  { %v3804_v28 = vmul.f32 %v13323_v62, %v3802_v32  ;;  %vm3809_vm1 = vweird.f32 %v13323_v62 }
0x1a78   :  { %vm3810_vm3 = vmor %vm3808_vm2, %vm3809_vm1 }
0x1a79   :  { %v3805_v37 = vsub.f32 1.0, %v3804_v28 }
0x1a7b   :  { %v3806_v19 = vmul.f32 %v13323_v62, %v3805_v37 }
0x1a7d   :  { %v3807_v38 = vadd.f32 %v13323_v62, %v3806_v19 }
0x1a7f   :  { %v3811_v25 = vsel %vm3810_vm3, %v13323_v62, %v3807_v38  ;;  %v14713_v62 = vsub.f32 %v3624_v41, %v14696_v52  ;;  %v3915_v41 = vpop.f32.mrf.mxu0 }
0x1a80   :  { %v3816_v40 = vsel %vm3813_vm4, %v3815_v63, %v3811_v25  ;;  %v14722_v63 = vsub.f32 %v3622_v10, %v14701_v27 }
0x1a81   :  { %v3817_v58 = vmul.f32 %v13321_v43, %v3816_v40  ;;  %16427 = vst [vmem:[#allocation56_spill] sm:$0xff] %v14713_v62  ;;  %v14726_v43 = vsub.f32 %v3621_v54, %v14704_v51  ;;  %v3885_v40 = vpop.f32.mrf.mxu3 }
0x1a82   :  { %16429 = vst [vmem:[#allocation58_spill] sm:$0xff] %v14722_v63 }
0x1a83   :  { %v4005_v35 = vsel %vm4003_vm6, %v3817_v58, 0  ;;  %v14717_v58 = vsub.f32 %v3623_v33, %v14698_v2  ;;  %16430 = vst [vmem:[#allocation59_spill] sm:$0xff] %v14726_v43  ;;  %v3942_v33 = vpop.f32.mrf.mxu1 }
0x1a84   :  { %v4029_v49 = vand.u32 4294901760, %v4005_v35 }
0x1a85   :  { %16428 = vst [vmem:[#allocation57_spill] sm:$0xff] %v14717_v58 }
0x1a86   :  { %4065 = vmatmul.f32.vlgmr.msra.gmra.mxu1 %v4029_v49  ;;  %v4030_v30 = vsub.f32 %v4005_v35, %v4029_v49  ;;  %v3844_v35 = vpop.f32.mrf.mxu2 }
0x1a87   :  { %4326 = vmatpush.msra.mxu1 %v14696_v52 }
0x1a88   :  { %4091 = vmatmul.f32.vlgmr.msra.gmra.mxu2 %v4030_v30  ;;  %v4031_v28 = vand.u32 4294901760, %v4030_v30 }
0x1a89   :  { %4328 = vmatpush.msra.mxu1 %v14698_v2  ;;  %v4000_v19 = vpop.f32.mrf.mxu3 }
0x1a8a   :  { %4116 = vmatmul.f32.vlgmr.msra.gmra.mxu3 %v4031_v28  ;;  %v4032_v32 = vsub.f32 %v4030_v30, %v4031_v28  ;;  %v3886_v30 = vadd.f32 %v3885_v40, %v3844_v35  ;;  %v14733_v35 = vld [vmem:[#allocation16] sm:$0x1] }
0x1a8b   :  { %4330 = vmatpush.msra.mxu1 %v14701_v27 }
0x1a8c   :  { %v4033_v25 = vand.u32 4294901760, %v4032_v32  ;;  %v3916_v10 = vadd.f32 %v3915_v41, %v3886_v30 }
0x1a8d   :  { %4332 = vmatpush.msra.mxu1 %v14704_v51 }
0x1a8e   :  { %4034 = vmatmul.f32.vlgmr.msra.gmra.mxu0 %v4033_v25  ;;  %4166 = vmatmul.f32.vlgmr.msrb.gmra.mxu1 %v4029_v49  ;;  %v3943_v37 = vadd.f32 %v3942_v33, %v3916_v10  ;;  %v3975_v54 = vpop.f32.mrf.mxu2 }
0x1a8f   :  { %4468 = vmatpush.xpose.msrb.mxu1 %v14610_v60  ;;  %4297 = vmatpush.msra.mxu0 %v14713_v62 }
0x1a90   :  { %v3976_v42 = vadd.f32 %v3975_v54, %v3943_v37 }
0x1a91   :  { %4300 = vmatpush.msra.mxu0 %v14717_v58 }
0x1a92   :  { %v4001_v0 = vadd.f32 %v4000_v19, %v3976_v42 }
0x1a93   :  { %4474 = vmatpush.xpose.msrb.mxu1 %v14625_v34  ;;  %4303 = vmatpush.msra.mxu0 %v14722_v63 }
0x1a95   :  { %4306 = vmatpush.msra.mxu0 %v14726_v43 }
0x1a96   :  { %4143 = vmatmul.f32.vlgmr.msrb.gmra.mxu0 %v4029_v49 }
0x1a97   :  { %4437 = vmatpush.xpose.msrb.mxu0 %v14571_v56 }
0x1a9b   :  { %4439 = vmatpush.xpose.msrb.mxu0 %v14551_v59 }
0x1b03   :  { %v4066_v38 = vpop.f32.mrf.mxu1 }
0x1b0b   :  { %v4035_v28 = vpop.f32.mrf.mxu0  ;;  %v4092_v49 = vpop.f32.mrf.mxu2 }
0x1b0c   :  { %v4036_v32 = vadd.f32 %v4035_v28, %v4001_v0  ;;  %v4167_v45 = vpop.f32.mrf.mxu1 }
0x1b0d   :  { %v4117_v60 = vpop.f32.mrf.mxu3 }
0x1b0e   :  { %v4067_v25 = vadd.f32 %v4066_v38, %v4036_v32 }
0x1b10   :  { %v4093_v34 = vadd.f32 %v4092_v49, %v4067_v25 }
0x1b12   :  { %v4118_v50 = vadd.f32 %v4117_v60, %v4093_v34 }
0x1b13   :  { %v4144_v47 = vpop.f32.mrf.mxu0 }
0x1b14   :  { %v4145_v46 = vadd.f32 %v4144_v47, %v4118_v50 }
0x1b16   :  { %v4168_v40 = vadd.f32 %v4167_v45, %v4145_v46 }
0x1b18   :  { %v4170_v30 = vadd.f32 %v4168_v40, %v14733_v35 }
0x1b1a   :  { %13324 = vtanh.f32 %v4170_v30  ;;  %v13178_v33 = vmul.f32 -1.442695, %v4170_v30  ;;  %v14744_v30 = vand.u32 4294901760, %v14713_v62 }
0x1b1c   :  { %13326 = vpow2.f32 %v13178_v33  ;;  %16431 = vst [vmem:[#allocation60_spill] sm:$0xff] %v14744_v30  ;;  %v14750_v33 = vand.u32 4294901760, %v14722_v63  ;;  %4355 = vmatpush.msra.mxu2 %v14744_v30 }
0x1b1e   :  { %16433 = vst [vmem:[#allocation62_spill] sm:$0xff] %v14750_v33 }
0x1b20   :  { %v13325_v41 = vpop.eup %13324 }
0x1b21   :  { %4193 = vrot.lane.b32.xlu0 %v13325_v41, %s13729_s14  ;;  %v14747_v41 = vand.u32 4294901760, %v14717_v58 }
0x1b22   :  { %v13327_v10 = vpop.eup %13326 }
0x1b23   :  { %v4174_v37 = vadd.f32 1.0, %v13327_v10  ;;  %16432 = vst [vmem:[#allocation61_spill] sm:$0xff] %v14747_v41  ;;  %v14753_v10 = vand.u32 4294901760, %v14726_v43  ;;  %4359 = vmatpush.msra.mxu2 %v14747_v41 }
0x1b25   :  { %13328 = vrcp.f32 %v4174_v37  ;;  %v4186_v50 = vand.u32 2147483648, %v4174_v37  ;;  %vm4180_vm8 = vweird.f32 %v4174_v37  ;;  %v4184_v46 = vand.u32 2147483647, %v4174_v37  ;;  %16434 = vst [vmem:[#allocation63_spill] sm:$0xff] %v14753_v10  ;;  %4363 = vmatpush.msra.mxu2 %v14750_v33 }
0x1b27   :  { %v4187_v19 = vor.u32 1.1754944e-38, %v4186_v50  ;;  %vm4185_vm10 = vcmp.eq.f32.partialorder %v4184_v46, 8.507059e+37  ;;  %4367 = vmatpush.msra.mxu2 %v14753_v10 }
0x1b2b   :  { %v13329_v54 = vpop.eup %13328 }
0x1b2c   :  { %v4176_v42 = vmul.f32 %v13329_v54, %v4174_v37  ;;  %vm4181_vm7 = vweird.f32 %v13329_v54  ;;  %v4263_v37 = vsub.f32 %v14717_v58, %v14747_v41 }
0x1b2d   :  { %vm4182_vm9 = vmor %vm4180_vm8, %vm4181_vm7 }
0x1b2e   :  { %v4177_v60 = vsub.f32 1.0, %v4176_v42 }
0x1b30   :  { %v4178_v34 = vmul.f32 %v13329_v54, %v4177_v60  ;;  %v14764_v60 = vand.u32 4294901760, %v4263_v37 }
0x1b32   :  { %v4179_v47 = vadd.f32 %v13329_v54, %v4178_v34  ;;  %16436 = vst [vmem:[#allocation65_spill] sm:$0xff] %v14764_v60  ;;  %v4275_v34 = vsub.f32 %v14726_v43, %v14753_v10 }
0x1b34   :  { %v4183_v45 = vsel %vm4182_vm9, %v13329_v54, %v4179_v47  ;;  %v4269_v54 = vsub.f32 %v14722_v63, %v14750_v33  ;;  %v14774_v50 = vand.u32 4294901760, %v4275_v34 }
0x1b35   :  { %v4188_v38 = vsel %vm4185_vm10, %v4187_v19, %v4183_v45  ;;  %v635_v19 = vadd.f32 %v14161_v7, %v14159_v6 }
0x1b36   :  { %v4191_v32 = vmul.f32 %v4188_v38, %v14512_v17  ;;  %v4257_v17 = vsub.f32 %v14713_v62, %v14744_v30  ;;  %v14770_v47 = vand.u32 4294901760, %v4269_v54  ;;  %16438 = vst [vmem:[#allocation67_spill] sm:$0xff] %v14774_v50 }
0x1b38   :  { %v14762_v42 = vand.u32 4294901760, %v4257_v17  ;;  %16437 = vst [vmem:[#allocation66_spill] sm:$0xff] %v14770_v47 }
0x1b3a   :  { %16435 = vst [vmem:[#allocation64_spill] sm:$0xff] %v14762_v42  ;;  %4259 = vmatpush.msrb.mxu3 %v14762_v42 }
0x1b3c   :  { %4265 = vmatpush.msrb.mxu3 %v14764_v60 }
0x1b3e   :  { %4271 = vmatpush.msrb.mxu3 %v14770_v47 }
0x1b40   :  { %4277 = vmatpush.msrb.mxu3 %v14774_v50 }
0x1b42   :  { %4386 = vmatpush.msra.mxu3 %v14696_v52 }
0x1b44   :  { %4388 = vmatpush.msra.mxu3 %v14698_v2 }
0x1b46   :  { %4390 = vmatpush.msra.mxu3 %v14701_v27 }
0x1b48   :  { %4392 = vmatpush.msra.mxu3 %v14704_v51 }
0x1b93   :  { %v4194_v0 = vpop.permute.xlu0 %4193 }
0x1b94   :  { %v4196_v28 = vmul.f32 %v4194_v0, %v4188_v38  ;;  %v631_v0 = vadd.f32 %v14157_v55, %v14155_v48 }
0x1b96   :  { %4198 = vrot.lane.b32.xlu0 %v4196_v28, %s13730_s15  ;;  %v680_v28 = vadd.f32 %v14187_v9, %v635_v19 }
0x1c08   :  { %v4199_v25 = vpop.permute.xlu0 %4198 }
0x1c09   :  { %v14739_v49 = vadd.f32 %v4199_v25, %v4191_v32  ;;  %v675_v32 = vadd.f32 %v14179_v4, %v631_v0  ;;  %v725_v25 = vadd.f32 %v14189_v23, %v680_v28  ;;  %v16440_v0 = vld [vmem:[#allocation48_spill] sm:$0xff] }
0x1c0b   :  { %13330 = vtanh.f32 %v14739_v49  ;;  %v719_v17 = vadd.f32 %v14181_v5, %v675_v32  ;;  %v770_v6 = vadd.f32 %v14191_v24, %v725_v25  ;;  %v16441_v25 = vld [vmem:[#allocation47_spill] sm:$0xff] }
0x1c0d   :  { %v766_v4 = vadd.f32 %v14183_v22, %v719_v17  ;;  %v807_v5 = vadd.f32 %v14193_v20, %v770_v6 }
0x1c11   :  { %v13331_v40 = vpop.eup %13330 }
0x1c12   :  { %4204 = vrot.lane.b32.xlu0 %v13331_v40, %s13729_s14  ;;  %v627_v40 = vadd.f32 %v14153_v39, %v14151_v36 }
0x1c14   :  { %v670_v37 = vadd.f32 %v14171_v3, %v627_v40 }
0x1c16   :  { %v713_v55 = vadd.f32 %v14173_v16, %v670_v37  ;;  %v14818_v16 = vand.u32 4294901760, %v807_v5 }
0x1c18   :  { %v14833_v24 = vsub.f32 %v807_v5, %v14818_v16  ;;  %v14909_v5 = vld [vmem:[#allocation20] sm:$0x1] }
0x1c19   :  { %16448 = vst [vmem:[#allocation70_spill] sm:$0xff] %v14909_v5 }
0x1c1a   :  { %v14850_v54 = vand.u32 4294901760, %v14833_v24 }
0x1c1c   :  { %v4814_v28 = vsub.f32 %v14833_v24, %v14850_v54 }
0x1c84   :  { %v4205_v46 = vpop.permute.xlu0 %4204 }
0x1c85   :  { %v4207_v45 = vmul.f32 %v4205_v46, %v4188_v38  ;;  %v623_v38 = vadd.f32 %v14149_v29, %v14147_v26  ;;  %v762_v26 = vadd.f32 %v14175_v18, %v713_v55 }
0x1c87   :  { %4209 = vrot.lane.b32.xlu0 %v4207_v45, %s13730_s15  ;;  %v665_v48 = vadd.f32 %v14163_v11, %v623_v38  ;;  %v803_v11 = vadd.f32 %v14185_v8, %v766_v4  ;;  %v799_v18 = vadd.f32 %v14177_v21, %v762_v26  ;;  %v16439_v45 = vld [vmem:[#allocation49_spill] sm:$0xff]  ;;  %v14885_v38 = vand.u32 4294901760, %v4814_v28 }
0x1c89   :  { %v707_v36 = vadd.f32 %v14165_v12, %v665_v48  ;;  %v14825_v8 = vand.u32 4294901760, %v803_v11  ;;  %v14836_v21 = vand.u32 4294901760, %v799_v18  ;;  %16442 = vst [vmem:[#allocation49_spill] sm:$0xff] %v14885_v38 }
0x1c8b   :  { %v758_v3 = vadd.f32 %v14167_v14, %v707_v36  ;;  %v14841_v20 = vsub.f32 %v803_v11, %v14825_v8  ;;  %v14854_v34 = vsub.f32 %v799_v18, %v14836_v21 }
0x1c8d   :  { %v795_v14 = vadd.f32 %v14169_v15, %v758_v3  ;;  %v14859_v46 = vand.u32 4294901760, %v14841_v20  ;;  %v14870_v32 = vand.u32 4294901760, %v14854_v34 }
0x1c8f   :  { %v14845_v15 = vand.u32 4294901760, %v795_v14  ;;  %v4820_v40 = vsub.f32 %v14841_v20, %v14859_v46  ;;  %v4826_v37 = vsub.f32 %v14854_v34, %v14870_v32 }
0x1c91   :  { %v14864_v19 = vsub.f32 %v795_v14, %v14845_v15  ;;  %v14893_v6 = vand.u32 4294901760, %v4820_v40  ;;  %v14900_v55 = vand.u32 4294901760, %v4826_v37 }
0x1c93   :  { %v14879_v17 = vand.u32 4294901760, %v14864_v19  ;;  %16443 = vst [vmem:[#allocation48_spill] sm:$0xff] %v14893_v6 }
0x1c94   :  { %16444 = vst [vmem:[#allocation68_spill] sm:$0xff] %v14900_v55 }
0x1c95   :  { %v4832_v48 = vsub.f32 %v14864_v19, %v14879_v17 }
0x1c97   :  { %v14905_v4 = vand.u32 4294901760, %v4832_v48 }
0x1c99   :  { %16446 = vst [vmem:[#allocation69_spill] sm:$0xff] %v14905_v4 }
0x1cf9   :  { %v4210_v7 = vpop.permute.xlu0 %4209 }
0x1cfa   :  { %v4211_v9 = vsel %vm216_vm0, %v4210_v7, 0  ;;  %v16445_v7 = vld [vmem:[#allocation50_spill] sm:$0xff] }
0x1cfb   :  { %v14803_v39 = vand.u32 4294901760, %v4211_v9 }
0x1cfd   :  { %v14808_v29 = vsub.f32 %v4211_v9, %v14803_v39  ;;  %4279 = vmatmul.f32.vlgmr.msrb.gmra.mxu3 %v14803_v39  ;;  %v16447_v9 = vld [vmem:[#allocation51_spill] sm:$0xff] }
0x1cfe   :  { %4521 = vmatpush.xpose.msrb.mxu3 %v14571_v56 }
0x1cff   :  { %4309 = vmatmul.f32.vlgmr.msra.gmra.mxu0 %v14808_v29  ;;  %v14816_v12 = vand.u32 4294901760, %v14808_v29 }
0x1d00   :  { %4548 = vmatpush.xpose.msra.mxu0 %v14592_v61 }
0x1d01   :  { %4336 = vmatmul.f32.vlgmr.msra.gmra.mxu1 %v14816_v12  ;;  %v4236_v22 = vsub.f32 %v14808_v29, %v14816_v12 }
0x1d02   :  { %4523 = vmatpush.xpose.msrb.mxu3 %v14551_v59  ;;  %4573 = vmatpush.xpose.msra.mxu1 %v14571_v56 }
0x1d03   :  { %v14830_v23 = vand.u32 4294901760, %v4236_v22 }
0x1d04   :  { %4552 = vmatpush.xpose.msra.mxu0 %v14595_v13 }
0x1d05   :  { %4238 = vmatmul.f32.vlgmr.msrb.gmra.mxu2 %v14830_v23  ;;  %4394 = vmatmul.f32.vlgmr.msra.gmra.mxu3 %v14803_v39 }
0x1d06   :  { %4496 = vmatpush.xpose.msrb.mxu2 %v14579_v44  ;;  %4575 = vmatpush.xpose.msra.mxu1 %v14551_v59 }
0x1d07   :  { %4654 = vmatpush.msra.mxu3 %v14678_v53  ;;  %4445 = vmatmul.f32.vlgmr.msrb.gmra.mxu0 %v14830_v23 }
0x1d08   :  { %4682 = vmatpush.msrb.mxu0 %v14652_v1 }
0x1d09   :  { %4660 = vmatpush.msra.mxu3 %v14688_v31  ;;  %4476 = vmatmul.f32.vlgmr.msrb.gmra.mxu1 %v14803_v39 }
0x1d0a   :  { %4499 = vmatpush.xpose.msrb.mxu2 %v14569_v57  ;;  %4685 = vmatpush.msrb.mxu0 %v16439_v45 }
0x1d0b   :  { %4707 = vmatpush.msrb.mxu1 %v16440_v0 }
0x1d0d   :  { %4709 = vmatpush.msrb.mxu1 %v16441_v25  ;;  %4369 = vmatmul.f32.vlgmr.msra.gmra.mxu2 %v14803_v39 }
0x1d0e   :  { %4527 = vmatmul.f32.vlgmr.msrb.gmra.mxu3 %v14816_v12  ;;  %4623 = vmatpush.msra.mxu2 %v16440_v0 }
0x1d0f   :  { %4759 = vmatpush.msrb.mxu3 %v16440_v0  ;;  %4554 = vmatmul.f32.vlgmr.msra.gmra.mxu0 %v14803_v39 }
0x1d10   :  { %4625 = vmatpush.msra.mxu2 %v16441_v25  ;;  %4783 = vmatpush.msra.mxu0 %v14818_v16 }
0x1d11   :  { %4761 = vmatpush.msrb.mxu3 %v16441_v25  ;;  %4577 = vmatmul.f32.vlgmr.msra.gmra.mxu1 %v14803_v39 }
0x1d12   :  { %4785 = vmatpush.msra.mxu0 %v14825_v8  ;;  %4816 = vmatpush.msra.mxu1 %v14885_v38 }
0x1d14   :  { %4787 = vmatpush.msra.mxu0 %v14836_v21  ;;  %4822 = vmatpush.msra.mxu1 %v14893_v6 }
0x1d15   :  { %4502 = vmatmul.f32.vlgmr.msrb.gmra.mxu2 %v14808_v29 }
0x1d16   :  { %4734 = vmatpush.msrb.mxu2 %v16445_v7  ;;  %4789 = vmatpush.msra.mxu0 %v14845_v15 }
0x1d17   :  { %4828 = vmatpush.msra.mxu1 %v14900_v55 }
0x1d18   :  { %4738 = vmatpush.msrb.mxu2 %v16447_v9 }
0x1d19   :  { %4834 = vmatpush.msra.mxu1 %v14905_v4 }
0x1d7c   :  { %v4310_v26 = vpop.f32.mrf.mxu0 }
0x1d7e   :  { %v4337_v18 = vpop.f32.mrf.mxu1 }
0x1d80   :  { %v4280_v36 = vpop.f32.mrf.mxu3 }
0x1d84   :  { %v4446_v48 = vpop.f32.mrf.mxu0 }
0x1d86   :  { %v4477_v6 = vpop.f32.mrf.mxu1 }
0x1d87   :  { %v4478_v9 = vadd.f32 %v4477_v6, %v4446_v48 }
0x1d88   :  { %v4239_v11 = vpop.f32.mrf.mxu2  ;;  %v4395_v40 = vpop.f32.mrf.mxu3 }
0x1d89   :  { %v4240_v3 = vadd.f32 %v4239_v11, %v14909_v5 }
0x1d8b   :  { %v4281_v22 = vadd.f32 %v4280_v36, %v4240_v3 }
0x1d8c   :  { %v4555_v3 = vpop.f32.mrf.mxu0 }
0x1d8d   :  { %v4311_v14 = vadd.f32 %v4310_v26, %v4281_v22 }
0x1d8e   :  { %v4578_v22 = vpop.f32.mrf.mxu1 }
0x1d8f   :  { %v4338_v28 = vadd.f32 %v4337_v18, %v4311_v14 }
0x1d90   :  { %v4370_v37 = vpop.f32.mrf.mxu2 }
0x1d91   :  { %v4371_v55 = vadd.f32 %v4370_v37, %v4338_v28  ;;  %v4528_v36 = vpop.f32.mrf.mxu3  ;;  %v206_v28 = vlaneseq }
0x1d93   :  { %v4396_v7 = vadd.f32 %v4395_v40, %v4371_v55  ;;  %v14918_v40 = vand.u32 127, %v206_v28 }
0x1d95   :  { %4398 = vst.msk [vmem:[%s16264_s12] sm:$0x1] %vm1048_vm5, %v4396_v7  ;;  %v4399_v4 = vsel %vm1048_vm5, %v4396_v7, -inf }
0x1d96   :  { %4400 = vmax.xlane.f32.xlu0 %v4399_v4 }
0x1d98   :  { %v4503_v11 = vpop.f32.mrf.mxu2 }
0x1d99   :  { %v4504_v5 = vadd.f32 %v4503_v11, %v4478_v9 }
0x1d9b   :  { %v4529_v26 = vadd.f32 %v4528_v36, %v4504_v5 }
0x1d9d   :  { %v4556_v18 = vadd.f32 %v4555_v3, %v4529_v26 }
0x1d9f   :  { %v4579_v14 = vadd.f32 %v4578_v22, %v4556_v18 }
0x1da1   :  { %v4581_v55 = vsel %vm3793_vm15, %v4579_v14, -inf }
0x1da2   :  { %4582 = vmax.xlane.f32.xlu2 %v4581_v55 }
0x1e09   :  { %v4401_v37 = vpop.xlane.xlu0 %4400 }
0x1e0a   :  { %vm4402_vm11 = vcmp.eq.f32.partialorder %v4396_v7, %v4401_v37 }
0x1e0b   :  { %v4403_v38 = vsel %vm4402_vm11, %v14918_v40, 32 }
0x1e0c   :  { %v4404_v6 = vsel %vm1048_vm5, %v4403_v38, 2147483647 }
0x1e0d   :  { %v4406_v4 = vshra.s32 %v4404_v6, 16  ;;  %v4405_v3 = vand.u32 65535, %v4404_v6 }
0x1e0f   :  { %v4408_v9 = vcvt.s32.f32 %v4406_v4  ;;  %v4407_v22 = vcvt.s32.f32 %v4405_v3 }
0x1e11   :  { %4409 = vmin.xlane.f32.xlu1 %v4408_v9 }
0x1e15   :  { %v4583_v5 = vpop.xlane.xlu2 %4582 }
0x1e16   :  { %v4584_v48 = vsub.f32 %v4579_v14, %v4583_v5 }
0x1e18   :  { %v4585_v11 = vmul.f32 1.442695, %v4584_v48 }
0x1e1a   :  { %13332 = vpow2.f32 %v4585_v11 }
0x1e20   :  { %v13333_v36 = vpop.eup %13332 }
0x1e21   :  { %v4587_v26 = vsel %vm3793_vm15, %v13333_v36, 0.0 }
0x1e22   :  { %4588 = vadd.xlane.f32.xlu2 %v4587_v26 }
0x1e84   :  { %v4410_v18 = vpop.xlane.xlu1 %4409 }
0x1e85   :  { %vm4411_vm12 = vcmp.eq.f32.partialorder %v4408_v9, %v4410_v18 }
0x1e86   :  { %v4412_v7 = vsel %vm4411_vm12, %v4407_v22, inf }
0x1e87   :  { %4413 = vmin.xlane.f32.xlu1 %v4412_v7 }
0x1e95   :  { %v4589_v55 = vpop.xlane.xlu2 %4588 }
0x1e96   :  { %13334 = vrcp.f32 %v4589_v55  ;;  %v4601_v4 = vand.u32 2147483648, %v4589_v55  ;;  %v4599_v14 = vand.u32 2147483647, %v4589_v55  ;;  %vm4595_vm14 = vweird.f32 %v4589_v55 }
0x1e98   :  { %v4602_v48 = vor.u32 1.1754944e-38, %v4601_v4  ;;  %vm4600_vm2 = vcmp.eq.f32.partialorder %v4599_v14, 8.507059e+37  ;;  %v16453_v4 = vld [vmem:[#allocation45_spill] sm:$0xff]  ;;  %v16454_v14 = vld [vmem:[#allocation31_spill] sm:$0xff] }
0x1e9c   :  { %v13335_v38 = vpop.eup %13334 }
0x1e9d   :  { %v4591_v28 = vmul.f32 %v13335_v38, %v4589_v55  ;;  %vm4596_vm13 = vweird.f32 %v13335_v38  ;;  %v16449_v55 = vld [vmem:[#allocation40_spill] sm:$0xff] }
0x1e9e   :  { %vm4597_vm1 = vmor %vm4595_vm14, %vm4596_vm13 }
0x1e9f   :  { %v4592_v37 = vsub.f32 1.0, %v4591_v28  ;;  %v16451_v28 = vld [vmem:[#allocation44_spill] sm:$0xff] }
0x1ea1   :  { %v4593_v25 = vmul.f32 %v13335_v38, %v4592_v37  ;;  %v16452_v37 = vld [vmem:[#allocation29_spill] sm:$0xff] }
0x1ea3   :  { %v4594_v5 = vadd.f32 %v13335_v38, %v4593_v25 }
0x1ea5   :  { %v4598_v11 = vsel %vm4597_vm1, %v13335_v38, %v4594_v5  ;;  %v16450_v38 = vld [vmem:[#allocation42_spill] sm:$0xff]  ;;  %v16455_v5 = vld [vmem:[#allocation32_spill] sm:$0xff] }
0x1ea6   :  { %v4603_v6 = vsel %vm4600_vm2, %v4602_v48, %v4598_v11  ;;  %v16456_v48 = vld [vmem:[#allocation35_spill] sm:$0xff]  ;;  %v4416_v11 = vcvt.f32.s32 %v4410_v18  ;;  %v16458_v18 = vld [vmem:[#allocation33_spill] sm:$0xff] }
0x1ea7   :  { %v4604_v26 = vmul.f32 %v13333_v36, %v4603_v6 }
0x1ea9   :  { %v4606_v9 = vsel %vm4003_vm6, %v4604_v26, 0  ;;  %v4417_v26 = vshll.u32 %v4416_v11, 16 }
0x1eaa   :  { %v4626_v3 = vand.u32 4294901760, %v4606_v9 }
0x1eac   :  { %4662 = vmatmul.f32.vlgmr.msra.gmra.mxu3 %v4626_v3  ;;  %v4627_v22 = vsub.f32 %v4606_v9, %v4626_v3 }
0x1ead   :  { %4883 = vmatpush.msra.mxu3 %v14818_v16 }
0x1eae   :  { %4688 = vmatmul.f32.vlgmr.msrb.gmra.mxu0 %v4627_v22  ;;  %v4628_v7 = vand.u32 4294901760, %v4627_v22 }
0x1eaf   :  { %4885 = vmatpush.msra.mxu3 %v14825_v8  ;;  %4912 = vmatpush.msrb.mxu0 %v14850_v54 }
0x1eb0   :  { %4713 = vmatmul.f32.vlgmr.msrb.gmra.mxu1 %v4628_v7  ;;  %v4629_v25 = vsub.f32 %v4627_v22, %v4628_v7  ;;  %v16457_v7 = vmov 0.0  }
0x1eb1   :  { %4887 = vmatpush.msra.mxu3 %v14836_v21  ;;  %4916 = vmatpush.msrb.mxu0 %v14859_v46 }
0x1eb2   :  { %4943 = vmatpush.msrb.mxu1 %v14818_v16  ;;  %v4630_v36 = vand.u32 4294901760, %v4629_v25 }
0x1eb3   :  { %4889 = vmatpush.msra.mxu3 %v14845_v15  ;;  %4920 = vmatpush.msrb.mxu0 %v14870_v32 }
0x1eb4   :  { %4945 = vmatpush.msrb.mxu1 %v14825_v8  ;;  %4631 = vmatmul.f32.vlgmr.msra.gmra.mxu2 %v4630_v36 }
0x1eb5   :  { %4763 = vmatmul.f32.vlgmr.msrb.gmra.mxu3 %v4626_v3  ;;  %4854 = vmatpush.msra.mxu2 %v14833_v24 }
0x1eb6   :  { %4924 = vmatpush.msrb.mxu0 %v14879_v17  ;;  %4947 = vmatpush.msrb.mxu1 %v14836_v21 }
0x1eb7   :  { %4857 = vmatpush.msra.mxu2 %v14841_v20  ;;  %5001 = vmatpush.msrb.mxu3 %v16449_v55 }
0x1eb8   :  { %4949 = vmatpush.msrb.mxu1 %v14845_v15 }
0x1eb9   :  { %4860 = vmatpush.msra.mxu2 %v14854_v34  ;;  %5007 = vmatpush.msrb.mxu3 %v16450_v38 }
0x1ebb   :  { %4863 = vmatpush.msra.mxu2 %v14864_v19  ;;  %5013 = vmatpush.msrb.mxu3 %v16451_v28 }
0x1ebc   :  { %4740 = vmatmul.f32.vlgmr.msrb.gmra.mxu2 %v4626_v3 }
0x1ebd   :  { %4968 = vmatpush.msrb.mxu2 %v16452_v37  ;;  %5019 = vmatpush.msrb.mxu3 %v16453_v4 }
0x1ebf   :  { %4970 = vmatpush.msrb.mxu2 %v16454_v14 }
0x1ec1   :  { %4972 = vmatpush.msrb.mxu2 %v16455_v5 }
0x1ec3   :  { %4974 = vmatpush.msrb.mxu2 %v16456_v48 }
0x1efa   :  { %v4414_v6 = vpop.xlane.xlu1 %4413 }
0x1efb   :  { %v4415_v9 = vcvt.f32.s32 %v4414_v6  ;;  %v16459_v6 = vld [vmem:[#allocation37_spill] sm:$0xff] }
0x1efd   :  { %v4418_v22 = vadd.s32 %v4417_v26, %v4415_v9  ;;  %v16460_v9 = vld [vmem:[#allocation39_spill] sm:$0xff] }
0x1eff   :  { %vm4419_vm3 = vcmp.eq.s32.totalorder %v14918_v40, %v4418_v22  ;;  %v16461_v22 = vld [vmem:[#allocation41_spill] sm:$0xff] }
0x1f00   :  { %v13179_v25 = vsel %vm4419_vm3, 1.0, %v16457_v7 }
0x1f01   :  { %v4768_v3 = vsel %vm216_vm0, %v13179_v25, 0  ;;  %13180 = vmatmul.msk.f32.vlgmr.msra.gmra.mxu1 %vm216_vm0, %v13179_v25 }
0x1f02   :  { %v4791_v36 = vsub.f32 %v4768_v3, %v4768_v3  ;;  %5068 = vmatpush.msra.mxu1 %v16452_v37  ;;  %v16462_v3 = vld [vmem:[#allocation30_spill] sm:$0xff] }
0x1f04   :  { %4866 = vmatmul.f32.vlgmr.msra.gmra.mxu2 %v4791_v36  ;;  %v4792_v4 = vand.u32 4294901760, %v4791_v36  ;;  %5070 = vmatpush.msra.mxu1 %v16454_v14 }
0x1f05   :  { %5097 = vmatpush.msra.mxu2 %v16458_v18 }
0x1f06   :  { %4893 = vmatmul.f32.vlgmr.msra.gmra.mxu3 %v4792_v4  ;;  %v4793_v11 = vsub.f32 %v4791_v36, %v4792_v4  ;;  %5072 = vmatpush.msra.mxu1 %v16455_v5  ;;  %v16463_v4 = vld [vmem:[#allocation34_spill] sm:$0xff]  ;;  %v16464_v36 = vld [vmem:[#allocation36_spill] sm:$0xff] }
0x1f07   :  { %5101 = vmatpush.msra.mxu2 %v16459_v6  ;;  %5128 = vmatpush.msra.mxu3 %v16452_v37 }
0x1f08   :  { %v4794_v26 = vand.u32 4294901760, %v4793_v11  ;;  %5074 = vmatpush.msra.mxu1 %v16456_v48 }
0x1f09   :  { %13182 = vmatmul.msk.f32.vlgmr.msrb.gmra.mxu1 %vm216_vm0, %v13179_v25  ;;  %5105 = vmatpush.msra.mxu2 %v16460_v9 }
0x1f0a   :  { %4795 = vmatmul.f32.vlgmr.msra.gmra.mxu0 %v4794_v26  ;;  %5130 = vmatpush.msra.mxu3 %v16454_v14 }
0x1f0b   :  { %5109 = vmatpush.msra.mxu2 %v16461_v22  ;;  %5039 = vmatpush.msra.mxu0 %v16462_v3 }
0x1f0c   :  { %4980 = vmatmul.f32.vlgmr.msrb.gmra.mxu2 %v14830_v23  ;;  %5132 = vmatpush.msra.mxu3 %v16455_v5  ;;  %v16465_v23 = vld [vmem:[#allocation38_spill] sm:$0xff] }
0x1f0d   :  { %5268 = vmatpush.msrb.mxu2 %v14713_v62  ;;  %5042 = vmatpush.msra.mxu0 %v16463_v4 }
0x1f0e   :  { %5021 = vmatmul.f32.vlgmr.msrb.gmra.mxu3 %v14803_v39  ;;  %5230 = vmatpush.msrb.mxu1 %v14762_v42 }
0x1f0f   :  { %5134 = vmatpush.msra.mxu3 %v16456_v48  ;;  %5271 = vmatpush.msrb.mxu2 %v14717_v58 }
0x1f10   :  { %5045 = vmatpush.msra.mxu0 %v16464_v36  ;;  %5236 = vmatpush.msrb.mxu1 %v14764_v60 }
0x1f11   :  { %5297 = vmatpush.msrb.mxu3 %v14696_v52  ;;  %5078 = vmatmul.f32.vlgmr.msra.gmra.mxu1 %v14816_v12  ;;  %v16466_v12 = vld [vmem:[#allocation43_spill] sm:$0xff] }
0x1f12   :  { %5274 = vmatpush.msrb.mxu2 %v14722_v63  ;;  %13181 = vmatmul.msk.f32.vlgmr.msrb.gmra.mxu0 %vm216_vm0, %v13179_v25  ;;  %v16467_v25 = vld [vmem:[#allocation46_spill] sm:$0xff] }
0x1f13   :  { %5299 = vmatpush.msrb.mxu3 %v14698_v2  ;;  %5048 = vmatpush.msra.mxu0 %v16465_v23 }
0x1f14   :  { %5277 = vmatpush.msrb.mxu2 %v14726_v43  ;;  %5242 = vmatpush.msrb.mxu1 %v14770_v47 }
0x1f15   :  { %5301 = vmatpush.msrb.mxu3 %v14701_v27  ;;  %5111 = vmatmul.f32.vlgmr.msra.gmra.mxu2 %v14803_v39 }
0x1f16   :  { %5408 = vmatpush.xpose.msra.mxu2 %v14571_v56  ;;  %5197 = vmatpush.msrb.mxu0 %v14696_v52 }
0x1f17   :  { %5303 = vmatpush.msrb.mxu3 %v14704_v51  ;;  %5248 = vmatpush.msrb.mxu1 %v14774_v50 }
0x1f18   :  { %5136 = vmatmul.f32.vlgmr.msra.gmra.mxu3 %v14803_v39  ;;  %5199 = vmatpush.msrb.mxu0 %v14698_v2 }
0x1f19   :  { %5439 = vmatpush.xpose.msra.mxu3 %v16466_v12  ;;  %5357 = vmatpush.msra.mxu1 %v14696_v52 }
0x1f1a   :  { %5410 = vmatpush.xpose.msra.mxu2 %v14551_v59  ;;  %5051 = vmatmul.f32.vlgmr.msra.gmra.mxu0 %v14808_v29 }
0x1f1b   :  { %5201 = vmatpush.msrb.mxu0 %v14701_v27  ;;  %5359 = vmatpush.msra.mxu1 %v14698_v2 }
0x1f1d   :  { %5445 = vmatpush.xpose.msra.mxu3 %v16467_v25  ;;  %5203 = vmatpush.msrb.mxu0 %v14704_v51 }
0x1f1e   :  { %5361 = vmatpush.msra.mxu1 %v14701_v27 }
0x1f1f   :  { %5326 = vmatpush.msra.mxu0 %v14744_v30 }
0x1f20   :  { %5363 = vmatpush.msra.mxu1 %v14704_v51 }
0x1f21   :  { %5330 = vmatpush.msra.mxu0 %v14747_v41 }
0x1f23   :  { %5334 = vmatpush.msra.mxu0 %v14750_v33 }
0x1f25   :  { %5338 = vmatpush.msra.mxu0 %v14753_v10 }
0x1f2b   :  { %v4689_v26 = vpop.f32.mrf.mxu0 }
0x1f2d   :  { %v4714_v25 = vpop.f32.mrf.mxu1 }
0x1f2f   :  { %v4663_v29 = vpop.f32.mrf.mxu3 }
0x1f37   :  { %v4632_v39 = vpop.f32.mrf.mxu2 }
0x1f38   :  { %v4664_v11 = vadd.f32 %v4663_v29, %v4632_v39  ;;  %v4764_v47 = vpop.f32.mrf.mxu3 }
0x1f3a   :  { %v4690_v50 = vadd.f32 %v4689_v26, %v4664_v11 }
0x1f3c   :  { %v4715_v60 = vadd.f32 %v4714_v25, %v4690_v50 }
0x1f3f   :  { %v4741_v12 = vpop.f32.mrf.mxu2 }
0x1f40   :  { %v4742_v27 = vadd.f32 %v4741_v12, %v4715_v60 }
0x1f42   :  { %v4765_v51 = vadd.f32 %v4764_v47, %v4742_v27 }
0x1f7e   :  { %v4837_v23 = vpop.f32.mrf.mxu1 }
0x1f86   :  { %v4952_v33 = vpop.f32.mrf.mxu1 }
0x1f87   :  { %v4796_v30 = vpop.f32.mrf.mxu0  ;;  %v4867_v43 = vpop.f32.mrf.mxu2 }
0x1f88   :  { %v4797_v41 = vadd.f32 %v4796_v30, %v4765_v51 }
0x1f89   :  { %v4894_v2 = vpop.f32.mrf.mxu3 }
0x1f8a   :  { %v4838_v63 = vadd.f32 %v4837_v23, %v4797_v41 }
0x1f8c   :  { %v4868_v52 = vadd.f32 %v4867_v43, %v4838_v63 }
0x1f8e   :  { %v4895_v39 = vadd.f32 %v4894_v2, %v4868_v52  ;;  %v5079_v26 = vpop.f32.mrf.mxu1 }
0x1f8f   :  { %v4927_v36 = vpop.f32.mrf.mxu0  ;;  %v4981_v10 = vpop.f32.mrf.mxu2 }
0x1f90   :  { %v4928_v4 = vadd.f32 %v4927_v36, %v4895_v39 }
0x1f91   :  { %v5022_v58 = vpop.f32.mrf.mxu3 }
0x1f92   :  { %v5023_v29 = vadd.f32 %v5022_v58, %v4981_v10  ;;  %v4953_v62 = vadd.f32 %v4952_v33, %v4928_v4 }
0x1f97   :  { %v5052_v42 = vpop.f32.mrf.mxu0 }
0x1f98   :  { %v5053_v11 = vadd.f32 %v5052_v42, %v5023_v29  ;;  %v5112_v60 = vpop.f32.mrf.mxu2 }
0x1f9a   :  { %v5080_v50 = vadd.f32 %v5079_v26, %v5053_v11 }
0x1f9b   :  { %v5137_v25 = vpop.f32.mrf.mxu3 }
0x1f9c   :  { %v5113_v12 = vadd.f32 %v5112_v60, %v5080_v50 }
0x1f9e   :  { %v5138_v27 = vadd.f32 %v5137_v25, %v5113_v12 }
0x1fa0   :  { %v5140_v47 = vadd.f32 %v5138_v27, %v4953_v62 }
0x1fa2   :  { %v5141_v51 = vadd.f32 %v5140_v47, %v14733_v35 }
0x1fa4   :  { %13336 = vtanh.f32 %v5141_v51  ;;  %v13183_v63 = vmul.f32 -1.442695, %v5141_v51 }
0x1fa6   :  { %13338 = vpow2.f32 %v13183_v63 }
0x1faa   :  { %v13337_v30 = vpop.eup %13336 }
0x1fab   :  { %5164 = vrot.lane.b32.xlu2 %v13337_v30, %s13729_s14 }
0x1fac   :  { %v13339_v52 = vpop.eup %13338 }
0x1fad   :  { %v5145_v2 = vadd.f32 1.0, %v13339_v52  ;;  %v16468_v52 = vld [vmem:[#allocation47_spill] sm:$0xff] }
0x1faf   :  { %13340 = vrcp.f32 %v5145_v2  ;;  %v5157_v33 = vand.u32 2147483648, %v5145_v2  ;;  %vm5151_vm7 = vweird.f32 %v5145_v2  ;;  %v5155_v62 = vand.u32 2147483647, %v5145_v2 }
0x1fb1   :  { %v5158_v4 = vor.u32 1.1754944e-38, %v5157_v33  ;;  %vm5156_vm9 = vcmp.eq.f32.partialorder %v5155_v62, 8.507059e+37 }
0x1fb5   :  { %v13341_v58 = vpop.eup %13340 }
0x1fb6   :  { %v5147_v43 = vmul.f32 %v13341_v58, %v5145_v2  ;;  %vm5152_vm4 = vweird.f32 %v13341_v58  ;;  %v16469_v2 = vld [vmem:[#allocation49_spill] sm:$0xff] }
0x1fb7   :  { %vm5153_vm8 = vmor %vm5151_vm7, %vm5152_vm4 }
0x1fb8   :  { %v5148_v41 = vsub.f32 1.0, %v5147_v43  ;;  %v16471_v43 = vld [vmem:[#allocation50_spill] sm:$0xff] }
0x1fba   :  { %v5149_v10 = vmul.f32 %v13341_v58, %v5148_v41  ;;  %v16472_v41 = vld [vmem:[#allocation68_spill] sm:$0xff] }
0x1fbc   :  { %v5150_v42 = vadd.f32 %v13341_v58, %v5149_v10  ;;  %v16473_v10 = vld [vmem:[#allocation51_spill] sm:$0xff] }
0x1fbe   :  { %v5154_v35 = vsel %vm5153_vm8, %v13341_v58, %v5150_v42  ;;  %v16470_v58 = vld [vmem:[#allocation48_spill] sm:$0xff]  ;;  %v16474_v42 = vld [vmem:[#allocation69_spill] sm:$0xff] }
0x1fbf   :  { %v5159_v23 = vsel %vm5156_vm9, %v5158_v4, %v5154_v35  ;;  %v16475_v4 = vld [vmem:[#allocation70_spill] sm:$0xff] }
0x1fc0   :  { %v5162_v29 = vmul.f32 %v5159_v23, %v14739_v49 }
0x2005   :  { %v5165_v36 = vpop.permute.xlu2 %5164 }
0x2006   :  { %v5167_v39 = vmul.f32 %v5165_v36, %v5159_v23 }
0x2008   :  { %5169 = vrot.lane.b32.xlu1 %v5167_v39, %s13730_s15 }
0x207a   :  { %v5170_v11 = vpop.permute.xlu1 %5169 }
0x207b   :  { %v15008_v26 = vadd.f32 %v5170_v11, %v5162_v29 }
0x207d   :  { %13342 = vtanh.f32 %v15008_v26 }
0x2083   :  { %v13343_v50 = vpop.eup %13342 }
0x2084   :  { %5175 = vrot.lane.b32.xlu2 %v13343_v50, %s13729_s14 }
0x20de   :  { %v5176_v60 = vpop.permute.xlu2 %5175 }
0x20df   :  { %v5178_v12 = vmul.f32 %v5176_v60, %v5159_v23 }
0x20e1   :  { %5180 = vrot.lane.b32.xlu0 %v5178_v12, %s13730_s15 }
0x2153   :  { %v5181_v25 = vpop.permute.xlu0 %5180 }
0x2154   :  { %v5182_v27 = vsel %vm216_vm0, %v5181_v25, 0 }
0x2155   :  { %v15014_v47 = vand.u32 4294901760, %v5182_v27 }
0x2157   :  { %v15017_v51 = vsub.f32 %v5182_v27, %v15014_v47  ;;  %5250 = vmatmul.f32.vlgmr.msrb.gmra.mxu1 %v15014_v47 }
0x2158   :  { %5492 = vmatpush.xpose.msrb.mxu1 %v14571_v56 }
0x2159   :  { %5280 = vmatmul.f32.vlgmr.msrb.gmra.mxu2 %v15017_v51  ;;  %v15023_v49 = vand.u32 4294901760, %v15017_v51 }
0x215a   :  { %5519 = vmatpush.xpose.msrb.mxu2 %v14592_v61 }
0x215b   :  { %5307 = vmatmul.f32.vlgmr.msrb.gmra.mxu3 %v15023_v49  ;;  %v5207_v30 = vsub.f32 %v15017_v51, %v15023_v49 }
0x215c   :  { %5494 = vmatpush.xpose.msrb.mxu1 %v14551_v59  ;;  %5544 = vmatpush.xpose.msrb.mxu3 %v14571_v56 }
0x215d   :  { %v15031_v63 = vand.u32 4294901760, %v5207_v30 }
0x215e   :  { %5523 = vmatpush.xpose.msrb.mxu2 %v14595_v13 }
0x215f   :  { %5209 = vmatmul.f32.vlgmr.msrb.gmra.mxu0 %v15031_v63  ;;  %5365 = vmatmul.f32.vlgmr.msra.gmra.mxu1 %v15014_v47 }
0x2160   :  { %5467 = vmatpush.xpose.msrb.mxu0 %v14579_v44  ;;  %5546 = vmatpush.xpose.msrb.mxu3 %v14551_v59 }
0x2161   :  { %5625 = vmatpush.msra.mxu1 %v14678_v53  ;;  %5416 = vmatmul.f32.vlgmr.msra.gmra.mxu2 %v15031_v63 }
0x2162   :  { %5653 = vmatpush.msra.mxu2 %v14652_v1 }
0x2163   :  { %5631 = vmatpush.msra.mxu1 %v14688_v31  ;;  %5447 = vmatmul.f32.vlgmr.msra.gmra.mxu3 %v15014_v47 }
0x2164   :  { %5470 = vmatpush.xpose.msrb.mxu0 %v14569_v57  ;;  %5656 = vmatpush.msra.mxu2 %v16439_v45 }
0x2165   :  { %5678 = vmatpush.msra.mxu3 %v16440_v0 }
0x2167   :  { %5680 = vmatpush.msra.mxu3 %v16468_v52  ;;  %5340 = vmatmul.f32.vlgmr.msra.gmra.mxu0 %v15014_v47 }
0x2168   :  { %5498 = vmatmul.f32.vlgmr.msrb.gmra.mxu1 %v15023_v49  ;;  %5594 = vmatpush.msra.mxu0 %v16440_v0 }
0x2169   :  { %5730 = vmatpush.msrb.mxu1 %v16440_v0  ;;  %5525 = vmatmul.f32.vlgmr.msrb.gmra.mxu2 %v15014_v47 }
0x216a   :  { %5596 = vmatpush.msra.mxu0 %v16468_v52  ;;  %5754 = vmatpush.msrb.mxu2 %v14818_v16 }
0x216b   :  { %5732 = vmatpush.msrb.mxu1 %v16468_v52  ;;  %5548 = vmatmul.f32.vlgmr.msrb.gmra.mxu3 %v15014_v47 }
0x216c   :  { %5756 = vmatpush.msrb.mxu2 %v14825_v8  ;;  %5787 = vmatpush.msrb.mxu3 %v16469_v2 }
0x216e   :  { %5758 = vmatpush.msrb.mxu2 %v14836_v21  ;;  %5793 = vmatpush.msrb.mxu3 %v16470_v58 }
0x216f   :  { %5473 = vmatmul.f32.vlgmr.msrb.gmra.mxu0 %v15017_v51 }
0x2170   :  { %5705 = vmatpush.msrb.mxu0 %v16471_v43  ;;  %5760 = vmatpush.msrb.mxu2 %v14845_v15 }
0x2171   :  { %5799 = vmatpush.msrb.mxu3 %v16472_v41 }
0x2172   :  { %5709 = vmatpush.msrb.mxu0 %v16473_v10 }
0x2173   :  { %5805 = vmatpush.msrb.mxu3 %v16474_v42 }
0x21d4   :  { %v5251_v33 = vpop.f32.mrf.mxu1 }
0x21dc   :  { %v5210_v62 = vpop.f32.mrf.mxu0  ;;  %v5281_v35 = vpop.f32.mrf.mxu2 }
0x21dd   :  { %v5211_v36 = vadd.f32 %v5210_v62, %v16475_v4  ;;  %v5366_v50 = vpop.f32.mrf.mxu1 }
0x21de   :  { %v5308_v23 = vpop.f32.mrf.mxu3 }
0x21df   :  { %v5252_v39 = vadd.f32 %v5251_v33, %v5211_v36 }
0x21e1   :  { %v5282_v29 = vadd.f32 %v5281_v35, %v5252_v39 }
0x21e3   :  { %v5309_v11 = vadd.f32 %v5308_v23, %v5282_v29 }
0x21e4   :  { %v5341_v60 = vpop.f32.mrf.mxu0  ;;  %v5417_v25 = vpop.f32.mrf.mxu2 }
0x21e5   :  { %v5342_v12 = vadd.f32 %v5341_v60, %v5309_v11  ;;  %v5499_v33 = vpop.f32.mrf.mxu1 }
0x21e6   :  { %v5448_v30 = vpop.f32.mrf.mxu3 }
0x21e7   :  { %v5367_v27 = vadd.f32 %v5366_v50, %v5342_v12  ;;  %v5449_v10 = vadd.f32 %v5448_v30, %v5417_v25 }
0x21e9   :  { %5369 = vst.msk [vmem:[%s16264_s12 + $0x1] sm:$0x1] %vm1048_vm5, %v5367_v27  ;;  %v5370_v42 = vsel %vm1048_vm5, %v5367_v27, -inf }
0x21ea   :  { %5371 = vmax.xlane.f32.xlu1 %v5370_v42 }
0x21ec   :  { %v5474_v62 = vpop.f32.mrf.mxu0  ;;  %v5526_v36 = vpop.f32.mrf.mxu2 }
0x21ed   :  { %v5475_v4 = vadd.f32 %v5474_v62, %v5449_v10 }
0x21ee   :  { %v5549_v39 = vpop.f32.mrf.mxu3 }
0x21ef   :  { %v5500_v35 = vadd.f32 %v5499_v33, %v5475_v4 }
0x21f1   :  { %v5527_v23 = vadd.f32 %v5526_v36, %v5500_v35 }
0x21f3   :  { %v5550_v29 = vadd.f32 %v5549_v39, %v5527_v23 }
0x21f5   :  { %v5552_v11 = vsel %vm3793_vm15, %v5550_v29, -inf }
0x21f6   :  { %5553 = vmax.xlane.f32.xlu2 %v5552_v11 }
0x225d   :  { %v5372_v50 = vpop.xlane.xlu1 %5371 }
0x225e   :  { %vm5373_vm10 = vcmp.eq.f32.partialorder %v5367_v27, %v5372_v50 }
0x225f   :  { %v5374_v60 = vsel %vm5373_vm10, %v14918_v40, 32 }
0x2260   :  { %v5375_v12 = vsel %vm1048_vm5, %v5374_v60, 2147483647 }
0x2261   :  { %v5377_v41 = vshra.s32 %v5375_v12, 16  ;;  %v5376_v33 = vand.u32 65535, %v5375_v12 }
0x2263   :  { %v5379_v42 = vcvt.s32.f32 %v5377_v41  ;;  %v5378_v36 = vcvt.s32.f32 %v5376_v33 }
0x2265   :  { %5380 = vmin.xlane.f32.xlu0 %v5379_v42 }
0x2269   :  { %v5554_v25 = vpop.xlane.xlu2 %5553 }
0x226a   :  { %v5555_v10 = vsub.f32 %v5550_v29, %v5554_v25 }
0x226c   :  { %v5556_v30 = vmul.f32 1.442695, %v5555_v10 }
0x226e   :  { %13344 = vpow2.f32 %v5556_v30 }
0x2274   :  { %v13345_v62 = vpop.eup %13344 }
0x2275   :  { %v5558_v4 = vsel %vm3793_vm15, %v13345_v62, 0.0 }
0x2276   :  { %5559 = vadd.xlane.f32.xlu1 %v5558_v4 }
0x22d8   :  { %v5381_v35 = vpop.xlane.xlu0 %5380 }
0x22d9   :  { %vm5382_vm11 = vcmp.eq.f32.partialorder %v5379_v42, %v5381_v35 }
0x22da   :  { %v5383_v27 = vsel %vm5382_vm11, %v5378_v36, inf }
0x22db   :  { %5384 = vmin.xlane.f32.xlu2 %v5383_v27 }
0x22e9   :  { %v5560_v23 = vpop.xlane.xlu1 %5559 }
0x22ea   :  { %13346 = vrcp.f32 %v5560_v23  ;;  %v5572_v50 = vand.u32 2147483648, %v5560_v23  ;;  %v5570_v29 = vand.u32 2147483647, %v5560_v23  ;;  %vm5566_vm13 = vweird.f32 %v5560_v23 }
0x22ec   :  { %v5573_v10 = vor.u32 1.1754944e-38, %v5572_v50  ;;  %vm5571_vm1 = vcmp.eq.f32.partialorder %v5570_v29, 8.507059e+37 }
0x22f0   :  { %v13347_v39 = vpop.eup %13346 }
0x22f1   :  { %v5562_v11 = vmul.f32 %v13347_v39, %v5560_v23  ;;  %vm5567_vm12 = vweird.f32 %v13347_v39 }
0x22f2   :  { %vm5568_vm14 = vmor %vm5566_vm13, %vm5567_vm12 }
0x22f3   :  { %v5563_v41 = vsub.f32 1.0, %v5562_v11  ;;  %v5387_v11 = vcvt.f32.s32 %v5381_v35 }
0x22f5   :  { %v5564_v60 = vmul.f32 %v13347_v39, %v5563_v41  ;;  %v5388_v50 = vshll.u32 %v5387_v11, 16  ;;  %v16484_v11 = vld [vmem:[#allocation53_spill] sm:$0xff] }
0x22f7   :  { %v5565_v25 = vadd.f32 %v13347_v39, %v5564_v60 }
0x22f9   :  { %v5569_v30 = vsel %vm5568_vm14, %v13347_v39, %v5565_v25  ;;  %v16476_v39 = vld [vmem:[#allocation45_spill] sm:$0xff] }
0x22fa   :  { %v5574_v12 = vsel %vm5571_vm1, %v5573_v10, %v5569_v30 }
0x22fb   :  { %v5575_v4 = vmul.f32 %v13345_v62, %v5574_v12 }
0x22fd   :  { %v5577_v42 = vsel %vm4003_vm6, %v5575_v4, 0 }
0x22fe   :  { %v5597_v33 = vand.u32 4294901760, %v5577_v42 }
0x2300   :  { %5633 = vmatmul.f32.vlgmr.msra.gmra.mxu1 %v5597_v33  ;;  %v5598_v36 = vsub.f32 %v5577_v42, %v5597_v33  ;;  %v16477_v42 = vld [vmem:[#allocation56_spill] sm:$0xff] }
0x2301   :  { %5854 = vmatpush.msra.mxu1 %v14818_v16 }
0x2302   :  { %5659 = vmatmul.f32.vlgmr.msra.gmra.mxu2 %v5598_v36  ;;  %v5599_v27 = vand.u32 4294901760, %v5598_v36 }
0x2303   :  { %5856 = vmatpush.msra.mxu1 %v14825_v8  ;;  %5883 = vmatpush.msra.mxu2 %v14850_v54 }
0x2304   :  { %5684 = vmatmul.f32.vlgmr.msra.gmra.mxu3 %v5599_v27  ;;  %v5600_v23 = vsub.f32 %v5598_v36, %v5599_v27  ;;  %v16479_v36 = vld [vmem:[#allocation64_spill] sm:$0xff]  ;;  %v16480_v27 = vld [vmem:[#allocation57_spill] sm:$0xff] }
0x2305   :  { %5858 = vmatpush.msra.mxu1 %v14836_v21  ;;  %5887 = vmatpush.msra.mxu2 %v14859_v46 }
0x2306   :  { %5914 = vmatpush.msra.mxu3 %v14818_v16  ;;  %v5601_v62 = vand.u32 4294901760, %v5600_v23  ;;  %v16481_v23 = vld [vmem:[#allocation52_spill] sm:$0xff] }
0x2307   :  { %5860 = vmatpush.msra.mxu1 %v14845_v15  ;;  %5891 = vmatpush.msra.mxu2 %v14870_v32 }
0x2308   :  { %5916 = vmatpush.msra.mxu3 %v14825_v8  ;;  %5602 = vmatmul.f32.vlgmr.msra.gmra.mxu0 %v5601_v62  ;;  %v16482_v62 = vld [vmem:[#allocation36_spill] sm:$0xff] }
0x2309   :  { %5734 = vmatmul.f32.vlgmr.msrb.gmra.mxu1 %v5597_v33  ;;  %5825 = vmatpush.msra.mxu0 %v14833_v24 }
0x230a   :  { %5895 = vmatpush.msra.mxu2 %v14879_v17  ;;  %5918 = vmatpush.msra.mxu3 %v14836_v21 }
0x230b   :  { %5828 = vmatpush.msra.mxu0 %v14841_v20  ;;  %5972 = vmatpush.msrb.mxu1 %v16449_v55 }
0x230c   :  { %5920 = vmatpush.msra.mxu3 %v14845_v15 }
0x230d   :  { %5831 = vmatpush.msra.mxu0 %v14854_v34  ;;  %5978 = vmatpush.msrb.mxu1 %v16450_v38 }
0x230f   :  { %5834 = vmatpush.msra.mxu0 %v14864_v19  ;;  %5984 = vmatpush.msrb.mxu1 %v16451_v28 }
0x2310   :  { %5711 = vmatmul.f32.vlgmr.msrb.gmra.mxu0 %v5597_v33  ;;  %v16478_v33 = vld [vmem:[#allocation34_spill] sm:$0xff] }
0x2311   :  { %5939 = vmatpush.msrb.mxu0 %v16452_v37  ;;  %5990 = vmatpush.msrb.mxu1 %v16476_v39 }
0x2313   :  { %5941 = vmatpush.msrb.mxu0 %v16454_v14 }
0x2315   :  { %5943 = vmatpush.msrb.mxu0 %v16455_v5 }
0x2317   :  { %5945 = vmatpush.msrb.mxu0 %v16456_v48 }
0x234e   :  { %v5385_v41 = vpop.xlane.xlu2 %5384 }
0x234f   :  { %v5386_v60 = vcvt.f32.s32 %v5385_v41  ;;  %v16485_v41 = vld [vmem:[#allocation59_spill] sm:$0xff] }
0x2351   :  { %v5389_v29 = vadd.s32 %v5388_v50, %v5386_v60  ;;  %v16486_v50 = vld [vmem:[#allocation38_spill] sm:$0xff] }
0x2352   :  { %v16487_v60 = vld [vmem:[#allocation54_spill] sm:$0xff] }
0x2353   :  { %vm5390_vm2 = vcmp.eq.s32.totalorder %v14918_v40, %v5389_v29  ;;  %v16488_v29 = vld [vmem:[#allocation65_spill] sm:$0xff] }
0x2354   :  { %v13184_v25 = vsel %vm5390_vm2, 1.0, %v16457_v7 }
0x2355   :  { %v5739_v10 = vsel %vm216_vm0, %v13184_v25, 0  ;;  %13185 = vmatmul.msk.f32.vlgmr.msrb.gmra.mxu3 %vm216_vm0, %v13184_v25 }
0x2356   :  { %v5762_v30 = vsub.f32 %v5739_v10, %v5739_v10  ;;  %6039 = vmatpush.msrb.mxu3 %v16452_v37  ;;  %v16489_v10 = vld [vmem:[#allocation55_spill] sm:$0xff] }
0x2358   :  { %5837 = vmatmul.f32.vlgmr.msra.gmra.mxu0 %v5762_v30  ;;  %v5763_v12 = vand.u32 4294901760, %v5762_v30  ;;  %6041 = vmatpush.msrb.mxu3 %v16454_v14 }
0x2359   :  { %6068 = vmatpush.msra.mxu0 %v16458_v18 }
0x235a   :  { %5864 = vmatmul.f32.vlgmr.msra.gmra.mxu1 %v5763_v12  ;;  %v5764_v35 = vsub.f32 %v5762_v30, %v5763_v12  ;;  %6043 = vmatpush.msrb.mxu3 %v16455_v5  ;;  %v16492_v30 = vld [vmem:[#allocation67_spill] sm:$0xff]  ;;  %v16493_v12 = vld [vmem:[#allocation46_spill] sm:$0xff] }
0x235b   :  { %6072 = vmatpush.msra.mxu0 %v16459_v6  ;;  %6099 = vmatpush.msra.mxu1 %v16452_v37 }
0x235c   :  { %v5765_v4 = vand.u32 4294901760, %v5764_v35  ;;  %6045 = vmatpush.msrb.mxu3 %v16456_v48  ;;  %v16495_v35 = vld [vmem:[#allocation61_spill] sm:$0xff] }
0x235d   :  { %13187 = vmatmul.msk.f32.vlgmr.msra.gmra.mxu3 %vm216_vm0, %v13184_v25  ;;  %6076 = vmatpush.msra.mxu0 %v16460_v9 }
0x235e   :  { %5766 = vmatmul.f32.vlgmr.msrb.gmra.mxu2 %v5765_v4  ;;  %6101 = vmatpush.msra.mxu1 %v16454_v14  ;;  %v16496_v4 = vld [vmem:[#allocation62_spill] sm:$0xff] }
0x235f   :  { %6080 = vmatpush.msra.mxu0 %v16461_v22  ;;  %6010 = vmatpush.msrb.mxu2 %v16462_v3 }
0x2360   :  { %5951 = vmatmul.f32.vlgmr.msrb.gmra.mxu0 %v15031_v63  ;;  %6103 = vmatpush.msra.mxu1 %v16455_v5  ;;  %v16483_v63 = vld [vmem:[#allocation58_spill] sm:$0xff] }
0x2361   :  { %6239 = vmatpush.msrb.mxu0 %v16477_v42  ;;  %6013 = vmatpush.msrb.mxu2 %v16478_v33 }
0x2362   :  { %5992 = vmatmul.f32.vlgmr.msrb.gmra.mxu1 %v15014_v47  ;;  %6201 = vmatpush.msra.mxu3 %v16479_v36 }
0x2363   :  { %6105 = vmatpush.msra.mxu1 %v16456_v48  ;;  %6242 = vmatpush.msrb.mxu0 %v16480_v27 }
0x2364   :  { %6016 = vmatpush.msrb.mxu2 %v16482_v62  ;;  %6207 = vmatpush.msra.mxu3 %v16488_v29 }
0x2365   :  { %6268 = vmatpush.msrb.mxu1 %v16481_v23  ;;  %6049 = vmatmul.f32.vlgmr.msrb.gmra.mxu3 %v15023_v49  ;;  %v16490_v49 = vld [vmem:[#allocation66_spill] sm:$0xff] }
0x2366   :  { %6245 = vmatpush.msrb.mxu0 %v16483_v63  ;;  %13186 = vmatmul.msk.f32.vlgmr.msra.gmra.mxu2 %vm216_vm0, %v13184_v25  ;;  %v16491_v25 = vld [vmem:[#allocation43_spill] sm:$0xff] }
0x2367   :  { %6270 = vmatpush.msrb.mxu1 %v16484_v11  ;;  %6019 = vmatpush.msrb.mxu2 %v16486_v50 }
0x2368   :  { %6248 = vmatpush.msrb.mxu0 %v16485_v41  ;;  %6213 = vmatpush.msra.mxu3 %v16490_v49 }
0x2369   :  { %6272 = vmatpush.msrb.mxu1 %v16487_v60  ;;  %6082 = vmatmul.f32.vlgmr.msra.gmra.mxu0 %v15014_v47 }
0x236a   :  { %6379 = vmatpush.xpose.msra.mxu0 %v14571_v56  ;;  %6168 = vmatpush.msra.mxu2 %v16481_v23 }
0x236b   :  { %6274 = vmatpush.msrb.mxu1 %v16489_v10  ;;  %6219 = vmatpush.msra.mxu3 %v16492_v30 }
0x236c   :  { %6107 = vmatmul.f32.vlgmr.msra.gmra.mxu1 %v15014_v47  ;;  %6170 = vmatpush.msra.mxu2 %v16484_v11  ;;  %v16494_v47 = vld [vmem:[#allocation60_spill] sm:$0xff] }
0x236d   :  { %6410 = vmatpush.xpose.msra.mxu1 %v16491_v25  ;;  %6328 = vmatpush.msrb.mxu3 %v16481_v23 }
0x236e   :  { %6381 = vmatpush.xpose.msra.mxu0 %v14551_v59  ;;  %6022 = vmatmul.f32.vlgmr.msrb.gmra.mxu2 %v15017_v51  ;;  %v16497_v51 = vld [vmem:[#allocation63_spill] sm:$0xff] }
0x236f   :  { %6172 = vmatpush.msra.mxu2 %v16487_v60  ;;  %6330 = vmatpush.msrb.mxu3 %v16484_v11 }
0x2371   :  { %6416 = vmatpush.xpose.msra.mxu1 %v16493_v12  ;;  %6174 = vmatpush.msra.mxu2 %v16489_v10 }
0x2372   :  { %6332 = vmatpush.msrb.mxu3 %v16487_v60 }
0x2373   :  { %6297 = vmatpush.msrb.mxu2 %v16494_v47 }
0x2374   :  { %6334 = vmatpush.msrb.mxu3 %v16489_v10 }
0x2375   :  { %6301 = vmatpush.msrb.mxu2 %v16495_v35 }
0x2377   :  { %6305 = vmatpush.msrb.mxu2 %v16496_v4 }
0x2379   :  { %6309 = vmatpush.msrb.mxu2 %v16497_v51 }
0x237d   :  { %v5634_v25 = vpop.f32.mrf.mxu1 }
0x2385   :  { %v5603_v30 = vpop.f32.mrf.mxu0  ;;  %v5660_v12 = vpop.f32.mrf.mxu2 }
0x2386   :  { %v5635_v49 = vadd.f32 %v5634_v25, %v5603_v30  ;;  %v5735_v11 = vpop.f32.mrf.mxu1 }
0x2387   :  { %v5685_v29 = vpop.f32.mrf.mxu3 }
0x2388   :  { %v5661_v50 = vadd.f32 %v5660_v12, %v5635_v49 }
0x238a   :  { %v5686_v63 = vadd.f32 %v5685_v29, %v5661_v50 }
0x238d   :  { %v5712_v41 = vpop.f32.mrf.mxu0 }
0x238e   :  { %v5713_v60 = vadd.f32 %v5712_v41, %v5686_v63 }
0x2390   :  { %v5736_v10 = vadd.f32 %v5735_v11, %v5713_v60 }
0x23d5   :  { %v5838_v47 = vpop.f32.mrf.mxu0 }
0x23d7   :  { %v5865_v27 = vpop.f32.mrf.mxu1 }
0x23d8   :  { %v5808_v62 = vpop.f32.mrf.mxu3 }
0x23dd   :  { %v5952_v51 = vpop.f32.mrf.mxu0 }
0x23df   :  { %v5993_v3 = vpop.f32.mrf.mxu1 }
0x23e0   :  { %v5923_v4 = vpop.f32.mrf.mxu3  ;;  %v5994_v25 = vadd.f32 %v5993_v3, %v5952_v51 }
0x23e1   :  { %v5767_v23 = vpop.f32.mrf.mxu2 }
0x23e2   :  { %v5768_v35 = vadd.f32 %v5767_v23, %v5736_v10  ;;  %v15157_v23 = vld [vmem:[#allocation16] sm:$0x1] }
0x23e4   :  { %v5809_v36 = vadd.f32 %v5808_v62, %v5768_v35 }
0x23e6   :  { %v5839_v42 = vadd.f32 %v5838_v47, %v5809_v36  ;;  %v6083_v63 = vpop.f32.mrf.mxu0 }
0x23e8   :  { %v5866_v30 = vadd.f32 %v5865_v27, %v5839_v42  ;;  %v6050_v12 = vpop.f32.mrf.mxu3 }
0x23e9   :  { %v5898_v33 = vpop.f32.mrf.mxu2  ;;  %v6108_v29 = vpop.f32.mrf.mxu1 }
0x23ea   :  { %v5899_v9 = vadd.f32 %v5898_v33, %v5866_v30 }
0x23ec   :  { %v5924_v6 = vadd.f32 %v5923_v4, %v5899_v9 }
0x23f1   :  { %v6023_v22 = vpop.f32.mrf.mxu2 }
0x23f2   :  { %v6024_v49 = vadd.f32 %v6023_v22, %v5994_v25 }
0x23f4   :  { %v6051_v50 = vadd.f32 %v6050_v12, %v6024_v49 }
0x23f6   :  { %v6084_v41 = vadd.f32 %v6083_v63, %v6051_v50 }
0x23f8   :  { %v6109_v11 = vadd.f32 %v6108_v29, %v6084_v41 }
0x23fa   :  { %v6111_v60 = vadd.f32 %v6109_v11, %v5924_v6 }
0x23fc   :  { %v6112_v62 = vadd.f32 %v15157_v23, %v6111_v60 }
0x23fe   :  { %13348 = vtanh.f32 %v6112_v62  ;;  %v13188_v3 = vmul.f32 -1.442695, %v6112_v62 }
0x2400   :  { %13350 = vpow2.f32 %v13188_v3 }
0x2404   :  { %v13349_v36 = vpop.eup %13348 }
0x2405   :  { %6135 = vrot.lane.b32.xlu1 %v13349_v36, %s13729_s14 }
0x2406   :  { %v13351_v22 = vpop.eup %13350 }
0x2407   :  { %v6116_v42 = vadd.f32 1.0, %v13351_v22 }
0x2409   :  { %13352 = vrcp.f32 %v6116_v42  ;;  %v6128_v6 = vand.u32 2147483648, %v6116_v42  ;;  %vm6122_vm4 = vweird.f32 %v6116_v42  ;;  %v6126_v35 = vand.u32 2147483647, %v6116_v42 }
0x240b   :  { %v6129_v51 = vor.u32 1.1754944e-38, %v6128_v6  ;;  %vm6127_vm8 = vcmp.eq.f32.partialorder %v6126_v35, 8.507059e+37  ;;  %v15221_v35 = vld [vmem:[#allocation20] sm:$0x1] }
0x240c   :  { %16501 = vst [vmem:[#allocation40_spill] sm:$0xff] %v15221_v35 }
0x240f   :  { %v13353_v33 = vpop.eup %13352 }
0x2410   :  { %v6118_v27 = vmul.f32 %v13353_v33, %v6116_v42  ;;  %vm6123_vm3 = vweird.f32 %v13353_v33 }
0x2411   :  { %vm6124_vm7 = vmor %vm6122_vm4, %vm6123_vm3 }
0x2412   :  { %v6119_v10 = vsub.f32 1.0, %v6118_v27  ;;  %v16499_v27 = vld [vmem:[#allocation51_spill] sm:$0xff] }
0x2414   :  { %v6120_v47 = vmul.f32 %v13353_v33, %v6119_v10  ;;  %v16500_v10 = vld [vmem:[#allocation69_spill] sm:$0xff] }
0x2416   :  { %v6121_v9 = vadd.f32 %v13353_v33, %v6120_v47 }
0x2418   :  { %v6125_v4 = vsel %vm6124_vm7, %v13353_v33, %v6121_v9  ;;  %v16498_v33 = vld [vmem:[#allocation68_spill] sm:$0xff] }
0x2419   :  { %v6130_v30 = vsel %vm6127_vm8, %v6129_v51, %v6125_v4 }
0x241a   :  { %v6133_v12 = vmul.f32 %v6130_v30, %v15008_v26 }
0x2477   :  { %v6136_v25 = vpop.permute.xlu1 %6135 }
0x2478   :  { %v6138_v49 = vmul.f32 %v6136_v25, %v6130_v30 }
0x247a   :  { %6140 = vrot.lane.b32.xlu2 %v6138_v49, %s13730_s15 }
0x24d4   :  { %v6141_v50 = vpop.permute.xlu2 %6140 }
0x24d5   :  { %v15163_v63 = vadd.f32 %v6141_v50, %v6133_v12 }
0x24d7   :  { %13354 = vtanh.f32 %v15163_v63 }
0x24dd   :  { %v13355_v41 = vpop.eup %13354 }
0x24de   :  { %6146 = vrot.lane.b32.xlu0 %v13355_v41, %s13729_s14 }
0x2550   :  { %v6147_v29 = vpop.permute.xlu0 %6146 }
0x2551   :  { %v6149_v11 = vmul.f32 %v6147_v29, %v6130_v30 }
0x2553   :  { %6151 = vrot.lane.b32.xlu1 %v6149_v11, %s13730_s15 }
0x25c5   :  { %v6152_v60 = vpop.permute.xlu1 %6151 }
0x25c6   :  { %v6153_v62 = vsel %vm216_vm0, %v6152_v60, 0 }
0x25c7   :  { %v15169_v36 = vand.u32 4294901760, %v6153_v62 }
0x25c9   :  { %v15172_v3 = vsub.f32 %v6153_v62, %v15169_v36  ;;  %6221 = vmatmul.f32.vlgmr.msra.gmra.mxu3 %v15169_v36 }
0x25ca   :  { %6463 = vmatpush.xpose.msra.mxu3 %v14571_v56 }
0x25cb   :  { %6251 = vmatmul.f32.vlgmr.msrb.gmra.mxu0 %v15172_v3  ;;  %v15178_v26 = vand.u32 4294901760, %v15172_v3 }
0x25cc   :  { %6490 = vmatpush.xpose.msrb.mxu0 %v14592_v61 }
0x25cd   :  { %6278 = vmatmul.f32.vlgmr.msrb.gmra.mxu1 %v15178_v26  ;;  %v6178_v22 = vsub.f32 %v15172_v3, %v15178_v26 }
0x25ce   :  { %6465 = vmatpush.xpose.msra.mxu3 %v14551_v59  ;;  %6515 = vmatpush.xpose.msrb.mxu1 %v14571_v56 }
0x25cf   :  { %v15186_v42 = vand.u32 4294901760, %v6178_v22 }
0x25d0   :  { %6494 = vmatpush.xpose.msrb.mxu0 %v14595_v13 }
0x25d1   :  { %6180 = vmatmul.f32.vlgmr.msra.gmra.mxu2 %v15186_v42  ;;  %6336 = vmatmul.f32.vlgmr.msrb.gmra.mxu3 %v15169_v36 }
0x25d2   :  { %6438 = vmatpush.xpose.msra.mxu2 %v14579_v44  ;;  %6517 = vmatpush.xpose.msrb.mxu1 %v14551_v59 }
0x25d3   :  { %6596 = vmatpush.msrb.mxu3 %v14678_v53  ;;  %6387 = vmatmul.f32.vlgmr.msra.gmra.mxu0 %v15186_v42 }
0x25d4   :  { %6624 = vmatpush.msra.mxu0 %v14652_v1 }
0x25d5   :  { %6602 = vmatpush.msrb.mxu3 %v14688_v31  ;;  %6418 = vmatmul.f32.vlgmr.msra.gmra.mxu1 %v15169_v36 }
0x25d6   :  { %6441 = vmatpush.xpose.msra.mxu2 %v14569_v57  ;;  %6627 = vmatpush.msra.mxu0 %v16439_v45 }
0x25d7   :  { %6649 = vmatpush.msra.mxu1 %v16440_v0 }
0x25d9   :  { %6651 = vmatpush.msra.mxu1 %v16468_v52  ;;  %6311 = vmatmul.f32.vlgmr.msrb.gmra.mxu2 %v15169_v36 }
0x25da   :  { %6469 = vmatmul.f32.vlgmr.msra.gmra.mxu3 %v15178_v26  ;;  %6565 = vmatpush.msrb.mxu2 %v16440_v0 }
0x25db   :  { %6701 = vmatpush.msra.mxu3 %v16440_v0  ;;  %6496 = vmatmul.f32.vlgmr.msrb.gmra.mxu0 %v15169_v36 }
0x25dc   :  { %6567 = vmatpush.msrb.mxu2 %v16468_v52  ;;  %6725 = vmatpush.msrb.mxu0 %v14818_v16 }
0x25dd   :  { %6703 = vmatpush.msra.mxu3 %v16468_v52  ;;  %6519 = vmatmul.f32.vlgmr.msrb.gmra.mxu1 %v15169_v36 }
0x25de   :  { %6727 = vmatpush.msrb.mxu0 %v14825_v8  ;;  %6758 = vmatpush.msrb.mxu1 %v16469_v2 }
0x25e0   :  { %6729 = vmatpush.msrb.mxu0 %v14836_v21  ;;  %6764 = vmatpush.msrb.mxu1 %v16470_v58 }
0x25e1   :  { %6444 = vmatmul.f32.vlgmr.msra.gmra.mxu2 %v15172_v3 }
0x25e2   :  { %6676 = vmatpush.msra.mxu2 %v16471_v43  ;;  %6731 = vmatpush.msrb.mxu0 %v14845_v15 }
0x25e3   :  { %6770 = vmatpush.msrb.mxu1 %v16498_v33 }
0x25e4   :  { %6680 = vmatpush.msra.mxu2 %v16499_v27 }
0x25e5   :  { %6776 = vmatpush.msrb.mxu1 %v16500_v10 }
0x2648   :  { %v6252_v9 = vpop.f32.mrf.mxu0 }
0x264a   :  { %v6279_v51 = vpop.f32.mrf.mxu1 }
0x264c   :  { %v6222_v47 = vpop.f32.mrf.mxu3 }
0x2650   :  { %v6388_v29 = vpop.f32.mrf.mxu0 }
0x2652   :  { %v6419_v60 = vpop.f32.mrf.mxu1 }
0x2653   :  { %v6420_v22 = vadd.f32 %v6419_v60, %v6388_v29 }
0x2654   :  { %v6181_v6 = vpop.f32.mrf.mxu2  ;;  %v6337_v12 = vpop.f32.mrf.mxu3 }
0x2655   :  { %v6182_v4 = vadd.f32 %v15221_v35, %v6181_v6 }
0x2657   :  { %v6223_v25 = vadd.f32 %v6222_v47, %v6182_v4 }
0x2658   :  { %v6497_v4 = vpop.f32.mrf.mxu0 }
0x2659   :  { %v6253_v30 = vadd.f32 %v6252_v9, %v6223_v25 }
0x265a   :  { %v6520_v25 = vpop.f32.mrf.mxu1 }
0x265b   :  { %v6280_v49 = vadd.f32 %v6279_v51, %v6253_v30 }
0x265c   :  { %v6312_v50 = vpop.f32.mrf.mxu2 }
0x265d   :  { %v6313_v41 = vadd.f32 %v6312_v50, %v6280_v49  ;;  %v6470_v47 = vpop.f32.mrf.mxu3 }
0x265f   :  { %v6338_v11 = vadd.f32 %v6337_v12, %v6313_v41 }
0x2661   :  { %6340 = vst.msk [vmem:[%s16264_s12 + $0x2] sm:$0x1] %vm1048_vm5, %v6338_v11  ;;  %v6341_v62 = vsel %vm1048_vm5, %v6338_v11, -inf }
0x2662   :  { %6342 = vmax.xlane.f32.xlu2 %v6341_v62 }
0x2664   :  { %v6445_v6 = vpop.f32.mrf.mxu2 }
0x2665   :  { %v6446_v35 = vadd.f32 %v6445_v6, %v6420_v22 }
0x2667   :  { %v6471_v9 = vadd.f32 %v6470_v47, %v6446_v35 }
0x2669   :  { %v6498_v51 = vadd.f32 %v6497_v4, %v6471_v9 }
0x266b   :  { %v6521_v30 = vadd.f32 %v6520_v25, %v6498_v51 }
0x266d   :  { %v6523_v49 = vsel %vm3793_vm15, %v6521_v30, -inf }
0x266e   :  { %6524 = vmax.xlane.f32.xlu0 %v6523_v49 }
0x26d5   :  { %v6343_v12 = vpop.xlane.xlu2 %6342 }
0x26d6   :  { %vm6344_vm9 = vcmp.eq.f32.partialorder %v6338_v11, %v6343_v12 }
0x26d7   :  { %v6345_v50 = vsel %vm6344_vm9, %v14918_v40, 32 }
0x26d8   :  { %v6346_v41 = vsel %vm1048_vm5, %v6345_v50, 2147483647 }
0x26d9   :  { %v6348_v10 = vshra.s32 %v6346_v41, 16  ;;  %v6347_v47 = vand.u32 65535, %v6346_v41 }
0x26db   :  { %v6350_v62 = vcvt.s32.f32 %v6348_v10  ;;  %v6349_v4 = vcvt.s32.f32 %v6347_v47 }
0x26dd   :  { %6351 = vmin.xlane.f32.xlu1 %v6350_v62 }
0x26e1   :  { %v6525_v29 = vpop.xlane.xlu0 %6524 }
0x26e2   :  { %v6526_v60 = vsub.f32 %v6521_v30, %v6525_v29 }
0x26e4   :  { %v6527_v22 = vmul.f32 1.442695, %v6526_v60 }
0x26e6   :  { %13356 = vpow2.f32 %v6527_v22 }
0x26ec   :  { %v13357_v35 = vpop.eup %13356 }
0x26ed   :  { %v6529_v6 = vsel %vm3793_vm15, %v13357_v35, 0.0 }
0x26ee   :  { %6530 = vadd.xlane.f32.xlu2 %v6529_v6 }
0x2750   :  { %v6352_v9 = vpop.xlane.xlu1 %6351 }
0x2751   :  { %vm6353_vm10 = vcmp.eq.f32.partialorder %v6350_v62, %v6352_v9 }
0x2752   :  { %v6354_v11 = vsel %vm6353_vm10, %v6349_v4, inf }
0x2753   :  { %6355 = vmin.xlane.f32.xlu0 %v6354_v11 }
0x2761   :  { %v6531_v51 = vpop.xlane.xlu2 %6530 }
0x2762   :  { %13358 = vrcp.f32 %v6531_v51  ;;  %v6543_v12 = vand.u32 2147483648, %v6531_v51  ;;  %v6541_v30 = vand.u32 2147483647, %v6531_v51  ;;  %vm6537_vm12 = vweird.f32 %v6531_v51 }
0x2764   :  { %v6544_v60 = vor.u32 1.1754944e-38, %v6543_v12  ;;  %vm6542_vm14 = vcmp.eq.f32.partialorder %v6541_v30, 8.507059e+37 }
0x2768   :  { %v13359_v25 = vpop.eup %13358 }
0x2769   :  { %v6533_v49 = vmul.f32 %v13359_v25, %v6531_v51  ;;  %vm6538_vm11 = vweird.f32 %v13359_v25 }
0x276a   :  { %vm6539_vm13 = vmor %vm6537_vm12, %vm6538_vm11 }
0x276b   :  { %v6534_v10 = vsub.f32 1.0, %v6533_v49 }
0x276d   :  { %v6535_v50 = vmul.f32 %v13359_v25, %v6534_v10 }
0x276f   :  { %v6536_v29 = vadd.f32 %v13359_v25, %v6535_v50 }
0x2771   :  { %v6540_v22 = vsel %vm6539_vm13, %v13359_v25, %v6536_v29  ;;  %v6358_v25 = vcvt.f32.s32 %v6352_v9 }
0x2772   :  { %v6545_v41 = vsel %vm6542_vm14, %v6544_v60, %v6540_v22 }
0x2773   :  { %v6546_v6 = vmul.f32 %v13357_v35, %v6545_v41  ;;  %v6359_v10 = vshll.u32 %v6358_v25, 16  ;;  %v16502_v41 = vld [vmem:[#allocation37_spill] sm:$0xff] }
0x2774   :  { %v16509_v25 = vld [vmem:[#allocation57_spill] sm:$0xff] }
0x2775   :  { %v6548_v62 = vsel %vm4003_vm6, %v6546_v6, 0 }
0x2776   :  { %v6568_v47 = vand.u32 4294901760, %v6548_v62 }
0x2778   :  { %6604 = vmatmul.f32.vlgmr.msrb.gmra.mxu3 %v6568_v47  ;;  %v6569_v4 = vsub.f32 %v6548_v62, %v6568_v47  ;;  %v16503_v62 = vld [vmem:[#allocation39_spill] sm:$0xff] }
0x2779   :  { %6825 = vmatpush.msrb.mxu3 %v14818_v16 }
0x277a   :  { %6630 = vmatmul.f32.vlgmr.msra.gmra.mxu0 %v6569_v4  ;;  %v6570_v11 = vand.u32 4294901760, %v6569_v4 }
0x277b   :  { %6827 = vmatpush.msrb.mxu3 %v14825_v8  ;;  %6854 = vmatpush.msra.mxu0 %v14850_v54 }
0x277c   :  { %6655 = vmatmul.f32.vlgmr.msra.gmra.mxu1 %v6570_v11  ;;  %v6571_v51 = vsub.f32 %v6569_v4, %v6570_v11  ;;  %v16505_v4 = vld [vmem:[#allocation30_spill] sm:$0xff]  ;;  %v16506_v11 = vld [vmem:[#allocation56_spill] sm:$0xff] }
0x277d   :  { %6829 = vmatpush.msrb.mxu3 %v14836_v21  ;;  %6858 = vmatpush.msra.mxu0 %v14859_v46 }
0x277e   :  { %6885 = vmatpush.msra.mxu1 %v14818_v16  ;;  %v6572_v35 = vand.u32 4294901760, %v6571_v51  ;;  %v16507_v51 = vld [vmem:[#allocation34_spill] sm:$0xff] }
0x277f   :  { %6831 = vmatpush.msrb.mxu3 %v14845_v15  ;;  %6862 = vmatpush.msra.mxu0 %v14870_v32 }
0x2780   :  { %6887 = vmatpush.msra.mxu1 %v14825_v8  ;;  %6573 = vmatmul.f32.vlgmr.msrb.gmra.mxu2 %v6572_v35  ;;  %v16508_v35 = vld [vmem:[#allocation64_spill] sm:$0xff] }
0x2781   :  { %6705 = vmatmul.f32.vlgmr.msra.gmra.mxu3 %v6568_v47  ;;  %6796 = vmatpush.msrb.mxu2 %v14833_v24 }
0x2782   :  { %6866 = vmatpush.msra.mxu0 %v14879_v17  ;;  %6889 = vmatpush.msra.mxu1 %v14836_v21 }
0x2783   :  { %6799 = vmatpush.msrb.mxu2 %v14841_v20  ;;  %6943 = vmatpush.msra.mxu3 %v16449_v55 }
0x2784   :  { %6891 = vmatpush.msra.mxu1 %v14845_v15 }
0x2785   :  { %6802 = vmatpush.msrb.mxu2 %v14854_v34  ;;  %6949 = vmatpush.msra.mxu3 %v16450_v38 }
0x2787   :  { %6805 = vmatpush.msrb.mxu2 %v14864_v19  ;;  %6955 = vmatpush.msra.mxu3 %v16451_v28 }
0x2788   :  { %6682 = vmatmul.f32.vlgmr.msra.gmra.mxu2 %v6568_v47  ;;  %v16504_v47 = vld [vmem:[#allocation41_spill] sm:$0xff] }
0x2789   :  { %6910 = vmatpush.msra.mxu2 %v16452_v37  ;;  %6961 = vmatpush.msra.mxu3 %v16476_v39 }
0x278b   :  { %6912 = vmatpush.msra.mxu2 %v16454_v14 }
0x278d   :  { %6914 = vmatpush.msra.mxu2 %v16455_v5 }
0x278f   :  { %6916 = vmatpush.msra.mxu2 %v16456_v48 }
0x27c6   :  { %v6356_v49 = vpop.xlane.xlu0 %6355 }
0x27c7   :  { %v6357_v12 = vcvt.f32.s32 %v6356_v49  ;;  %v16510_v49 = vld [vmem:[#allocation52_spill] sm:$0xff] }
0x27c9   :  { %v6360_v50 = vadd.s32 %v6359_v10, %v6357_v12  ;;  %v16511_v10 = vld [vmem:[#allocation36_spill] sm:$0xff]  ;;  %v16513_v12 = vld [vmem:[#allocation53_spill] sm:$0xff] }
0x27cb   :  { %vm6361_vm1 = vcmp.eq.s32.totalorder %v14918_v40, %v6360_v50  ;;  %v16514_v50 = vld [vmem:[#allocation59_spill] sm:$0xff] }
0x27cc   :  { %v13189_v30 = vsel %vm6361_vm1, 1.0, %v16457_v7 }
0x27cd   :  { %v6710_v29 = vsel %vm216_vm0, %v13189_v30, 0  ;;  %13190 = vmatmul.msk.f32.vlgmr.msrb.gmra.mxu1 %vm216_vm0, %v13189_v30 }
0x27ce   :  { %v6733_v60 = vsub.f32 %v6710_v29, %v6710_v29  ;;  %7010 = vmatpush.msrb.mxu1 %v16452_v37  ;;  %v16515_v29 = vld [vmem:[#allocation38_spill] sm:$0xff] }
0x27d0   :  { %6808 = vmatmul.f32.vlgmr.msrb.gmra.mxu2 %v6733_v60  ;;  %v6734_v22 = vand.u32 4294901760, %v6733_v60  ;;  %7012 = vmatpush.msrb.mxu1 %v16454_v14 }
0x27d1   :  { %7039 = vmatpush.msrb.mxu2 %v16458_v18 }
0x27d2   :  { %6835 = vmatmul.f32.vlgmr.msrb.gmra.mxu3 %v6734_v22  ;;  %v6735_v9 = vsub.f32 %v6733_v60, %v6734_v22  ;;  %7014 = vmatpush.msrb.mxu1 %v16455_v5  ;;  %v16516_v60 = vld [vmem:[#allocation54_spill] sm:$0xff]  ;;  %v16517_v22 = vld [vmem:[#allocation65_spill] sm:$0xff] }
0x27d3   :  { %7043 = vmatpush.msrb.mxu2 %v16502_v41  ;;  %7070 = vmatpush.msrb.mxu3 %v16452_v37 }
0x27d4   :  { %v6736_v6 = vand.u32 4294901760, %v6735_v9  ;;  %7016 = vmatpush.msrb.mxu1 %v16456_v48  ;;  %v16518_v9 = vld [vmem:[#allocation55_spill] sm:$0xff] }
0x27d5   :  { %13192 = vmatmul.msk.f32.vlgmr.msra.gmra.mxu1 %vm216_vm0, %v13189_v30  ;;  %7047 = vmatpush.msrb.mxu2 %v16503_v62 }
0x27d6   :  { %6737 = vmatmul.f32.vlgmr.msrb.gmra.mxu0 %v6736_v6  ;;  %7072 = vmatpush.msrb.mxu3 %v16454_v14  ;;  %v16521_v6 = vld [vmem:[#allocation67_spill] sm:$0xff] }
0x27d7   :  { %7051 = vmatpush.msrb.mxu2 %v16504_v47  ;;  %6981 = vmatpush.msrb.mxu0 %v16505_v4 }
0x27d8   :  { %6922 = vmatmul.f32.vlgmr.msra.gmra.mxu2 %v15186_v42  ;;  %7074 = vmatpush.msrb.mxu3 %v16455_v5  ;;  %v16512_v42 = vld [vmem:[#allocation58_spill] sm:$0xff] }
0x27d9   :  { %7210 = vmatpush.msra.mxu2 %v16506_v11  ;;  %6984 = vmatpush.msrb.mxu0 %v16507_v51 }
0x27da   :  { %6963 = vmatmul.f32.vlgmr.msra.gmra.mxu3 %v15169_v36  ;;  %7172 = vmatpush.msra.mxu1 %v16508_v35 }
0x27db   :  { %7076 = vmatpush.msrb.mxu3 %v16456_v48  ;;  %7213 = vmatpush.msra.mxu2 %v16509_v25 }
0x27dc   :  { %6987 = vmatpush.msrb.mxu0 %v16511_v10  ;;  %7178 = vmatpush.msra.mxu1 %v16517_v22  ;;  %v16522_v22 = vld [vmem:[#allocation46_spill] sm:$0xff] }
0x27dd   :  { %7239 = vmatpush.msra.mxu3 %v16510_v49  ;;  %7020 = vmatmul.f32.vlgmr.msrb.gmra.mxu1 %v15178_v26  ;;  %v16519_v26 = vld [vmem:[#allocation66_spill] sm:$0xff] }
0x27de   :  { %7216 = vmatpush.msra.mxu2 %v16512_v42  ;;  %13191 = vmatmul.msk.f32.vlgmr.msra.gmra.mxu0 %vm216_vm0, %v13189_v30  ;;  %v16520_v30 = vld [vmem:[#allocation43_spill] sm:$0xff] }
0x27df   :  { %7241 = vmatpush.msra.mxu3 %v16513_v12  ;;  %6990 = vmatpush.msrb.mxu0 %v16515_v29 }
0x27e0   :  { %7219 = vmatpush.msra.mxu2 %v16514_v50  ;;  %7184 = vmatpush.msra.mxu1 %v16519_v26 }
0x27e1   :  { %7243 = vmatpush.msra.mxu3 %v16516_v60  ;;  %7053 = vmatmul.f32.vlgmr.msrb.gmra.mxu2 %v15169_v36 }
0x27e2   :  { %7350 = vmatpush.xpose.msrb.mxu2 %v14571_v56  ;;  %7139 = vmatpush.msra.mxu0 %v16510_v49 }
0x27e3   :  { %7245 = vmatpush.msra.mxu3 %v16518_v9  ;;  %7190 = vmatpush.msra.mxu1 %v16521_v6  ;;  %v16525_v6 = vld [vmem:[#allocation62_spill] sm:$0xff] }
0x27e4   :  { %7078 = vmatmul.f32.vlgmr.msrb.gmra.mxu3 %v15169_v36  ;;  %7141 = vmatpush.msra.mxu0 %v16513_v12  ;;  %v16523_v36 = vld [vmem:[#allocation60_spill] sm:$0xff] }
0x27e5   :  { %7381 = vmatpush.xpose.msrb.mxu3 %v16520_v30  ;;  %7299 = vmatpush.msrb.mxu1 %v16510_v49  ;;  %v16524_v30 = vld [vmem:[#allocation61_spill] sm:$0xff] }
0x27e6   :  { %7352 = vmatpush.xpose.msrb.mxu2 %v14551_v59  ;;  %6993 = vmatmul.f32.vlgmr.msrb.gmra.mxu0 %v15172_v3  ;;  %v16526_v3 = vld [vmem:[#allocation63_spill] sm:$0xff] }
0x27e7   :  { %7143 = vmatpush.msra.mxu0 %v16516_v60  ;;  %7301 = vmatpush.msrb.mxu1 %v16513_v12 }
0x27e9   :  { %7387 = vmatpush.xpose.msrb.mxu3 %v16522_v22  ;;  %7145 = vmatpush.msra.mxu0 %v16518_v9 }
0x27ea   :  { %7303 = vmatpush.msrb.mxu1 %v16516_v60 }
0x27eb   :  { %7268 = vmatpush.msrb.mxu0 %v16523_v36 }
0x27ec   :  { %7305 = vmatpush.msrb.mxu1 %v16518_v9 }
0x27ed   :  { %7272 = vmatpush.msrb.mxu0 %v16524_v30 }
0x27ef   :  { %7276 = vmatpush.msrb.mxu0 %v16525_v6 }
0x27f1   :  { %7280 = vmatpush.msrb.mxu0 %v16526_v3 }
0x27f7   :  { %v6631_v22 = vpop.f32.mrf.mxu0 }
0x27f9   :  { %v6656_v42 = vpop.f32.mrf.mxu1 }
0x27fb   :  { %v6605_v29 = vpop.f32.mrf.mxu3 }
0x2803   :  { %v6574_v26 = vpop.f32.mrf.mxu2 }
0x2804   :  { %v6606_v50 = vadd.f32 %v6605_v29, %v6574_v26  ;;  %v6706_v49 = vpop.f32.mrf.mxu3 }
0x2806   :  { %v6632_v12 = vadd.f32 %v6631_v22, %v6606_v50 }
0x2808   :  { %v6657_v25 = vadd.f32 %v6656_v42, %v6632_v12 }
0x280b   :  { %v6683_v10 = vpop.f32.mrf.mxu2 }
0x280c   :  { %v6684_v60 = vadd.f32 %v6683_v10, %v6657_v25 }
0x280e   :  { %v6707_v9 = vadd.f32 %v6706_v49, %v6684_v60 }
0x284a   :  { %v6779_v35 = vpop.f32.mrf.mxu1 }
0x2852   :  { %v6894_v6 = vpop.f32.mrf.mxu1 }
0x2853   :  { %v6738_v36 = vpop.f32.mrf.mxu0  ;;  %v6809_v51 = vpop.f32.mrf.mxu2 }
0x2854   :  { %v6739_v30 = vadd.f32 %v6738_v36, %v6707_v9 }
0x2855   :  { %v6836_v11 = vpop.f32.mrf.mxu3 }
0x2856   :  { %v6780_v4 = vadd.f32 %v6779_v35, %v6739_v30 }
0x2858   :  { %v6810_v62 = vadd.f32 %v6809_v51, %v6780_v4 }
0x285a   :  { %v6837_v29 = vadd.f32 %v6836_v11, %v6810_v62  ;;  %v7021_v22 = vpop.f32.mrf.mxu1 }
0x285b   :  { %v6869_v47 = vpop.f32.mrf.mxu0  ;;  %v6923_v3 = vpop.f32.mrf.mxu2 }
0x285c   :  { %v6870_v7 = vadd.f32 %v6869_v47, %v6837_v29 }
0x285d   :  { %v6964_v41 = vpop.f32.mrf.mxu3 }
0x285e   :  { %v6965_v26 = vadd.f32 %v6964_v41, %v6923_v3  ;;  %v6895_v48 = vadd.f32 %v6894_v6, %v6870_v7 }
0x2863   :  { %v6994_v18 = vpop.f32.mrf.mxu0 }
0x2864   :  { %v6995_v50 = vadd.f32 %v6994_v18, %v6965_v26  ;;  %v7054_v25 = vpop.f32.mrf.mxu2 }
0x2866   :  { %v7022_v42 = vadd.f32 %v7021_v22, %v6995_v50 }
0x2867   :  { %v7079_v12 = vpop.f32.mrf.mxu3 }
0x2868   :  { %v7055_v10 = vadd.f32 %v7054_v25, %v7022_v42 }
0x286a   :  { %v7080_v49 = vadd.f32 %v7079_v12, %v7055_v10 }
0x286c   :  { %v7082_v60 = vadd.f32 %v7080_v49, %v6895_v48 }
0x286e   :  { %v7083_v35 = vadd.f32 %v15157_v23, %v7082_v60 }
0x2870   :  { %13360 = vtanh.f32 %v7083_v35  ;;  %v13193_v4 = vmul.f32 -1.442695, %v7083_v35 }
0x2872   :  { %13362 = vpow2.f32 %v13193_v4 }
0x2876   :  { %v13361_v9 = vpop.eup %13360 }
0x2877   :  { %7106 = vrot.lane.b32.xlu1 %v13361_v9, %s13729_s14 }
0x2878   :  { %v13363_v41 = vpop.eup %13362 }
0x2879   :  { %v7087_v62 = vadd.f32 1.0, %v13363_v41  ;;  %v16527_v41 = vld [vmem:[#allocation69_spill] sm:$0xff] }
0x287b   :  { %13364 = vrcp.f32 %v7087_v62  ;;  %v7099_v7 = vand.u32 2147483648, %v7087_v62  ;;  %vm7093_vm3 = vweird.f32 %v7087_v62  ;;  %v7097_v48 = vand.u32 2147483647, %v7087_v62 }
0x287d   :  { %v7100_v6 = vor.u32 1.1754944e-38, %v7099_v7  ;;  %vm7098_vm7 = vcmp.eq.f32.partialorder %v7097_v48, 8.507059e+37 }
0x2881   :  { %v13365_v18 = vpop.eup %13364 }
0x2882   :  { %v7089_v47 = vmul.f32 %v13365_v18, %v7087_v62  ;;  %vm7094_vm2 = vweird.f32 %v13365_v18 }
0x2883   :  { %vm7095_vm4 = vmor %vm7093_vm3, %vm7094_vm2 }
0x2884   :  { %v7090_v11 = vsub.f32 1.0, %v7089_v47 }
0x2886   :  { %v7091_v51 = vmul.f32 %v13365_v18, %v7090_v11  ;;  %v16528_v11 = vld [vmem:[#allocation40_spill] sm:$0xff] }
0x2888   :  { %v7092_v30 = vadd.f32 %v13365_v18, %v7091_v51 }
0x288a   :  { %v7096_v23 = vsel %vm7095_vm4, %v13365_v18, %v7092_v30 }
0x288b   :  { %v7101_v3 = vsel %vm7098_vm7, %v7100_v6, %v7096_v23 }
0x288c   :  { %v7104_v26 = vmul.f32 %v7101_v3, %v15163_v63 }
0x28e9   :  { %v7107_v36 = vpop.permute.xlu1 %7106 }
0x28ea   :  { %v7109_v29 = vmul.f32 %v7107_v36, %v7101_v3 }
0x28ec   :  { %7111 = vrot.lane.b32.xlu2 %v7109_v29, %s13730_s15 }
0x2946   :  { %v7112_v50 = vpop.permute.xlu2 %7111 }
0x2947   :  { %v15318_v22 = vadd.f32 %v7112_v50, %v7104_v26 }
0x2949   :  { %13366 = vtanh.f32 %v15318_v22 }
0x294f   :  { %v13367_v42 = vpop.eup %13366 }
0x2950   :  { %7117 = vrot.lane.b32.xlu0 %v13367_v42, %s13729_s14 }
0x29c2   :  { %v7118_v25 = vpop.permute.xlu0 %7117 }
0x29c3   :  { %v7120_v10 = vmul.f32 %v7118_v25, %v7101_v3 }
0x29c5   :  { %7122 = vrot.lane.b32.xlu1 %v7120_v10, %s13730_s15 }
0x2a37   :  { %v7123_v12 = vpop.permute.xlu1 %7122 }
0x2a38   :  { %v7124_v49 = vsel %vm216_vm0, %v7123_v12, 0 }
0x2a39   :  { %v15324_v60 = vand.u32 4294901760, %v7124_v49 }
0x2a3b   :  { %v15327_v35 = vsub.f32 %v7124_v49, %v15324_v60  ;;  %7192 = vmatmul.f32.vlgmr.msra.gmra.mxu1 %v15324_v60 }
0x2a3c   :  { %7434 = vmatpush.xpose.msra.mxu1 %v14571_v56 }
0x2a3d   :  { %7222 = vmatmul.f32.vlgmr.msra.gmra.mxu2 %v15327_v35  ;;  %v15333_v63 = vand.u32 4294901760, %v15327_v35 }
0x2a3e   :  { %7461 = vmatpush.xpose.msra.mxu2 %v14592_v61 }
0x2a3f   :  { %7249 = vmatmul.f32.vlgmr.msra.gmra.mxu3 %v15333_v63  ;;  %v7149_v9 = vsub.f32 %v15327_v35, %v15333_v63 }
0x2a40   :  { %7436 = vmatpush.xpose.msra.mxu1 %v14551_v59  ;;  %7486 = vmatpush.xpose.msra.mxu3 %v14571_v56 }
0x2a41   :  { %v15341_v4 = vand.u32 4294901760, %v7149_v9 }
0x2a42   :  { %7465 = vmatpush.xpose.msra.mxu2 %v14595_v13 }
0x2a43   :  { %7151 = vmatmul.f32.vlgmr.msra.gmra.mxu0 %v15341_v4  ;;  %7307 = vmatmul.f32.vlgmr.msrb.gmra.mxu1 %v15324_v60 }
0x2a44   :  { %7409 = vmatpush.xpose.msra.mxu0 %v14579_v44  ;;  %7488 = vmatpush.xpose.msra.mxu3 %v14551_v59 }
0x2a45   :  { %7567 = vmatpush.msrb.mxu1 %v14678_v53  ;;  %7358 = vmatmul.f32.vlgmr.msrb.gmra.mxu2 %v15341_v4 }
0x2a46   :  { %7595 = vmatpush.msrb.mxu2 %v14652_v1 }
0x2a47   :  { %7573 = vmatpush.msrb.mxu1 %v14688_v31  ;;  %7389 = vmatmul.f32.vlgmr.msrb.gmra.mxu3 %v15324_v60 }
0x2a48   :  { %7412 = vmatpush.xpose.msra.mxu0 %v14569_v57  ;;  %7598 = vmatpush.msrb.mxu2 %v16439_v45 }
0x2a49   :  { %7620 = vmatpush.msrb.mxu3 %v16440_v0 }
0x2a4b   :  { %7622 = vmatpush.msrb.mxu3 %v16468_v52  ;;  %7282 = vmatmul.f32.vlgmr.msrb.gmra.mxu0 %v15324_v60 }
0x2a4c   :  { %7440 = vmatmul.f32.vlgmr.msra.gmra.mxu1 %v15333_v63  ;;  %7536 = vmatpush.msrb.mxu0 %v16440_v0 }
0x2a4d   :  { %7672 = vmatpush.msra.mxu1 %v16440_v0  ;;  %7467 = vmatmul.f32.vlgmr.msra.gmra.mxu2 %v15324_v60 }
0x2a4e   :  { %7538 = vmatpush.msrb.mxu0 %v16468_v52  ;;  %7696 = vmatpush.msra.mxu2 %v14818_v16 }
0x2a4f   :  { %7674 = vmatpush.msra.mxu1 %v16468_v52  ;;  %7490 = vmatmul.f32.vlgmr.msra.gmra.mxu3 %v15324_v60 }
0x2a50   :  { %7698 = vmatpush.msra.mxu2 %v14825_v8  ;;  %7729 = vmatpush.msra.mxu3 %v16469_v2 }
0x2a52   :  { %7700 = vmatpush.msra.mxu2 %v14836_v21  ;;  %7735 = vmatpush.msra.mxu3 %v16470_v58 }
0x2a53   :  { %7415 = vmatmul.f32.vlgmr.msra.gmra.mxu0 %v15327_v35 }
0x2a54   :  { %7647 = vmatpush.msra.mxu0 %v16471_v43  ;;  %7702 = vmatpush.msra.mxu2 %v14845_v15 }
0x2a55   :  { %7741 = vmatpush.msra.mxu3 %v16498_v33 }
0x2a56   :  { %7651 = vmatpush.msra.mxu0 %v16499_v27 }
0x2a57   :  { %7747 = vmatpush.msra.mxu3 %v16527_v41 }
0x2ab8   :  { %v7193_v62 = vpop.f32.mrf.mxu1 }
0x2ac0   :  { %v7152_v18 = vpop.f32.mrf.mxu0  ;;  %v7223_v47 = vpop.f32.mrf.mxu2 }
0x2ac1   :  { %v7153_v51 = vadd.f32 %v16528_v11, %v7152_v18  ;;  %v7308_v6 = vpop.f32.mrf.mxu1 }
0x2ac2   :  { %v7250_v30 = vpop.f32.mrf.mxu3 }
0x2ac3   :  { %v7194_v7 = vadd.f32 %v7193_v62, %v7153_v51 }
0x2ac5   :  { %v7224_v48 = vadd.f32 %v7223_v47, %v7194_v7 }
0x2ac7   :  { %v7251_v23 = vadd.f32 %v7250_v30, %v7224_v48 }
0x2ac8   :  { %v7283_v36 = vpop.f32.mrf.mxu0  ;;  %v7359_v29 = vpop.f32.mrf.mxu2 }
0x2ac9   :  { %v7284_v3 = vadd.f32 %v7283_v36, %v7251_v23  ;;  %v7441_v49 = vpop.f32.mrf.mxu1 }
0x2aca   :  { %v7390_v50 = vpop.f32.mrf.mxu3 }
0x2acb   :  { %v7309_v26 = vadd.f32 %v7308_v6, %v7284_v3  ;;  %v7391_v25 = vadd.f32 %v7390_v50, %v7359_v29 }
0x2acd   :  { %7311 = vst.msk [vmem:[%s16264_s12 + $0x3] sm:$0x1] %vm1048_vm5, %v7309_v26  ;;  %v7312_v42 = vsel %vm1048_vm5, %v7309_v26, -inf }
0x2ace   :  { %7313 = vmax.xlane.f32.xlu0 %v7312_v42 }
0x2ad0   :  { %v7416_v10 = vpop.f32.mrf.mxu0  ;;  %v7468_v62 = vpop.f32.mrf.mxu2 }
0x2ad1   :  { %v7417_v12 = vadd.f32 %v7416_v10, %v7391_v25 }
0x2ad2   :  { %v7491_v47 = vpop.f32.mrf.mxu3 }
0x2ad3   :  { %v7442_v9 = vadd.f32 %v7441_v49, %v7417_v12 }
0x2ad5   :  { %v7469_v18 = vadd.f32 %v7468_v62, %v7442_v9 }
0x2ad7   :  { %v7492_v11 = vadd.f32 %v7491_v47, %v7469_v18 }
0x2ad9   :  { %v7494_v51 = vsel %vm3793_vm15, %v7492_v11, -inf }
0x2ada   :  { %7495 = vmax.xlane.f32.xlu2 %v7494_v51 }
0x2b41   :  { %v7314_v30 = vpop.xlane.xlu0 %7313 }
0x2b42   :  { %vm7315_vm8 = vcmp.eq.f32.partialorder %v7309_v26, %v7314_v30 }
0x2b43   :  { %v7316_v7 = vsel %vm7315_vm8, %v14918_v40, 32 }
0x2b44   :  { %v7317_v48 = vsel %vm1048_vm5, %v7316_v7, 2147483647 }
0x2b45   :  { %v7319_v23 = vshra.s32 %v7317_v48, 16  ;;  %v7318_v25 = vand.u32 65535, %v7317_v48 }
0x2b47   :  { %v7321_v6 = vcvt.s32.f32 %v7319_v23  ;;  %v7320_v12 = vcvt.s32.f32 %v7318_v25 }
0x2b49   :  { %7322 = vmin.xlane.f32.xlu1 %v7321_v6 }
0x2b4d   :  { %v7496_v36 = vpop.xlane.xlu2 %7495 }
0x2b4e   :  { %v7497_v3 = vsub.f32 %v7492_v11, %v7496_v36 }
0x2b50   :  { %v7498_v29 = vmul.f32 1.442695, %v7497_v3 }
0x2b52   :  { %13368 = vpow2.f32 %v7498_v29 }
0x2b58   :  { %v13369_v50 = vpop.eup %13368 }
0x2b59   :  { %v7500_v42 = vsel %vm3793_vm15, %v13369_v50, 0.0 }
0x2b5a   :  { %7501 = vadd.xlane.f32.xlu0 %v7500_v42 }
0x2bbc   :  { %v7323_v10 = vpop.xlane.xlu1 %7322 }
0x2bbd   :  { %vm7324_vm9 = vcmp.eq.f32.partialorder %v7321_v6, %v7323_v10 }
0x2bbe   :  { %v7325_v26 = vsel %vm7324_vm9, %v7320_v12, inf  ;;  %v16529_v12 = vld [vmem:[#allocation35_spill] sm:$0xff] }
0x2bbf   :  { %7326 = vmin.xlane.f32.xlu2 %v7325_v26  ;;  %v7329_v26 = vcvt.f32.s32 %v7323_v10  ;;  %v16531_v10 = vld [vmem:[#allocation33_spill] sm:$0xff] }
0x2bcd   :  { %v7502_v49 = vpop.xlane.xlu0 %7501 }
0x2bce   :  { %13370 = vrcp.f32 %v7502_v49  ;;  %v7514_v47 = vand.u32 2147483648, %v7502_v49  ;;  %v7512_v11 = vand.u32 2147483647, %v7502_v49  ;;  %vm7508_vm11 = vweird.f32 %v7502_v49 }
0x2bd0   :  { %v7515_v7 = vor.u32 1.1754944e-38, %v7514_v47  ;;  %vm7513_vm13 = vcmp.eq.f32.partialorder %v7512_v11, 8.507059e+37  ;;  %v16530_v47 = vmov 0.0  }
0x2bd4   :  { %v13371_v9 = vpop.eup %13370 }
0x2bd5   :  { %v7504_v62 = vmul.f32 %v13371_v9, %v7502_v49  ;;  %vm7509_vm10 = vweird.f32 %v13371_v9 }
0x2bd6   :  { %vm7510_vm12 = vmor %vm7508_vm11, %vm7509_vm10 }
0x2bd7   :  { %v7505_v18 = vsub.f32 1.0, %v7504_v62 }
0x2bd9   :  { %v7506_v51 = vmul.f32 %v13371_v9, %v7505_v18 }
0x2bdb   :  { %v7507_v30 = vadd.f32 %v13371_v9, %v7506_v51 }
0x2bdd   :  { %v7511_v23 = vsel %vm7510_vm12, %v13371_v9, %v7507_v30  ;;  %v7330_v9 = vshll.u32 %v7329_v26, 16  ;;  %v16539_v26 = vld [vmem:[#allocation57_spill] sm:$0xff] }
0x2bde   :  { %v7516_v48 = vsel %vm7513_vm13, %v7515_v7, %v7511_v23 }
0x2bdf   :  { %v7517_v36 = vmul.f32 %v13369_v50, %v7516_v48  ;;  %v16532_v48 = vld [vmem:[#allocation37_spill] sm:$0xff] }
0x2be1   :  { %v7519_v6 = vsel %vm4003_vm6, %v7517_v36, 0 }
0x2be2   :  { %v7539_v3 = vand.u32 4294901760, %v7519_v6 }
0x2be4   :  { %7575 = vmatmul.f32.vlgmr.msrb.gmra.mxu1 %v7539_v3  ;;  %v7540_v29 = vsub.f32 %v7519_v6, %v7539_v3  ;;  %v16533_v6 = vld [vmem:[#allocation39_spill] sm:$0xff] }
0x2be5   :  { %7796 = vmatpush.msrb.mxu1 %v14818_v16 }
0x2be6   :  { %7601 = vmatmul.f32.vlgmr.msrb.gmra.mxu2 %v7540_v29  ;;  %v7541_v42 = vand.u32 4294901760, %v7540_v29 }
0x2be7   :  { %7798 = vmatpush.msrb.mxu1 %v14825_v8  ;;  %7825 = vmatpush.msrb.mxu2 %v14850_v54 }
0x2be8   :  { %7626 = vmatmul.f32.vlgmr.msrb.gmra.mxu3 %v7541_v42  ;;  %v7542_v25 = vsub.f32 %v7540_v29, %v7541_v42  ;;  %v16535_v29 = vld [vmem:[#allocation30_spill] sm:$0xff]  ;;  %v16536_v42 = vld [vmem:[#allocation56_spill] sm:$0xff] }
0x2be9   :  { %7800 = vmatpush.msrb.mxu1 %v14836_v21  ;;  %7829 = vmatpush.msrb.mxu2 %v14859_v46 }
0x2bea   :  { %7856 = vmatpush.msrb.mxu3 %v14818_v16  ;;  %v7543_v50 = vand.u32 4294901760, %v7542_v25  ;;  %v16537_v25 = vld [vmem:[#allocation34_spill] sm:$0xff] }
0x2beb   :  { %7802 = vmatpush.msrb.mxu1 %v14845_v15  ;;  %7833 = vmatpush.msrb.mxu2 %v14870_v32 }
0x2bec   :  { %7858 = vmatpush.msrb.mxu3 %v14825_v8  ;;  %7544 = vmatmul.f32.vlgmr.msrb.gmra.mxu0 %v7543_v50  ;;  %v16538_v50 = vld [vmem:[#allocation64_spill] sm:$0xff] }
0x2bed   :  { %7676 = vmatmul.f32.vlgmr.msra.gmra.mxu1 %v7539_v3  ;;  %7767 = vmatpush.msrb.mxu0 %v14833_v24 }
0x2bee   :  { %7837 = vmatpush.msrb.mxu2 %v14879_v17  ;;  %7860 = vmatpush.msrb.mxu3 %v14836_v21 }
0x2bef   :  { %7770 = vmatpush.msrb.mxu0 %v14841_v20  ;;  %7914 = vmatpush.msra.mxu1 %v16449_v55 }
0x2bf0   :  { %7862 = vmatpush.msrb.mxu3 %v14845_v15 }
0x2bf1   :  { %7773 = vmatpush.msrb.mxu0 %v14854_v34  ;;  %7920 = vmatpush.msra.mxu1 %v16450_v38 }
0x2bf3   :  { %7776 = vmatpush.msrb.mxu0 %v14864_v19  ;;  %7926 = vmatpush.msra.mxu1 %v16451_v28 }
0x2bf4   :  { %7653 = vmatmul.f32.vlgmr.msra.gmra.mxu0 %v7539_v3  ;;  %v16534_v3 = vld [vmem:[#allocation41_spill] sm:$0xff] }
0x2bf5   :  { %7881 = vmatpush.msra.mxu0 %v16452_v37  ;;  %7932 = vmatpush.msra.mxu1 %v16476_v39 }
0x2bf7   :  { %7883 = vmatpush.msra.mxu0 %v16454_v14 }
0x2bf9   :  { %7885 = vmatpush.msra.mxu0 %v16455_v5 }
0x2bfb   :  { %7887 = vmatpush.msra.mxu0 %v16529_v12 }
0x2c32   :  { %v7327_v49 = vpop.xlane.xlu2 %7326 }
0x2c33   :  { %v7328_v62 = vcvt.f32.s32 %v7327_v49  ;;  %v16540_v49 = vld [vmem:[#allocation52_spill] sm:$0xff] }
0x2c35   :  { %v7331_v18 = vadd.s32 %v7330_v9, %v7328_v62  ;;  %v16541_v9 = vld [vmem:[#allocation36_spill] sm:$0xff]  ;;  %v16543_v62 = vld [vmem:[#allocation53_spill] sm:$0xff] }
0x2c37   :  { %vm7332_vm14 = vcmp.eq.s32.totalorder %v14918_v40, %v7331_v18  ;;  %v16544_v18 = vld [vmem:[#allocation59_spill] sm:$0xff] }
0x2c38   :  { %v13194_v51 = vsel %vm7332_vm14, 1.0, %v16530_v47 }
0x2c39   :  { %v7681_v11 = vsel %vm216_vm0, %v13194_v51, 0  ;;  %13195 = vmatmul.msk.f32.vlgmr.msra.gmra.mxu3 %vm216_vm0, %v13194_v51 }
0x2c3a   :  { %v7704_v30 = vsub.f32 %v7681_v11, %v7681_v11  ;;  %7981 = vmatpush.msra.mxu3 %v16452_v37  ;;  %v16545_v11 = vld [vmem:[#allocation38_spill] sm:$0xff] }
0x2c3c   :  { %7779 = vmatmul.f32.vlgmr.msrb.gmra.mxu0 %v7704_v30  ;;  %v7705_v7 = vand.u32 4294901760, %v7704_v30  ;;  %7983 = vmatpush.msra.mxu3 %v16454_v14 }
0x2c3d   :  { %8010 = vmatpush.msrb.mxu0 %v16531_v10 }
0x2c3e   :  { %7806 = vmatmul.f32.vlgmr.msrb.gmra.mxu1 %v7705_v7  ;;  %v7706_v23 = vsub.f32 %v7704_v30, %v7705_v7  ;;  %7985 = vmatpush.msra.mxu3 %v16455_v5  ;;  %v16546_v30 = vld [vmem:[#allocation54_spill] sm:$0xff]  ;;  %v16547_v7 = vld [vmem:[#allocation65_spill] sm:$0xff] }
0x2c3f   :  { %8014 = vmatpush.msrb.mxu0 %v16532_v48  ;;  %8041 = vmatpush.msrb.mxu1 %v16452_v37 }
0x2c40   :  { %v7707_v36 = vand.u32 4294901760, %v7706_v23  ;;  %7987 = vmatpush.msra.mxu3 %v16529_v12  ;;  %v16548_v23 = vld [vmem:[#allocation55_spill] sm:$0xff] }
0x2c41   :  { %13197 = vmatmul.msk.f32.vlgmr.msrb.gmra.mxu3 %vm216_vm0, %v13194_v51  ;;  %8018 = vmatpush.msrb.mxu0 %v16533_v6 }
0x2c42   :  { %7708 = vmatmul.f32.vlgmr.msra.gmra.mxu2 %v7707_v36  ;;  %8043 = vmatpush.msrb.mxu1 %v16454_v14  ;;  %v16551_v36 = vld [vmem:[#allocation67_spill] sm:$0xff] }
0x2c43   :  { %8022 = vmatpush.msrb.mxu0 %v16534_v3  ;;  %7952 = vmatpush.msra.mxu2 %v16535_v29 }
0x2c44   :  { %7893 = vmatmul.f32.vlgmr.msra.gmra.mxu0 %v15341_v4  ;;  %8045 = vmatpush.msrb.mxu1 %v16455_v5  ;;  %v16542_v4 = vld [vmem:[#allocation58_spill] sm:$0xff] }
0x2c45   :  { %8181 = vmatpush.msra.mxu0 %v16536_v42  ;;  %7955 = vmatpush.msra.mxu2 %v16537_v25 }
0x2c46   :  { %7934 = vmatmul.f32.vlgmr.msra.gmra.mxu1 %v15324_v60  ;;  %8143 = vmatpush.msrb.mxu3 %v16538_v50 }
0x2c47   :  { %8047 = vmatpush.msrb.mxu1 %v16529_v12  ;;  %8184 = vmatpush.msra.mxu0 %v16539_v26 }
0x2c48   :  { %7958 = vmatpush.msra.mxu2 %v16541_v9  ;;  %8149 = vmatpush.msrb.mxu3 %v16547_v7  ;;  %v16552_v7 = vld [vmem:[#allocation46_spill] sm:$0xff] }
0x2c49   :  { %8210 = vmatpush.msra.mxu1 %v16540_v49  ;;  %7991 = vmatmul.f32.vlgmr.msra.gmra.mxu3 %v15333_v63  ;;  %v16549_v63 = vld [vmem:[#allocation66_spill] sm:$0xff] }
0x2c4a   :  { %8187 = vmatpush.msra.mxu0 %v16542_v4  ;;  %13196 = vmatmul.msk.f32.vlgmr.msrb.gmra.mxu2 %vm216_vm0, %v13194_v51  ;;  %v16550_v51 = vld [vmem:[#allocation43_spill] sm:$0xff] }
0x2c4b   :  { %8212 = vmatpush.msra.mxu1 %v16543_v62  ;;  %7961 = vmatpush.msra.mxu2 %v16545_v11 }
0x2c4c   :  { %8190 = vmatpush.msra.mxu0 %v16544_v18  ;;  %8155 = vmatpush.msrb.mxu3 %v16549_v63 }
0x2c4d   :  { %8214 = vmatpush.msra.mxu1 %v16546_v30  ;;  %8024 = vmatmul.f32.vlgmr.msrb.gmra.mxu0 %v15324_v60 }
0x2c4e   :  { %8321 = vmatpush.xpose.msrb.mxu0 %v14571_v56  ;;  %8110 = vmatpush.msrb.mxu2 %v16540_v49 }
0x2c4f   :  { %8216 = vmatpush.msra.mxu1 %v16548_v23  ;;  %8161 = vmatpush.msrb.mxu3 %v16551_v36  ;;  %v16555_v36 = vld [vmem:[#allocation62_spill] sm:$0xff] }
0x2c50   :  { %8049 = vmatmul.f32.vlgmr.msrb.gmra.mxu1 %v15324_v60  ;;  %8112 = vmatpush.msrb.mxu2 %v16543_v62  ;;  %v16553_v60 = vld [vmem:[#allocation60_spill] sm:$0xff] }
0x2c51   :  { %8352 = vmatpush.xpose.msrb.mxu1 %v16550_v51  ;;  %8270 = vmatpush.msra.mxu3 %v16540_v49  ;;  %v16554_v51 = vld [vmem:[#allocation61_spill] sm:$0xff] }
0x2c52   :  { %8323 = vmatpush.xpose.msrb.mxu0 %v14551_v59  ;;  %7964 = vmatmul.f32.vlgmr.msra.gmra.mxu2 %v15327_v35  ;;  %v16556_v35 = vld [vmem:[#allocation63_spill] sm:$0xff] }
0x2c53   :  { %8114 = vmatpush.msrb.mxu2 %v16546_v30  ;;  %8272 = vmatpush.msra.mxu3 %v16543_v62 }
0x2c55   :  { %8358 = vmatpush.xpose.msrb.mxu1 %v16552_v7  ;;  %8116 = vmatpush.msrb.mxu2 %v16548_v23 }
0x2c56   :  { %8274 = vmatpush.msra.mxu3 %v16546_v30 }
0x2c57   :  { %8239 = vmatpush.msra.mxu2 %v16553_v60 }
0x2c58   :  { %8276 = vmatpush.msra.mxu3 %v16548_v23 }
0x2c59   :  { %8243 = vmatpush.msra.mxu2 %v16554_v51 }
0x2c5b   :  { %8247 = vmatpush.msra.mxu2 %v16555_v36 }
0x2c5d   :  { %8251 = vmatpush.msra.mxu2 %v16556_v35 }
0x2c61   :  { %v7576_v11 = vpop.f32.mrf.mxu1 }
0x2c69   :  { %v7545_v63 = vpop.f32.mrf.mxu0  ;;  %v7602_v7 = vpop.f32.mrf.mxu2 }
0x2c6a   :  { %v7577_v18 = vadd.f32 %v7576_v11, %v7545_v63  ;;  %v7677_v49 = vpop.f32.mrf.mxu1 }
0x2c6b   :  { %v7627_v4 = vpop.f32.mrf.mxu3 }
0x2c6c   :  { %v7603_v62 = vadd.f32 %v7602_v7, %v7577_v18 }
0x2c6e   :  { %v7628_v26 = vadd.f32 %v7627_v4, %v7603_v62 }
0x2c71   :  { %v7654_v9 = vpop.f32.mrf.mxu0 }
0x2c72   :  { %v7655_v30 = vadd.f32 %v7654_v9, %v7628_v26 }
0x2c74   :  { %v7678_v23 = vadd.f32 %v7677_v49, %v7655_v30 }
0x2cb9   :  { %v7780_v60 = vpop.f32.mrf.mxu0 }
0x2cbb   :  { %v7807_v42 = vpop.f32.mrf.mxu1 }
0x2cbc   :  { %v7750_v50 = vpop.f32.mrf.mxu3 }
0x2cc1   :  { %v7894_v35 = vpop.f32.mrf.mxu0 }
0x2cc3   :  { %v7935_v48 = vpop.f32.mrf.mxu1 }
0x2cc4   :  { %v7865_v36 = vpop.f32.mrf.mxu3  ;;  %v7936_v11 = vadd.f32 %v7935_v48, %v7894_v35 }
0x2cc5   :  { %v7709_v25 = vpop.f32.mrf.mxu2 }
0x2cc6   :  { %v7710_v51 = vadd.f32 %v7709_v25, %v7678_v23  ;;  %v15467_v25 = vld [vmem:[#allocation16] sm:$0x1] }
0x2cc8   :  { %v7751_v29 = vadd.f32 %v7750_v50, %v7710_v51 }
0x2cca   :  { %v7781_v6 = vadd.f32 %v7780_v60, %v7751_v29  ;;  %v8025_v26 = vpop.f32.mrf.mxu0 }
0x2ccc   :  { %v7808_v63 = vadd.f32 %v7807_v42, %v7781_v6  ;;  %v7992_v7 = vpop.f32.mrf.mxu3 }
0x2ccd   :  { %v7840_v3 = vpop.f32.mrf.mxu2  ;;  %v8050_v62 = vpop.f32.mrf.mxu1 }
0x2cce   :  { %v7841_v47 = vadd.f32 %v7840_v3, %v7808_v63 }
0x2cd0   :  { %v7866_v12 = vadd.f32 %v7865_v36, %v7841_v47 }
0x2cd5   :  { %v7965_v10 = vpop.f32.mrf.mxu2 }
0x2cd6   :  { %v7966_v18 = vadd.f32 %v7965_v10, %v7936_v11 }
0x2cd8   :  { %v7993_v4 = vadd.f32 %v7992_v7, %v7966_v18 }
0x2cda   :  { %v8026_v9 = vadd.f32 %v8025_v26, %v7993_v4 }
0x2cdc   :  { %v8051_v49 = vadd.f32 %v8050_v62, %v8026_v9 }
0x2cde   :  { %v8053_v30 = vadd.f32 %v8051_v49, %v7866_v12 }
0x2ce0   :  { %v8054_v50 = vadd.f32 %v15467_v25, %v8053_v30 }
0x2ce2   :  { %13372 = vtanh.f32 %v8054_v50  ;;  %v13198_v48 = vmul.f32 -1.442695, %v8054_v50 }
0x2ce4   :  { %13374 = vpow2.f32 %v13198_v48 }
0x2ce8   :  { %v13373_v29 = vpop.eup %13372 }
0x2ce9   :  { %8077 = vrot.lane.b32.xlu1 %v13373_v29, %s13729_s14 }
0x2cea   :  { %v13375_v10 = vpop.eup %13374 }
0x2ceb   :  { %v8058_v6 = vadd.f32 1.0, %v13375_v10 }
0x2ced   :  { %13376 = vrcp.f32 %v8058_v6  ;;  %v8070_v12 = vand.u32 2147483648, %v8058_v6  ;;  %vm8064_vm2 = vweird.f32 %v8058_v6  ;;  %v8068_v36 = vand.u32 2147483647, %v8058_v6 }
0x2cef   :  { %v8071_v35 = vor.u32 1.1754944e-38, %v8070_v12  ;;  %vm8069_vm4 = vcmp.eq.f32.partialorder %v8068_v36, 8.507059e+37 }
0x2cf3   :  { %v13377_v3 = vpop.eup %13376 }
0x2cf4   :  { %v8060_v42 = vmul.f32 %v13377_v3, %v8058_v6  ;;  %vm8065_vm1 = vweird.f32 %v13377_v3 }
0x2cf5   :  { %vm8066_vm3 = vmor %vm8064_vm2, %vm8065_vm1 }
0x2cf6   :  { %v8061_v23 = vsub.f32 1.0, %v8060_v42 }
0x2cf8   :  { %v8062_v51 = vmul.f32 %v13377_v3, %v8061_v23 }
0x2cfa   :  { %v8063_v47 = vadd.f32 %v13377_v3, %v8062_v51  ;;  %v15531_v51 = vld [vmem:[#allocation20] sm:$0x1] }
0x2cfc   :  { %v8067_v60 = vsel %vm8066_vm3, %v13377_v3, %v8063_v47 }
0x2cfd   :  { %v8072_v63 = vsel %vm8069_vm4, %v8071_v35, %v8067_v60 }
0x2cfe   :  { %v8075_v7 = vmul.f32 %v8072_v63, %v15318_v22 }
0x2d5b   :  { %v8078_v11 = vpop.permute.xlu1 %8077 }
0x2d5c   :  { %v8080_v18 = vmul.f32 %v8078_v11, %v8072_v63 }
0x2d5e   :  { %8082 = vrot.lane.b32.xlu0 %v8080_v18, %s13730_s15 }
0x2dd0   :  { %v8083_v4 = vpop.permute.xlu0 %8082 }
0x2dd1   :  { %v15473_v26 = vadd.f32 %v8083_v4, %v8075_v7 }
0x2dd3   :  { %13378 = vtanh.f32 %v15473_v26 }
0x2dd9   :  { %v13379_v9 = vpop.eup %13378 }
0x2dda   :  { %8088 = vrot.lane.b32.xlu2 %v13379_v9, %s13729_s14 }
0x2e34   :  { %v8089_v62 = vpop.permute.xlu2 %8088 }
0x2e35   :  { %v8091_v49 = vmul.f32 %v8089_v62, %v8072_v63 }
0x2e37   :  { %8093 = vrot.lane.b32.xlu0 %v8091_v49, %s13730_s15 }
0x2ea9   :  { %v8094_v30 = vpop.permute.xlu0 %8093 }
0x2eaa   :  { %v8095_v50 = vsel %vm216_vm0, %v8094_v30, 0 }
0x2eab   :  { %v15479_v29 = vand.u32 4294901760, %v8095_v50 }
0x2ead   :  { %v15482_v48 = vsub.f32 %v8095_v50, %v15479_v29  ;;  %8163 = vmatmul.f32.vlgmr.msrb.gmra.mxu3 %v15479_v29 }
0x2eae   :  { %8405 = vmatpush.xpose.msrb.mxu3 %v14571_v56 }
0x2eaf   :  { %8193 = vmatmul.f32.vlgmr.msra.gmra.mxu0 %v15482_v48  ;;  %v15488_v22 = vand.u32 4294901760, %v15482_v48 }
0x2eb0   :  { %8432 = vmatpush.xpose.msra.mxu0 %v14592_v61 }
0x2eb1   :  { %8220 = vmatmul.f32.vlgmr.msra.gmra.mxu1 %v15488_v22  ;;  %v8120_v10 = vsub.f32 %v15482_v48, %v15488_v22 }
0x2eb2   :  { %8407 = vmatpush.xpose.msrb.mxu3 %v14551_v59  ;;  %8457 = vmatpush.xpose.msra.mxu1 %v14571_v56 }
0x2eb3   :  { %v15496_v6 = vand.u32 4294901760, %v8120_v10 }
0x2eb4   :  { %8436 = vmatpush.xpose.msra.mxu0 %v14595_v13 }
0x2eb5   :  { %8122 = vmatmul.f32.vlgmr.msrb.gmra.mxu2 %v15496_v6  ;;  %8278 = vmatmul.f32.vlgmr.msra.gmra.mxu3 %v15479_v29 }
0x2eb6   :  { %8380 = vmatpush.xpose.msrb.mxu2 %v14579_v44  ;;  %8459 = vmatpush.xpose.msra.mxu1 %v14551_v59 }
0x2eb7   :  { %8538 = vmatpush.msra.mxu3 %v14678_v53  ;;  %8329 = vmatmul.f32.vlgmr.msrb.gmra.mxu0 %v15496_v6 }
0x2eb8   :  { %8566 = vmatpush.msrb.mxu0 %v14652_v1 }
0x2eb9   :  { %8544 = vmatpush.msra.mxu3 %v14688_v31  ;;  %8360 = vmatmul.f32.vlgmr.msrb.gmra.mxu1 %v15479_v29 }
0x2eba   :  { %8383 = vmatpush.xpose.msrb.mxu2 %v14569_v57  ;;  %8569 = vmatpush.msrb.mxu0 %v16439_v45 }
0x2ebb   :  { %8591 = vmatpush.msrb.mxu1 %v16440_v0 }
0x2ebd   :  { %8593 = vmatpush.msrb.mxu1 %v16468_v52  ;;  %8253 = vmatmul.f32.vlgmr.msra.gmra.mxu2 %v15479_v29 }
0x2ebe   :  { %8411 = vmatmul.f32.vlgmr.msrb.gmra.mxu3 %v15488_v22  ;;  %8507 = vmatpush.msra.mxu2 %v16440_v0 }
0x2ebf   :  { %8643 = vmatpush.msrb.mxu3 %v16440_v0  ;;  %8438 = vmatmul.f32.vlgmr.msra.gmra.mxu0 %v15479_v29 }
0x2ec0   :  { %8509 = vmatpush.msra.mxu2 %v16468_v52  ;;  %8667 = vmatpush.msra.mxu0 %v14818_v16 }
0x2ec1   :  { %8645 = vmatpush.msrb.mxu3 %v16468_v52  ;;  %8461 = vmatmul.f32.vlgmr.msra.gmra.mxu1 %v15479_v29 }
0x2ec2   :  { %8669 = vmatpush.msra.mxu0 %v14825_v8  ;;  %8700 = vmatpush.msra.mxu1 %v16469_v2 }
0x2ec4   :  { %8671 = vmatpush.msra.mxu0 %v14836_v21  ;;  %8706 = vmatpush.msra.mxu1 %v16470_v58 }
0x2ec5   :  { %8386 = vmatmul.f32.vlgmr.msrb.gmra.mxu2 %v15482_v48 }
0x2ec6   :  { %8618 = vmatpush.msrb.mxu2 %v16471_v43  ;;  %8673 = vmatpush.msra.mxu0 %v14845_v15 }
0x2ec7   :  { %8712 = vmatpush.msra.mxu1 %v16498_v33 }
0x2ec8   :  { %8622 = vmatpush.msrb.mxu2 %v16499_v27 }
0x2ec9   :  { %8718 = vmatpush.msra.mxu1 %v16527_v41 }
0x2f2c   :  { %v8194_v42 = vpop.f32.mrf.mxu0 }
0x2f2e   :  { %v8221_v12 = vpop.f32.mrf.mxu1 }
0x2f30   :  { %v8164_v3 = vpop.f32.mrf.mxu3 }
0x2f34   :  { %v8330_v7 = vpop.f32.mrf.mxu0 }
0x2f36   :  { %v8361_v9 = vpop.f32.mrf.mxu1 }
0x2f37   :  { %v8362_v49 = vadd.f32 %v8361_v9, %v8330_v7 }
0x2f38   :  { %v8123_v23 = vpop.f32.mrf.mxu2  ;;  %v8279_v11 = vpop.f32.mrf.mxu3 }
0x2f39   :  { %v8124_v47 = vadd.f32 %v15531_v51, %v8123_v23 }
0x2f3b   :  { %v8165_v36 = vadd.f32 %v8164_v3, %v8124_v47 }
0x2f3d   :  { %v8195_v60 = vadd.f32 %v8194_v42, %v8165_v36  ;;  %v8439_v42 = vpop.f32.mrf.mxu0 }
0x2f3e   :  { %v8462_v47 = vpop.f32.mrf.mxu1 }
0x2f3f   :  { %v8222_v35 = vadd.f32 %v8221_v12, %v8195_v60 }
0x2f40   :  { %v8254_v63 = vpop.f32.mrf.mxu2 }
0x2f41   :  { %v8255_v18 = vadd.f32 %v8254_v63, %v8222_v35  ;;  %v8412_v10 = vpop.f32.mrf.mxu3 }
0x2f43   :  { %v8280_v4 = vadd.f32 %v8279_v11, %v8255_v18 }
0x2f45   :  { %8282 = vst.msk [vmem:[%s16264_s12 + $0x4] sm:$0x1] %vm1048_vm5, %v8280_v4  ;;  %v8283_v62 = vsel %vm1048_vm5, %v8280_v4, -inf }
0x2f46   :  { %8284 = vmax.xlane.f32.xlu1 %v8283_v62 }
0x2f48   :  { %v8387_v30 = vpop.f32.mrf.mxu2 }
0x2f49   :  { %v8388_v50 = vadd.f32 %v8387_v30, %v8362_v49 }
0x2f4b   :  { %v8413_v3 = vadd.f32 %v8412_v10, %v8388_v50 }
0x2f4d   :  { %v8440_v23 = vadd.f32 %v8439_v42, %v8413_v3 }
0x2f4f   :  { %v8463_v12 = vadd.f32 %v8462_v47, %v8440_v23 }
0x2f51   :  { %v8465_v36 = vsel %vm3793_vm15, %v8463_v12, -inf }
0x2f52   :  { %8466 = vmax.xlane.f32.xlu2 %v8465_v36 }
0x2fb9   :  { %v8285_v60 = vpop.xlane.xlu1 %8284 }
0x2fba   :  { %vm8286_vm7 = vcmp.eq.f32.partialorder %v8280_v4, %v8285_v60 }
0x2fbb   :  { %v8287_v35 = vsel %vm8286_vm7, %v14918_v40, 32 }
0x2fbc   :  { %v8288_v11 = vsel %vm1048_vm5, %v8287_v35, 2147483647 }
0x2fbd   :  { %v8290_v63 = vshra.s32 %v8288_v11, 16  ;;  %v8289_v50 = vand.u32 65535, %v8288_v11 }
0x2fbf   :  { %v8292_v18 = vcvt.s32.f32 %v8290_v63  ;;  %v8291_v3 = vcvt.s32.f32 %v8289_v50 }
0x2fc1   :  { %8293 = vmin.xlane.f32.xlu0 %v8292_v18 }
0x2fc5   :  { %v8467_v7 = vpop.xlane.xlu2 %8466 }
0x2fc6   :  { %v8468_v9 = vsub.f32 %v8463_v12, %v8467_v7 }
0x2fc8   :  { %v8469_v62 = vmul.f32 1.442695, %v8468_v9 }
0x2fca   :  { %13380 = vpow2.f32 %v8469_v62 }
0x2fd0   :  { %v13381_v49 = vpop.eup %13380 }
0x2fd1   :  { %v8471_v30 = vsel %vm3793_vm15, %v13381_v49, 0.0 }
0x2fd2   :  { %8472 = vadd.xlane.f32.xlu2 %v8471_v30 }
0x3034   :  { %v8294_v10 = vpop.xlane.xlu0 %8293 }
0x3035   :  { %vm8295_vm8 = vcmp.eq.f32.partialorder %v8292_v18, %v8294_v10 }
0x3036   :  { %v8296_v4 = vsel %vm8295_vm8, %v8291_v3, inf }
0x3037   :  { %8297 = vmin.xlane.f32.xlu1 %v8296_v4 }
0x3045   :  { %v8473_v42 = vpop.xlane.xlu2 %8472 }
0x3046   :  { %13382 = vrcp.f32 %v8473_v42  ;;  %v8485_v60 = vand.u32 2147483648, %v8473_v42  ;;  %v8483_v12 = vand.u32 2147483647, %v8473_v42  ;;  %vm8479_vm10 = vweird.f32 %v8473_v42 }
0x3048   :  { %v8486_v7 = vor.u32 1.1754944e-38, %v8485_v60  ;;  %vm8484_vm12 = vcmp.eq.f32.partialorder %v8483_v12, 8.507059e+37  ;;  %v16558_v12 = vmov 0.0  }
0x304c   :  { %v13383_v23 = vpop.eup %13382 }
0x304d   :  { %v8475_v47 = vmul.f32 %v13383_v23, %v8473_v42  ;;  %vm8480_vm9 = vweird.f32 %v13383_v23  ;;  %v16557_v42 = vld [vmem:[#allocation35_spill] sm:$0xff] }
0x304e   :  { %vm8481_vm11 = vmor %vm8479_vm10, %vm8480_vm9 }
0x304f   :  { %v8476_v36 = vsub.f32 1.0, %v8475_v47 }
0x3051   :  { %v8477_v35 = vmul.f32 %v13383_v23, %v8476_v36 }
0x3053   :  { %v8478_v63 = vadd.f32 %v13383_v23, %v8477_v35 }
0x3055   :  { %v8482_v9 = vsel %vm8481_vm11, %v13383_v23, %v8478_v63  ;;  %v8300_v23 = vcvt.f32.s32 %v8294_v10  ;;  %v16559_v10 = vld [vmem:[#allocation33_spill] sm:$0xff] }
0x3056   :  { %v8487_v11 = vsel %vm8484_vm12, %v8486_v7, %v8482_v9 }
0x3057   :  { %v8488_v62 = vmul.f32 %v13381_v49, %v8487_v11  ;;  %v8301_v36 = vshll.u32 %v8300_v23, 16  ;;  %v16565_v23 = vld [vmem:[#allocation34_spill] sm:$0xff] }
0x3059   :  { %v8490_v18 = vsel %vm4003_vm6, %v8488_v62, 0 }
0x305a   :  { %v8510_v30 = vand.u32 4294901760, %v8490_v18 }
0x305c   :  { %8546 = vmatmul.f32.vlgmr.msra.gmra.mxu3 %v8510_v30  ;;  %v8511_v50 = vsub.f32 %v8490_v18, %v8510_v30  ;;  %v16560_v18 = vld [vmem:[#allocation37_spill] sm:$0xff] }
0x305d   :  { %8767 = vmatpush.msra.mxu3 %v14818_v16 }
0x305e   :  { %8572 = vmatmul.f32.vlgmr.msrb.gmra.mxu0 %v8511_v50  ;;  %v8512_v3 = vand.u32 4294901760, %v8511_v50 }
0x305f   :  { %8769 = vmatpush.msra.mxu3 %v14825_v8  ;;  %8796 = vmatpush.msrb.mxu0 %v14850_v54 }
0x3060   :  { %8597 = vmatmul.f32.vlgmr.msrb.gmra.mxu1 %v8512_v3  ;;  %v8513_v4 = vsub.f32 %v8511_v50, %v8512_v3  ;;  %v16561_v50 = vld [vmem:[#allocation39_spill] sm:$0xff]  ;;  %v16562_v3 = vld [vmem:[#allocation41_spill] sm:$0xff] }
0x3061   :  { %8771 = vmatpush.msra.mxu3 %v14836_v21  ;;  %8800 = vmatpush.msrb.mxu0 %v14859_v46 }
0x3062   :  { %8827 = vmatpush.msrb.mxu1 %v14818_v16  ;;  %v8514_v49 = vand.u32 4294901760, %v8513_v4  ;;  %v16563_v4 = vld [vmem:[#allocation30_spill] sm:$0xff] }
0x3063   :  { %8773 = vmatpush.msra.mxu3 %v14845_v15  ;;  %8804 = vmatpush.msrb.mxu0 %v14870_v32 }
0x3064   :  { %8829 = vmatpush.msrb.mxu1 %v14825_v8  ;;  %8515 = vmatmul.f32.vlgmr.msra.gmra.mxu2 %v8514_v49  ;;  %v16564_v49 = vld [vmem:[#allocation56_spill] sm:$0xff] }
0x3065   :  { %8647 = vmatmul.f32.vlgmr.msrb.gmra.mxu3 %v8510_v30  ;;  %8738 = vmatpush.msra.mxu2 %v14833_v24 }
0x3066   :  { %8808 = vmatpush.msrb.mxu0 %v14879_v17  ;;  %8831 = vmatpush.msrb.mxu1 %v14836_v21 }
0x3067   :  { %8741 = vmatpush.msra.mxu2 %v14841_v20  ;;  %8885 = vmatpush.msrb.mxu3 %v16449_v55 }
0x3068   :  { %8833 = vmatpush.msrb.mxu1 %v14845_v15 }
0x3069   :  { %8744 = vmatpush.msra.mxu2 %v14854_v34  ;;  %8891 = vmatpush.msrb.mxu3 %v16450_v38 }
0x306b   :  { %8747 = vmatpush.msra.mxu2 %v14864_v19  ;;  %8897 = vmatpush.msrb.mxu3 %v16451_v28 }
0x306c   :  { %8624 = vmatmul.f32.vlgmr.msrb.gmra.mxu2 %v8510_v30 }
0x306d   :  { %8852 = vmatpush.msrb.mxu2 %v16452_v37  ;;  %8903 = vmatpush.msrb.mxu3 %v16476_v39 }
0x306f   :  { %8854 = vmatpush.msrb.mxu2 %v16454_v14 }
0x3071   :  { %8856 = vmatpush.msrb.mxu2 %v16455_v5 }
0x3073   :  { %8858 = vmatpush.msrb.mxu2 %v16557_v42 }
0x30aa   :  { %v8298_v47 = vpop.xlane.xlu1 %8297 }
0x30ab   :  { %v8299_v60 = vcvt.f32.s32 %v8298_v47  ;;  %v16566_v47 = vld [vmem:[#allocation64_spill] sm:$0xff] }
0x30ad   :  { %v8302_v35 = vadd.s32 %v8301_v36, %v8299_v60  ;;  %v16567_v36 = vld [vmem:[#allocation57_spill] sm:$0xff]  ;;  %v16568_v60 = vld [vmem:[#allocation52_spill] sm:$0xff] }
0x30af   :  { %vm8303_vm13 = vcmp.eq.s32.totalorder %v14918_v40, %v8302_v35  ;;  %v16569_v35 = vld [vmem:[#allocation36_spill] sm:$0xff] }
0x30b0   :  { %v13199_v63 = vsel %vm8303_vm13, 1.0, %v16558_v12 }
0x30b1   :  { %v8652_v7 = vsel %vm216_vm0, %v13199_v63, 0  ;;  %13200 = vmatmul.msk.f32.vlgmr.msra.gmra.mxu1 %vm216_vm0, %v13199_v63 }
0x30b2   :  { %v8675_v9 = vsub.f32 %v8652_v7, %v8652_v7  ;;  %8952 = vmatpush.msra.mxu1 %v16452_v37  ;;  %v16571_v7 = vld [vmem:[#allocation53_spill] sm:$0xff] }
0x30b4   :  { %8750 = vmatmul.f32.vlgmr.msra.gmra.mxu2 %v8675_v9  ;;  %v8676_v11 = vand.u32 4294901760, %v8675_v9  ;;  %8954 = vmatpush.msra.mxu1 %v16454_v14 }
0x30b5   :  { %8981 = vmatpush.msra.mxu2 %v16559_v10 }
0x30b6   :  { %8777 = vmatmul.f32.vlgmr.msra.gmra.mxu3 %v8676_v11  ;;  %v8677_v62 = vsub.f32 %v8675_v9, %v8676_v11  ;;  %8956 = vmatpush.msra.mxu1 %v16455_v5  ;;  %v16572_v9 = vld [vmem:[#allocation59_spill] sm:$0xff]  ;;  %v16573_v11 = vld [vmem:[#allocation38_spill] sm:$0xff] }
0x30b7   :  { %8985 = vmatpush.msra.mxu2 %v16560_v18  ;;  %9012 = vmatpush.msra.mxu3 %v16452_v37 }
0x30b8   :  { %v8678_v30 = vand.u32 4294901760, %v8677_v62  ;;  %8958 = vmatpush.msra.mxu1 %v16557_v42  ;;  %v16574_v62 = vld [vmem:[#allocation54_spill] sm:$0xff] }
0x30b9   :  { %13202 = vmatmul.msk.f32.vlgmr.msrb.gmra.mxu1 %vm216_vm0, %v13199_v63  ;;  %8989 = vmatpush.msra.mxu2 %v16561_v50 }
0x30ba   :  { %8679 = vmatmul.f32.vlgmr.msra.gmra.mxu0 %v8678_v30  ;;  %9014 = vmatpush.msra.mxu3 %v16454_v14  ;;  %v16575_v30 = vld [vmem:[#allocation65_spill] sm:$0xff] }
0x30bb   :  { %8993 = vmatpush.msra.mxu2 %v16562_v3  ;;  %8923 = vmatpush.msra.mxu0 %v16563_v4 }
0x30bc   :  { %8864 = vmatmul.f32.vlgmr.msrb.gmra.mxu2 %v15496_v6  ;;  %9016 = vmatpush.msra.mxu3 %v16455_v5  ;;  %v16570_v6 = vld [vmem:[#allocation58_spill] sm:$0xff] }
0x30bd   :  { %9152 = vmatpush.msrb.mxu2 %v16564_v49  ;;  %8926 = vmatpush.msra.mxu0 %v16565_v23 }
0x30be   :  { %8905 = vmatmul.f32.vlgmr.msrb.gmra.mxu3 %v15479_v29  ;;  %9114 = vmatpush.msrb.mxu1 %v16566_v47 }
0x30bf   :  { %9018 = vmatpush.msra.mxu3 %v16557_v42  ;;  %9155 = vmatpush.msrb.mxu2 %v16567_v36 }
0x30c0   :  { %8929 = vmatpush.msra.mxu0 %v16569_v35  ;;  %9120 = vmatpush.msrb.mxu1 %v16575_v30  ;;  %v16576_v35 = vld [vmem:[#allocation55_spill] sm:$0xff]  ;;  %v16580_v30 = vld [vmem:[#allocation46_spill] sm:$0xff] }
0x30c1   :  { %9181 = vmatpush.msrb.mxu3 %v16568_v60  ;;  %8962 = vmatmul.f32.vlgmr.msra.gmra.mxu1 %v15488_v22  ;;  %v16577_v22 = vld [vmem:[#allocation66_spill] sm:$0xff] }
0x30c2   :  { %9158 = vmatpush.msrb.mxu2 %v16570_v6  ;;  %13201 = vmatmul.msk.f32.vlgmr.msrb.gmra.mxu0 %vm216_vm0, %v13199_v63  ;;  %v16578_v63 = vld [vmem:[#allocation43_spill] sm:$0xff] }
0x30c3   :  { %9183 = vmatpush.msrb.mxu3 %v16571_v7  ;;  %8932 = vmatpush.msra.mxu0 %v16573_v11  ;;  %v16579_v11 = vld [vmem:[#allocation67_spill] sm:$0xff] }
0x30c4   :  { %9161 = vmatpush.msrb.mxu2 %v16572_v9  ;;  %9126 = vmatpush.msrb.mxu1 %v16577_v22 }
0x30c5   :  { %9185 = vmatpush.msrb.mxu3 %v16574_v62  ;;  %8995 = vmatmul.f32.vlgmr.msra.gmra.mxu2 %v15479_v29 }
0x30c6   :  { %9292 = vmatpush.xpose.msra.mxu2 %v14571_v56  ;;  %9081 = vmatpush.msrb.mxu0 %v16568_v60 }
0x30c7   :  { %9187 = vmatpush.msrb.mxu3 %v16576_v35  ;;  %9132 = vmatpush.msrb.mxu1 %v16579_v11  ;;  %v16583_v11 = vld [vmem:[#allocation62_spill] sm:$0xff] }
0x30c8   :  { %9020 = vmatmul.f32.vlgmr.msra.gmra.mxu3 %v15479_v29  ;;  %9083 = vmatpush.msrb.mxu0 %v16571_v7  ;;  %v16581_v29 = vld [vmem:[#allocation60_spill] sm:$0xff] }
0x30c9   :  { %9323 = vmatpush.xpose.msra.mxu3 %v16578_v63  ;;  %9241 = vmatpush.msra.mxu1 %v16568_v60  ;;  %v16582_v63 = vld [vmem:[#allocation61_spill] sm:$0xff] }
0x30ca   :  { %9294 = vmatpush.xpose.msra.mxu2 %v14551_v59  ;;  %8935 = vmatmul.f32.vlgmr.msra.gmra.mxu0 %v15482_v48  ;;  %v16584_v48 = vld [vmem:[#allocation63_spill] sm:$0xff] }
0x30cb   :  { %9085 = vmatpush.msrb.mxu0 %v16574_v62  ;;  %9243 = vmatpush.msra.mxu1 %v16571_v7 }
0x30cd   :  { %9329 = vmatpush.xpose.msra.mxu3 %v16580_v30  ;;  %9087 = vmatpush.msrb.mxu0 %v16576_v35 }
0x30ce   :  { %9245 = vmatpush.msra.mxu1 %v16574_v62 }
0x30cf   :  { %9210 = vmatpush.msra.mxu0 %v16581_v29 }
0x30d0   :  { %9247 = vmatpush.msra.mxu1 %v16576_v35 }
0x30d1   :  { %9214 = vmatpush.msra.mxu0 %v16582_v63 }
0x30d3   :  { %9218 = vmatpush.msra.mxu0 %v16583_v11 }
0x30d5   :  { %9222 = vmatpush.msra.mxu0 %v16584_v48 }
0x30db   :  { %v8573_v30 = vpop.f32.mrf.mxu0 }
0x30dd   :  { %v8598_v60 = vpop.f32.mrf.mxu1 }
0x30df   :  { %v8547_v9 = vpop.f32.mrf.mxu3 }
0x30e7   :  { %v8516_v22 = vpop.f32.mrf.mxu2 }
0x30e8   :  { %v8548_v6 = vadd.f32 %v8547_v9, %v8516_v22  ;;  %v8648_v47 = vpop.f32.mrf.mxu3 }
0x30ea   :  { %v8574_v7 = vadd.f32 %v8573_v30, %v8548_v6 }
0x30ec   :  { %v8599_v23 = vadd.f32 %v8598_v60, %v8574_v7 }
0x30ef   :  { %v8625_v36 = vpop.f32.mrf.mxu2 }
0x30f0   :  { %v8626_v62 = vadd.f32 %v8625_v36, %v8599_v23 }
0x30f2   :  { %v8649_v35 = vadd.f32 %v8648_v47, %v8626_v62 }
0x312e   :  { %v8721_v49 = vpop.f32.mrf.mxu1 }
0x3136   :  { %v8836_v11 = vpop.f32.mrf.mxu1 }
0x3137   :  { %v8680_v29 = vpop.f32.mrf.mxu0  ;;  %v8751_v4 = vpop.f32.mrf.mxu2 }
0x3138   :  { %v8681_v63 = vadd.f32 %v8680_v29, %v8649_v35 }
0x3139   :  { %v8778_v3 = vpop.f32.mrf.mxu3 }
0x313a   :  { %v8722_v50 = vadd.f32 %v8721_v49, %v8681_v63 }
0x313c   :  { %v8752_v10 = vadd.f32 %v8751_v4, %v8722_v50 }
0x313e   :  { %v8779_v9 = vadd.f32 %v8778_v3, %v8752_v10  ;;  %v8963_v30 = vpop.f32.mrf.mxu1 }
0x313f   :  { %v8811_v18 = vpop.f32.mrf.mxu0  ;;  %v8865_v48 = vpop.f32.mrf.mxu2 }
0x3140   :  { %v8812_v5 = vadd.f32 %v8811_v18, %v8779_v9 }
0x3141   :  { %v8906_v12 = vpop.f32.mrf.mxu3 }
0x3142   :  { %v8907_v22 = vadd.f32 %v8906_v12, %v8865_v48  ;;  %v8837_v14 = vadd.f32 %v8836_v11, %v8812_v5 }
0x3147   :  { %v8936_v42 = vpop.f32.mrf.mxu0 }
0x3148   :  { %v8937_v6 = vadd.f32 %v8936_v42, %v8907_v22  ;;  %v8996_v23 = vpop.f32.mrf.mxu2 }
0x314a   :  { %v8964_v60 = vadd.f32 %v8963_v30, %v8937_v6 }
0x314b   :  { %v9021_v7 = vpop.f32.mrf.mxu3 }
0x314c   :  { %v8997_v36 = vadd.f32 %v8996_v23, %v8964_v60 }
0x314e   :  { %v9022_v47 = vadd.f32 %v9021_v7, %v8997_v36 }
0x3150   :  { %v9024_v62 = vadd.f32 %v9022_v47, %v8837_v14 }
0x3152   :  { %v9025_v49 = vadd.f32 %v15467_v25, %v9024_v62 }
0x3154   :  { %13384 = vtanh.f32 %v9025_v49  ;;  %v13203_v50 = vmul.f32 -1.442695, %v9025_v49 }
0x3156   :  { %13386 = vpow2.f32 %v13203_v50 }
0x315a   :  { %v13385_v35 = vpop.eup %13384 }
0x315b   :  { %9048 = vrot.lane.b32.xlu0 %v13385_v35, %s13729_s14 }
0x315c   :  { %v13387_v12 = vpop.eup %13386 }
0x315d   :  { %v9029_v10 = vadd.f32 1.0, %v13387_v12 }
0x315f   :  { %13388 = vrcp.f32 %v9029_v10  ;;  %v9041_v5 = vand.u32 2147483648, %v9029_v10  ;;  %vm9035_vm1 = vweird.f32 %v9029_v10  ;;  %v9039_v14 = vand.u32 2147483647, %v9029_v10 }
0x3161   :  { %v9042_v11 = vor.u32 1.1754944e-38, %v9041_v5  ;;  %vm9040_vm3 = vcmp.eq.f32.partialorder %v9039_v14, 8.507059e+37 }
0x3165   :  { %v13389_v42 = vpop.eup %13388 }
0x3166   :  { %v9031_v18 = vmul.f32 %v13389_v42, %v9029_v10  ;;  %vm9036_vm14 = vweird.f32 %v13389_v42 }
0x3167   :  { %vm9037_vm2 = vmor %vm9035_vm1, %vm9036_vm14 }
0x3168   :  { %v9032_v3 = vsub.f32 1.0, %v9031_v18 }
0x316a   :  { %v9033_v4 = vmul.f32 %v13389_v42, %v9032_v3 }
0x316c   :  { %v9034_v63 = vadd.f32 %v13389_v42, %v9033_v4 }
0x316e   :  { %v9038_v25 = vsel %vm9037_vm2, %v13389_v42, %v9034_v63 }
0x316f   :  { %v9043_v48 = vsel %vm9040_vm3, %v9042_v11, %v9038_v25 }
0x3170   :  { %v9046_v22 = vmul.f32 %v9043_v48, %v15473_v26 }
0x31cd   :  { %v9049_v29 = vpop.permute.xlu0 %9048 }
0x31ce   :  { %v9051_v9 = vmul.f32 %v9049_v29, %v9043_v48 }
0x31d0   :  { %9053 = vrot.lane.b32.xlu2 %v9051_v9, %s13730_s15 }
0x322a   :  { %v9054_v6 = vpop.permute.xlu2 %9053 }
0x322b   :  { %v15628_v30 = vadd.f32 %v9054_v6, %v9046_v22 }
0x322d   :  { %13390 = vtanh.f32 %v15628_v30 }
0x3233   :  { %v13391_v60 = vpop.eup %13390 }
0x3234   :  { %9059 = vrot.lane.b32.xlu1 %v13391_v60, %s13729_s14 }
0x32a6   :  { %v9060_v23 = vpop.permute.xlu1 %9059 }
0x32a7   :  { %v9062_v36 = vmul.f32 %v9060_v23, %v9043_v48 }
0x32a9   :  { %9064 = vrot.lane.b32.xlu0 %v9062_v36, %s13730_s15 }
0x331b   :  { %v9065_v7 = vpop.permute.xlu0 %9064 }
0x331c   :  { %v9066_v47 = vsel %vm216_vm0, %v9065_v7, 0 }
0x331d   :  { %v15634_v62 = vand.u32 4294901760, %v9066_v47 }
0x331f   :  { %v15637_v49 = vsub.f32 %v9066_v47, %v15634_v62  ;;  %9134 = vmatmul.f32.vlgmr.msrb.gmra.mxu1 %v15634_v62 }
0x3320   :  { %9376 = vmatpush.xpose.msrb.mxu1 %v14571_v56 }
0x3321   :  { %9164 = vmatmul.f32.vlgmr.msrb.gmra.mxu2 %v15637_v49  ;;  %v15643_v26 = vand.u32 4294901760, %v15637_v49 }
0x3322   :  { %9403 = vmatpush.xpose.msrb.mxu2 %v14592_v61 }
0x3323   :  { %9191 = vmatmul.f32.vlgmr.msrb.gmra.mxu3 %v15643_v26  ;;  %v9091_v35 = vsub.f32 %v15637_v49, %v15643_v26 }
0x3324   :  { %9378 = vmatpush.xpose.msrb.mxu1 %v14551_v59  ;;  %9428 = vmatpush.xpose.msrb.mxu3 %v14571_v56 }
0x3325   :  { %v15651_v50 = vand.u32 4294901760, %v9091_v35 }
0x3326   :  { %9407 = vmatpush.xpose.msrb.mxu2 %v14595_v13 }
0x3327   :  { %9093 = vmatmul.f32.vlgmr.msrb.gmra.mxu0 %v15651_v50  ;;  %9249 = vmatmul.f32.vlgmr.msra.gmra.mxu1 %v15634_v62 }
0x3328   :  { %9351 = vmatpush.xpose.msrb.mxu0 %v14579_v44  ;;  %9430 = vmatpush.xpose.msrb.mxu3 %v14551_v59 }
0x3329   :  { %9509 = vmatpush.msra.mxu1 %v14678_v53  ;;  %9300 = vmatmul.f32.vlgmr.msra.gmra.mxu2 %v15651_v50 }
0x332a   :  { %9537 = vmatpush.msra.mxu2 %v14652_v1 }
0x332b   :  { %9515 = vmatpush.msra.mxu1 %v14688_v31  ;;  %9331 = vmatmul.f32.vlgmr.msra.gmra.mxu3 %v15634_v62 }
0x332c   :  { %9354 = vmatpush.xpose.msrb.mxu0 %v14569_v57  ;;  %9540 = vmatpush.msra.mxu2 %v16439_v45 }
0x332d   :  { %9562 = vmatpush.msra.mxu3 %v16440_v0 }
0x332f   :  { %9564 = vmatpush.msra.mxu3 %v16468_v52  ;;  %9224 = vmatmul.f32.vlgmr.msra.gmra.mxu0 %v15634_v62 }
0x3330   :  { %9382 = vmatmul.f32.vlgmr.msrb.gmra.mxu1 %v15643_v26  ;;  %9478 = vmatpush.msra.mxu0 %v16440_v0 }
0x3331   :  { %9614 = vmatpush.msrb.mxu1 %v16440_v0  ;;  %9409 = vmatmul.f32.vlgmr.msrb.gmra.mxu2 %v15634_v62 }
0x3332   :  { %9480 = vmatpush.msra.mxu0 %v16468_v52  ;;  %9638 = vmatpush.msrb.mxu2 %v14818_v16 }
0x3333   :  { %9616 = vmatpush.msrb.mxu1 %v16468_v52  ;;  %9432 = vmatmul.f32.vlgmr.msrb.gmra.mxu3 %v15634_v62 }
0x3334   :  { %9640 = vmatpush.msrb.mxu2 %v14825_v8  ;;  %9671 = vmatpush.msrb.mxu3 %v16469_v2 }
0x3336   :  { %9642 = vmatpush.msrb.mxu2 %v14836_v21  ;;  %9677 = vmatpush.msrb.mxu3 %v16470_v58 }
0x3337   :  { %9357 = vmatmul.f32.vlgmr.msrb.gmra.mxu0 %v15637_v49 }
0x3338   :  { %9589 = vmatpush.msrb.mxu0 %v16471_v43  ;;  %9644 = vmatpush.msrb.mxu2 %v14845_v15 }
0x3339   :  { %9683 = vmatpush.msrb.mxu3 %v16498_v33 }
0x333a   :  { %9593 = vmatpush.msrb.mxu0 %v16499_v27 }
0x333b   :  { %9689 = vmatpush.msrb.mxu3 %v16527_v41 }
0x339c   :  { %v9135_v12 = vpop.f32.mrf.mxu1 }
0x33a4   :  { %v9094_v10 = vpop.f32.mrf.mxu0  ;;  %v9165_v42 = vpop.f32.mrf.mxu2 }
0x33a5   :  { %v9095_v18 = vadd.f32 %v15531_v51, %v9094_v10  ;;  %v9250_v14 = vpop.f32.mrf.mxu1 }
0x33a6   :  { %v9192_v3 = vpop.f32.mrf.mxu3 }
0x33a7   :  { %v9136_v4 = vadd.f32 %v9135_v12, %v9095_v18 }
0x33a9   :  { %v9166_v63 = vadd.f32 %v9165_v42, %v9136_v4 }
0x33ab   :  { %v9193_v5 = vadd.f32 %v9192_v3, %v9166_v63 }
0x33ac   :  { %v9225_v25 = vpop.f32.mrf.mxu0  ;;  %v9301_v29 = vpop.f32.mrf.mxu2 }
0x33ad   :  { %v9226_v11 = vadd.f32 %v9225_v25, %v9193_v5  ;;  %v9383_v23 = vpop.f32.mrf.mxu1 }
0x33ae   :  { %v9332_v9 = vpop.f32.mrf.mxu3 }
0x33af   :  { %v9251_v48 = vadd.f32 %v9250_v14, %v9226_v11  ;;  %v9333_v6 = vadd.f32 %v9332_v9, %v9301_v29 }
0x33b1   :  { %9253 = vst.msk [vmem:[%s16264_s12 + $0x5] sm:$0x1] %vm1048_vm5, %v9251_v48  ;;  %v9254_v22 = vsel %vm1048_vm5, %v9251_v48, -inf }
0x33b2   :  { %9255 = vmax.xlane.f32.xlu2 %v9254_v22 }
0x33b4   :  { %v9358_v51 = vpop.f32.mrf.mxu0  ;;  %v9410_v7 = vpop.f32.mrf.mxu2 }
0x33b5   :  { %v9359_v60 = vadd.f32 %v9358_v51, %v9333_v6 }
0x33b6   :  { %v9433_v35 = vpop.f32.mrf.mxu3 }
0x33b7   :  { %v9384_v36 = vadd.f32 %v9383_v23, %v9359_v60 }
0x33b9   :  { %v9411_v47 = vadd.f32 %v9410_v7, %v9384_v36 }
0x33bb   :  { %v9434_v12 = vadd.f32 %v9433_v35, %v9411_v47 }
0x33bd   :  { %v9436_v10 = vsel %vm3793_vm15, %v9434_v12, -inf }
0x33be   :  { %9437 = vmax.xlane.f32.xlu0 %v9436_v10 }
0x3425   :  { %v9256_v42 = vpop.xlane.xlu2 %9255 }
0x3426   :  { %vm9257_vm4 = vcmp.eq.f32.partialorder %v9251_v48, %v9256_v42 }
0x3427   :  { %v9258_v18 = vsel %vm9257_vm4, %v14918_v40, 32 }
0x3428   :  { %v9259_v3 = vsel %vm1048_vm5, %v9258_v18, 2147483647 }
0x3429   :  { %v9261_v4 = vshra.s32 %v9259_v3, 16  ;;  %v9260_v9 = vand.u32 65535, %v9259_v3 }
0x342b   :  { %v9263_v63 = vcvt.s32.f32 %v9261_v4  ;;  %v9262_v6 = vcvt.s32.f32 %v9260_v9  ;;  %v16586_v9 = vld [vmem:[#allocation32_spill] sm:$0xff] }
0x342d   :  { %9264 = vmin.xlane.f32.xlu1 %v9263_v63 }
0x3431   :  { %v9438_v5 = vpop.xlane.xlu0 %9437 }
0x3432   :  { %v9439_v14 = vsub.f32 %v9434_v12, %v9438_v5 }
0x3434   :  { %v9440_v25 = vmul.f32 1.442695, %v9439_v14 }
0x3436   :  { %13392 = vpow2.f32 %v9440_v25 }
0x343c   :  { %v13393_v11 = vpop.eup %13392 }
0x343d   :  { %v9442_v29 = vsel %vm3793_vm15, %v13393_v11, 0.0 }
0x343e   :  { %9443 = vadd.xlane.f32.xlu2 %v9442_v29  ;;  %v16585_v29 = vld [vmem:[#allocation31_spill] sm:$0xff] }
0x34a0   :  { %v9265_v22 = vpop.xlane.xlu1 %9264 }
0x34a1   :  { %vm9266_vm7 = vcmp.eq.f32.partialorder %v9263_v63, %v9265_v22 }
0x34a2   :  { %v9267_v48 = vsel %vm9266_vm7, %v9262_v6, inf  ;;  %v16587_v6 = vld [vmem:[#allocation35_spill] sm:$0xff] }
0x34a3   :  { %9268 = vmin.xlane.f32.xlu0 %v9267_v48  ;;  %v9271_v48 = vcvt.f32.s32 %v9265_v22  ;;  %v16589_v22 = vld [vmem:[#allocation33_spill] sm:$0xff] }
0x34b1   :  { %v9444_v51 = vpop.xlane.xlu2 %9443 }
0x34b2   :  { %13394 = vrcp.f32 %v9444_v51  ;;  %v9456_v7 = vand.u32 2147483648, %v9444_v51  ;;  %v9454_v35 = vand.u32 2147483647, %v9444_v51  ;;  %vm9450_vm9 = vweird.f32 %v9444_v51 }
0x34b4   :  { %v9457_v10 = vor.u32 1.1754944e-38, %v9456_v7  ;;  %vm9455_vm11 = vcmp.eq.f32.partialorder %v9454_v35, 8.507059e+37  ;;  %v16588_v7 = vmov 0.0  }
0x34b8   :  { %v13395_v60 = vpop.eup %13394 }
0x34b9   :  { %v9446_v23 = vmul.f32 %v13395_v60, %v9444_v51  ;;  %vm9451_vm8 = vweird.f32 %v13395_v60 }
0x34ba   :  { %vm9452_vm10 = vmor %vm9450_vm9, %vm9451_vm8 }
0x34bb   :  { %v9447_v36 = vsub.f32 1.0, %v9446_v23 }
0x34bd   :  { %v9448_v47 = vmul.f32 %v13395_v60, %v9447_v36 }
0x34bf   :  { %v9449_v12 = vadd.f32 %v13395_v60, %v9448_v47 }
0x34c1   :  { %v9453_v42 = vsel %vm9452_vm10, %v13395_v60, %v9449_v12  ;;  %v9272_v60 = vshll.u32 %v9271_v48, 16  ;;  %v16597_v48 = vld [vmem:[#allocation57_spill] sm:$0xff] }
0x34c2   :  { %v9458_v18 = vsel %vm9455_vm11, %v9457_v10, %v9453_v42 }
0x34c3   :  { %v9459_v3 = vmul.f32 %v13393_v11, %v9458_v18  ;;  %v16590_v18 = vld [vmem:[#allocation37_spill] sm:$0xff] }
0x34c5   :  { %v9461_v4 = vsel %vm4003_vm6, %v9459_v3, 0 }
0x34c6   :  { %v9481_v63 = vand.u32 4294901760, %v9461_v4 }
0x34c8   :  { %9517 = vmatmul.f32.vlgmr.msra.gmra.mxu1 %v9481_v63  ;;  %v9482_v5 = vsub.f32 %v9461_v4, %v9481_v63  ;;  %v16591_v4 = vld [vmem:[#allocation39_spill] sm:$0xff] }
0x34c9   :  { %9738 = vmatpush.msra.mxu1 %v14818_v16 }
0x34ca   :  { %9543 = vmatmul.f32.vlgmr.msra.gmra.mxu2 %v9482_v5  ;;  %v9483_v14 = vand.u32 4294901760, %v9482_v5 }
0x34cb   :  { %9740 = vmatpush.msra.mxu1 %v14825_v8  ;;  %9767 = vmatpush.msra.mxu2 %v14850_v54 }
0x34cc   :  { %9568 = vmatmul.f32.vlgmr.msra.gmra.mxu3 %v9483_v14  ;;  %v9484_v25 = vsub.f32 %v9482_v5, %v9483_v14  ;;  %v16593_v5 = vld [vmem:[#allocation30_spill] sm:$0xff]  ;;  %v16594_v14 = vld [vmem:[#allocation56_spill] sm:$0xff] }
0x34cd   :  { %9742 = vmatpush.msra.mxu1 %v14836_v21  ;;  %9771 = vmatpush.msra.mxu2 %v14859_v46 }
0x34ce   :  { %9798 = vmatpush.msra.mxu3 %v14818_v16  ;;  %v9485_v11 = vand.u32 4294901760, %v9484_v25  ;;  %v16595_v25 = vld [vmem:[#allocation34_spill] sm:$0xff] }
0x34cf   :  { %9744 = vmatpush.msra.mxu1 %v14845_v15  ;;  %9775 = vmatpush.msra.mxu2 %v14870_v32 }
0x34d0   :  { %9800 = vmatpush.msra.mxu3 %v14825_v8  ;;  %9486 = vmatmul.f32.vlgmr.msra.gmra.mxu0 %v9485_v11  ;;  %v16596_v11 = vld [vmem:[#allocation64_spill] sm:$0xff] }
0x34d1   :  { %9618 = vmatmul.f32.vlgmr.msrb.gmra.mxu1 %v9481_v63  ;;  %9709 = vmatpush.msra.mxu0 %v14833_v24 }
0x34d2   :  { %9779 = vmatpush.msra.mxu2 %v14879_v17  ;;  %9802 = vmatpush.msra.mxu3 %v14836_v21 }
0x34d3   :  { %9712 = vmatpush.msra.mxu0 %v14841_v20  ;;  %9856 = vmatpush.msrb.mxu1 %v16449_v55 }
0x34d4   :  { %9804 = vmatpush.msra.mxu3 %v14845_v15 }
0x34d5   :  { %9715 = vmatpush.msra.mxu0 %v14854_v34  ;;  %9862 = vmatpush.msrb.mxu1 %v16450_v38 }
0x34d7   :  { %9718 = vmatpush.msra.mxu0 %v14864_v19  ;;  %9868 = vmatpush.msrb.mxu1 %v16451_v28 }
0x34d8   :  { %9595 = vmatmul.f32.vlgmr.msrb.gmra.mxu0 %v9481_v63  ;;  %v16592_v63 = vld [vmem:[#allocation41_spill] sm:$0xff] }
0x34d9   :  { %9823 = vmatpush.msrb.mxu0 %v16452_v37  ;;  %9874 = vmatpush.msrb.mxu1 %v16476_v39 }
0x34db   :  { %9825 = vmatpush.msrb.mxu0 %v16585_v29 }
0x34dd   :  { %9827 = vmatpush.msrb.mxu0 %v16586_v9 }
0x34df   :  { %9829 = vmatpush.msrb.mxu0 %v16587_v6 }
0x3516   :  { %v9269_v51 = vpop.xlane.xlu0 %9268 }
0x3517   :  { %v9270_v23 = vcvt.f32.s32 %v9269_v51  ;;  %v16598_v51 = vld [vmem:[#allocation52_spill] sm:$0xff] }
0x3519   :  { %v9273_v36 = vadd.s32 %v9272_v60, %v9270_v23  ;;  %v16599_v60 = vld [vmem:[#allocation36_spill] sm:$0xff]  ;;  %v16601_v23 = vld [vmem:[#allocation53_spill] sm:$0xff] }
0x351b   :  { %vm9274_vm12 = vcmp.eq.s32.totalorder %v14918_v40, %v9273_v36  ;;  %v16602_v36 = vld [vmem:[#allocation59_spill] sm:$0xff] }
0x351c   :  { %v13204_v47 = vsel %vm9274_vm12, 1.0, %v16588_v7 }
0x351d   :  { %v9623_v35 = vsel %vm216_vm0, %v13204_v47, 0  ;;  %13205 = vmatmul.msk.f32.vlgmr.msrb.gmra.mxu3 %vm216_vm0, %v13204_v47 }
0x351e   :  { %v9646_v12 = vsub.f32 %v9623_v35, %v9623_v35  ;;  %9923 = vmatpush.msrb.mxu3 %v16452_v37  ;;  %v16603_v35 = vld [vmem:[#allocation38_spill] sm:$0xff] }
0x3520   :  { %9721 = vmatmul.f32.vlgmr.msra.gmra.mxu0 %v9646_v12  ;;  %v9647_v10 = vand.u32 4294901760, %v9646_v12  ;;  %9925 = vmatpush.msrb.mxu3 %v16585_v29 }
0x3521   :  { %9952 = vmatpush.msra.mxu0 %v16589_v22 }
0x3522   :  { %9748 = vmatmul.f32.vlgmr.msra.gmra.mxu1 %v9647_v10  ;;  %v9648_v42 = vsub.f32 %v9646_v12, %v9647_v10  ;;  %9927 = vmatpush.msrb.mxu3 %v16586_v9  ;;  %v16604_v12 = vld [vmem:[#allocation54_spill] sm:$0xff]  ;;  %v16605_v10 = vld [vmem:[#allocation65_spill] sm:$0xff] }
0x3523   :  { %9956 = vmatpush.msra.mxu0 %v16590_v18  ;;  %9983 = vmatpush.msra.mxu1 %v16452_v37 }
0x3524   :  { %v9649_v3 = vand.u32 4294901760, %v9648_v42  ;;  %9929 = vmatpush.msrb.mxu3 %v16587_v6  ;;  %v16606_v42 = vld [vmem:[#allocation55_spill] sm:$0xff] }
0x3525   :  { %13207 = vmatmul.msk.f32.vlgmr.msra.gmra.mxu3 %vm216_vm0, %v13204_v47  ;;  %9960 = vmatpush.msra.mxu0 %v16591_v4 }
0x3526   :  { %9650 = vmatmul.f32.vlgmr.msrb.gmra.mxu2 %v9649_v3  ;;  %9985 = vmatpush.msra.mxu1 %v16585_v29  ;;  %v16609_v3 = vld [vmem:[#allocation67_spill] sm:$0xff] }
0x3527   :  { %9964 = vmatpush.msra.mxu0 %v16592_v63  ;;  %9894 = vmatpush.msrb.mxu2 %v16593_v5 }
0x3528   :  { %9835 = vmatmul.f32.vlgmr.msrb.gmra.mxu0 %v15651_v50  ;;  %9987 = vmatpush.msra.mxu1 %v16586_v9  ;;  %v16600_v50 = vld [vmem:[#allocation58_spill] sm:$0xff] }
0x3529   :  { %10123 = vmatpush.msrb.mxu0 %v16594_v14  ;;  %9897 = vmatpush.msrb.mxu2 %v16595_v25 }
0x352a   :  { %9876 = vmatmul.f32.vlgmr.msrb.gmra.mxu1 %v15634_v62  ;;  %10085 = vmatpush.msra.mxu3 %v16596_v11 }
0x352b   :  { %9989 = vmatpush.msra.mxu1 %v16587_v6  ;;  %10126 = vmatpush.msrb.mxu0 %v16597_v48 }
0x352c   :  { %9900 = vmatpush.msrb.mxu2 %v16599_v60  ;;  %10091 = vmatpush.msra.mxu3 %v16605_v10  ;;  %v16610_v10 = vld [vmem:[#allocation46_spill] sm:$0xff] }
0x352d   :  { %10152 = vmatpush.msrb.mxu1 %v16598_v51  ;;  %9933 = vmatmul.f32.vlgmr.msrb.gmra.mxu3 %v15643_v26  ;;  %v16607_v26 = vld [vmem:[#allocation66_spill] sm:$0xff] }
0x352e   :  { %10129 = vmatpush.msrb.mxu0 %v16600_v50  ;;  %13206 = vmatmul.msk.f32.vlgmr.msra.gmra.mxu2 %vm216_vm0, %v13204_v47  ;;  %v16608_v47 = vld [vmem:[#allocation43_spill] sm:$0xff] }
0x352f   :  { %10154 = vmatpush.msrb.mxu1 %v16601_v23  ;;  %9903 = vmatpush.msrb.mxu2 %v16603_v35 }
0x3530   :  { %10132 = vmatpush.msrb.mxu0 %v16602_v36  ;;  %10097 = vmatpush.msra.mxu3 %v16607_v26 }
0x3531   :  { %10156 = vmatpush.msrb.mxu1 %v16604_v12  ;;  %9966 = vmatmul.f32.vlgmr.msra.gmra.mxu0 %v15634_v62 }
0x3532   :  { %10263 = vmatpush.xpose.msra.mxu0 %v14571_v56  ;;  %10052 = vmatpush.msra.mxu2 %v16598_v51 }
0x3533   :  { %10158 = vmatpush.msrb.mxu1 %v16606_v42  ;;  %10103 = vmatpush.msra.mxu3 %v16609_v3  ;;  %v16613_v3 = vld [vmem:[#allocation62_spill] sm:$0xff] }
0x3534   :  { %9991 = vmatmul.f32.vlgmr.msra.gmra.mxu1 %v15634_v62  ;;  %10054 = vmatpush.msra.mxu2 %v16601_v23  ;;  %v16611_v62 = vld [vmem:[#allocation60_spill] sm:$0xff] }
0x3535   :  { %10294 = vmatpush.xpose.msra.mxu1 %v16608_v47  ;;  %10212 = vmatpush.msrb.mxu3 %v16598_v51  ;;  %v16612_v47 = vld [vmem:[#allocation61_spill] sm:$0xff] }
0x3536   :  { %10265 = vmatpush.xpose.msra.mxu0 %v14551_v59  ;;  %9906 = vmatmul.f32.vlgmr.msrb.gmra.mxu2 %v15637_v49  ;;  %v16614_v49 = vld [vmem:[#allocation63_spill] sm:$0xff] }
0x3537   :  { %10056 = vmatpush.msra.mxu2 %v16604_v12  ;;  %10214 = vmatpush.msrb.mxu3 %v16601_v23 }
0x3539   :  { %10300 = vmatpush.xpose.msra.mxu1 %v16610_v10  ;;  %10058 = vmatpush.msra.mxu2 %v16606_v42 }
0x353a   :  { %10216 = vmatpush.msrb.mxu3 %v16604_v12 }
0x353b   :  { %10181 = vmatpush.msrb.mxu2 %v16611_v62 }
0x353c   :  { %10218 = vmatpush.msrb.mxu3 %v16606_v42 }
0x353d   :  { %10185 = vmatpush.msrb.mxu2 %v16612_v47 }
0x353f   :  { %10189 = vmatpush.msrb.mxu2 %v16613_v3 }
0x3541   :  { %10193 = vmatpush.msrb.mxu2 %v16614_v49 }
0x3545   :  { %v9518_v35 = vpop.f32.mrf.mxu1 }
0x354d   :  { %v9487_v26 = vpop.f32.mrf.mxu0  ;;  %v9544_v10 = vpop.f32.mrf.mxu2 }
0x354e   :  { %v9519_v36 = vadd.f32 %v9518_v35, %v9487_v26  ;;  %v9619_v51 = vpop.f32.mrf.mxu1 }
0x354f   :  { %v9569_v50 = vpop.f32.mrf.mxu3 }
0x3550   :  { %v9545_v23 = vadd.f32 %v9544_v10, %v9519_v36 }
0x3552   :  { %v9570_v48 = vadd.f32 %v9569_v50, %v9545_v23 }
0x3555   :  { %v9596_v60 = vpop.f32.mrf.mxu0 }
0x3556   :  { %v9597_v12 = vadd.f32 %v9596_v60, %v9570_v48 }
0x3558   :  { %v9620_v42 = vadd.f32 %v9619_v51, %v9597_v12 }
0x359d   :  { %v9722_v62 = vpop.f32.mrf.mxu0 }
0x359f   :  { %v9749_v14 = vpop.f32.mrf.mxu1 }
0x35a0   :  { %v9692_v11 = vpop.f32.mrf.mxu3 }
0x35a5   :  { %v9836_v49 = vpop.f32.mrf.mxu0 }
0x35a7   :  { %v9877_v18 = vpop.f32.mrf.mxu1 }
0x35a8   :  { %v9807_v3 = vpop.f32.mrf.mxu3  ;;  %v9878_v35 = vadd.f32 %v9877_v18, %v9836_v49 }
0x35a9   :  { %v9651_v25 = vpop.f32.mrf.mxu2 }
0x35aa   :  { %v9652_v47 = vadd.f32 %v9651_v25, %v9620_v42  ;;  %v15777_v25 = vld [vmem:[#allocation16] sm:$0x1] }
0x35ac   :  { %v9693_v5 = vadd.f32 %v9692_v11, %v9652_v47 }
0x35ae   :  { %v9723_v4 = vadd.f32 %v9722_v62, %v9693_v5  ;;  %v9967_v48 = vpop.f32.mrf.mxu0 }
0x35b0   :  { %v9750_v26 = vadd.f32 %v9749_v14, %v9723_v4  ;;  %v9934_v10 = vpop.f32.mrf.mxu3 }
0x35b1   :  { %v9782_v63 = vpop.f32.mrf.mxu2  ;;  %v9992_v23 = vpop.f32.mrf.mxu1 }
0x35b2   :  { %v9783_v7 = vadd.f32 %v9782_v63, %v9750_v26 }
0x35b4   :  { %v9808_v6 = vadd.f32 %v9807_v3, %v9783_v7 }
0x35b9   :  { %v9907_v22 = vpop.f32.mrf.mxu2 }
0x35ba   :  { %v9908_v36 = vadd.f32 %v9907_v22, %v9878_v35 }
0x35bc   :  { %v9935_v50 = vadd.f32 %v9934_v10, %v9908_v36 }
0x35be   :  { %v9968_v60 = vadd.f32 %v9967_v48, %v9935_v50 }
0x35c0   :  { %v9993_v51 = vadd.f32 %v9992_v23, %v9968_v60 }
0x35c2   :  { %v9995_v12 = vadd.f32 %v9993_v51, %v9808_v6 }
0x35c4   :  { %v9996_v11 = vadd.f32 %v15777_v25, %v9995_v12 }
0x35c6   :  { %13396 = vtanh.f32 %v9996_v11  ;;  %v13208_v18 = vmul.f32 -1.442695, %v9996_v11 }
0x35c8   :  { %13398 = vpow2.f32 %v13208_v18 }
0x35cc   :  { %v13397_v5 = vpop.eup %13396 }
0x35cd   :  { %10019 = vrot.lane.b32.xlu1 %v13397_v5, %s13729_s14 }
0x35ce   :  { %v13399_v22 = vpop.eup %13398 }
0x35cf   :  { %v10000_v4 = vadd.f32 1.0, %v13399_v22 }
0x35d1   :  { %13400 = vrcp.f32 %v10000_v4  ;;  %v10012_v6 = vand.u32 2147483648, %v10000_v4  ;;  %vm10006_vm14 = vweird.f32 %v10000_v4  ;;  %v10010_v3 = vand.u32 2147483647, %v10000_v4 }
0x35d3   :  { %v10013_v49 = vor.u32 1.1754944e-38, %v10012_v6  ;;  %vm10011_vm2 = vcmp.eq.f32.partialorder %v10010_v3, 8.507059e+37 }
0x35d7   :  { %v13401_v63 = vpop.eup %13400 }
0x35d8   :  { %v10002_v14 = vmul.f32 %v13401_v63, %v10000_v4  ;;  %vm10007_vm13 = vweird.f32 %v13401_v63 }
0x35d9   :  { %vm10008_vm1 = vmor %vm10006_vm14, %vm10007_vm13 }
0x35da   :  { %v10003_v42 = vsub.f32 1.0, %v10002_v14 }
0x35dc   :  { %v10004_v47 = vmul.f32 %v13401_v63, %v10003_v42 }
0x35de   :  { %v10005_v7 = vadd.f32 %v13401_v63, %v10004_v47  ;;  %v15841_v47 = vld [vmem:[#allocation20] sm:$0x1] }
0x35e0   :  { %v10009_v62 = vsel %vm10008_vm1, %v13401_v63, %v10005_v7 }
0x35e1   :  { %v10014_v26 = vsel %vm10011_vm2, %v10013_v49, %v10009_v62 }
0x35e2   :  { %v10017_v10 = vmul.f32 %v10014_v26, %v15628_v30 }
0x363f   :  { %v10020_v35 = vpop.permute.xlu1 %10019 }
0x3640   :  { %v10022_v36 = vmul.f32 %v10020_v35, %v10014_v26 }
0x3642   :  { %10024 = vrot.lane.b32.xlu2 %v10022_v36, %s13730_s15 }
0x369c   :  { %v10025_v50 = vpop.permute.xlu2 %10024 }
0x369d   :  { %v15783_v48 = vadd.f32 %v10025_v50, %v10017_v10 }
0x369f   :  { %13402 = vtanh.f32 %v15783_v48 }
0x36a5   :  { %v13403_v60 = vpop.eup %13402 }
0x36a6   :  { %10030 = vrot.lane.b32.xlu0 %v13403_v60, %s13729_s14 }
0x3718   :  { %v10031_v23 = vpop.permute.xlu0 %10030 }
0x3719   :  { %v10033_v51 = vmul.f32 %v10031_v23, %v10014_v26 }
0x371b   :  { %10035 = vrot.lane.b32.xlu1 %v10033_v51, %s13730_s15 }
0x378d   :  { %v10036_v12 = vpop.permute.xlu1 %10035 }
0x378e   :  { %v10037_v11 = vsel %vm216_vm0, %v10036_v12, 0 }
0x378f   :  { %v15789_v5 = vand.u32 4294901760, %v10037_v11 }
0x3791   :  { %v15792_v18 = vsub.f32 %v10037_v11, %v15789_v5  ;;  %10105 = vmatmul.f32.vlgmr.msra.gmra.mxu3 %v15789_v5 }
0x3792   :  { %10347 = vmatpush.xpose.msra.mxu3 %v14571_v56 }
0x3793   :  { %10135 = vmatmul.f32.vlgmr.msrb.gmra.mxu0 %v15792_v18  ;;  %v15798_v30 = vand.u32 4294901760, %v15792_v18 }
0x3794   :  { %10374 = vmatpush.xpose.msrb.mxu0 %v14592_v61 }
0x3795   :  { %10162 = vmatmul.f32.vlgmr.msrb.gmra.mxu1 %v15798_v30  ;;  %v10062_v22 = vsub.f32 %v15792_v18, %v15798_v30 }
0x3796   :  { %10349 = vmatpush.xpose.msra.mxu3 %v14551_v59  ;;  %10399 = vmatpush.xpose.msrb.mxu1 %v14571_v56 }
0x3797   :  { %v15806_v4 = vand.u32 4294901760, %v10062_v22 }
0x3798   :  { %10378 = vmatpush.xpose.msrb.mxu0 %v14595_v13 }
0x3799   :  { %10064 = vmatmul.f32.vlgmr.msra.gmra.mxu2 %v15806_v4  ;;  %10220 = vmatmul.f32.vlgmr.msrb.gmra.mxu3 %v15789_v5 }
0x379a   :  { %10322 = vmatpush.xpose.msra.mxu2 %v14579_v44  ;;  %10401 = vmatpush.xpose.msrb.mxu1 %v14551_v59 }
0x379b   :  { %10480 = vmatpush.msrb.mxu3 %v14678_v53  ;;  %10271 = vmatmul.f32.vlgmr.msra.gmra.mxu0 %v15806_v4 }
0x379c   :  { %10508 = vmatpush.msra.mxu0 %v14652_v1 }
0x379d   :  { %10486 = vmatpush.msrb.mxu3 %v14688_v31  ;;  %10302 = vmatmul.f32.vlgmr.msra.gmra.mxu1 %v15789_v5 }
0x379e   :  { %10325 = vmatpush.xpose.msra.mxu2 %v14569_v57  ;;  %10511 = vmatpush.msra.mxu0 %v16439_v45 }
0x379f   :  { %10533 = vmatpush.msra.mxu1 %v16440_v0 }
0x37a1   :  { %10535 = vmatpush.msra.mxu1 %v16468_v52  ;;  %10195 = vmatmul.f32.vlgmr.msrb.gmra.mxu2 %v15789_v5 }
0x37a2   :  { %10353 = vmatmul.f32.vlgmr.msra.gmra.mxu3 %v15798_v30  ;;  %10449 = vmatpush.msrb.mxu2 %v16440_v0 }
0x37a3   :  { %10585 = vmatpush.msra.mxu3 %v16440_v0  ;;  %10380 = vmatmul.f32.vlgmr.msrb.gmra.mxu0 %v15789_v5 }
0x37a4   :  { %10451 = vmatpush.msrb.mxu2 %v16468_v52  ;;  %10609 = vmatpush.msrb.mxu0 %v14818_v16 }
0x37a5   :  { %10587 = vmatpush.msra.mxu3 %v16468_v52  ;;  %10403 = vmatmul.f32.vlgmr.msrb.gmra.mxu1 %v15789_v5 }
0x37a6   :  { %10611 = vmatpush.msrb.mxu0 %v14825_v8  ;;  %10642 = vmatpush.msrb.mxu1 %v16469_v2 }
0x37a8   :  { %10613 = vmatpush.msrb.mxu0 %v14836_v21  ;;  %10648 = vmatpush.msrb.mxu1 %v16470_v58 }
0x37a9   :  { %10328 = vmatmul.f32.vlgmr.msra.gmra.mxu2 %v15792_v18 }
0x37aa   :  { %10560 = vmatpush.msra.mxu2 %v16471_v43  ;;  %10615 = vmatpush.msrb.mxu0 %v14845_v15 }
0x37ab   :  { %10654 = vmatpush.msrb.mxu1 %v16498_v33 }
0x37ac   :  { %10564 = vmatpush.msra.mxu2 %v16499_v27 }
0x37ad   :  { %10660 = vmatpush.msrb.mxu1 %v16527_v41 }
0x3810   :  { %v10136_v14 = vpop.f32.mrf.mxu0 }
0x3812   :  { %v10163_v6 = vpop.f32.mrf.mxu1 }
0x3814   :  { %v10106_v63 = vpop.f32.mrf.mxu3 }
0x3818   :  { %v10272_v10 = vpop.f32.mrf.mxu0 }
0x381a   :  { %v10303_v60 = vpop.f32.mrf.mxu1 }
0x381b   :  { %v10304_v51 = vadd.f32 %v10303_v60, %v10272_v10 }
0x381c   :  { %v10065_v42 = vpop.f32.mrf.mxu2  ;;  %v10221_v35 = vpop.f32.mrf.mxu3 }
0x381d   :  { %v10066_v7 = vadd.f32 %v15841_v47, %v10065_v42 }
0x381f   :  { %v10107_v3 = vadd.f32 %v10106_v63, %v10066_v7 }
0x3821   :  { %v10137_v62 = vadd.f32 %v10136_v14, %v10107_v3  ;;  %v10381_v14 = vpop.f32.mrf.mxu0 }
0x3822   :  { %v10404_v7 = vpop.f32.mrf.mxu1 }
0x3823   :  { %v10164_v49 = vadd.f32 %v10163_v6, %v10137_v62 }
0x3824   :  { %v10196_v26 = vpop.f32.mrf.mxu2 }
0x3825   :  { %v10197_v36 = vadd.f32 %v10196_v26, %v10164_v49  ;;  %v10354_v22 = vpop.f32.mrf.mxu3 }
0x3827   :  { %v10222_v50 = vadd.f32 %v10221_v35, %v10197_v36 }
0x3829   :  { %10224 = vst.msk [vmem:[%s16264_s12 + $0x6] sm:$0x1] %vm1048_vm5, %v10222_v50  ;;  %v10225_v23 = vsel %vm1048_vm5, %v10222_v50, -inf }
0x382a   :  { %10226 = vmax.xlane.f32.xlu0 %v10225_v23 }
0x382c   :  { %v10329_v12 = vpop.f32.mrf.mxu2 }
0x382d   :  { %v10330_v11 = vadd.f32 %v10329_v12, %v10304_v51 }
0x382f   :  { %v10355_v63 = vadd.f32 %v10354_v22, %v10330_v11 }
0x3831   :  { %v10382_v42 = vadd.f32 %v10381_v14, %v10355_v63 }
0x3833   :  { %v10405_v6 = vadd.f32 %v10404_v7, %v10382_v42 }
0x3835   :  { %v10407_v3 = vsel %vm3793_vm15, %v10405_v6, -inf }
0x3836   :  { %10408 = vmax.xlane.f32.xlu2 %v10407_v3 }
0x389d   :  { %v10227_v62 = vpop.xlane.xlu0 %10226 }
0x389e   :  { %vm10228_vm3 = vcmp.eq.f32.partialorder %v10222_v50, %v10227_v62 }
0x389f   :  { %v10229_v49 = vsel %vm10228_vm3, %v14918_v40, 32 }
0x38a0   :  { %v10230_v35 = vsel %vm1048_vm5, %v10229_v49, 2147483647 }
0x38a1   :  { %v10232_v26 = vshra.s32 %v10230_v35, 16  ;;  %v10231_v11 = vand.u32 65535, %v10230_v35 }
0x38a3   :  { %v10234_v36 = vcvt.s32.f32 %v10232_v26  ;;  %v10233_v63 = vcvt.s32.f32 %v10231_v11 }
0x38a5   :  { %10235 = vmin.xlane.f32.xlu1 %v10234_v36 }
0x38a9   :  { %v10409_v10 = vpop.xlane.xlu2 %10408 }
0x38aa   :  { %v10410_v60 = vsub.f32 %v10405_v6, %v10409_v10 }
0x38ac   :  { %v10411_v23 = vmul.f32 1.442695, %v10410_v60 }
0x38ae   :  { %13404 = vpow2.f32 %v10411_v23 }
0x38b4   :  { %v13405_v51 = vpop.eup %13404 }
0x38b5   :  { %v10413_v12 = vsel %vm3793_vm15, %v13405_v51, 0.0 }
0x38b6   :  { %10414 = vadd.xlane.f32.xlu0 %v10413_v12 }
0x3918   :  { %v10236_v22 = vpop.xlane.xlu1 %10235 }
0x3919   :  { %vm10237_vm4 = vcmp.eq.f32.partialorder %v10234_v36, %v10236_v22 }
0x391a   :  { %v10238_v50 = vsel %vm10237_vm4, %v10233_v63, inf }
0x391b   :  { %10239 = vmin.xlane.f32.xlu2 %v10238_v50 }
0x3929   :  { %v10415_v14 = vpop.xlane.xlu0 %10414 }
0x392a   :  { %13406 = vrcp.f32 %v10415_v14  ;;  %v10427_v62 = vand.u32 2147483648, %v10415_v14  ;;  %v10425_v6 = vand.u32 2147483647, %v10415_v14  ;;  %vm10421_vm8 = vweird.f32 %v10415_v14 }
0x392c   :  { %v10428_v10 = vor.u32 1.1754944e-38, %v10427_v62  ;;  %vm10426_vm10 = vcmp.eq.f32.partialorder %v10425_v6, 8.507059e+37  ;;  %v16616_v6 = vmov 0.0  }
0x3930   :  { %v13407_v42 = vpop.eup %13406 }
0x3931   :  { %v10417_v7 = vmul.f32 %v13407_v42, %v10415_v14  ;;  %vm10422_vm7 = vweird.f32 %v13407_v42  ;;  %v16615_v14 = vld [vmem:[#allocation35_spill] sm:$0xff] }
0x3932   :  { %vm10423_vm9 = vmor %vm10421_vm8, %vm10422_vm7 }
0x3933   :  { %v10418_v3 = vsub.f32 1.0, %v10417_v7 }
0x3935   :  { %v10419_v49 = vmul.f32 %v13407_v42, %v10418_v3 }
0x3937   :  { %v10420_v26 = vadd.f32 %v13407_v42, %v10419_v49 }
0x3939   :  { %v10424_v60 = vsel %vm10423_vm9, %v13407_v42, %v10420_v26  ;;  %v10242_v42 = vcvt.f32.s32 %v10236_v22  ;;  %v16617_v22 = vld [vmem:[#allocation33_spill] sm:$0xff] }
0x393a   :  { %v10429_v35 = vsel %vm10426_vm10, %v10428_v10, %v10424_v60 }
0x393b   :  { %v10430_v23 = vmul.f32 %v13405_v51, %v10429_v35  ;;  %v10243_v3 = vshll.u32 %v10242_v42, 16  ;;  %v16623_v42 = vld [vmem:[#allocation34_spill] sm:$0xff] }
0x393d   :  { %v10432_v36 = vsel %vm4003_vm6, %v10430_v23, 0 }
0x393e   :  { %v10452_v12 = vand.u32 4294901760, %v10432_v36 }
0x3940   :  { %10488 = vmatmul.f32.vlgmr.msrb.gmra.mxu3 %v10452_v12  ;;  %v10453_v11 = vsub.f32 %v10432_v36, %v10452_v12  ;;  %v16618_v36 = vld [vmem:[#allocation37_spill] sm:$0xff] }
0x3941   :  { %10709 = vmatpush.msrb.mxu3 %v14818_v16 }
0x3942   :  { %10514 = vmatmul.f32.vlgmr.msra.gmra.mxu0 %v10453_v11  ;;  %v10454_v63 = vand.u32 4294901760, %v10453_v11 }
0x3943   :  { %10711 = vmatpush.msrb.mxu3 %v14825_v8  ;;  %10738 = vmatpush.msra.mxu0 %v14850_v54 }
0x3944   :  { %10539 = vmatmul.f32.vlgmr.msra.gmra.mxu1 %v10454_v63  ;;  %v10455_v50 = vsub.f32 %v10453_v11, %v10454_v63  ;;  %v16619_v11 = vld [vmem:[#allocation39_spill] sm:$0xff]  ;;  %v16620_v63 = vld [vmem:[#allocation41_spill] sm:$0xff] }
0x3945   :  { %10713 = vmatpush.msrb.mxu3 %v14836_v21  ;;  %10742 = vmatpush.msra.mxu0 %v14859_v46 }
0x3946   :  { %10769 = vmatpush.msra.mxu1 %v14818_v16  ;;  %v10456_v51 = vand.u32 4294901760, %v10455_v50  ;;  %v16621_v50 = vld [vmem:[#allocation30_spill] sm:$0xff] }
0x3947   :  { %10715 = vmatpush.msrb.mxu3 %v14845_v15  ;;  %10746 = vmatpush.msra.mxu0 %v14870_v32 }
0x3948   :  { %10771 = vmatpush.msra.mxu1 %v14825_v8  ;;  %10457 = vmatmul.f32.vlgmr.msrb.gmra.mxu2 %v10456_v51  ;;  %v16622_v51 = vld [vmem:[#allocation56_spill] sm:$0xff] }
0x3949   :  { %10589 = vmatmul.f32.vlgmr.msra.gmra.mxu3 %v10452_v12  ;;  %10680 = vmatpush.msrb.mxu2 %v14833_v24 }
0x394a   :  { %10750 = vmatpush.msra.mxu0 %v14879_v17  ;;  %10773 = vmatpush.msra.mxu1 %v14836_v21 }
0x394b   :  { %10683 = vmatpush.msrb.mxu2 %v14841_v20  ;;  %10827 = vmatpush.msra.mxu3 %v16449_v55 }
0x394c   :  { %10775 = vmatpush.msra.mxu1 %v14845_v15 }
0x394d   :  { %10686 = vmatpush.msrb.mxu2 %v14854_v34  ;;  %10833 = vmatpush.msra.mxu3 %v16450_v38 }
0x394f   :  { %10689 = vmatpush.msrb.mxu2 %v14864_v19  ;;  %10839 = vmatpush.msra.mxu3 %v16451_v28 }
0x3950   :  { %10566 = vmatmul.f32.vlgmr.msra.gmra.mxu2 %v10452_v12 }
0x3951   :  { %10794 = vmatpush.msra.mxu2 %v16452_v37  ;;  %10845 = vmatpush.msra.mxu3 %v16476_v39 }
0x3953   :  { %10796 = vmatpush.msra.mxu2 %v16585_v29 }
0x3955   :  { %10798 = vmatpush.msra.mxu2 %v16586_v9 }
0x3957   :  { %10800 = vmatpush.msra.mxu2 %v16615_v14 }
0x398e   :  { %v10240_v7 = vpop.xlane.xlu2 %10239 }
0x398f   :  { %v10241_v62 = vcvt.f32.s32 %v10240_v7  ;;  %v16624_v7 = vld [vmem:[#allocation64_spill] sm:$0xff] }
0x3991   :  { %v10244_v49 = vadd.s32 %v10243_v3, %v10241_v62  ;;  %v16625_v3 = vld [vmem:[#allocation57_spill] sm:$0xff]  ;;  %v16626_v62 = vld [vmem:[#allocation52_spill] sm:$0xff] }
0x3993   :  { %vm10245_vm11 = vcmp.eq.s32.totalorder %v14918_v40, %v10244_v49  ;;  %v16627_v49 = vld [vmem:[#allocation36_spill] sm:$0xff] }
0x3994   :  { %v13209_v26 = vsel %vm10245_vm11, 1.0, %v16616_v6 }
0x3995   :  { %v10594_v10 = vsel %vm216_vm0, %v13209_v26, 0  ;;  %13210 = vmatmul.msk.f32.vlgmr.msrb.gmra.mxu1 %vm216_vm0, %v13209_v26 }
0x3996   :  { %v10617_v60 = vsub.f32 %v10594_v10, %v10594_v10  ;;  %10894 = vmatpush.msrb.mxu1 %v16452_v37  ;;  %v16629_v10 = vld [vmem:[#allocation53_spill] sm:$0xff] }
0x3998   :  { %10692 = vmatmul.f32.vlgmr.msrb.gmra.mxu2 %v10617_v60  ;;  %v10618_v35 = vand.u32 4294901760, %v10617_v60  ;;  %10896 = vmatpush.msrb.mxu1 %v16585_v29 }
0x3999   :  { %10923 = vmatpush.msrb.mxu2 %v16617_v22 }
0x399a   :  { %10719 = vmatmul.f32.vlgmr.msrb.gmra.mxu3 %v10618_v35  ;;  %v10619_v23 = vsub.f32 %v10617_v60, %v10618_v35  ;;  %10898 = vmatpush.msrb.mxu1 %v16586_v9  ;;  %v16630_v60 = vld [vmem:[#allocation59_spill] sm:$0xff]  ;;  %v16631_v35 = vld [vmem:[#allocation38_spill] sm:$0xff] }
0x399b   :  { %10927 = vmatpush.msrb.mxu2 %v16618_v36  ;;  %10954 = vmatpush.msrb.mxu3 %v16452_v37 }
0x399c   :  { %v10620_v12 = vand.u32 4294901760, %v10619_v23  ;;  %10900 = vmatpush.msrb.mxu1 %v16615_v14  ;;  %v16632_v23 = vld [vmem:[#allocation54_spill] sm:$0xff] }
0x399d   :  { %13212 = vmatmul.msk.f32.vlgmr.msra.gmra.mxu1 %vm216_vm0, %v13209_v26  ;;  %10931 = vmatpush.msrb.mxu2 %v16619_v11 }
0x399e   :  { %10621 = vmatmul.f32.vlgmr.msrb.gmra.mxu0 %v10620_v12  ;;  %10956 = vmatpush.msrb.mxu3 %v16585_v29  ;;  %v16633_v12 = vld [vmem:[#allocation65_spill] sm:$0xff] }
0x399f   :  { %10935 = vmatpush.msrb.mxu2 %v16620_v63  ;;  %10865 = vmatpush.msrb.mxu0 %v16621_v50 }
0x39a0   :  { %10806 = vmatmul.f32.vlgmr.msra.gmra.mxu2 %v15806_v4  ;;  %10958 = vmatpush.msrb.mxu3 %v16586_v9  ;;  %v16628_v4 = vld [vmem:[#allocation58_spill] sm:$0xff] }
0x39a1   :  { %11094 = vmatpush.msra.mxu2 %v16622_v51  ;;  %10868 = vmatpush.msrb.mxu0 %v16623_v42 }
0x39a2   :  { %10847 = vmatmul.f32.vlgmr.msra.gmra.mxu3 %v15789_v5  ;;  %11056 = vmatpush.msra.mxu1 %v16624_v7 }
0x39a3   :  { %10960 = vmatpush.msrb.mxu3 %v16615_v14  ;;  %11097 = vmatpush.msra.mxu2 %v16625_v3 }
0x39a4   :  { %10871 = vmatpush.msrb.mxu0 %v16627_v49  ;;  %11062 = vmatpush.msra.mxu1 %v16633_v12  ;;  %v16634_v49 = vld [vmem:[#allocation55_spill] sm:$0xff]  ;;  %v16638_v12 = vld [vmem:[#allocation46_spill] sm:$0xff] }
0x39a5   :  { %11123 = vmatpush.msra.mxu3 %v16626_v62  ;;  %10904 = vmatmul.f32.vlgmr.msrb.gmra.mxu1 %v15798_v30  ;;  %v16635_v30 = vld [vmem:[#allocation66_spill] sm:$0xff] }
0x39a6   :  { %11100 = vmatpush.msra.mxu2 %v16628_v4  ;;  %13211 = vmatmul.msk.f32.vlgmr.msra.gmra.mxu0 %vm216_vm0, %v13209_v26  ;;  %v16636_v26 = vld [vmem:[#allocation43_spill] sm:$0xff] }
0x39a7   :  { %11125 = vmatpush.msra.mxu3 %v16629_v10  ;;  %10874 = vmatpush.msrb.mxu0 %v16631_v35  ;;  %v16637_v35 = vld [vmem:[#allocation67_spill] sm:$0xff] }
0x39a8   :  { %11103 = vmatpush.msra.mxu2 %v16630_v60  ;;  %11068 = vmatpush.msra.mxu1 %v16635_v30 }
0x39a9   :  { %11127 = vmatpush.msra.mxu3 %v16632_v23  ;;  %10937 = vmatmul.f32.vlgmr.msrb.gmra.mxu2 %v15789_v5 }
0x39aa   :  { %11234 = vmatpush.xpose.msrb.mxu2 %v14571_v56  ;;  %11023 = vmatpush.msra.mxu0 %v16626_v62 }
0x39ab   :  { %11129 = vmatpush.msra.mxu3 %v16634_v49  ;;  %11074 = vmatpush.msra.mxu1 %v16637_v35  ;;  %v16641_v35 = vld [vmem:[#allocation62_spill] sm:$0xff] }
0x39ac   :  { %10962 = vmatmul.f32.vlgmr.msrb.gmra.mxu3 %v15789_v5  ;;  %11025 = vmatpush.msra.mxu0 %v16629_v10  ;;  %v16639_v5 = vld [vmem:[#allocation60_spill] sm:$0xff] }
0x39ad   :  { %11265 = vmatpush.xpose.msrb.mxu3 %v16636_v26  ;;  %11183 = vmatpush.msrb.mxu1 %v16626_v62  ;;  %v16640_v26 = vld [vmem:[#allocation61_spill] sm:$0xff] }
0x39ae   :  { %11236 = vmatpush.xpose.msrb.mxu2 %v14551_v59  ;;  %10877 = vmatmul.f32.vlgmr.msrb.gmra.mxu0 %v15792_v18  ;;  %v16642_v18 = vld [vmem:[#allocation63_spill] sm:$0xff] }
0x39af   :  { %11027 = vmatpush.msra.mxu0 %v16632_v23  ;;  %11185 = vmatpush.msrb.mxu1 %v16629_v10 }
0x39b1   :  { %11271 = vmatpush.xpose.msrb.mxu3 %v16638_v12  ;;  %11029 = vmatpush.msra.mxu0 %v16634_v49 }
0x39b2   :  { %11187 = vmatpush.msrb.mxu1 %v16632_v23 }
0x39b3   :  { %11152 = vmatpush.msrb.mxu0 %v16639_v5 }
0x39b4   :  { %11189 = vmatpush.msrb.mxu1 %v16634_v49 }
0x39b5   :  { %11156 = vmatpush.msrb.mxu0 %v16640_v26 }
0x39b7   :  { %11160 = vmatpush.msrb.mxu0 %v16641_v35 }
0x39b9   :  { %11164 = vmatpush.msrb.mxu0 %v16642_v18 }
0x39bf   :  { %v10515_v12 = vpop.f32.mrf.mxu0 }
0x39c1   :  { %v10540_v62 = vpop.f32.mrf.mxu1 }
0x39c3   :  { %v10489_v60 = vpop.f32.mrf.mxu3 }
0x39cb   :  { %v10458_v30 = vpop.f32.mrf.mxu2 }
0x39cc   :  { %v10490_v4 = vadd.f32 %v10489_v60, %v10458_v30  ;;  %v10590_v7 = vpop.f32.mrf.mxu3 }
0x39ce   :  { %v10516_v10 = vadd.f32 %v10515_v12, %v10490_v4 }
0x39d0   :  { %v10541_v42 = vadd.f32 %v10540_v62, %v10516_v10 }
0x39d3   :  { %v10567_v3 = vpop.f32.mrf.mxu2 }
0x39d4   :  { %v10568_v23 = vadd.f32 %v10567_v3, %v10541_v42 }
0x39d6   :  { %v10591_v49 = vadd.f32 %v10590_v7, %v10568_v23 }
0x3a12   :  { %v10663_v51 = vpop.f32.mrf.mxu1 }
0x3a1a   :  { %v10778_v35 = vpop.f32.mrf.mxu1 }
0x3a1b   :  { %v10622_v5 = vpop.f32.mrf.mxu0  ;;  %v10693_v50 = vpop.f32.mrf.mxu2 }
0x3a1c   :  { %v10623_v26 = vadd.f32 %v10622_v5, %v10591_v49 }
0x3a1d   :  { %v10720_v63 = vpop.f32.mrf.mxu3 }
0x3a1e   :  { %v10664_v11 = vadd.f32 %v10663_v51, %v10623_v26 }
0x3a20   :  { %v10694_v22 = vadd.f32 %v10693_v50, %v10664_v11 }
0x3a22   :  { %v10721_v60 = vadd.f32 %v10720_v63, %v10694_v22  ;;  %v10905_v12 = vpop.f32.mrf.mxu1 }
0x3a23   :  { %v10753_v36 = vpop.f32.mrf.mxu0  ;;  %v10807_v18 = vpop.f32.mrf.mxu2 }
0x3a24   :  { %v10754_v9 = vadd.f32 %v10753_v36, %v10721_v60 }
0x3a25   :  { %v10848_v6 = vpop.f32.mrf.mxu3 }
0x3a26   :  { %v10849_v30 = vadd.f32 %v10848_v6, %v10807_v18  ;;  %v10779_v29 = vadd.f32 %v10778_v35, %v10754_v9 }
0x3a2b   :  { %v10878_v14 = vpop.f32.mrf.mxu0 }
0x3a2c   :  { %v10879_v4 = vadd.f32 %v10878_v14, %v10849_v30  ;;  %v10938_v42 = vpop.f32.mrf.mxu2 }
0x3a2e   :  { %v10906_v62 = vadd.f32 %v10905_v12, %v10879_v4 }
0x3a2f   :  { %v10963_v10 = vpop.f32.mrf.mxu3 }
0x3a30   :  { %v10939_v3 = vadd.f32 %v10938_v42, %v10906_v62 }
0x3a32   :  { %v10964_v7 = vadd.f32 %v10963_v10, %v10939_v3 }
0x3a34   :  { %v10966_v23 = vadd.f32 %v10964_v7, %v10779_v29 }
0x3a36   :  { %v10967_v51 = vadd.f32 %v15777_v25, %v10966_v23 }
0x3a38   :  { %13408 = vtanh.f32 %v10967_v51  ;;  %v13213_v11 = vmul.f32 -1.442695, %v10967_v51 }
0x3a3a   :  { %13410 = vpow2.f32 %v13213_v11 }
0x3a3e   :  { %v13409_v49 = vpop.eup %13408 }
0x3a3f   :  { %10990 = vrot.lane.b32.xlu1 %v13409_v49, %s13729_s14 }
0x3a40   :  { %v13411_v6 = vpop.eup %13410 }
0x3a41   :  { %v10971_v22 = vadd.f32 1.0, %v13411_v6 }
0x3a43   :  { %13412 = vrcp.f32 %v10971_v22  ;;  %v10983_v9 = vand.u32 2147483648, %v10971_v22  ;;  %vm10977_vm13 = vweird.f32 %v10971_v22  ;;  %v10981_v29 = vand.u32 2147483647, %v10971_v22 }
0x3a45   :  { %v10984_v35 = vor.u32 1.1754944e-38, %v10983_v9  ;;  %vm10982_vm1 = vcmp.eq.f32.partialorder %v10981_v29, 8.507059e+37 }
0x3a49   :  { %v13413_v14 = vpop.eup %13412 }
0x3a4a   :  { %v10973_v36 = vmul.f32 %v13413_v14, %v10971_v22  ;;  %vm10978_vm12 = vweird.f32 %v13413_v14 }
0x3a4b   :  { %vm10979_vm14 = vmor %vm10977_vm13, %vm10978_vm12 }
0x3a4c   :  { %v10974_v63 = vsub.f32 1.0, %v10973_v36 }
0x3a4e   :  { %v10975_v50 = vmul.f32 %v13413_v14, %v10974_v63 }
0x3a50   :  { %v10976_v26 = vadd.f32 %v13413_v14, %v10975_v50 }
0x3a52   :  { %v10980_v25 = vsel %vm10979_vm14, %v13413_v14, %v10976_v26 }
0x3a53   :  { %v10985_v18 = vsel %vm10982_vm1, %v10984_v35, %v10980_v25 }
0x3a54   :  { %v10988_v30 = vmul.f32 %v10985_v18, %v15783_v48 }
0x3ab1   :  { %v10991_v5 = vpop.permute.xlu1 %10990 }
0x3ab2   :  { %v10993_v60 = vmul.f32 %v10991_v5, %v10985_v18 }
0x3ab4   :  { %10995 = vrot.lane.b32.xlu0 %v10993_v60, %s13730_s15 }
0x3b26   :  { %v10996_v4 = vpop.permute.xlu0 %10995 }
0x3b27   :  { %v15938_v12 = vadd.f32 %v10996_v4, %v10988_v30 }
0x3b29   :  { %13414 = vtanh.f32 %v15938_v12 }
0x3b2f   :  { %v13415_v62 = vpop.eup %13414 }
0x3b30   :  { %11001 = vrot.lane.b32.xlu2 %v13415_v62, %s13729_s14 }
0x3b8a   :  { %v11002_v42 = vpop.permute.xlu2 %11001 }
0x3b8b   :  { %v11004_v3 = vmul.f32 %v11002_v42, %v10985_v18 }
0x3b8d   :  { %11006 = vrot.lane.b32.xlu0 %v11004_v3, %s13730_s15 }
0x3bff   :  { %v11007_v10 = vpop.permute.xlu0 %11006 }
0x3c00   :  { %v11008_v7 = vsel %vm216_vm0, %v11007_v10, 0 }
0x3c01   :  { %v15944_v23 = vand.u32 4294901760, %v11008_v7 }
0x3c03   :  { %v15947_v51 = vsub.f32 %v11008_v7, %v15944_v23  ;;  %11076 = vmatmul.f32.vlgmr.msra.gmra.mxu1 %v15944_v23 }
0x3c04   :  { %11318 = vmatpush.xpose.msra.mxu1 %v14571_v56 }
0x3c05   :  { %11106 = vmatmul.f32.vlgmr.msra.gmra.mxu2 %v15947_v51  ;;  %v15953_v48 = vand.u32 4294901760, %v15947_v51 }
0x3c06   :  { %11345 = vmatpush.xpose.msra.mxu2 %v14592_v61 }
0x3c07   :  { %11133 = vmatmul.f32.vlgmr.msra.gmra.mxu3 %v15953_v48  ;;  %v11033_v49 = vsub.f32 %v15947_v51, %v15953_v48 }
0x3c08   :  { %11320 = vmatpush.xpose.msra.mxu1 %v14551_v59  ;;  %11370 = vmatpush.xpose.msra.mxu3 %v14571_v56 }
0x3c09   :  { %v15961_v11 = vand.u32 4294901760, %v11033_v49 }
0x3c0a   :  { %11349 = vmatpush.xpose.msra.mxu2 %v14595_v13 }
0x3c0b   :  { %11035 = vmatmul.f32.vlgmr.msra.gmra.mxu0 %v15961_v11  ;;  %11191 = vmatmul.f32.vlgmr.msrb.gmra.mxu1 %v15944_v23 }
0x3c0c   :  { %11293 = vmatpush.xpose.msra.mxu0 %v14579_v44  ;;  %11372 = vmatpush.xpose.msra.mxu3 %v14551_v59 }
0x3c0d   :  { %11451 = vmatpush.msrb.mxu1 %v14678_v53  ;;  %11242 = vmatmul.f32.vlgmr.msrb.gmra.mxu2 %v15961_v11 }
0x3c0e   :  { %11479 = vmatpush.msrb.mxu2 %v14652_v1 }
0x3c0f   :  { %11457 = vmatpush.msrb.mxu1 %v14688_v31  ;;  %11273 = vmatmul.f32.vlgmr.msrb.gmra.mxu3 %v15944_v23 }
0x3c10   :  { %11296 = vmatpush.xpose.msra.mxu0 %v14569_v57  ;;  %11482 = vmatpush.msrb.mxu2 %v16439_v45 }
0x3c11   :  { %11504 = vmatpush.msrb.mxu3 %v16440_v0 }
0x3c13   :  { %11506 = vmatpush.msrb.mxu3 %v16468_v52  ;;  %11166 = vmatmul.f32.vlgmr.msrb.gmra.mxu0 %v15944_v23 }
0x3c14   :  { %11324 = vmatmul.f32.vlgmr.msra.gmra.mxu1 %v15953_v48  ;;  %11420 = vmatpush.msrb.mxu0 %v16440_v0 }
0x3c15   :  { %11556 = vmatpush.msra.mxu1 %v16440_v0  ;;  %11351 = vmatmul.f32.vlgmr.msra.gmra.mxu2 %v15944_v23 }
0x3c16   :  { %11422 = vmatpush.msrb.mxu0 %v16468_v52  ;;  %11580 = vmatpush.msra.mxu2 %v14818_v16 }
0x3c17   :  { %11558 = vmatpush.msra.mxu1 %v16468_v52  ;;  %11374 = vmatmul.f32.vlgmr.msra.gmra.mxu3 %v15944_v23 }
0x3c18   :  { %11582 = vmatpush.msra.mxu2 %v14825_v8  ;;  %11613 = vmatpush.msra.mxu3 %v16469_v2 }
0x3c1a   :  { %11584 = vmatpush.msra.mxu2 %v14836_v21  ;;  %11619 = vmatpush.msra.mxu3 %v16470_v58 }
0x3c1b   :  { %11299 = vmatmul.f32.vlgmr.msra.gmra.mxu0 %v15947_v51 }
0x3c1c   :  { %11531 = vmatpush.msra.mxu0 %v16471_v43  ;;  %11586 = vmatpush.msra.mxu2 %v14845_v15 }
0x3c1d   :  { %11625 = vmatpush.msra.mxu3 %v16498_v33 }
0x3c1e   :  { %11535 = vmatpush.msra.mxu0 %v16499_v27 }
0x3c1f   :  { %11631 = vmatpush.msra.mxu3 %v16527_v41 }
0x3c80   :  { %v11077_v6 = vpop.f32.mrf.mxu1 }
0x3c88   :  { %v11036_v22 = vpop.f32.mrf.mxu0  ;;  %v11107_v14 = vpop.f32.mrf.mxu2 }
0x3c89   :  { %v11037_v36 = vadd.f32 %v15841_v47, %v11036_v22  ;;  %v11192_v29 = vpop.f32.mrf.mxu1 }
0x3c8a   :  { %v11134_v63 = vpop.f32.mrf.mxu3 }
0x3c8b   :  { %v11078_v50 = vadd.f32 %v11077_v6, %v11037_v36 }
0x3c8d   :  { %v11108_v26 = vadd.f32 %v11107_v14, %v11078_v50 }
0x3c8f   :  { %v11135_v9 = vadd.f32 %v11134_v63, %v11108_v26 }
0x3c90   :  { %v11167_v25 = vpop.f32.mrf.mxu0  ;;  %v11243_v5 = vpop.f32.mrf.mxu2 }
0x3c91   :  { %v11168_v35 = vadd.f32 %v11167_v25, %v11135_v9  ;;  %v11325_v42 = vpop.f32.mrf.mxu1 }
0x3c92   :  { %v11274_v60 = vpop.f32.mrf.mxu3 }
0x3c93   :  { %v11193_v18 = vadd.f32 %v11192_v29, %v11168_v35  ;;  %v11275_v4 = vadd.f32 %v11274_v60, %v11243_v5 }
0x3c95   :  { %11195 = vst.msk [vmem:[%s16264_s12 + $0x7] sm:$0x1] %vm1048_vm5, %v11193_v18  ;;  %v11196_v30 = vsel %vm1048_vm5, %v11193_v18, -inf }
0x3c96   :  { %11197 = vmax.xlane.f32.xlu1 %v11196_v30 }
0x3c98   :  { %v11300_v47 = vpop.f32.mrf.mxu0  ;;  %v11352_v10 = vpop.f32.mrf.mxu2 }
0x3c99   :  { %v11301_v62 = vadd.f32 %v11300_v47, %v11275_v4 }
0x3c9a   :  { %v11375_v49 = vpop.f32.mrf.mxu3 }
0x3c9b   :  { %v11326_v3 = vadd.f32 %v11325_v42, %v11301_v62 }
0x3c9d   :  { %v11353_v7 = vadd.f32 %v11352_v10, %v11326_v3 }
0x3c9f   :  { %v11376_v6 = vadd.f32 %v11375_v49, %v11353_v7 }
0x3ca1   :  { %v11378_v22 = vsel %vm3793_vm15, %v11376_v6, -inf }
0x3ca2   :  { %11379 = vmax.xlane.f32.xlu2 %v11378_v22 }
0x3d09   :  { %v11198_v14 = vpop.xlane.xlu1 %11197 }
0x3d0a   :  { %vm11199_vm2 = vcmp.eq.f32.partialorder %v11193_v18, %v11198_v14 }
0x3d0b   :  { %v11200_v36 = vsel %vm11199_vm2, %v14918_v40, 32 }
0x3d0c   :  { %v11201_v63 = vsel %vm1048_vm5, %v11200_v36, 2147483647 }
0x3d0d   :  { %v11203_v50 = vshra.s32 %v11201_v63, 16  ;;  %v11202_v60 = vand.u32 65535, %v11201_v63 }
0x3d0f   :  { %v11205_v26 = vcvt.s32.f32 %v11203_v50  ;;  %v11204_v4 = vcvt.s32.f32 %v11202_v60  ;;  %v16644_v60 = vld [vmem:[#allocation32_spill] sm:$0xff] }
0x3d11   :  { %11206 = vmin.xlane.f32.xlu0 %v11205_v26 }
0x3d15   :  { %v11380_v9 = vpop.xlane.xlu2 %11379 }
0x3d16   :  { %v11381_v29 = vsub.f32 %v11376_v6, %v11380_v9 }
0x3d18   :  { %v11382_v25 = vmul.f32 1.442695, %v11381_v29 }
0x3d1a   :  { %13416 = vpow2.f32 %v11382_v25 }
0x3d20   :  { %v13417_v35 = vpop.eup %13416 }
0x3d21   :  { %v11384_v5 = vsel %vm3793_vm15, %v13417_v35, 0.0 }
0x3d22   :  { %11385 = vadd.xlane.f32.xlu1 %v11384_v5  ;;  %v16643_v5 = vld [vmem:[#allocation31_spill] sm:$0xff] }
0x3d84   :  { %v11207_v30 = vpop.xlane.xlu0 %11206 }
0x3d85   :  { %vm11208_vm3 = vcmp.eq.f32.partialorder %v11205_v26, %v11207_v30 }
0x3d86   :  { %v11209_v18 = vsel %vm11208_vm3, %v11204_v4, inf  ;;  %v16645_v4 = vld [vmem:[#allocation35_spill] sm:$0xff] }
0x3d87   :  { %11210 = vmin.xlane.f32.xlu2 %v11209_v18  ;;  %v11213_v18 = vcvt.f32.s32 %v11207_v30  ;;  %v16647_v30 = vld [vmem:[#allocation33_spill] sm:$0xff] }
0x3d95   :  { %v11386_v47 = vpop.xlane.xlu1 %11385 }
0x3d96   :  { %13418 = vrcp.f32 %v11386_v47  ;;  %v11398_v10 = vand.u32 2147483648, %v11386_v47  ;;  %v11396_v49 = vand.u32 2147483647, %v11386_v47  ;;  %vm11392_vm7 = vweird.f32 %v11386_v47 }
0x3d98   :  { %v11399_v22 = vor.u32 1.1754944e-38, %v11398_v10  ;;  %vm11397_vm9 = vcmp.eq.f32.partialorder %v11396_v49, 8.507059e+37  ;;  %v16646_v10 = vmov 0.0  }
0x3d9c   :  { %v13419_v62 = vpop.eup %13418 }
0x3d9d   :  { %v11388_v42 = vmul.f32 %v13419_v62, %v11386_v47  ;;  %vm11393_vm4 = vweird.f32 %v13419_v62 }
0x3d9e   :  { %vm11394_vm8 = vmor %vm11392_vm7, %vm11393_vm4 }
0x3d9f   :  { %v11389_v3 = vsub.f32 1.0, %v11388_v42 }
0x3da1   :  { %v11390_v7 = vmul.f32 %v13419_v62, %v11389_v3 }
0x3da3   :  { %v11391_v6 = vadd.f32 %v13419_v62, %v11390_v7 }
0x3da5   :  { %v11395_v14 = vsel %vm11394_vm8, %v13419_v62, %v11391_v6  ;;  %v11214_v62 = vshll.u32 %v11213_v18, 16  ;;  %v16655_v18 = vld [vmem:[#allocation57_spill] sm:$0xff] }
0x3da6   :  { %v11400_v36 = vsel %vm11397_vm9, %v11399_v22, %v11395_v14 }
0x3da7   :  { %v11401_v63 = vmul.f32 %v13417_v35, %v11400_v36  ;;  %v16648_v36 = vld [vmem:[#allocation37_spill] sm:$0xff] }
0x3da9   :  { %v11403_v50 = vsel %vm4003_vm6, %v11401_v63, 0 }
0x3daa   :  { %v11423_v26 = vand.u32 4294901760, %v11403_v50 }
0x3dac   :  { %11459 = vmatmul.f32.vlgmr.msrb.gmra.mxu1 %v11423_v26  ;;  %v11424_v9 = vsub.f32 %v11403_v50, %v11423_v26  ;;  %v16649_v50 = vld [vmem:[#allocation39_spill] sm:$0xff] }
0x3dad   :  { %11680 = vmatpush.msrb.mxu1 %v14818_v16 }
0x3dae   :  { %11485 = vmatmul.f32.vlgmr.msrb.gmra.mxu2 %v11424_v9  ;;  %v11425_v29 = vand.u32 4294901760, %v11424_v9 }
0x3daf   :  { %11682 = vmatpush.msrb.mxu1 %v14825_v8  ;;  %11709 = vmatpush.msrb.mxu2 %v14850_v54 }
0x3db0   :  { %11510 = vmatmul.f32.vlgmr.msrb.gmra.mxu3 %v11425_v29  ;;  %v11426_v25 = vsub.f32 %v11424_v9, %v11425_v29  ;;  %v16651_v9 = vld [vmem:[#allocation30_spill] sm:$0xff]  ;;  %v16652_v29 = vld [vmem:[#allocation56_spill] sm:$0xff] }
0x3db1   :  { %11684 = vmatpush.msrb.mxu1 %v14836_v21  ;;  %11713 = vmatpush.msrb.mxu2 %v14859_v46 }
0x3db2   :  { %11740 = vmatpush.msrb.mxu3 %v14818_v16  ;;  %v11427_v35 = vand.u32 4294901760, %v11426_v25  ;;  %v16653_v25 = vld [vmem:[#allocation34_spill] sm:$0xff] }
0x3db3   :  { %11686 = vmatpush.msrb.mxu1 %v14845_v15  ;;  %11717 = vmatpush.msrb.mxu2 %v14870_v32 }
0x3db4   :  { %11742 = vmatpush.msrb.mxu3 %v14825_v8  ;;  %11428 = vmatmul.f32.vlgmr.msrb.gmra.mxu0 %v11427_v35  ;;  %v16654_v35 = vld [vmem:[#allocation64_spill] sm:$0xff] }
0x3db5   :  { %11560 = vmatmul.f32.vlgmr.msra.gmra.mxu1 %v11423_v26  ;;  %11651 = vmatpush.msrb.mxu0 %v14833_v24 }
0x3db6   :  { %11721 = vmatpush.msrb.mxu2 %v14879_v17  ;;  %11744 = vmatpush.msrb.mxu3 %v14836_v21 }
0x3db7   :  { %11654 = vmatpush.msrb.mxu0 %v14841_v20  ;;  %11798 = vmatpush.msra.mxu1 %v16449_v55 }
0x3db8   :  { %11746 = vmatpush.msrb.mxu3 %v14845_v15 }
0x3db9   :  { %11657 = vmatpush.msrb.mxu0 %v14854_v34  ;;  %11804 = vmatpush.msra.mxu1 %v16450_v38 }
0x3dbb   :  { %11660 = vmatpush.msrb.mxu0 %v14864_v19  ;;  %11810 = vmatpush.msra.mxu1 %v16451_v28 }
0x3dbc   :  { %11537 = vmatmul.f32.vlgmr.msra.gmra.mxu0 %v11423_v26  ;;  %v16650_v26 = vld [vmem:[#allocation41_spill] sm:$0xff] }
0x3dbd   :  { %11765 = vmatpush.msra.mxu0 %v16452_v37  ;;  %11816 = vmatpush.msra.mxu1 %v16476_v39 }
0x3dbf   :  { %11767 = vmatpush.msra.mxu0 %v16643_v5 }
0x3dc1   :  { %11769 = vmatpush.msra.mxu0 %v16644_v60 }
0x3dc3   :  { %11771 = vmatpush.msra.mxu0 %v16645_v4 }
0x3dfa   :  { %v11211_v47 = vpop.xlane.xlu2 %11210 }
0x3dfb   :  { %v11212_v42 = vcvt.f32.s32 %v11211_v47  ;;  %v16656_v47 = vld [vmem:[#allocation52_spill] sm:$0xff] }
0x3dfd   :  { %v11215_v3 = vadd.s32 %v11214_v62, %v11212_v42  ;;  %v16657_v62 = vld [vmem:[#allocation36_spill] sm:$0xff]  ;;  %v16659_v42 = vld [vmem:[#allocation53_spill] sm:$0xff] }
0x3dff   :  { %vm11216_vm10 = vcmp.eq.s32.totalorder %v14918_v40, %v11215_v3  ;;  %v16660_v3 = vld [vmem:[#allocation59_spill] sm:$0xff] }
0x3e00   :  { %v13214_v7 = vsel %vm11216_vm10, 1.0, %v16646_v10 }
0x3e01   :  { %v11565_v49 = vsel %vm216_vm0, %v13214_v7, 0  ;;  %13215 = vmatmul.msk.f32.vlgmr.msra.gmra.mxu3 %vm216_vm0, %v13214_v7 }
0x3e02   :  { %v11588_v6 = vsub.f32 %v11565_v49, %v11565_v49  ;;  %11865 = vmatpush.msra.mxu3 %v16452_v37  ;;  %v16661_v49 = vld [vmem:[#allocation38_spill] sm:$0xff] }
0x3e04   :  { %11663 = vmatmul.f32.vlgmr.msrb.gmra.mxu0 %v11588_v6  ;;  %v11589_v22 = vand.u32 4294901760, %v11588_v6  ;;  %11867 = vmatpush.msra.mxu3 %v16643_v5 }
0x3e05   :  { %11894 = vmatpush.msrb.mxu0 %v16647_v30 }
0x3e06   :  { %11690 = vmatmul.f32.vlgmr.msrb.gmra.mxu1 %v11589_v22  ;;  %v11590_v14 = vsub.f32 %v11588_v6, %v11589_v22  ;;  %11869 = vmatpush.msra.mxu3 %v16644_v60  ;;  %v16662_v6 = vld [vmem:[#allocation54_spill] sm:$0xff]  ;;  %v16663_v22 = vld [vmem:[#allocation65_spill] sm:$0xff] }
0x3e07   :  { %11898 = vmatpush.msrb.mxu0 %v16648_v36  ;;  %11925 = vmatpush.msrb.mxu1 %v16452_v37 }
0x3e08   :  { %v11591_v63 = vand.u32 4294901760, %v11590_v14  ;;  %11871 = vmatpush.msra.mxu3 %v16645_v4  ;;  %v16664_v14 = vld [vmem:[#allocation55_spill] sm:$0xff] }
0x3e09   :  { %13217 = vmatmul.msk.f32.vlgmr.msrb.gmra.mxu3 %vm216_vm0, %v13214_v7  ;;  %11902 = vmatpush.msrb.mxu0 %v16649_v50 }
0x3e0a   :  { %11592 = vmatmul.f32.vlgmr.msra.gmra.mxu2 %v11591_v63  ;;  %11927 = vmatpush.msrb.mxu1 %v16643_v5  ;;  %v16667_v63 = vld [vmem:[#allocation67_spill] sm:$0xff] }
0x3e0b   :  { %11906 = vmatpush.msrb.mxu0 %v16650_v26  ;;  %11836 = vmatpush.msra.mxu2 %v16651_v9 }
0x3e0c   :  { %11777 = vmatmul.f32.vlgmr.msra.gmra.mxu0 %v15961_v11  ;;  %11929 = vmatpush.msrb.mxu1 %v16644_v60  ;;  %v16658_v11 = vld [vmem:[#allocation58_spill] sm:$0xff] }
0x3e0d   :  { %12065 = vmatpush.msra.mxu0 %v16652_v29  ;;  %11839 = vmatpush.msra.mxu2 %v16653_v25 }
0x3e0e   :  { %11818 = vmatmul.f32.vlgmr.msra.gmra.mxu1 %v15944_v23  ;;  %12027 = vmatpush.msrb.mxu3 %v16654_v35 }
0x3e0f   :  { %11931 = vmatpush.msrb.mxu1 %v16645_v4  ;;  %12068 = vmatpush.msra.mxu0 %v16655_v18 }
0x3e10   :  { %11842 = vmatpush.msra.mxu2 %v16657_v62  ;;  %12033 = vmatpush.msrb.mxu3 %v16663_v22 }
0x3e11   :  { %12094 = vmatpush.msra.mxu1 %v16656_v47  ;;  %11875 = vmatmul.f32.vlgmr.msra.gmra.mxu3 %v15953_v48  ;;  %v16665_v48 = vld [vmem:[#allocation66_spill] sm:$0xff] }
0x3e12   :  { %12071 = vmatpush.msra.mxu0 %v16658_v11  ;;  %13216 = vmatmul.msk.f32.vlgmr.msrb.gmra.mxu2 %vm216_vm0, %v13214_v7  ;;  %v16666_v7 = vld [vmem:[#allocation43_spill] sm:$0xff] }
0x3e13   :  { %12096 = vmatpush.msra.mxu1 %v16659_v42  ;;  %11845 = vmatpush.msra.mxu2 %v16661_v49 }
0x3e14   :  { %12074 = vmatpush.msra.mxu0 %v16660_v3  ;;  %12039 = vmatpush.msrb.mxu3 %v16665_v48  ;;  %v16668_v3 = vld [vmem:[#allocation46_spill] sm:$0xff] }
0x3e15   :  { %12098 = vmatpush.msra.mxu1 %v16662_v6  ;;  %11908 = vmatmul.f32.vlgmr.msrb.gmra.mxu0 %v15944_v23 }
0x3e16   :  { %12205 = vmatpush.xpose.msrb.mxu0 %v14571_v56  ;;  %11994 = vmatpush.msrb.mxu2 %v16656_v47 }
0x3e17   :  { %12100 = vmatpush.msra.mxu1 %v16664_v14  ;;  %12045 = vmatpush.msrb.mxu3 %v16667_v63  ;;  %v16671_v63 = vld [vmem:[#allocation62_spill] sm:$0xff] }
0x3e18   :  { %11933 = vmatmul.f32.vlgmr.msrb.gmra.mxu1 %v15944_v23  ;;  %11996 = vmatpush.msrb.mxu2 %v16659_v42  ;;  %v16669_v23 = vld [vmem:[#allocation60_spill] sm:$0xff] }
0x3e19   :  { %12236 = vmatpush.xpose.msrb.mxu1 %v16666_v7  ;;  %12154 = vmatpush.msra.mxu3 %v16656_v47  ;;  %v16670_v7 = vld [vmem:[#allocation61_spill] sm:$0xff] }
0x3e1a   :  { %12207 = vmatpush.xpose.msrb.mxu0 %v14551_v59  ;;  %11848 = vmatmul.f32.vlgmr.msra.gmra.mxu2 %v15947_v51  ;;  %v16672_v51 = vld [vmem:[#allocation63_spill] sm:$0xff] }
0x3e1b   :  { %11998 = vmatpush.msrb.mxu2 %v16662_v6  ;;  %12156 = vmatpush.msra.mxu3 %v16659_v42 }
0x3e1d   :  { %12242 = vmatpush.xpose.msrb.mxu1 %v16668_v3  ;;  %12000 = vmatpush.msrb.mxu2 %v16664_v14 }
0x3e1e   :  { %12158 = vmatpush.msra.mxu3 %v16662_v6 }
0x3e1f   :  { %12123 = vmatpush.msra.mxu2 %v16669_v23 }
0x3e20   :  { %12160 = vmatpush.msra.mxu3 %v16664_v14 }
0x3e21   :  { %12127 = vmatpush.msra.mxu2 %v16670_v7 }
0x3e23   :  { %12131 = vmatpush.msra.mxu2 %v16671_v63 }
0x3e25   :  { %12135 = vmatpush.msra.mxu2 %v16672_v51 }
0x3e29   :  { %v11460_v47 = vpop.f32.mrf.mxu1 }
0x3e31   :  { %v11429_v11 = vpop.f32.mrf.mxu0  ;;  %v11486_v3 = vpop.f32.mrf.mxu2 }
0x3e32   :  { %v11461_v48 = vadd.f32 %v11460_v47, %v11429_v11  ;;  %v11561_v22 = vpop.f32.mrf.mxu1 }
0x3e33   :  { %v11511_v49 = vpop.f32.mrf.mxu3 }
0x3e34   :  { %v11487_v42 = vadd.f32 %v11486_v3, %v11461_v48 }
0x3e36   :  { %v11512_v62 = vadd.f32 %v11511_v49, %v11487_v42 }
0x3e39   :  { %v11538_v18 = vpop.f32.mrf.mxu0 }
0x3e3a   :  { %v11539_v6 = vadd.f32 %v11538_v18, %v11512_v62 }
0x3e3c   :  { %v11562_v14 = vadd.f32 %v11561_v22, %v11539_v6 }
0x3e81   :  { %v11664_v23 = vpop.f32.mrf.mxu0 }
0x3e83   :  { %v11691_v25 = vpop.f32.mrf.mxu1 }
0x3e84   :  { %v11634_v29 = vpop.f32.mrf.mxu3 }
0x3e89   :  { %v11778_v51 = vpop.f32.mrf.mxu0 }
0x3e8b   :  { %v11819_v36 = vpop.f32.mrf.mxu1 }
0x3e8c   :  { %v11749_v63 = vpop.f32.mrf.mxu3  ;;  %v11820_v47 = vadd.f32 %v11819_v36, %v11778_v51 }
0x3e8d   :  { %v11593_v35 = vpop.f32.mrf.mxu2 }
0x3e8e   :  { %v11594_v7 = vadd.f32 %v11593_v35, %v11562_v14  ;;  %v16087_v35 = vld [vmem:[#allocation16] sm:$0x1] }
0x3e90   :  { %v11635_v26 = vadd.f32 %v11634_v29, %v11594_v7 }
0x3e92   :  { %v11665_v50 = vadd.f32 %v11664_v23, %v11635_v26  ;;  %v11909_v18 = vpop.f32.mrf.mxu0 }
0x3e94   :  { %v11692_v11 = vadd.f32 %v11691_v25, %v11665_v50  ;;  %v11876_v3 = vpop.f32.mrf.mxu3 }
0x3e95   :  { %v11724_v9 = vpop.f32.mrf.mxu2  ;;  %v11934_v49 = vpop.f32.mrf.mxu1 }
0x3e96   :  { %v11725_v10 = vadd.f32 %v11724_v9, %v11692_v11 }
0x3e98   :  { %v11750_v4 = vadd.f32 %v11749_v63, %v11725_v10 }
0x3e9d   :  { %v11849_v30 = vpop.f32.mrf.mxu2 }
0x3e9e   :  { %v11850_v48 = vadd.f32 %v11849_v30, %v11820_v47 }
0x3ea0   :  { %v11877_v42 = vadd.f32 %v11876_v3, %v11850_v48 }
0x3ea2   :  { %v11910_v62 = vadd.f32 %v11909_v18, %v11877_v42 }
0x3ea4   :  { %v11935_v6 = vadd.f32 %v11934_v49, %v11910_v62 }
0x3ea6   :  { %v11937_v22 = vadd.f32 %v11935_v6, %v11750_v4 }
0x3ea8   :  { %v11938_v29 = vadd.f32 %v16087_v35, %v11937_v22 }
0x3eaa   :  { %13420 = vtanh.f32 %v11938_v29  ;;  %v13218_v36 = vmul.f32 -1.442695, %v11938_v29 }
0x3eac   :  { %13422 = vpow2.f32 %v13218_v36 }
0x3eb0   :  { %v13421_v26 = vpop.eup %13420 }
0x3eb1   :  { %11961 = vrot.lane.b32.xlu0 %v13421_v26, %s13729_s14 }
0x3eb2   :  { %v13423_v30 = vpop.eup %13422 }
0x3eb3   :  { %v11942_v50 = vadd.f32 1.0, %v13423_v30 }
0x3eb5   :  { %13424 = vrcp.f32 %v11942_v50  ;;  %v11954_v4 = vand.u32 2147483648, %v11942_v50  ;;  %vm11948_vm12 = vweird.f32 %v11942_v50  ;;  %v11952_v63 = vand.u32 2147483647, %v11942_v50 }
0x3eb7   :  { %v11955_v51 = vor.u32 1.1754944e-38, %v11954_v4  ;;  %vm11953_vm14 = vcmp.eq.f32.partialorder %v11952_v63, 8.507059e+37 }
0x3ebb   :  { %v13425_v9 = vpop.eup %13424 }
0x3ebc   :  { %v11944_v25 = vmul.f32 %v13425_v9, %v11942_v50  ;;  %vm11949_vm11 = vweird.f32 %v13425_v9 }
0x3ebd   :  { %vm11950_vm13 = vmor %vm11948_vm12, %vm11949_vm11 }
0x3ebe   :  { %v11945_v14 = vsub.f32 1.0, %v11944_v25 }
0x3ec0   :  { %v11946_v23 = vmul.f32 %v13425_v9, %v11945_v14 }
0x3ec2   :  { %v11947_v10 = vadd.f32 %v13425_v9, %v11946_v23 }
0x3ec4   :  { %v11951_v7 = vsel %vm11950_vm13, %v13425_v9, %v11947_v10 }
0x3ec5   :  { %v11956_v11 = vsel %vm11953_vm14, %v11955_v51, %v11951_v7 }
0x3ec6   :  { %v11959_v3 = vmul.f32 %v11956_v11, %v15938_v12 }
0x3f23   :  { %v11962_v47 = vpop.permute.xlu0 %11961 }
0x3f24   :  { %v11964_v48 = vmul.f32 %v11962_v47, %v11956_v11 }
0x3f26   :  { %11966 = vrot.lane.b32.xlu1 %v11964_v48, %s13730_s15 }
0x3f98   :  { %v11967_v42 = vpop.permute.xlu1 %11966 }
0x3f99   :  { %v16093_v18 = vadd.f32 %v11967_v42, %v11959_v3 }
0x3f9b   :  { %13426 = vtanh.f32 %v16093_v18 }
0x3fa1   :  { %v13427_v62 = vpop.eup %13426 }
0x3fa2   :  { %11972 = vrot.lane.b32.xlu2 %v13427_v62, %s13729_s14 }
0x3ffc   :  { %v11973_v49 = vpop.permute.xlu2 %11972 }
0x3ffd   :  { %v11975_v6 = vmul.f32 %v11973_v49, %v11956_v11 }
0x3fff   :  { %11977 = vrot.lane.b32.xlu0 %v11975_v6, %s13730_s15 }
0x4071   :  { %v11978_v22 = vpop.permute.xlu0 %11977 }
0x4072   :  { %v11979_v29 = vsel %vm216_vm0, %v11978_v22, 0 }
0x4073   :  { %v16099_v26 = vand.u32 4294901760, %v11979_v29 }
0x4075   :  { %v16102_v36 = vsub.f32 %v11979_v29, %v16099_v26  ;;  %12047 = vmatmul.f32.vlgmr.msrb.gmra.mxu3 %v16099_v26 }
0x4076   :  { %12289 = vmatpush.xpose.msrb.mxu3 %v14571_v56 }
0x4077   :  { %12077 = vmatmul.f32.vlgmr.msra.gmra.mxu0 %v16102_v36  ;;  %v16108_v12 = vand.u32 4294901760, %v16102_v36 }
0x4078   :  { %12316 = vmatpush.xpose.msra.mxu0 %v14592_v61 }
0x4079   :  { %12104 = vmatmul.f32.vlgmr.msra.gmra.mxu1 %v16108_v12  ;;  %v12004_v30 = vsub.f32 %v16102_v36, %v16108_v12 }
0x407a   :  { %12291 = vmatpush.xpose.msrb.mxu3 %v14551_v59  ;;  %12341 = vmatpush.xpose.msra.mxu1 %v14571_v56 }
0x407b   :  { %v16116_v50 = vand.u32 4294901760, %v12004_v30 }
0x407c   :  { %12320 = vmatpush.xpose.msra.mxu0 %v14595_v13 }
0x407d   :  { %12006 = vmatmul.f32.vlgmr.msrb.gmra.mxu2 %v16116_v50  ;;  %12162 = vmatmul.f32.vlgmr.msra.gmra.mxu3 %v16099_v26 }
0x407e   :  { %12264 = vmatpush.xpose.msrb.mxu2 %v14579_v44  ;;  %12343 = vmatpush.xpose.msra.mxu1 %v14551_v59  ;;  %v16151_v44 = vld [vmem:[#allocation20] sm:$0x1] }
0x407f   :  { %12422 = vmatpush.msra.mxu3 %v14678_v53  ;;  %12213 = vmatmul.f32.vlgmr.msrb.gmra.mxu0 %v16116_v50 }
0x4080   :  { %12450 = vmatpush.msrb.mxu0 %v14652_v1 }
0x4081   :  { %12428 = vmatpush.msra.mxu3 %v14688_v31  ;;  %12244 = vmatmul.f32.vlgmr.msrb.gmra.mxu1 %v16099_v26 }
0x4082   :  { %12267 = vmatpush.xpose.msrb.mxu2 %v14569_v57  ;;  %12453 = vmatpush.msrb.mxu0 %v16439_v45 }
0x4083   :  { %12475 = vmatpush.msrb.mxu1 %v16440_v0 }
0x4085   :  { %12477 = vmatpush.msrb.mxu1 %v16468_v52  ;;  %12137 = vmatmul.f32.vlgmr.msra.gmra.mxu2 %v16099_v26 }
0x4086   :  { %12295 = vmatmul.f32.vlgmr.msrb.gmra.mxu3 %v16108_v12  ;;  %12391 = vmatpush.msra.mxu2 %v16440_v0 }
0x4087   :  { %12527 = vmatpush.msrb.mxu3 %v16440_v0  ;;  %12322 = vmatmul.f32.vlgmr.msra.gmra.mxu0 %v16099_v26 }
0x4088   :  { %12393 = vmatpush.msra.mxu2 %v16468_v52  ;;  %12551 = vmatpush.msra.mxu0 %v14818_v16 }
0x4089   :  { %12529 = vmatpush.msrb.mxu3 %v16468_v52  ;;  %12345 = vmatmul.f32.vlgmr.msra.gmra.mxu1 %v16099_v26 }
0x408a   :  { %12553 = vmatpush.msra.mxu0 %v14825_v8  ;;  %12584 = vmatpush.msra.mxu1 %v16469_v2 }
0x408c   :  { %12555 = vmatpush.msra.mxu0 %v14836_v21  ;;  %12590 = vmatpush.msra.mxu1 %v16470_v58 }
0x408d   :  { %12270 = vmatmul.f32.vlgmr.msrb.gmra.mxu2 %v16102_v36 }
0x408e   :  { %12502 = vmatpush.msrb.mxu2 %v16471_v43  ;;  %12557 = vmatpush.msra.mxu0 %v14845_v15 }
0x408f   :  { %12596 = vmatpush.msra.mxu1 %v16498_v33 }
0x4090   :  { %12506 = vmatpush.msrb.mxu2 %v16499_v27 }
0x4091   :  { %12602 = vmatpush.msra.mxu1 %v16527_v41 }
0x40f4   :  { %v12078_v57 = vpop.f32.mrf.mxu0 }
0x40f6   :  { %v12105_v13 = vpop.f32.mrf.mxu1 }
0x40f8   :  { %v12048_v59 = vpop.f32.mrf.mxu3 }
0x40fc   :  { %v12214_v2 = vpop.f32.mrf.mxu0 }
0x40fe   :  { %v12245_v43 = vpop.f32.mrf.mxu1 }
0x40ff   :  { %v12246_v27 = vadd.f32 %v12245_v43, %v12214_v2 }
0x4100   :  { %v12007_v56 = vpop.f32.mrf.mxu2  ;;  %v12163_v45 = vpop.f32.mrf.mxu3 }
0x4101   :  { %v12008_v61 = vadd.f32 %v16151_v44, %v12007_v56 }
0x4103   :  { %v12049_v1 = vadd.f32 %v12048_v59, %v12008_v61 }
0x4104   :  { %v12323_v23 = vpop.f32.mrf.mxu0 }
0x4105   :  { %v12079_v53 = vadd.f32 %v12078_v57, %v12049_v1 }
0x4106   :  { %v12346_v4 = vpop.f32.mrf.mxu1 }
0x4107   :  { %v12106_v31 = vadd.f32 %v12105_v13, %v12079_v53 }
0x4108   :  { %v12138_v0 = vpop.f32.mrf.mxu2 }
0x4109   :  { %v12139_v52 = vadd.f32 %v12138_v0, %v12106_v31  ;;  %v12296_v25 = vpop.f32.mrf.mxu3 }
0x410b   :  { %v12164_v58 = vadd.f32 %v12163_v45, %v12139_v52 }
0x410d   :  { %12166 = vst.msk [vmem:[%s16264_s12 + $0x8] sm:$0x1] %vm1048_vm5, %v12164_v58  ;;  %v12167_v33 = vsel %vm1048_vm5, %v12164_v58, -inf }
0x410e   :  { %12168 = vmax.xlane.f32.xlu0 %v12167_v33 }
0x4110   :  { %v12271_v41 = vpop.f32.mrf.mxu2 }
0x4111   :  { %v12272_v9 = vadd.f32 %v12271_v41, %v12246_v27 }
0x4113   :  { %v12297_v14 = vadd.f32 %v12296_v25, %v12272_v9 }
0x4115   :  { %v12324_v10 = vadd.f32 %v12323_v23, %v12297_v14  ;;  %v16679_v23 = vld [vmem:[#allocation41_spill] sm:$0xff] }
0x4117   :  { %v12347_v63 = vadd.f32 %v12346_v4, %v12324_v10  ;;  %v16680_v10 = vld [vmem:[#allocation34_spill] sm:$0xff]  ;;  %v16682_v4 = vld [vmem:[#allocation56_spill] sm:$0xff] }
0x4119   :  { %v12349_v7 = vsel %vm3793_vm15, %v12347_v63, -inf }
0x411a   :  { %12350 = vmax.xlane.f32.xlu1 %v12349_v7  ;;  %v16685_v7 = vld [vmem:[#allocation57_spill] sm:$0xff] }
0x4181   :  { %v12169_v51 = vpop.xlane.xlu0 %12168 }
0x4182   :  { %vm12170_vm1 = vcmp.eq.f32.partialorder %v12164_v58, %v12169_v51  ;;  %v16688_v51 = vld [vmem:[#allocation52_spill] sm:$0xff] }
0x4183   :  { %v12171_v47 = vsel %vm12170_vm1, %v14918_v40, 32 }
0x4184   :  { %v12172_v11 = vsel %vm1048_vm5, %v12171_v47, 2147483647  ;;  %v16689_v47 = vld [vmem:[#allocation58_spill] sm:$0xff] }
0x4185   :  { %v12174_v48 = vshra.s32 %v12172_v11, 16  ;;  %v12173_v29 = vand.u32 65535, %v12172_v11  ;;  %v16690_v11 = vld [vmem:[#allocation67_spill] sm:$0xff] }
0x4187   :  { %v12176_v3 = vcvt.s32.f32 %v12174_v48  ;;  %v12175_v59 = vcvt.s32.f32 %v12173_v29  ;;  %v16691_v48 = vld [vmem:[#allocation53_spill] sm:$0xff] }
0x4189   :  { %12177 = vmin.xlane.f32.xlu2 %v12176_v3 }
0x418d   :  { %v12351_v42 = vpop.xlane.xlu1 %12350 }
0x418e   :  { %v12352_v62 = vsub.f32 %v12347_v63, %v12351_v42  ;;  %v16683_v63 = vld [vmem:[#allocation36_spill] sm:$0xff]  ;;  %v16694_v42 = vld [vmem:[#allocation55_spill] sm:$0xff] }
0x4190   :  { %v12353_v49 = vmul.f32 1.442695, %v12352_v62  ;;  %v16696_v62 = vld [vmem:[#allocation61_spill] sm:$0xff] }
0x4192   :  { %13428 = vpow2.f32 %v12353_v49  ;;  %v16697_v49 = vld [vmem:[#allocation62_spill] sm:$0xff] }
0x4198   :  { %v13429_v6 = vpop.eup %13428 }
0x4199   :  { %v12355_v22 = vsel %vm3793_vm15, %v13429_v6, 0.0 }
0x419a   :  { %12356 = vadd.xlane.f32.xlu2 %v12355_v22 }
0x41fc   :  { %v12178_v30 = vpop.xlane.xlu2 %12177 }
0x41fd   :  { %vm12179_vm2 = vcmp.eq.f32.partialorder %v12176_v3, %v12178_v30  ;;  %v16693_v3 = vld [vmem:[#allocation54_spill] sm:$0xff] }
0x41fe   :  { %v12180_v57 = vsel %vm12179_vm2, %v12175_v59, inf }
0x41ff   :  { %12181 = vmin.xlane.f32.xlu0 %v12180_v57 }
0x420d   :  { %v12357_v56 = vpop.xlane.xlu2 %12356 }
0x420e   :  { %13430 = vrcp.f32 %v12357_v56  ;;  %v12369_v53 = vand.u32 2147483648, %v12357_v56  ;;  %v12367_v45 = vand.u32 2147483647, %v12357_v56  ;;  %vm12363_vm4 = vweird.f32 %v12357_v56 }
0x4210   :  { %v12370_v52 = vor.u32 1.1754944e-38, %v12369_v53  ;;  %vm12368_vm15 = vcmp.eq.f32.partialorder %v12367_v45, 8.507059e+37 }
0x4214   :  { %v13431_v61 = vpop.eup %13430 }
0x4215   :  { %v12359_v13 = vmul.f32 %v13431_v61, %v12357_v56  ;;  %vm12364_vm3 = vweird.f32 %v13431_v61 }
0x4216   :  { %vm12365_vm7 = vmor %vm12363_vm4, %vm12364_vm3 }
0x4217   :  { %v12360_v1 = vsub.f32 1.0, %v12359_v13 }
0x4219   :  { %v12361_v31 = vmul.f32 %v13431_v61, %v12360_v1 }
0x421b   :  { %v12362_v0 = vadd.f32 %v13431_v61, %v12361_v31 }
0x421d   :  { %v12366_v2 = vsel %vm12365_vm7, %v13431_v61, %v12362_v0 }
0x421e   :  { %v12371_v58 = vsel %vm12368_vm15, %v12370_v52, %v12366_v2 }
0x421f   :  { %v12372_v43 = vmul.f32 %v13429_v6, %v12371_v58  ;;  %v16698_v6 = vld [vmem:[#allocation63_spill] sm:$0xff] }
0x4221   :  { %v12374_v33 = vsel %vm4003_vm6, %v12372_v43, 0 }
0x4222   :  { %v12394_v27 = vand.u32 4294901760, %v12374_v33 }
0x4224   :  { %12430 = vmatmul.f32.vlgmr.msra.gmra.mxu3 %v12394_v27  ;;  %v12395_v41 = vsub.f32 %v12374_v33, %v12394_v27 }
0x4225   :  { %12651 = vmatpush.msra.mxu3 %v14818_v16 }
0x4226   :  { %12456 = vmatmul.f32.vlgmr.msrb.gmra.mxu0 %v12395_v41  ;;  %v12396_v9 = vand.u32 4294901760, %v12395_v41 }
0x4227   :  { %12653 = vmatpush.msra.mxu3 %v14825_v8  ;;  %12680 = vmatpush.msrb.mxu0 %v14850_v54  ;;  %v16674_v54 = vmov 0.0  }
0x4228   :  { %12481 = vmatmul.f32.vlgmr.msrb.gmra.mxu1 %v12396_v9  ;;  %v12397_v25 = vsub.f32 %v12395_v41, %v12396_v9 }
0x4229   :  { %12655 = vmatpush.msra.mxu3 %v14836_v21  ;;  %12684 = vmatpush.msrb.mxu0 %v14859_v46 }
0x422a   :  { %12711 = vmatpush.msrb.mxu1 %v14818_v16  ;;  %v12398_v14 = vand.u32 4294901760, %v12397_v25  ;;  %v16673_v16 = vld [vmem:[#allocation35_spill] sm:$0xff] }
0x422b   :  { %12657 = vmatpush.msra.mxu3 %v14845_v15  ;;  %12688 = vmatpush.msrb.mxu0 %v14870_v32 }
0x422c   :  { %12713 = vmatpush.msrb.mxu1 %v14825_v8  ;;  %12399 = vmatmul.f32.vlgmr.msra.gmra.mxu2 %v12398_v14  ;;  %v12184_v8 = vcvt.f32.s32 %v12178_v30 }
0x422d   :  { %12531 = vmatmul.f32.vlgmr.msrb.gmra.mxu3 %v12394_v27  ;;  %12622 = vmatpush.msra.mxu2 %v14833_v24 }
0x422e   :  { %12692 = vmatpush.msrb.mxu0 %v14879_v17  ;;  %12715 = vmatpush.msrb.mxu1 %v14836_v21  ;;  %v12185_v21 = vshll.u32 %v12184_v8, 16  ;;  %v16675_v17 = vld [vmem:[#allocation33_spill] sm:$0xff] }
0x422f   :  { %12625 = vmatpush.msra.mxu2 %v14841_v20  ;;  %12769 = vmatpush.msrb.mxu3 %v16449_v55 }
0x4230   :  { %12717 = vmatpush.msrb.mxu1 %v14845_v15 }
0x4231   :  { %12628 = vmatpush.msra.mxu2 %v14854_v34  ;;  %12775 = vmatpush.msrb.mxu3 %v16450_v38 }
0x4233   :  { %12631 = vmatpush.msra.mxu2 %v14864_v19  ;;  %12781 = vmatpush.msrb.mxu3 %v16451_v28  ;;  %v16677_v28 = vld [vmem:[#allocation39_spill] sm:$0xff] }
0x4234   :  { %12508 = vmatmul.f32.vlgmr.msrb.gmra.mxu2 %v12394_v27 }
0x4235   :  { %12736 = vmatpush.msrb.mxu2 %v16452_v37  ;;  %12787 = vmatpush.msrb.mxu3 %v16476_v39  ;;  %v16678_v39 = vld [vmem:[#allocation30_spill] sm:$0xff] }
0x4237   :  { %12738 = vmatpush.msrb.mxu2 %v16643_v5 }
0x4239   :  { %12740 = vmatpush.msrb.mxu2 %v16644_v60 }
0x423b   :  { %12742 = vmatpush.msrb.mxu2 %v16673_v16 }
0x4272   :  { %v12182_v24 = vpop.xlane.xlu0 %12181 }
0x4273   :  { %v12183_v20 = vcvt.f32.s32 %v12182_v24 }
0x4275   :  { %v12186_v15 = vadd.s32 %v12185_v21, %v12183_v20 }
0x4277   :  { %vm12187_vm6 = vcmp.eq.s32.totalorder %v14918_v40, %v12186_v15  ;;  %v16676_v40 = vld [vmem:[#allocation37_spill] sm:$0xff] }
0x4278   :  { %v13219_v34 = vsel %vm12187_vm6, 1.0, %v16674_v54 }
0x4279   :  { %v12536_v46 = vsel %vm216_vm0, %v13219_v34, 0  ;;  %13220 = vmatmul.msk.f32.vlgmr.msra.gmra.mxu1 %vm216_vm0, %v13219_v34 }
0x427a   :  { %v12559_v19 = vsub.f32 %v12536_v46, %v12536_v46  ;;  %12836 = vmatpush.msra.mxu1 %v16452_v37 }
0x427c   :  { %12634 = vmatmul.f32.vlgmr.msra.gmra.mxu2 %v12559_v19  ;;  %v12560_v32 = vand.u32 4294901760, %v12559_v19  ;;  %12838 = vmatpush.msra.mxu1 %v16643_v5 }
0x427d   :  { %12865 = vmatpush.msra.mxu2 %v16675_v17 }
0x427e   :  { %12661 = vmatmul.f32.vlgmr.msra.gmra.mxu3 %v12560_v32  ;;  %v12561_v55 = vsub.f32 %v12559_v19, %v12560_v32  ;;  %12840 = vmatpush.msra.mxu1 %v16644_v60 }
0x427f   :  { %12869 = vmatpush.msra.mxu2 %v16676_v40  ;;  %12896 = vmatpush.msra.mxu3 %v16452_v37  ;;  %v16681_v37 = vld [vmem:[#allocation64_spill] sm:$0xff] }
0x4280   :  { %v12562_v38 = vand.u32 4294901760, %v12561_v55  ;;  %12842 = vmatpush.msra.mxu1 %v16673_v16 }
0x4281   :  { %13222 = vmatmul.msk.f32.vlgmr.msrb.gmra.mxu1 %vm216_vm0, %v13219_v34  ;;  %12873 = vmatpush.msra.mxu2 %v16677_v28 }
0x4282   :  { %12563 = vmatmul.f32.vlgmr.msra.gmra.mxu0 %v12562_v38  ;;  %12898 = vmatpush.msra.mxu3 %v16643_v5  ;;  %v16684_v5 = vld [vmem:[#allocation65_spill] sm:$0xff] }
0x4283   :  { %12807 = vmatpush.msra.mxu0 %v16678_v39  ;;  %12877 = vmatpush.msra.mxu2 %v16679_v23 }
0x4284   :  { %12748 = vmatmul.f32.vlgmr.msrb.gmra.mxu2 %v16116_v50  ;;  %12900 = vmatpush.msra.mxu3 %v16644_v60  ;;  %v16686_v50 = vld [vmem:[#allocation38_spill] sm:$0xff] }
0x4285   :  { %12810 = vmatpush.msra.mxu0 %v16680_v10  ;;  %12998 = vmatpush.msrb.mxu1 %v16681_v37  ;;  %v16687_v60 = vld [vmem:[#allocation66_spill] sm:$0xff] }
0x4286   :  { %12789 = vmatmul.f32.vlgmr.msrb.gmra.mxu3 %v16099_v26  ;;  %13036 = vmatpush.msrb.mxu2 %v16682_v4 }
0x4287   :  { %12902 = vmatpush.msra.mxu3 %v16673_v16  ;;  %12813 = vmatpush.msra.mxu0 %v16683_v63 }
0x4288   :  { %13004 = vmatpush.msrb.mxu1 %v16684_v5  ;;  %13039 = vmatpush.msrb.mxu2 %v16685_v7 }
0x4289   :  { %12846 = vmatmul.f32.vlgmr.msra.gmra.mxu1 %v16108_v12  ;;  %12816 = vmatpush.msra.mxu0 %v16686_v50  ;;  %v16692_v12 = vld [vmem:[#allocation59_spill] sm:$0xff] }
0x428a   :  { %13221 = vmatmul.msk.f32.vlgmr.msrb.gmra.mxu0 %vm216_vm0, %v13219_v34  ;;  %13010 = vmatpush.msrb.mxu1 %v16687_v60 }
0x428b   :  { %13065 = vmatpush.msrb.mxu3 %v16688_v51  ;;  %13042 = vmatpush.msrb.mxu2 %v16689_v47 }
0x428c   :  { %12879 = vmatmul.f32.vlgmr.msra.gmra.mxu2 %v16099_v26  ;;  %13016 = vmatpush.msrb.mxu1 %v16690_v11 }
0x428d   :  { %13067 = vmatpush.msrb.mxu3 %v16691_v48  ;;  %12965 = vmatpush.msrb.mxu0 %v16688_v51 }
0x428e   :  { %12904 = vmatmul.f32.vlgmr.msra.gmra.mxu3 %v16099_v26  ;;  %13045 = vmatpush.msrb.mxu2 %v16692_v12  ;;  %v16695_v26 = vld [vmem:[#allocation60_spill] sm:$0xff] }
0x428f   :  { %13069 = vmatpush.msrb.mxu3 %v16693_v3  ;;  %13125 = vmatpush.msra.mxu1 %v16688_v51 }
0x4290   :  { %12967 = vmatpush.msrb.mxu0 %v16691_v48 }
0x4291   :  { %13071 = vmatpush.msrb.mxu3 %v16694_v42  ;;  %13127 = vmatpush.msra.mxu1 %v16691_v48 }
0x4292   :  { %12819 = vmatmul.f32.vlgmr.msra.gmra.mxu0 %v16102_v36 }
0x4293   :  { %12969 = vmatpush.msrb.mxu0 %v16693_v3  ;;  %13129 = vmatpush.msra.mxu1 %v16693_v3 }
0x4295   :  { %12971 = vmatpush.msrb.mxu0 %v16694_v42  ;;  %13131 = vmatpush.msra.mxu1 %v16694_v42 }
0x4297   :  { %13094 = vmatpush.msra.mxu0 %v16695_v26 }
0x4299   :  { %13098 = vmatpush.msra.mxu0 %v16696_v62 }
0x429b   :  { %13102 = vmatpush.msra.mxu0 %v16697_v49 }
0x429d   :  { %13106 = vmatpush.msra.mxu0 %v16698_v6 }
0x42a3   :  { %v12457_v36 = vpop.f32.mrf.mxu0 }
0x42a5   :  { %v12482_v59 = vpop.f32.mrf.mxu1 }
0x42a7   :  { %v12431_v29 = vpop.f32.mrf.mxu3 }
0x42af   :  { %v12400_v22 = vpop.f32.mrf.mxu2 }
0x42b0   :  { %v12432_v30 = vadd.f32 %v12431_v29, %v12400_v22  ;;  %v12532_v61 = vpop.f32.mrf.mxu3 }
0x42b2   :  { %v12458_v57 = vadd.f32 %v12457_v36, %v12432_v30 }
0x42b4   :  { %v12483_v13 = vadd.f32 %v12482_v59, %v12458_v57 }
0x42b7   :  { %v12509_v56 = vpop.f32.mrf.mxu2 }
0x42b8   :  { %v12510_v1 = vadd.f32 %v12509_v56, %v12483_v13 }
0x42ba   :  { %v12533_v0 = vadd.f32 %v12532_v61, %v12510_v1 }
0x42f6   :  { %v12605_v53 = vpop.f32.mrf.mxu1 }
0x42fe   :  { %v12720_v43 = vpop.f32.mrf.mxu1 }
0x42ff   :  { %v12564_v31 = vpop.f32.mrf.mxu0  ;;  %v12635_v45 = vpop.f32.mrf.mxu2 }
0x4300   :  { %v12565_v2 = vadd.f32 %v12564_v31, %v12533_v0 }
0x4301   :  { %v12662_v52 = vpop.f32.mrf.mxu3 }
0x4302   :  { %v12606_v58 = vadd.f32 %v12605_v53, %v12565_v2 }
0x4304   :  { %v12636_v41 = vadd.f32 %v12635_v45, %v12606_v58 }
0x4306   :  { %v12663_v25 = vadd.f32 %v12662_v52, %v12636_v41  ;;  %v12847_v24 = vpop.f32.mrf.mxu1 }
0x4307   :  { %v12695_v33 = vpop.f32.mrf.mxu0  ;;  %v12749_v27 = vpop.f32.mrf.mxu2 }
0x4308   :  { %v12696_v21 = vadd.f32 %v12695_v33, %v12663_v25 }
0x4309   :  { %v12790_v9 = vpop.f32.mrf.mxu3 }
0x430a   :  { %v12791_v14 = vadd.f32 %v12790_v9, %v12749_v27  ;;  %v12721_v46 = vadd.f32 %v12720_v43, %v12696_v21 }
0x430f   :  { %v12820_v16 = vpop.f32.mrf.mxu0  ;;  %v12880_v15 = vpop.f32.mrf.mxu2 }
0x4310   :  { %v12821_v8 = vadd.f32 %v12820_v16, %v12791_v14 }
0x4311   :  { %v12905_v34 = vpop.f32.mrf.mxu3 }
0x4312   :  { %v12848_v20 = vadd.f32 %v12847_v24, %v12821_v8 }
0x4314   :  { %v12881_v54 = vadd.f32 %v12880_v15, %v12848_v20 }
0x4316   :  { %v12906_v19 = vadd.f32 %v12905_v34, %v12881_v54 }
0x4318   :  { %v12908_v32 = vadd.f32 %v12906_v19, %v12721_v46 }
0x431a   :  { %v12909_v17 = vadd.f32 %v16087_v35, %v12908_v32 }
0x431c   :  { %13432 = vtanh.f32 %v12909_v17  ;;  %v13223_v40 = vmul.f32 -1.442695, %v12909_v17 }
0x431e   :  { %13434 = vpow2.f32 %v13223_v40 }
0x4322   :  { %v13433_v55 = vpop.eup %13432 }
0x4323   :  { %12932 = vrot.lane.b32.xlu1 %v13433_v55, %s13729_s14 }
0x4324   :  { %v13435_v38 = vpop.eup %13434 }
0x4325   :  { %v12913_v28 = vadd.f32 1.0, %v13435_v38 }
0x4327   :  { %13436 = vrcp.f32 %v12913_v28  ;;  %v12925_v63 = vand.u32 2147483648, %v12913_v28  ;;  %vm12919_vm9 = vweird.f32 %v12913_v28  ;;  %v12923_v5 = vand.u32 2147483647, %v12913_v28 }
0x4329   :  { %v12926_v7 = vor.u32 1.1754944e-38, %v12925_v63  ;;  %vm12924_vm11 = vcmp.eq.f32.partialorder %v12923_v5, 8.507059e+37 }
0x432d   :  { %v13437_v39 = vpop.eup %13436 }
0x432e   :  { %v12915_v23 = vmul.f32 %v13437_v39, %v12913_v28  ;;  %vm12920_vm8 = vweird.f32 %v13437_v39 }
0x432f   :  { %vm12921_vm10 = vmor %vm12919_vm9, %vm12920_vm8 }
0x4330   :  { %v12916_v10 = vsub.f32 1.0, %v12915_v23 }
0x4332   :  { %v12917_v37 = vmul.f32 %v13437_v39, %v12916_v10 }
0x4334   :  { %v12918_v4 = vadd.f32 %v13437_v39, %v12917_v37 }
0x4336   :  { %v12922_v35 = vsel %vm12921_vm10, %v13437_v39, %v12918_v4 }
0x4337   :  { %v12927_v60 = vsel %vm12924_vm11, %v12926_v7, %v12922_v35 }
0x4338   :  { %v12930_v47 = vmul.f32 %v12927_v60, %v16093_v18 }
0x4395   :  { %v12933_v50 = vpop.permute.xlu1 %12932 }
0x4396   :  { %v12935_v51 = vmul.f32 %v12933_v50, %v12927_v60 }
0x4398   :  { %12937 = vrot.lane.b32.xlu2 %v12935_v51, %s13730_s15 }
0x43f2   :  { %v12938_v11 = vpop.permute.xlu2 %12937 }
0x43f3   :  { %v12940_v48 = vadd.f32 %v12938_v11, %v12930_v47 }
0x43f5   :  { %13438 = vtanh.f32 %v12940_v48 }
0x43fb   :  { %v13439_v12 = vpop.eup %13438 }
0x43fc   :  { %12943 = vrot.lane.b32.xlu0 %v13439_v12, %s13729_s14 }
0x446e   :  { %v12944_v3 = vpop.permute.xlu0 %12943 }
0x446f   :  { %v12946_v42 = vmul.f32 %v12944_v3, %v12927_v60 }
0x4471   :  { %12948 = vrot.lane.b32.xlu1 %v12946_v42, %s13730_s15 }
0x44e3   :  { %v12949_v26 = vpop.permute.xlu1 %12948 }
0x44e4   :  { %v12950_v62 = vsel %vm216_vm0, %v12949_v26, 0 }
0x44e5   :  { %v12972_v49 = vand.u32 4294901760, %v12950_v62 }
0x44e7   :  { %v12973_v6 = vsub.f32 %v12950_v62, %v12972_v49  ;;  %13018 = vmatmul.f32.vlgmr.msrb.gmra.mxu1 %v12972_v49 }
0x44e9   :  { %v12974_v22 = vand.u32 4294901760, %v12973_v6  ;;  %13048 = vmatmul.f32.vlgmr.msrb.gmra.mxu2 %v12973_v6 }
0x44eb   :  { %v12975_v29 = vsub.f32 %v12973_v6, %v12974_v22  ;;  %13075 = vmatmul.f32.vlgmr.msrb.gmra.mxu3 %v12974_v22 }
0x44ed   :  { %v12976_v18 = vand.u32 4294901760, %v12975_v29 }
0x44ef   :  { %12977 = vmatmul.f32.vlgmr.msrb.gmra.mxu0 %v12976_v18  ;;  %13133 = vmatmul.f32.vlgmr.msra.gmra.mxu1 %v12972_v49 }
0x44f7   :  { %13108 = vmatmul.f32.vlgmr.msra.gmra.mxu0 %v12972_v49 }
0x4564   :  { %v13019_v30 = vpop.f32.mrf.mxu1 }
0x456c   :  { %v12978_v36 = vpop.f32.mrf.mxu0  ;;  %v13049_v56 = vpop.f32.mrf.mxu2 }
0x456d   :  { %v12979_v59 = vadd.f32 %v16151_v44, %v12978_v36  ;;  %v13134_v45 = vpop.f32.mrf.mxu1 }
0x456e   :  { %v13076_v13 = vpop.f32.mrf.mxu3 }
0x456f   :  { %v13020_v57 = vadd.f32 %v13019_v30, %v12979_v59 }
0x4571   :  { %v13050_v61 = vadd.f32 %v13049_v56, %v13020_v57 }
0x4573   :  { %v13077_v1 = vadd.f32 %v13076_v13, %v13050_v61 }
0x4574   :  { %v13109_v53 = vpop.f32.mrf.mxu0 }
0x4575   :  { %v13110_v31 = vadd.f32 %v13109_v53, %v13077_v1 }
0x4577   :  { %v13135_v0 = vadd.f32 %v13134_v45, %v13110_v31 }
0x4579   :  { %13137 = vst.msk [vmem:[%s16264_s12 + $0x9] sm:$0x1] %vm1048_vm5, %v13135_v0 }
0x457a   :  { %13142 = vsyncpa [#allocation5], 1 }
0x457b   :  { %13143 = vsyncpa [#allocation9], 1 }
0x457c   :  { %13144 = vsyncpa [#allocation12], 1 }
0x457d   :  { %13145 = vsyncpa [#allocation15], 1 }
0x457e   :  { %13146 = vsyncpa [#allocation18], 1 }
0x457f   :  { %13147 = vsyncpa [#allocation21], 1 }
0x4580   :  { %13148 = vsyncpa [#allocation6], 1 }

</bundles_post_ra>
